<compile_context>
chip_gen: v5e
topology: v5e:2x2
jax: 0.10.0
libtpu: 0.0.40
codegen_flags: <defaults>
</compile_context>

<pallas_src>
import functools

import jax
import jax.numpy as jnp
from jax import lax
from jax.experimental import pallas as pl
from jax.experimental.pallas import tpu as pltpu

DIM = 32            # hidden size ("dim" in the torch script)
NUM_FEATURES = 8    # dataset.num_features (synthetic small value)
EDGE_DIM = 2        # edge_attr features (Linear(2, 64) in the edge network)
NN_HIDDEN = 64      # hidden width of the edge network
# Storage dtype for the per-edge weight matrices (the dominant tensor).  bf16 halves
# live VMEM; all math stays f32 (multiply upcasts per use).  Set to jnp.float32 for
# bit-faithful parity with the PyTorch reference.
W_EDGE_DTYPE = jnp.bfloat16


# ---------------------------------------------------------------------------
# Fully fused kernel: edge-net, lin0, 3x NNConv+GRU, Set2Set, lin1, lin2
# ---------------------------------------------------------------------------
def _net_fused_kernel(x_ref, ea_t_ref, g_t_ref, a_mat_ref, m_mat_ref,
                      lin0_w_ref, lin0_b_ref,
                      nn_w1t_ref, nn_b1t_ref, nn_w2t_ref, nn_b2t_ref,
                      root_w_ref, conv_b_ref,
                      gru_wx_ref, gru_wh_ref, gru_b_ref,
                      qrow_ref, lin1_wr_ref, lin1_bq_ref,
                      lin2_w_ref, lin2_b_ref,
                      o_ref):
    f32 = jnp.float32
    d = root_w_ref.shape[0]            # = DIM
    e = ea_t_ref.shape[1]              # number of edges

    # ---- edge network (loop-invariant, computed once, E on the lane axis) ----
    # hidden: eh_T[h, e] = relu(w1[0,h]*ea[e,0] + w1[1,h]*ea[e,1] + b1[h])
    # K=2 contraction done as two VPU rank-1 updates (avoids a 2-wide MXU pass).
    ea_t = ea_t_ref[...]                                               # [2, E]
    w1t = nn_w1t_ref[...]                                              # [64, 2]
    eh_t = jnp.maximum(
        w1t[:, 0:1] * ea_t[0:1, :] + w1t[:, 1:2] * ea_t[1:2, :]
        + nn_b1t_ref[...], 0.0)                                        # [64, E]
    # second layer: rows of nn_w2t are pre-permuted so row index = k*D + d_in,
    # hence the reshape below directly yields W[k, d_in, e] with no transpose.
    w_flat = (jnp.dot(nn_w2t_ref[...], eh_t, preferred_element_type=f32)
              + nn_b2t_ref[...])                                       # [D*D, E]
    # Dominant tensor: keep a single bf16 copy resident across the 3 iterations;
    # the multiply below upcasts per use (no persistent f32 duplicate in VMEM).
    w_kde = w_flat.reshape(d, d, e).astype(W_EDGE_DTYPE)               # [Dk, Dd, E]

    # ---- out = relu(lin0(x)); initial GRU hidden state h = out ----
    out = jnp.maximum(
        jnp.dot(x_ref[...], lin0_w_ref[...], preferred_element_type=f32)
        + lin0_b_ref[...], 0.0)                                        # [N, D]
    h = out

    # Loop-invariant operands: load once, keep resident.
    g_t = g_t_ref[...]                 # [N, E] one-hot(src) gather operator
    a_mat = a_mat_ref[...]             # [N, E] mean-aggregation operator (1/deg at tgt)
    root_w = root_w_ref[...]
    conv_b = conv_b_ref[...]
    gru_wx = gru_wx_ref[...]
    gru_wh = gru_wh_ref[...]
    gru_b = gru_b_ref[...]

    # 3 x ( NNConv(mean) + ReLU + fused-gate GRU ), unrolled, state stays on chip.
    for _ in range(3):
        # gather source-node features, lane-dense over E: x_srcT[d, e] = out[src[e], d]
        x_src_t = jnp.dot(out.T, g_t, preferred_element_type=f32)      # [D, E]
        # per-edge message: msg_t[k, e] = sum_d W_e[d, k] * x_src[e, d]
        # (bf16 operand upcasts in the multiply; reduction over the sublane axis)
        msg_t = jnp.sum(w_kde * x_src_t, axis=1)                       # [Dk, E] f32
        # mean aggregation at targets: agg[i, k] = sum_e A[i, e] * msg_t[k, e]
        agg = lax.dot_general(a_mat, msg_t, (((1,), (1,)), ((), ())),
                              preferred_element_type=f32)              # [N, D]
        conv = jnp.maximum(
            agg + jnp.dot(out, root_w, preferred_element_type=f32) + conv_b, 0.0)
        # fused-gate GRU: gates = [gr | gz | gin | ghn] in one 128-lane tensor
        gates = (jnp.dot(conv, gru_wx, preferred_element_type=f32)
                 + jnp.dot(h, gru_wh, preferred_element_type=f32) + gru_b)   # [N, 4D]
        r = jax.nn.sigmoid(gates[:, 0:d])
        z = jax.nn.sigmoid(gates[:, d:2 * d])
        n_gate = jnp.tanh(gates[:, 2 * d:3 * d] + r * gates[:, 3 * d:4 * d])
        h = (1.0 - z) * n_gate + z * h
        out = h

    # ---- Set2Set(dim, processing_steps=1) ---------------------------------
    # q is the bias-only LSTM output (identical for every graph), precomputed in
    # the wrapper (qrow).  Attention scores are therefore graph-independent.
    m_mat = m_mat_ref[...]                                             # [B, N]
    member = m_mat > 0.5
    scores = lax.dot_general(qrow_ref[...], out, (((1,), (1,)), ((), ())),
                             preferred_element_type=f32)               # [1, N]
    scores_b = jnp.broadcast_to(scores, m_mat.shape)                   # [B, N]
    e_masked = jnp.where(member, scores_b, jnp.full_like(m_mat, -1e30))
    g_max = jnp.max(e_masked, axis=1, keepdims=True)                   # [B, 1]
    # exp(e_masked - g_max): never overflows, even on non-member lanes
    p_bn = jnp.where(member, jnp.exp(e_masked - g_max), jnp.zeros_like(e_masked))
    den = jnp.maximum(jnp.sum(p_bn, axis=1, keepdims=True), 1e-30)     # empty-graph guard
    alpha = p_bn / den                                                 # [B, N]
    r_read = jnp.dot(alpha, out, preferred_element_type=f32)           # [B, D]

    # readout: lin2(relu(lin1([q || r]))); the q-part of lin1 is folded into lin1_bq
    y1 = jnp.maximum(
        jnp.dot(r_read, lin1_wr_ref[...], preferred_element_type=f32)
        + lin1_bq_ref[...], 0.0)                                       # [B, D]
    o_ref[...] = (jnp.sum(y1 * lin2_w_ref[...], axis=1, keepdims=True)
                  + lin2_b_ref[...])                                   # [B, 1]


# ---------------------------------------------------------------------------
# Parameters
# ---------------------------------------------------------------------------
def init_params(key):
    ks = iter(jax.random.split(key, 48))

    def u(shape, fan_in):
        s = 1.0 / (fan_in ** 0.5)
        return jax.random.uniform(next(ks), shape, jnp.float32, -s, s)

    p = {}
    p["lin0_w"] = u((NUM_FEATURES, DIM), NUM_FEATURES)
    p["lin0_b"] = u((1, DIM), NUM_FEATURES)
    # edge network nn = Seq(Linear(2,64), ReLU, Linear(64, dim*dim));
    # nn_w2 columns are indexed d_in*DIM + k_out (PyTorch NNConv .view(E, in, out)).
    p["nn_w1"] = u((EDGE_DIM, NN_HIDDEN), EDGE_DIM)
    p["nn_b1"] = u((1, NN_HIDDEN), EDGE_DIM)
    p["nn_w2"] = u((NN_HIDDEN, DIM * DIM), NN_HIDDEN)
    p["nn_b2"] = u((1, DIM * DIM), NN_HIDDEN)
    # NNConv root weight + bias
    p["conv_root_w"] = u((DIM, DIM), DIM)
    p["conv_b"] = u((1, DIM), DIM)

    # GRU(dim, dim): per-gate (r, z, n) weights fused so that
    #   gates = x @ gru_wx + h @ gru_wh + gru_b = [gr | gz | gin | ghn]  (128 lanes)
    wi = [u((DIM, DIM), DIM) for _ in range(3)]
    wh = [u((DIM, DIM), DIM) for _ in range(3)]
    bi = [u((1, DIM), DIM) for _ in range(3)]
    bh = [u((1, DIM), DIM) for _ in range(3)]
    zero = jnp.zeros((DIM, DIM), jnp.float32)
    p["gru_wx"] = jnp.concatenate([wi[0], wi[1], wi[2], zero], axis=1)     # [D, 4D]
    p["gru_wh"] = jnp.concatenate([wh[0], wh[1], zero, wh[2]], axis=1)     # [D, 4D]
    p["gru_b"] = jnp.concatenate([bi[0] + bh[0], bi[1] + bh[1], bi[2], bh[2]], axis=1)

    # Set2Set LSTM(2*dim, dim), gate order (i, f, g, o).  With processing_steps=1 the
    # weight matrices are provably unused (inputs/state are zero); only the fused bias
    # feeds the forward pass.  Weights kept for parity with the torch module.
    li = [u((2 * DIM, DIM), DIM) for _ in range(4)]
    lh = [u((DIM, DIM), DIM) for _ in range(4)]
    lbi = [u((1, DIM), DIM) for _ in range(4)]
    lbh = [u((1, DIM), DIM) for _ in range(4)]
    p["lstm_wx"] = jnp.concatenate(li, axis=1)                             # [2D, 4D] (unused)
    p["lstm_wh"] = jnp.concatenate(lh, axis=1)                             # [D, 4D]  (unused)
    p["lstm_b"] = jnp.concatenate([lbi[k] + lbh[k] for k in range(4)], axis=1)

    p["lin1_w"] = u((2 * DIM, DIM), 2 * DIM)
    p["lin1_b"] = u((1, DIM), 2 * DIM)
    p["lin2_w"] = u((1, DIM), DIM)        # row vector (lin2 has out_features == 1)
    p["lin2_b"] = u((1, 1), DIM)
    return p


def _vmem_limit_bytes(n_nodes, n_edges, n_graphs):
    """Rough upper bound of live VMEM inside the fused kernel (f32 unless noted)."""
    f32 = 4
    live = (
        f32 * n_edges * (2 * n_nodes + NN_HIDDEN + DIM * DIM + 2 * DIM)  # g_t, a_mat, eh_T, w_flat, msg
        + 2 * n_edges * DIM * DIM                                        # bf16 per-edge W (resident)
        + f32 * n_nodes * (NUM_FEATURES + 8 * DIM)                       # x, out/h/conv/gates
        + f32 * n_graphs * (2 * n_nodes + 4 * DIM)                       # membership + attention + readout
        + (4 << 20)                                                      # params + slack
    )
    return int(min(max(2 * live, 16 << 20), 64 << 20))


# ---------------------------------------------------------------------------
# Forward glue
# ---------------------------------------------------------------------------
@functools.partial(jax.jit, static_argnames=("num_graphs",))
def net_forward(p, x, edge_index, edge_attr, batch, num_graphs):
    n = x.shape[0]
    e = edge_index.shape[1]
    d = DIM
    src = edge_index[0]      # message source j  (flow: source -> target)
    tgt = edge_index[1]      # message target i

    # Dense one-hot gather / mean-aggregation / membership operators (exact, built once
    # in XLA, param/graph-sized).
    # TODO(synk): for large graphs replace these dense [N,E] operators (and the dense
    # gather/aggregation matmuls in the kernel) with a scalar-prefetched, edge-tiled
    # segment-sum kernel; also shard the edge set across the two v7x TensorCores.
    node_ids = jnp.arange(n, dtype=src.dtype)[:, None]
    g_t = (src[None, :] == node_ids).astype(jnp.float32)                   # [N, E]
    tgt_oh = (tgt[None, :] == node_ids).astype(jnp.float32)                # [N, E]
    deg = jnp.maximum(jnp.sum(tgt_oh, axis=1, keepdims=True), 1.0)
    a_mat = tgt_oh / deg                                                   # [N, E]
    m_mat = (batch[None, :] == jnp.arange(num_graphs, dtype=batch.dtype)[:, None]
             ).astype(jnp.float32)                                         # [B, N]
    ea_t = edge_attr.T                                                     # [2, E]

    # Edge-net params re-laid out (param-sized, once) so the in-kernel edge net emits
    # W directly in [k_out, d_in, E] layout with E on the lane axis (no relayout).
    nn_w1t = p["nn_w1"].T                                                  # [64, 2]
    nn_b1t = p["nn_b1"].T                                                  # [64, 1]
    w2_kd = (p["nn_w2"].reshape(NN_HIDDEN, DIM, DIM)
             .transpose(0, 2, 1).reshape(NN_HIDDEN, DIM * DIM))
    nn_w2t = w2_kd.T                                                       # [D*D, 64], row = k*D + d
    nn_b2t = p["nn_b2"].reshape(DIM, DIM).T.reshape(DIM * DIM, 1)          # [D*D, 1]

    # Set2Set(processing_steps=1): LSTM input q_star and state are zero, so its two
    # matmuls are dead; q depends only on the fused bias and is the same for every
    # graph.  Fold its lin1 contribution into the lin1 bias.
    lb = p["lstm_b"]
    i_g = jax.nn.sigmoid(lb[:, 0:d])
    g_g = jnp.tanh(lb[:, 2 * d:3 * d])
    o_g = jax.nn.sigmoid(lb[:, 3 * d:4 * d])
    q_row = o_g * jnp.tanh(i_g * g_g)                                      # [1, D]
    lin1_wr = p["lin1_w"][d:2 * d, :]                                      # [D, D]
    lin1_bq = q_row @ p["lin1_w"][0:d, :] + p["lin1_b"]                    # [1, D]

    y = pl.pallas_call(
        _net_fused_kernel,
        out_shape=jax.ShapeDtypeStruct((num_graphs, 1), jnp.float32),
        compiler_params=pltpu.CompilerParams(
            vmem_limit_bytes=_vmem_limit_bytes(n, e, num_graphs)),
    )(x, ea_t, g_t, a_mat, m_mat,
      p["lin0_w"], p["lin0_b"],
      nn_w1t, nn_b1t, nn_w2t, nn_b2t,
      p["conv_root_w"], p["conv_b"],
      p["gru_wx"], p["gru_wh"], p["gru_b"],
      q_row, lin1_wr, lin1_bq,
      p["lin2_w"], p["lin2_b"])
    return y.reshape(-1)


if __name__ == "__main__":
    key = jax.random.PRNGKey(0)
    kp, kx, ke = jax.random.split(key, 3)
    params = init_params(kp)

    num_graphs = 2
    nodes_per_graph = 6
    n = num_graphs * nodes_per_graph
    x = jax.random.normal(kx, (n, NUM_FEATURES), jnp.float32)
    batch = jnp.repeat(jnp.arange(num_graphs, dtype=jnp.int32), nodes_per_graph)

    # Bidirectional ring inside each graph
    src_list, tgt_list = [], []
    for g in range(num_graphs):
        off = g * nodes_per_graph
        for i in range(nodes_per_graph):
            a = off + i
            c = off + (i + 1) % nodes_per_graph
            src_list += [a, c]
            tgt_list += [c, a]
    edge_index = jnp.array([src_list, tgt_list], dtype=jnp.int32)
    edge_attr = jax.random.uniform(ke, (edge_index.shape[1], EDGE_DIM), jnp.float32)

    out = net_forward(params, x, edge_index, edge_attr, batch, num_graphs)
    out = jax.block_until_ready(out)
    assert out.shape == (num_graphs,)
    assert bool(jnp.all(jnp.isfinite(out)))
    print("KERNEL_OK")
</pallas_src>

<mosaic_0001>
module attributes {stable_mosaic.version = 11 : i64} {
  func.func @_net_fused_kernel(%arg0: memref<12x8xf32, #tpu.memory_space<vmem>>, %arg1: memref<2x24xf32, #tpu.memory_space<vmem>>, %arg2: memref<12x24xf32, #tpu.memory_space<vmem>>, %arg3: memref<12x24xf32, #tpu.memory_space<vmem>>, %arg4: memref<2x12xf32, #tpu.memory_space<vmem>>, %arg5: memref<8x32xf32, #tpu.memory_space<vmem>>, %arg6: memref<1x32xf32, #tpu.memory_space<vmem>>, %arg7: memref<64x2xf32, #tpu.memory_space<vmem>>, %arg8: memref<64x1xf32, #tpu.memory_space<vmem>>, %arg9: memref<1024x64xf32, #tpu.memory_space<vmem>>, %arg10: memref<1024x1xf32, #tpu.memory_space<vmem>>, %arg11: memref<32x32xf32, #tpu.memory_space<vmem>>, %arg12: memref<1x32xf32, #tpu.memory_space<vmem>>, %arg13: memref<32x128xf32, #tpu.memory_space<vmem>>, %arg14: memref<32x128xf32, #tpu.memory_space<vmem>>, %arg15: memref<1x128xf32, #tpu.memory_space<vmem>>, %arg16: memref<1x32xf32, #tpu.memory_space<vmem>>, %arg17: memref<32x32xf32, #tpu.memory_space<vmem>>, %arg18: memref<1x32xf32, #tpu.memory_space<vmem>>, %arg19: memref<1x32xf32, #tpu.memory_space<vmem>>, %arg20: memref<1x1xf32, #tpu.memory_space<vmem>>, %arg21: memref<2x1xf32, #tpu.memory_space<vmem>>) attributes {dimension_semantics = [], scalar_prefetch = 0 : i64, scratch_operands = 0 : i64, tpu.core_type = #tpu.core_type<tc>} {
    %c0 = arith.constant 0 : index
    %c0_0 = arith.constant 0 : index
    %0 = vector.load %arg1[%c0, %c0_0] : memref<2x24xf32, #tpu.memory_space<vmem>>, vector<2x24xf32>
    %c0_1 = arith.constant 0 : index
    %c0_2 = arith.constant 0 : index
    %1 = vector.load %arg7[%c0_1, %c0_2] : memref<64x2xf32, #tpu.memory_space<vmem>>, vector<64x2xf32>
    %2 = vector.extract_strided_slice %1 {offsets = [0, 0], sizes = [64, 1], strides = [1, 1]} : vector<64x2xf32> to vector<64x1xf32>
    %3 = vector.extract_strided_slice %0 {offsets = [0, 0], sizes = [1, 24], strides = [1, 1]} : vector<2x24xf32> to vector<1x24xf32>
    %4 = vector.broadcast %2 : vector<64x1xf32> to vector<64x24xf32>
    %5 = vector.broadcast %3 : vector<1x24xf32> to vector<64x24xf32>
    %6 = arith.mulf %4, %5 : vector<64x24xf32>
    %7 = vector.extract_strided_slice %1 {offsets = [0, 1], sizes = [64, 1], strides = [1, 1]} : vector<64x2xf32> to vector<64x1xf32>
    %8 = vector.extract_strided_slice %0 {offsets = [1, 0], sizes = [1, 24], strides = [1, 1]} : vector<2x24xf32> to vector<1x24xf32>
    %9 = vector.broadcast %7 : vector<64x1xf32> to vector<64x24xf32>
    %10 = vector.broadcast %8 : vector<1x24xf32> to vector<64x24xf32>
    %11 = arith.mulf %9, %10 : vector<64x24xf32>
    %12 = arith.addf %6, %11 : vector<64x24xf32>
    %c0_3 = arith.constant 0 : index
    %c0_4 = arith.constant 0 : index
    %13 = vector.load %arg8[%c0_3, %c0_4] : memref<64x1xf32, #tpu.memory_space<vmem>>, vector<64x1xf32>
    %14 = vector.broadcast %13 : vector<64x1xf32> to vector<64x24xf32>
    %15 = arith.addf %12, %14 : vector<64x24xf32>
    %cst = arith.constant 0.000000e+00 : f32
    %16 = vector.broadcast %cst : f32 to vector<64x24xf32>
    %17 = arith.maximumf %15, %16 : vector<64x24xf32>
    %c0_5 = arith.constant 0 : index
    %c0_6 = arith.constant 0 : index
    %18 = vector.load %arg9[%c0_5, %c0_6] : memref<1024x64xf32, #tpu.memory_space<vmem>>, vector<1024x64xf32>
    %cst_7 = arith.constant dense<0.000000e+00> : vector<1024x24xf32>
    %19 = tpu.matmul %18, %17, %cst_7 {dimension_numbers = #tpu.dot_dimension_numbers<[1], [0], [0], [1], [0, 0, 1, 1], [], []>} : vector<1024x64xf32>, vector<64x24xf32>, vector<1024x24xf32> -> vector<1024x24xf32>
    %c0_8 = arith.constant 0 : index
    %c0_9 = arith.constant 0 : index
    %20 = vector.load %arg10[%c0_8, %c0_9] : memref<1024x1xf32, #tpu.memory_space<vmem>>, vector<1024x1xf32>
    %21 = vector.broadcast %20 : vector<1024x1xf32> to vector<1024x24xf32>
    %22 = arith.addf %19, %21 : vector<1024x24xf32>
    %23 = vector.shape_cast %22 : vector<1024x24xf32> to vector<32x32x24xf32>
    %24 = arith.truncf %23 : vector<32x32x24xf32> to vector<32x32x24xbf16>
    %c0_10 = arith.constant 0 : index
    %c0_11 = arith.constant 0 : index
    %25 = vector.load %arg0[%c0_10, %c0_11] : memref<12x8xf32, #tpu.memory_space<vmem>>, vector<12x8xf32>
    %c0_12 = arith.constant 0 : index
    %c0_13 = arith.constant 0 : index
    %26 = vector.load %arg5[%c0_12, %c0_13] : memref<8x32xf32, #tpu.memory_space<vmem>>, vector<8x32xf32>
    %cst_14 = arith.constant dense<0.000000e+00> : vector<12x32xf32>
    %27 = tpu.matmul %25, %26, %cst_14 {dimension_numbers = #tpu.dot_dimension_numbers<[1], [0], [0], [1], [0, 0, 1, 1], [], []>} : vector<12x8xf32>, vector<8x32xf32>, vector<12x32xf32> -> vector<12x32xf32>
    %c0_15 = arith.constant 0 : index
    %c0_16 = arith.constant 0 : index
    %28 = vector.load %arg6[%c0_15, %c0_16] : memref<1x32xf32, #tpu.memory_space<vmem>>, vector<1x32xf32>
    %29 = vector.broadcast %28 : vector<1x32xf32> to vector<12x32xf32>
    %30 = arith.addf %27, %29 : vector<12x32xf32>
    %cst_17 = arith.constant 0.000000e+00 : f32
    %31 = vector.broadcast %cst_17 : f32 to vector<12x32xf32>
    %32 = arith.maximumf %30, %31 : vector<12x32xf32>
    %c0_18 = arith.constant 0 : index
    %c0_19 = arith.constant 0 : index
    %33 = vector.load %arg2[%c0_18, %c0_19] : memref<12x24xf32, #tpu.memory_space<vmem>>, vector<12x24xf32>
    %c0_20 = arith.constant 0 : index
    %c0_21 = arith.constant 0 : index
    %34 = vector.load %arg3[%c0_20, %c0_21] : memref<12x24xf32, #tpu.memory_space<vmem>>, vector<12x24xf32>
    %c0_22 = arith.constant 0 : index
    %c0_23 = arith.constant 0 : index
    %35 = vector.load %arg11[%c0_22, %c0_23] : memref<32x32xf32, #tpu.memory_space<vmem>>, vector<32x32xf32>
    %c0_24 = arith.constant 0 : index
    %c0_25 = arith.constant 0 : index
    %36 = vector.load %arg12[%c0_24, %c0_25] : memref<1x32xf32, #tpu.memory_space<vmem>>, vector<1x32xf32>
    %c0_26 = arith.constant 0 : index
    %c0_27 = arith.constant 0 : index
    %37 = vector.load %arg13[%c0_26, %c0_27] : memref<32x128xf32, #tpu.memory_space<vmem>>, vector<32x128xf32>
    %c0_28 = arith.constant 0 : index
    %c0_29 = arith.constant 0 : index
    %38 = vector.load %arg14[%c0_28, %c0_29] : memref<32x128xf32, #tpu.memory_space<vmem>>, vector<32x128xf32>
    %c0_30 = arith.constant 0 : index
    %c0_31 = arith.constant 0 : index
    %39 = vector.load %arg15[%c0_30, %c0_31] : memref<1x128xf32, #tpu.memory_space<vmem>>, vector<1x128xf32>
    %40 = tpu.transpose %32, [1, 0] : vector<12x32xf32> -> vector<32x12xf32>
    %cst_32 = arith.constant dense<0.000000e+00> : vector<32x24xf32>
    %41 = tpu.matmul %40, %33, %cst_32 {dimension_numbers = #tpu.dot_dimension_numbers<[1], [0], [0], [1], [0, 0, 1, 1], [], []>} : vector<32x12xf32>, vector<12x24xf32>, vector<32x24xf32> -> vector<32x24xf32>
    %42 = arith.extf %24 : vector<32x32x24xbf16> to vector<32x32x24xf32>
    %43 = vector.shape_cast %41 : vector<32x24xf32> to vector<1x32x24xf32>
    %44 = vector.broadcast %43 : vector<1x32x24xf32> to vector<32x32x24xf32>
    %45 = arith.mulf %42, %44 : vector<32x32x24xf32>
    %cst_33 = arith.constant dense<0.000000e+00> : vector<32x24xf32>
    %46 = vector.multi_reduction <add>, %45, %cst_33 [1] : vector<32x32x24xf32> to vector<32x24xf32>
    %cst_34 = arith.constant dense<0.000000e+00> : vector<12x32xf32>
    %47 = tpu.matmul %34, %46, %cst_34 {dimension_numbers = #tpu.dot_dimension_numbers<[1], [1], [0], [0], [0, 0, 1, 0], [], []>} : vector<12x24xf32>, vector<32x24xf32>, vector<12x32xf32> -> vector<12x32xf32>
    %cst_35 = arith.constant dense<0.000000e+00> : vector<12x32xf32>
    %48 = tpu.matmul %32, %35, %cst_35 {dimension_numbers = #tpu.dot_dimension_numbers<[1], [0], [0], [1], [0, 0, 1, 1], [], []>} : vector<12x32xf32>, vector<32x32xf32>, vector<12x32xf32> -> vector<12x32xf32>
    %49 = arith.addf %47, %48 : vector<12x32xf32>
    %50 = vector.broadcast %36 : vector<1x32xf32> to vector<12x32xf32>
    %51 = arith.addf %49, %50 : vector<12x32xf32>
    %cst_36 = arith.constant 0.000000e+00 : f32
    %52 = vector.broadcast %cst_36 : f32 to vector<12x32xf32>
    %53 = arith.maximumf %51, %52 : vector<12x32xf32>
    %cst_37 = arith.constant dense<0.000000e+00> : vector<12x128xf32>
    %54 = tpu.matmul %53, %37, %cst_37 {dimension_numbers = #tpu.dot_dimension_numbers<[1], [0], [0], [1], [0, 0, 1, 1], [], []>} : vector<12x32xf32>, vector<32x128xf32>, vector<12x128xf32> -> vector<12x128xf32>
    %cst_38 = arith.constant dense<0.000000e+00> : vector<12x128xf32>
    %55 = tpu.matmul %32, %38, %cst_38 {dimension_numbers = #tpu.dot_dimension_numbers<[1], [0], [0], [1], [0, 0, 1, 1], [], []>} : vector<12x32xf32>, vector<32x128xf32>, vector<12x128xf32> -> vector<12x128xf32>
    %56 = arith.addf %54, %55 : vector<12x128xf32>
    %57 = vector.broadcast %39 : vector<1x128xf32> to vector<12x128xf32>
    %58 = arith.addf %56, %57 : vector<12x128xf32>
    %59 = vector.extract_strided_slice %58 {offsets = [0, 0], sizes = [12, 32], strides = [1, 1]} : vector<12x128xf32> to vector<12x32xf32>
    %60 = arith.negf %59 : vector<12x32xf32>
    %61 = math.exp %60 : vector<12x32xf32>
    %cst_39 = arith.constant 1.000000e+00 : f32
    %62 = vector.broadcast %cst_39 : f32 to vector<12x32xf32>
    %63 = arith.addf %62, %61 : vector<12x32xf32>
    %64 = arith.divf %62, %63 : vector<12x32xf32>
    %65 = vector.extract_strided_slice %58 {offsets = [0, 32], sizes = [12, 32], strides = [1, 1]} : vector<12x128xf32> to vector<12x32xf32>
    %66 = arith.negf %65 : vector<12x32xf32>
    %67 = math.exp %66 : vector<12x32xf32>
    %cst_40 = arith.constant 1.000000e+00 : f32
    %68 = vector.broadcast %cst_40 : f32 to vector<12x32xf32>
    %69 = arith.addf %68, %67 : vector<12x32xf32>
    %70 = arith.divf %68, %69 : vector<12x32xf32>
    %71 = vector.extract_strided_slice %58 {offsets = [0, 64], sizes = [12, 32], strides = [1, 1]} : vector<12x128xf32> to vector<12x32xf32>
    %72 = vector.extract_strided_slice %58 {offsets = [0, 96], sizes = [12, 32], strides = [1, 1]} : vector<12x128xf32> to vector<12x32xf32>
    %73 = arith.mulf %64, %72 : vector<12x32xf32>
    %74 = arith.addf %71, %73 : vector<12x32xf32>
    %75 = math.tanh %74 : vector<12x32xf32>
    %cst_41 = arith.constant 1.000000e+00 : f32
    %76 = vector.broadcast %cst_41 : f32 to vector<12x32xf32>
    %77 = arith.subf %76, %70 : vector<12x32xf32>
    %78 = arith.mulf %77, %75 : vector<12x32xf32>
    %79 = arith.mulf %70, %32 : vector<12x32xf32>
    %80 = arith.addf %78, %79 : vector<12x32xf32>
    %81 = tpu.transpose %80, [1, 0] : vector<12x32xf32> -> vector<32x12xf32>
    %cst_42 = arith.constant dense<0.000000e+00> : vector<32x24xf32>
    %82 = tpu.matmul %81, %33, %cst_42 {dimension_numbers = #tpu.dot_dimension_numbers<[1], [0], [0], [1], [0, 0, 1, 1], [], []>} : vector<32x12xf32>, vector<12x24xf32>, vector<32x24xf32> -> vector<32x24xf32>
    %83 = arith.extf %24 : vector<32x32x24xbf16> to vector<32x32x24xf32>
    %84 = vector.shape_cast %82 : vector<32x24xf32> to vector<1x32x24xf32>
    %85 = vector.broadcast %84 : vector<1x32x24xf32> to vector<32x32x24xf32>
    %86 = arith.mulf %83, %85 : vector<32x32x24xf32>
    %cst_43 = arith.constant dense<0.000000e+00> : vector<32x24xf32>
    %87 = vector.multi_reduction <add>, %86, %cst_43 [1] : vector<32x32x24xf32> to vector<32x24xf32>
    %cst_44 = arith.constant dense<0.000000e+00> : vector<12x32xf32>
    %88 = tpu.matmul %34, %87, %cst_44 {dimension_numbers = #tpu.dot_dimension_numbers<[1], [1], [0], [0], [0, 0, 1, 0], [], []>} : vector<12x24xf32>, vector<32x24xf32>, vector<12x32xf32> -> vector<12x32xf32>
    %cst_45 = arith.constant dense<0.000000e+00> : vector<12x32xf32>
    %89 = tpu.matmul %80, %35, %cst_45 {dimension_numbers = #tpu.dot_dimension_numbers<[1], [0], [0], [1], [0, 0, 1, 1], [], []>} : vector<12x32xf32>, vector<32x32xf32>, vector<12x32xf32> -> vector<12x32xf32>
    %90 = arith.addf %88, %89 : vector<12x32xf32>
    %91 = vector.broadcast %36 : vector<1x32xf32> to vector<12x32xf32>
    %92 = arith.addf %90, %91 : vector<12x32xf32>
    %cst_46 = arith.constant 0.000000e+00 : f32
    %93 = vector.broadcast %cst_46 : f32 to vector<12x32xf32>
    %94 = arith.maximumf %92, %93 : vector<12x32xf32>
    %cst_47 = arith.constant dense<0.000000e+00> : vector<12x128xf32>
    %95 = tpu.matmul %94, %37, %cst_47 {dimension_numbers = #tpu.dot_dimension_numbers<[1], [0], [0], [1], [0, 0, 1, 1], [], []>} : vector<12x32xf32>, vector<32x128xf32>, vector<12x128xf32> -> vector<12x128xf32>
    %cst_48 = arith.constant dense<0.000000e+00> : vector<12x128xf32>
    %96 = tpu.matmul %80, %38, %cst_48 {dimension_numbers = #tpu.dot_dimension_numbers<[1], [0], [0], [1], [0, 0, 1, 1], [], []>} : vector<12x32xf32>, vector<32x128xf32>, vector<12x128xf32> -> vector<12x128xf32>
    %97 = arith.addf %95, %96 : vector<12x128xf32>
    %98 = vector.broadcast %39 : vector<1x128xf32> to vector<12x128xf32>
    %99 = arith.addf %97, %98 : vector<12x128xf32>
    %100 = vector.extract_strided_slice %99 {offsets = [0, 0], sizes = [12, 32], strides = [1, 1]} : vector<12x128xf32> to vector<12x32xf32>
    %101 = arith.negf %100 : vector<12x32xf32>
    %102 = math.exp %101 : vector<12x32xf32>
    %cst_49 = arith.constant 1.000000e+00 : f32
    %103 = vector.broadcast %cst_49 : f32 to vector<12x32xf32>
    %104 = arith.addf %103, %102 : vector<12x32xf32>
    %105 = arith.divf %103, %104 : vector<12x32xf32>
    %106 = vector.extract_strided_slice %99 {offsets = [0, 32], sizes = [12, 32], strides = [1, 1]} : vector<12x128xf32> to vector<12x32xf32>
    %107 = arith.negf %106 : vector<12x32xf32>
    %108 = math.exp %107 : vector<12x32xf32>
    %cst_50 = arith.constant 1.000000e+00 : f32
    %109 = vector.broadcast %cst_50 : f32 to vector<12x32xf32>
    %110 = arith.addf %109, %108 : vector<12x32xf32>
    %111 = arith.divf %109, %110 : vector<12x32xf32>
    %112 = vector.extract_strided_slice %99 {offsets = [0, 64], sizes = [12, 32], strides = [1, 1]} : vector<12x128xf32> to vector<12x32xf32>
    %113 = vector.extract_strided_slice %99 {offsets = [0, 96], sizes = [12, 32], strides = [1, 1]} : vector<12x128xf32> to vector<12x32xf32>
    %114 = arith.mulf %105, %113 : vector<12x32xf32>
    %115 = arith.addf %112, %114 : vector<12x32xf32>
    %116 = math.tanh %115 : vector<12x32xf32>
    %cst_51 = arith.constant 1.000000e+00 : f32
    %117 = vector.broadcast %cst_51 : f32 to vector<12x32xf32>
    %118 = arith.subf %117, %111 : vector<12x32xf32>
    %119 = arith.mulf %118, %116 : vector<12x32xf32>
    %120 = arith.mulf %111, %80 : vector<12x32xf32>
    %121 = arith.addf %119, %120 : vector<12x32xf32>
    %122 = tpu.transpose %121, [1, 0] : vector<12x32xf32> -> vector<32x12xf32>
    %cst_52 = arith.constant dense<0.000000e+00> : vector<32x24xf32>
    %123 = tpu.matmul %122, %33, %cst_52 {dimension_numbers = #tpu.dot_dimension_numbers<[1], [0], [0], [1], [0, 0, 1, 1], [], []>} : vector<32x12xf32>, vector<12x24xf32>, vector<32x24xf32> -> vector<32x24xf32>
    %124 = arith.extf %24 : vector<32x32x24xbf16> to vector<32x32x24xf32>
    %125 = vector.shape_cast %123 : vector<32x24xf32> to vector<1x32x24xf32>
    %126 = vector.broadcast %125 : vector<1x32x24xf32> to vector<32x32x24xf32>
    %127 = arith.mulf %124, %126 : vector<32x32x24xf32>
    %cst_53 = arith.constant dense<0.000000e+00> : vector<32x24xf32>
    %128 = vector.multi_reduction <add>, %127, %cst_53 [1] : vector<32x32x24xf32> to vector<32x24xf32>
    %cst_54 = arith.constant dense<0.000000e+00> : vector<12x32xf32>
    %129 = tpu.matmul %34, %128, %cst_54 {dimension_numbers = #tpu.dot_dimension_numbers<[1], [1], [0], [0], [0, 0, 1, 0], [], []>} : vector<12x24xf32>, vector<32x24xf32>, vector<12x32xf32> -> vector<12x32xf32>
    %cst_55 = arith.constant dense<0.000000e+00> : vector<12x32xf32>
    %130 = tpu.matmul %121, %35, %cst_55 {dimension_numbers = #tpu.dot_dimension_numbers<[1], [0], [0], [1], [0, 0, 1, 1], [], []>} : vector<12x32xf32>, vector<32x32xf32>, vector<12x32xf32> -> vector<12x32xf32>
    %131 = arith.addf %129, %130 : vector<12x32xf32>
    %132 = vector.broadcast %36 : vector<1x32xf32> to vector<12x32xf32>
    %133 = arith.addf %131, %132 : vector<12x32xf32>
    %cst_56 = arith.constant 0.000000e+00 : f32
    %134 = vector.broadcast %cst_56 : f32 to vector<12x32xf32>
    %135 = arith.maximumf %133, %134 : vector<12x32xf32>
    %cst_57 = arith.constant dense<0.000000e+00> : vector<12x128xf32>
    %136 = tpu.matmul %135, %37, %cst_57 {dimension_numbers = #tpu.dot_dimension_numbers<[1], [0], [0], [1], [0, 0, 1, 1], [], []>} : vector<12x32xf32>, vector<32x128xf32>, vector<12x128xf32> -> vector<12x128xf32>
    %cst_58 = arith.constant dense<0.000000e+00> : vector<12x128xf32>
    %137 = tpu.matmul %121, %38, %cst_58 {dimension_numbers = #tpu.dot_dimension_numbers<[1], [0], [0], [1], [0, 0, 1, 1], [], []>} : vector<12x32xf32>, vector<32x128xf32>, vector<12x128xf32> -> vector<12x128xf32>
    %138 = arith.addf %136, %137 : vector<12x128xf32>
    %139 = vector.broadcast %39 : vector<1x128xf32> to vector<12x128xf32>
    %140 = arith.addf %138, %139 : vector<12x128xf32>
    %141 = vector.extract_strided_slice %140 {offsets = [0, 0], sizes = [12, 32], strides = [1, 1]} : vector<12x128xf32> to vector<12x32xf32>
    %142 = arith.negf %141 : vector<12x32xf32>
    %143 = math.exp %142 : vector<12x32xf32>
    %cst_59 = arith.constant 1.000000e+00 : f32
    %144 = vector.broadcast %cst_59 : f32 to vector<12x32xf32>
    %145 = arith.addf %144, %143 : vector<12x32xf32>
    %146 = arith.divf %144, %145 : vector<12x32xf32>
    %147 = vector.extract_strided_slice %140 {offsets = [0, 32], sizes = [12, 32], strides = [1, 1]} : vector<12x128xf32> to vector<12x32xf32>
    %148 = arith.negf %147 : vector<12x32xf32>
    %149 = math.exp %148 : vector<12x32xf32>
    %cst_60 = arith.constant 1.000000e+00 : f32
    %150 = vector.broadcast %cst_60 : f32 to vector<12x32xf32>
    %151 = arith.addf %150, %149 : vector<12x32xf32>
    %152 = arith.divf %150, %151 : vector<12x32xf32>
    %153 = vector.extract_strided_slice %140 {offsets = [0, 64], sizes = [12, 32], strides = [1, 1]} : vector<12x128xf32> to vector<12x32xf32>
    %154 = vector.extract_strided_slice %140 {offsets = [0, 96], sizes = [12, 32], strides = [1, 1]} : vector<12x128xf32> to vector<12x32xf32>
    %155 = arith.mulf %146, %154 : vector<12x32xf32>
    %156 = arith.addf %153, %155 : vector<12x32xf32>
    %157 = math.tanh %156 : vector<12x32xf32>
    %cst_61 = arith.constant 1.000000e+00 : f32
    %158 = vector.broadcast %cst_61 : f32 to vector<12x32xf32>
    %159 = arith.subf %158, %152 : vector<12x32xf32>
    %160 = arith.mulf %159, %157 : vector<12x32xf32>
    %161 = arith.mulf %152, %121 : vector<12x32xf32>
    %162 = arith.addf %160, %161 : vector<12x32xf32>
    %c0_62 = arith.constant 0 : index
    %c0_63 = arith.constant 0 : index
    %163 = vector.load %arg4[%c0_62, %c0_63] : memref<2x12xf32, #tpu.memory_space<vmem>>, vector<2x12xf32>
    %cst_64 = arith.constant 5.000000e-01 : f32
    %164 = vector.broadcast %cst_64 : f32 to vector<2x12xf32>
    %165 = arith.cmpf ogt, %163, %164 : vector<2x12xf32>
    %c0_65 = arith.constant 0 : index
    %c0_66 = arith.constant 0 : index
    %166 = vector.load %arg16[%c0_65, %c0_66] : memref<1x32xf32, #tpu.memory_space<vmem>>, vector<1x32xf32>
    %cst_67 = arith.constant dense<0.000000e+00> : vector<1x12xf32>
    %167 = tpu.matmul %166, %162, %cst_67 {dimension_numbers = #tpu.dot_dimension_numbers<[1], [1], [0], [0], [0, 0, 1, 0], [], []>} : vector<1x32xf32>, vector<12x32xf32>, vector<1x12xf32> -> vector<1x12xf32>
    %168 = vector.shape_cast %167 : vector<1x12xf32> to vector<1x12xf32>
    %169 = vector.broadcast %168 : vector<1x12xf32> to vector<2x12xf32>
    %cst_68 = arith.constant -1.000000e+30 : f32
    %170 = vector.broadcast %cst_68 : f32 to vector<2x12xf32>
    %171 = arith.select %165, %169, %170 : vector<2x12xi1>, vector<2x12xf32>
    %cst_69 = arith.constant dense<0xFF800000> : vector<2xf32>
    %172 = vector.multi_reduction <maximumf>, %171, %cst_69 [1] : vector<2x12xf32> to vector<2xf32>
    %173 = vector.shape_cast %172 : vector<2xf32> to vector<2x1xf32>
    %174 = vector.broadcast %173 : vector<2x1xf32> to vector<2x12xf32>
    %175 = arith.subf %171, %174 : vector<2x12xf32>
    %176 = math.exp %175 : vector<2x12xf32>
    %cst_70 = arith.constant 0.000000e+00 : f32
    %177 = vector.broadcast %cst_70 : f32 to vector<2x12xf32>
    %178 = arith.select %165, %176, %177 : vector<2x12xi1>, vector<2x12xf32>
    %cst_71 = arith.constant dense<0.000000e+00> : vector<2xf32>
    %179 = vector.multi_reduction <add>, %178, %cst_71 [1] : vector<2x12xf32> to vector<2xf32>
    %180 = vector.shape_cast %179 : vector<2xf32> to vector<2x1xf32>
    %cst_72 = arith.constant 1.000000e-30 : f32
    %181 = vector.broadcast %cst_72 : f32 to vector<2x1xf32>
    %182 = arith.maximumf %180, %181 : vector<2x1xf32>
    %183 = vector.broadcast %182 : vector<2x1xf32> to vector<2x12xf32>
    %184 = arith.divf %178, %183 : vector<2x12xf32>
    %cst_73 = arith.constant dense<0.000000e+00> : vector<2x32xf32>
    %185 = tpu.matmul %184, %162, %cst_73 {dimension_numbers = #tpu.dot_dimension_numbers<[1], [0], [0], [1], [0, 0, 1, 1], [], []>} : vector<2x12xf32>, vector<12x32xf32>, vector<2x32xf32> -> vector<2x32xf32>
    %c0_74 = arith.constant 0 : index
    %c0_75 = arith.constant 0 : index
    %186 = vector.load %arg17[%c0_74, %c0_75] : memref<32x32xf32, #tpu.memory_space<vmem>>, vector<32x32xf32>
    %cst_76 = arith.constant dense<0.000000e+00> : vector<2x32xf32>
    %187 = tpu.matmul %185, %186, %cst_76 {dimension_numbers = #tpu.dot_dimension_numbers<[1], [0], [0], [1], [0, 0, 1, 1], [], []>} : vector<2x32xf32>, vector<32x32xf32>, vector<2x32xf32> -> vector<2x32xf32>
    %c0_77 = arith.constant 0 : index
    %c0_78 = arith.constant 0 : index
    %188 = vector.load %arg18[%c0_77, %c0_78] : memref<1x32xf32, #tpu.memory_space<vmem>>, vector<1x32xf32>
    %189 = vector.broadcast %188 : vector<1x32xf32> to vector<2x32xf32>
    %190 = arith.addf %187, %189 : vector<2x32xf32>
    %cst_79 = arith.constant 0.000000e+00 : f32
    %191 = vector.broadcast %cst_79 : f32 to vector<2x32xf32>
    %192 = arith.maximumf %190, %191 : vector<2x32xf32>
    %c0_80 = arith.constant 0 : index
    %c0_81 = arith.constant 0 : index
    %193 = vector.load %arg19[%c0_80, %c0_81] : memref<1x32xf32, #tpu.memory_space<vmem>>, vector<1x32xf32>
    %194 = vector.broadcast %193 : vector<1x32xf32> to vector<2x32xf32>
    %195 = arith.mulf %192, %194 : vector<2x32xf32>
    %cst_82 = arith.constant dense<0.000000e+00> : vector<2xf32>
    %196 = vector.multi_reduction <add>, %195, %cst_82 [1] : vector<2x32xf32> to vector<2xf32>
    %197 = vector.shape_cast %196 : vector<2xf32> to vector<2x1xf32>
    %c0_83 = arith.constant 0 : index
    %c0_84 = arith.constant 0 : index
    %198 = vector.load %arg20[%c0_83, %c0_84] : memref<1x1xf32, #tpu.memory_space<vmem>>, vector<1x1xf32>
    %199 = vector.broadcast %198 : vector<1x1xf32> to vector<2x1xf32>
    %200 = arith.addf %197, %199 : vector<2x1xf32>
    %c0_85 = arith.constant 0 : index
    %c0_86 = arith.constant 0 : index
    %201 = vector.load %arg21[%c0_85, %c0_86] : memref<2x1xf32, #tpu.memory_space<vmem>>, vector<2x1xf32>
    tpu.vector_store %arg21[%c0_85, %c0_86], %200 {strides = array<i32>} : memref<2x1xf32, #tpu.memory_space<vmem>>, vector<2x1xf32>,
    return
  }
}

</mosaic_0001>

<bundles_post_ra>
// kernel: net_forward.1
= control target key start
LH: loop header
LB: loop body
LE: loop exit
PB: predicated region body
PF: predicated region fallthrough
CT: control target
= control target key end

     0   :  { %v5338_v0 = vmov 0   ;;  %v5339_v4 = vmov 1   ;;  %vm1137_vm0 = vcmask 523264   ;;  %vm2058_vm1 = vcmask 64512   ;;  %s5340_s24 = smov 32   ;;  %s9318_s7 = inlined_call_operand.vmem [shape: f32[64,2], index: 7, kind: input, shape index: {}]   ;;  %s9319_s8 = inlined_call_operand.vmem [shape: f32[64,1], index: 8, kind: input, shape index: {}]   ;;  %s9320_s10 = inlined_call_operand.vmem [shape: f32[1024,1], index: 10, kind: input, shape index: {}]   ;;  %s9321_s1 = inlined_call_operand.vmem [shape: f32[2,24], index: 1, kind: input, shape index: {}]   ;;  %s9322_s9 = inlined_call_operand.vmem [shape: f32[1024,64], index: 9, kind: input, shape index: {}]   ;;  %s9323_s5 = inlined_call_operand.vmem [shape: f32[8,32], index: 5, kind: input, shape index: {}]   ;;  %s9324_s0 = inlined_call_operand.vmem [shape: f32[12,8], index: 0, kind: input, shape index: {}]   ;;  %s9325_s6 = inlined_call_operand.vmem [shape: f32[1,32], index: 6, kind: input, shape index: {}]   ;;  %s9326_s2 = inlined_call_operand.vmem [shape: f32[12,24], index: 2, kind: input, shape index: {}]   ;;  %s9327_s11 = inlined_call_operand.vmem [shape: f32[32,32], index: 11, kind: input, shape index: {}]   ;;  %s9328_s14 = inlined_call_operand.vmem [shape: f32[32,128], index: 14, kind: input, shape index: {}]   ;;  %s9329_s12 = inlined_call_operand.vmem [shape: f32[1,32], index: 12, kind: input, shape index: {}]   ;;  %s9330_s3 = inlined_call_operand.vmem [shape: f32[12,24], index: 3, kind: input, shape index: {}]   ;;  %s9331_s15 = inlined_call_operand.vmem [shape: f32[1,128], index: 15, kind: input, shape index: {}]   ;;  %s9332_s13 = inlined_call_operand.vmem [shape: f32[32,128], index: 13, kind: input, shape index: {}]   ;;  %s9333_s16 = inlined_call_operand.vmem [shape: f32[1,32], index: 16, kind: input, shape index: {}]   ;;  %s9334_s4 = inlined_call_operand.vmem [shape: f32[2,12], index: 4, kind: input, shape index: {}]   ;;  %s9335_s17 = inlined_call_operand.vmem [shape: f32[32,32], index: 17, kind: input, shape index: {}]   ;;  %s9336_s18 = inlined_call_operand.vmem [shape: f32[1,32], index: 18, kind: input, shape index: {}]   ;;  %s9337_s19 = inlined_call_operand.vmem [shape: f32[1,32], index: 19, kind: input, shape index: {}]   ;;  %s9338_s20 = inlined_call_operand.<no memory space> [shape: f32[1,1], index: 20, kind: input, shape index: {}]   ;;  %s9339_s21 = inlined_call_operand.vmem [shape: f32[2,1], index: 21, kind: output, shape index: {}]  }
   0x1   :  { %9524 = sst [smem:[#allocation167_spill]] %s9318_s7  ;;  %5263 = vset.pattern.permute.xlu2 %v5338_v0  ;;  %5261 = vset.pattern.permute.xlu1 %v5338_v0  ;;  %vm9498_vm2 = vcmask 1043456   ;;  %vm2859_vm3 = vcmask 261120   ;;  %vm2140_vm4 = vcmask 97280   ;;  %vm2442_vm5 = vcmask 195584  }
   0x2   :  { %9525 = sst [smem:[#allocation168_spill]] %s9319_s8  ;;  %5259 = vset.pattern.permute.xlu0 %v5338_v0  ;;  %vm2921_vm6 = vcmask 1041409   ;;  %vm2923_vm7 = vcmask 1042434   ;;  %vm2925_vm8 = vcmask 1043459   ;;  %vm2927_vm9 = vcmask 1044484  }
   0x3   :  { %9526 = sst [smem:[#allocation169_spill]] %s9320_s10  ;;  %vm2929_vm10 = vcmask 1045509   ;;  %vm9500_vm11 = vcmask 1046534   ;;  %vm9499_vm12 = vcmask 1047559  }
   0x4   :  { %9527 = sst [smem:[#allocation170_spill]] %s9321_s1 }
   0x5   :  { %9528 = sst [smem:[#allocation171_spill]] %s9322_s9 }
   0x6   :  { %9529 = sst [smem:[#allocation172_spill]] %s9323_s5 }
   0x7   :  { %s9530_s26 = sld [smem:[#allocation167_spill]] }
   0x8   :  { %s9531_s22 = sld [smem:[#allocation168_spill]] }
   0x9   :  { %s9532_s9 = sld [smem:[#allocation169_spill]] }
   0xa   :  { %s9533_s10 = sld [smem:[#allocation170_spill]] }
   0xb   :  { %s9536_s1 = sld [smem:[#allocation171_spill]] }
   0xd   :  { %v78_v1 = vld [vmem:[%s9530_s26 + $0x38] sm:$0xff]  ;;  %v77_v2 = vld [vmem:[%s9530_s26 + $0x30] sm:$0xff]  ;;  %v76_v3 = vld [vmem:[%s9530_s26 + $0x28] sm:$0xff] }
   0xe   :  { %111 = vperm.xlu1 %5261, %v77_v2   ;;  %116 = vperm.xlu0 %5259, %v78_v1   ;;  %v75_v5 = vld [vmem:[%s9530_s26 + $0x20] sm:$0xff]  ;;  %v184_v6 = vld [vmem:[%s9531_s22 + $0x38] sm:$0xff]  ;;  %v183_v8 = vld [vmem:[%s9531_s22 + $0x30] sm:$0xff] }
   0xf   :  { %106 = vperm.xlu2 %5263, %v76_v3   ;;  %v74_v7 = vld [vmem:[%s9530_s26 + $0x18] sm:$0xff]  ;;  %v73_v9 = vld [vmem:[%s9530_s26 + $0x10] sm:$0xff]  ;;  %v182_v10 = vld [vmem:[%s9531_s22 + $0x28] sm:$0xff] }
  0x10   :  { %v72_v11 = vld [vmem:[%s9530_s26 + $0x8] sm:$0xff]  ;;  %v181_v12 = vld [vmem:[%s9531_s22 + $0x20] sm:$0xff]  ;;  %v180_v14 = vld [vmem:[%s9531_s22 + $0x18] sm:$0xff] }
  0x11   :  { %v71_v13 = vld [vmem:[%s9530_s26] sm:$0xff]  ;;  %v179_v15 = vld [vmem:[%s9531_s22 + $0x10] sm:$0xff]  ;;  %v178_v17 = vld [vmem:[%s9531_s22 + $0x8] sm:$0xff] }
  0x12   :  { %v177_v16 = vld [vmem:[%s9531_s22] sm:$0xff]  ;;  %v434_v18 = vld [vmem:[%s9532_s9 + $0x208] sm:$0xff]  ;;  %v467_v25 = vld [vmem:[%s9532_s9 + $0x310] sm:$0xff]  ;;  %s9537_s22 = sld [smem:[#allocation172_spill]] }
  0x13   :  { %v469_v19 = vld [vmem:[%s9532_s9 + $0x320] sm:$0xff]  ;;  %v466_v23 = vld [vmem:[%s9532_s9 + $0x308] sm:$0xff]  ;;  %v447_v27 = vld [vmem:[%s9532_s9 + $0x270] sm:$0xff] }
  0x14   :  { %v465_v20 = vld [vmem:[%s9532_s9 + $0x300] sm:$0xff]  ;;  %v406_v24 = vld [vmem:[%s9532_s9 + $0x128] sm:$0xff]  ;;  %v488_v31 = vld [vmem:[%s9532_s9 + $0x3b8] sm:$0xff] }
  0x15   :  { %v401_v21 = vld [vmem:[%s9532_s9 + $0x100] sm:$0xff]  ;;  %v470_v26 = vld [vmem:[%s9532_s9 + $0x328] sm:$0xff]  ;;  %v475_v32 = vld [vmem:[%s9532_s9 + $0x350] sm:$0xff] }
  0x16   :  { %5262 = vset.pattern.permute.xlu1 %v5339_v4  ;;  %5260 = vset.pattern.permute.xlu0 %v5339_v4  ;;  %v473_v22 = vld [vmem:[%s9532_s9 + $0x340] sm:$0xff]  ;;  %v474_v29 = vld [vmem:[%s9532_s9 + $0x348] sm:$0xff]  ;;  %v471_v33 = vld [vmem:[%s9532_s9 + $0x330] sm:$0xff] }
  0x17   :  { %5264 = vset.pattern.permute.xlu2 %v5339_v4  ;;  %157 = vperm.xlu0 %5260, %v78_v1   ;;  %v477_v28 = vld [vmem:[%s9532_s9 + $0x360] sm:$0xff]  ;;  %v410_v35 = vld [vmem:[%s9532_s9 + $0x148] sm:$0xff]  ;;  %v403_v45 = vld [vmem:[%s9532_s9 + $0x110] sm:$0xff] }
  0x18   :  { %153 = vperm.xlu1 %5262, %v77_v2   ;;  %149 = vperm.xlu2 %5264, %v76_v3   ;;  %v482_v36 = vld [vmem:[%s9532_s9 + $0x388] sm:$0xff]  ;;  %v457_v39 = vld [vmem:[%s9532_s9 + $0x2c0] sm:$0xff]  ;;  %v468_v46 = vld [vmem:[%s9532_s9 + $0x318] sm:$0xff] }
  0x19   :  { %v478_v37 = vld [vmem:[%s9532_s9 + $0x368] sm:$0xff]  ;;  %v437_v40 = vld [vmem:[%s9532_s9 + $0x220] sm:$0xff]  ;;  %v479_v56 = vld [vmem:[%s9532_s9 + $0x370] sm:$0xff] }
  0x1a   :  { %v481_v41 = vld [vmem:[%s9532_s9 + $0x380] sm:$0xff]  ;;  %v414_v55 = vld [vmem:[%s9532_s9 + $0x168] sm:$0xff] }
  0x1b   :  { %v433_v47 = vld [vmem:[%s9532_s9 + $0x200] sm:$0xff]  ;;  %v438_v57 = vld [vmem:[%s9532_s9 + $0x228] sm:$0xff] }
  0x1c   :  { %v70_v50 = vld [vmem:[%s9533_s10] sm:$0x3]  ;;  %v486_v3 = vld [vmem:[%s9532_s9 + $0x3a8] sm:$0xff]  ;;  %s5341_s10 = smov 64  }
  0x1d   :  { %v5582_v51 = vperm.slane %v70_v50, 1  ;;  %v5586_v53 = vperm.slane %v70_v50, 0  ;;  %v461_v2 = vld [vmem:[%s9532_s9 + $0x2e0] sm:$0xff] }
  0x1f   :  { %145 = vperm.xlu0 %5260, %v75_v5  }
  0x20   :  { %5265 = vset.pattern.permute.xlu1 %v5338_v0  ;;  %5266 = vset.pattern.permute.xlu2 %v5338_v0 }
  0x21   :  { %222 = vperm.xlu1 %5265, %v184_v6   ;;  %101 = vperm.xlu2 %5266, %v75_v5   ;;  %v472_v5 = vld [vmem:[%s9532_s9 + $0x338] sm:$0xff] }
  0x27   :  { %141 = vperm.xlu0 %5260, %v74_v7  }
  0x29   :  { %217 = vperm.xlu1 %5265, %v183_v8   ;;  %96 = vperm.xlu2 %5266, %v74_v7  }
  0x2f   :  { %137 = vperm.xlu0 %5260, %v73_v9  }
  0x31   :  { %212 = vperm.xlu1 %5265, %v182_v10   ;;  %91 = vperm.xlu2 %5266, %v73_v9  }
  0x37   :  { %133 = vperm.xlu0 %5260, %v72_v11  }
  0x39   :  { %207 = vperm.xlu1 %5265, %v181_v12   ;;  %86 = vperm.xlu2 %5266, %v72_v11  }
  0x3f   :  { %129 = vperm.xlu0 %5260, %v71_v13  }
  0x41   :  { %202 = vperm.xlu1 %5265, %v180_v14   ;;  %81 = vperm.xlu2 %5266, %v71_v13   ;;  %v411_v14 = vld [vmem:[%s9532_s9 + $0x150] sm:$0xff] }
  0x47   :  { %5267 = vset.pattern.permute.xlu0 %v5338_v0 }
  0x48   :  { %187 = vperm.xlu0 %5267, %v177_v16   ;;  %v485_v16 = vld [vmem:[%s9532_s9 + $0x3a0] sm:$0xff] }
  0x49   :  { %197 = vperm.xlu1 %5265, %v179_v15   ;;  %192 = vperm.xlu2 %5266, %v178_v17   ;;  %v442_v15 = vld [vmem:[%s9532_s9 + $0x248] sm:$0xff] }
  0x50   :  { %999 = vperm.xlu0 %5267, %v469_v19  }
  0x51   :  { %824 = vperm.xlu1 %5265, %v434_v18   ;;  %979 = vperm.xlu2 %5266, %v465_v20  }
  0x58   :  { %1019 = vperm.xlu0 %5267, %v473_v22  }
  0x59   :  { %659 = vperm.xlu1 %5265, %v401_v21   ;;  %984 = vperm.xlu2 %5266, %v466_v23  }
  0x60   :  { %989 = vperm.xlu0 %5267, %v467_v25   ;;  %v452_v25 = vld [vmem:[%s9532_s9 + $0x298] sm:$0xff] }
  0x61   :  { %684 = vperm.xlu1 %5265, %v406_v24   ;;  %1004 = vperm.xlu2 %5266, %v470_v26   ;;  %v483_v26 = vld [vmem:[%s9532_s9 + $0x390] sm:$0xff] }
  0x68   :  { %1039 = vperm.xlu0 %5267, %v477_v28  }
  0x69   :  { %889 = vperm.xlu1 %5265, %v447_v27   ;;  %v5537_v30 = vpop.permute.xlu2 %106  ;;  %1024 = vperm.xlu2 %5266, %v474_v29   ;;  %v441_v27 = vld [vmem:[%s9532_s9 + $0x240] sm:$0xff] }
  0x6a   :  { %v125_v11 = vmul.f32 %v5586_v53, %v5537_v30 }
  0x70   :  { %1029 = vperm.xlu0 %5267, %v475_v32  }
  0x71   :  { %1094 = vperm.xlu1 %5265, %v488_v31   ;;  %1009 = vperm.xlu2 %5266, %v471_v33  }
  0x72   :  { %v150_v34 = vpop.permute.xlu2 %149 }
  0x73   :  { %v166_v12 = vmul.f32 %v5582_v51, %v150_v34 }
  0x75   :  { %v174_v18 = vadd.f32 %v166_v12, %v125_v11  ;;  %v2053_v11 = vld [vmem:[%s9537_s22] sm:$0xff]  ;;  %v463_v12 = vld [vmem:[%s9532_s9 + $0x2f0] sm:$0xff] }
  0x78   :  { %1064 = vperm.xlu0 %5267, %v482_v36   ;;  %v490_v36 = vld [vmem:[%s9532_s9 + $0x3c8] sm:$0xff] }
  0x79   :  { %704 = vperm.xlu1 %5265, %v410_v35   ;;  %1044 = vperm.xlu2 %5266, %v478_v37   ;;  %v370_v35 = vld [vmem:[%s9532_s9 + $0x8] sm:$0xff] }
  0x7b   :  { %v5557_v38 = vpop.permute.xlu2 %101 }
  0x7c   :  { %v124_v22 = vmul.f32 %v5586_v53, %v5557_v38  ;;  %v476_v38 = vld [vmem:[%s9532_s9 + $0x358] sm:$0xff] }
  0x80   :  { %v112_v42 = vpop.permute.xlu1 %111  ;;  %839 = vperm.xlu0 %5267, %v437_v40   ;;  %v117_v43 = vpop.permute.xlu0 %116 }
  0x81   :  { %939 = vperm.xlu1 %5265, %v457_v39   ;;  %1059 = vperm.xlu2 %5266, %v481_v41   ;;  %v127_v58 = vmul.f32 %v5586_v53, %v117_v43  ;;  %v126_v4 = vmul.f32 %v5586_v53, %v112_v42 }
  0x83   :  { %v5568_v44 = vpop.permute.xlu2 %96 }
  0x84   :  { %v123_v37 = vmul.f32 %v5586_v53, %v5568_v44 }
  0x88   :  { %994 = vperm.xlu0 %5267, %v468_v46  }
  0x89   :  { %669 = vperm.xlu1 %5265, %v403_v45   ;;  %819 = vperm.xlu2 %5266, %v433_v47   ;;  %v158_v48 = vpop.permute.xlu0 %157 }
  0x8a   :  { %v154_v49 = vpop.permute.xlu1 %153  ;;  %v168_v54 = vmul.f32 %v5582_v51, %v158_v48  ;;  %v404_v48 = vld [vmem:[%s9532_s9 + $0x118] sm:$0xff] }
  0x8b   :  { %v5584_v52 = vpop.permute.xlu2 %91  ;;  %v167_v0 = vmul.f32 %v5582_v51, %v154_v49  ;;  %v439_v49 = vld [vmem:[%s9532_s9 + $0x230] sm:$0xff] }
  0x8c   :  { %v176_v60 = vadd.f32 %v168_v54, %v127_v58  ;;  %v122_v50 = vmul.f32 %v5586_v53, %v5584_v52  ;;  %v489_v54 = vld [vmem:[%s9532_s9 + $0x3c0] sm:$0xff] }
  0x8d   :  { %v175_v7 = vadd.f32 %v167_v0, %v126_v4 }
  0x90   :  { %1049 = vperm.xlu0 %5267, %v479_v56  }
  0x91   :  { %724 = vperm.xlu1 %5265, %v414_v55   ;;  %844 = vperm.xlu2 %5266, %v438_v57   ;;  %v146_v59 = vpop.permute.xlu0 %145 }
  0x92   :  { %v165_v23 = vmul.f32 %v5582_v51, %v146_v59 }
  0x93   :  { %v223_v61 = vpop.permute.xlu1 %222  ;;  %v5599_v63 = vpop.permute.xlu2 %86 }
  0x94   :  { %v232_v62 = vadd.f32 %v223_v61, %v176_v60  ;;  %v173_v29 = vadd.f32 %v165_v23, %v124_v22  ;;  %v121_v47 = vmul.f32 %v5586_v53, %v5599_v63  ;;  %v494_v22 = vld [vmem:[%s9532_s9 + $0x3e8] sm:$0xff]  ;;  %v480_v23 = vld [vmem:[%s9532_s9 + $0x378] sm:$0xff] }
  0x96   :  { %v240_v1 = vmax.f32 %v232_v62, 0.0 }
  0x98   :  { %1530 = vmatpush.msra.mxu0 %v240_v1  ;;  %5229 = vmatpush.msra.mxu1 %v240_v1 }
  0x99   :  { %5230 = vmatpush.msra.mxu2 %v240_v1  ;;  %5231 = vmatpush.msra.mxu3 %v240_v1  ;;  %v142_v6 = vpop.permute.xlu0 %141 }
  0x9a   :  { %959 = vperm.xlu1 %5265, %v461_v2   ;;  %1084 = vperm.xlu0 %5267, %v486_v3   ;;  %v164_v33 = vmul.f32 %v5582_v51, %v142_v6  ;;  %v446_v2 = vld [vmem:[%s9532_s9 + $0x268] sm:$0xff] }
  0x9b   :  { %1014 = vperm.xlu2 %5266, %v472_v5   ;;  %v218_v8 = vpop.permute.xlu1 %217  ;;  %v5612_v10 = vpop.permute.xlu2 %81 }
  0x9c   :  { %v231_v9 = vadd.f32 %v218_v8, %v175_v7  ;;  %v172_v40 = vadd.f32 %v164_v33, %v123_v37  ;;  %v120_v58 = vmul.f32 %v5586_v53, %v5612_v10  ;;  %v435_v53 = vld [vmem:[%s9532_s9 + $0x210] sm:$0xff]  ;;  %v241_v7 = vld [vmem:[%s9536_s1] sm:$0xff]  ;;  %v340_v10 = vld [vmem:[%s9536_s1 + $0x318] sm:$0xff] }
  0x9d   :  { %v283_v8 = vld [vmem:[%s9536_s1 + $0x150] sm:$0xff]  ;;  %v493_v33 = vld [vmem:[%s9532_s9 + $0x3e0] sm:$0xff]  ;;  %v286_v37 = vld [vmem:[%s9536_s1 + $0x168] sm:$0xff] }
  0x9e   :  { %v239_v13 = vmax.f32 %v231_v9, 0.0  ;;  %v312_v9 = vld [vmem:[%s9536_s1 + $0x238] sm:$0xff] }
  0xa0   :  { %1531 = vmatpush.msra.mxu0 %v239_v13  ;;  %5232 = vmatpush.msra.mxu1 %v239_v13 }
  0xa1   :  { %5233 = vmatpush.msra.mxu2 %v239_v13  ;;  %5234 = vmatpush.msra.mxu3 %v239_v13  ;;  %v138_v17 = vpop.permute.xlu0 %137  ;;  %v487_v13 = vld [vmem:[%s9532_s9 + $0x3b0] sm:$0xff] }
  0xa2   :  { %709 = vperm.xlu1 %5265, %v411_v14   ;;  %864 = vperm.xlu0 %5267, %v442_v15   ;;  %v163_v44 = vmul.f32 %v5582_v51, %v138_v17  ;;  %v445_v14 = vld [vmem:[%s9532_s9 + $0x260] sm:$0xff]  ;;  %v242_v17 = vld [vmem:[%s9536_s1 + $0x8] sm:$0xff] }
  0xa3   :  { %1079 = vperm.xlu2 %5266, %v485_v16   ;;  %v213_v19 = vpop.permute.xlu1 %212  ;;  %v193_v21 = vpop.permute.xlu2 %192 }
  0xa4   :  { %v230_v20 = vadd.f32 %v213_v19, %v174_v18  ;;  %v171_v57 = vadd.f32 %v163_v44, %v122_v50  ;;  %v284_v18 = vld [vmem:[%s9536_s1 + $0x158] sm:$0xff]  ;;  %v313_v19 = vld [vmem:[%s9536_s1 + $0x240] sm:$0xff] }
  0xa5   :  { %v416_v50 = vld [vmem:[%s9532_s9 + $0x178] sm:$0xff] }
  0xa6   :  { %v238_v24 = vmax.f32 %v230_v20, 0.0  ;;  %v341_v20 = vld [vmem:[%s9536_s1 + $0x320] sm:$0xff] }
  0xa8   :  { %1532 = vmatpush.msra.mxu0 %v238_v24  ;;  %5235 = vmatpush.msra.mxu1 %v238_v24 }
  0xa9   :  { %5236 = vmatpush.msra.mxu2 %v238_v24  ;;  %5237 = vmatpush.msra.mxu3 %v238_v24  ;;  %v134_v28 = vpop.permute.xlu0 %133 }
  0xaa   :  { %914 = vperm.xlu1 %5265, %v452_v25   ;;  %1069 = vperm.xlu0 %5267, %v483_v26   ;;  %v162_v45 = vmul.f32 %v5582_v51, %v134_v28  ;;  %v243_v26 = vld [vmem:[%s9536_s1 + $0x10] sm:$0xff]  ;;  %v314_v28 = vld [vmem:[%s9536_s1 + $0x248] sm:$0xff] }
  0xab   :  { %859 = vperm.xlu2 %5266, %v441_v27   ;;  %v208_v30 = vpop.permute.xlu1 %207  ;;  %v5638_v32 = vpop.permute.xlu2 %979  ;;  %v285_v27 = vld [vmem:[%s9536_s1 + $0x160] sm:$0xff] }
  0xac   :  { %v229_v31 = vadd.f32 %v208_v30, %v173_v29  ;;  %9534 = vst [vmem:[#allocation3_spill] sm:$0xff] %v5638_v32  ;;  %v170_v55 = vadd.f32 %v162_v45, %v121_v47  ;;  %v342_v29 = vld [vmem:[%s9536_s1 + $0x328] sm:$0xff]  ;;  %v287_v47 = vld [vmem:[%s9536_s1 + $0x170] sm:$0xff] }
  0xad   :  { %v426_v30 = vld [vmem:[%s9532_s9 + $0x1c8] sm:$0xff] }
  0xae   :  { %v237_v34 = vmax.f32 %v229_v31, 0.0  ;;  %v226_v62 = vadd.f32 %v193_v21, %v170_v55  ;;  %v412_v21 = vld [vmem:[%s9532_s9 + $0x158] sm:$0xff]  ;;  %v449_v31 = vld [vmem:[%s9532_s9 + $0x280] sm:$0xff]  ;;  %v450_v55 = vld [vmem:[%s9532_s9 + $0x288] sm:$0xff] }
  0xb0   :  { %1533 = vmatpush.msra.mxu0 %v237_v34  ;;  %5238 = vmatpush.msra.mxu1 %v237_v34  ;;  %v234_v3 = vmax.f32 %v226_v62, 0.0  ;;  %v430_v62 = vld [vmem:[%s9532_s9 + $0x1e8] sm:$0xff] }
  0xb1   :  { %5239 = vmatpush.msra.mxu2 %v237_v34  ;;  %5240 = vmatpush.msra.mxu3 %v237_v34  ;;  %v130_v39 = vpop.permute.xlu0 %129 }
  0xb2   :  { %504 = vperm.xlu1 %5265, %v370_v35   ;;  %1104 = vperm.xlu0 %5267, %v490_v36   ;;  %v161_v56 = vmul.f32 %v5582_v51, %v130_v39  ;;  %v421_v51 = vld [vmem:[%s9532_s9 + $0x1a0] sm:$0xff]  ;;  %v244_v36 = vld [vmem:[%s9536_s1 + $0x18] sm:$0xff]  ;;  %v343_v39 = vld [vmem:[%s9536_s1 + $0x330] sm:$0xff] }
  0xb3   :  { %1034 = vperm.xlu2 %5266, %v476_v38   ;;  %v203_v41 = vpop.permute.xlu1 %202  ;;  %v5652_v43 = vpop.permute.xlu2 %984  ;;  %v315_v38 = vld [vmem:[%s9536_s1 + $0x250] sm:$0xff] }
  0xb4   :  { %v228_v42 = vadd.f32 %v203_v41, %v172_v40  ;;  %9535 = vst [vmem:[#allocation4_spill] sm:$0xff] %v5652_v43  ;;  %v169_v63 = vadd.f32 %v161_v56, %v120_v58  ;;  %v375_v40 = vld [vmem:[%s9532_s9 + $0x30] sm:$0xff]  ;;  %v484_v41 = vld [vmem:[%s9532_s9 + $0x398] sm:$0xff]  ;;  %v246_v58 = vld [vmem:[%s9536_s1 + $0x28] sm:$0xff] }
  0xb5   :  { %v382_v43 = vld [vmem:[%s9532_s9 + $0x68] sm:$0xff] }
  0xb6   :  { %v236_v46 = vmax.f32 %v228_v42, 0.0  ;;  %v443_v42 = vld [vmem:[%s9532_s9 + $0x250] sm:$0xff] }
  0xb8   :  { %1534 = vmatpush.msra.mxu0 %v236_v46  ;;  %5241 = vmatpush.msra.mxu1 %v236_v46 }
  0xb9   :  { %5242 = vmatpush.msra.mxu2 %v236_v46  ;;  %5243 = vmatpush.msra.mxu3 %v236_v46  ;;  %v245_v46 = vld [vmem:[%s9536_s1 + $0x20] sm:$0xff] }
  0xba   :  { %674 = vperm.xlu1 %5265, %v404_v48   ;;  %849 = vperm.xlu0 %5267, %v439_v49   ;;  %v188_v52 = vpop.permute.xlu0 %187  ;;  %v316_v48 = vld [vmem:[%s9536_s1 + $0x258] sm:$0xff] }
  0xbb   :  { %1099 = vperm.xlu2 %5266, %v489_v54   ;;  %v198_v59 = vpop.permute.xlu1 %197  ;;  %v5672_v61 = vpop.permute.xlu2 %1004  ;;  %v225_v1 = vadd.f32 %v188_v52, %v169_v63  ;;  %v344_v49 = vld [vmem:[%s9536_s1 + $0x338] sm:$0xff]  ;;  %v402_v54 = vld [vmem:[%s9532_s9 + $0x108] sm:$0xff]  ;;  %v317_v52 = vld [vmem:[%s9536_s1 + $0x260] sm:$0xff] }
  0xbc   :  { %v227_v60 = vadd.f32 %v198_v59, %v171_v57  ;;  %v288_v59 = vld [vmem:[%s9536_s1 + $0x178] sm:$0xff] }
  0xbd   :  { %v233_v4 = vmax.f32 %v225_v1, 0.0  ;;  %v436_v63 = vld [vmem:[%s9532_s9 + $0x218] sm:$0xff] }
  0xbe   :  { %v235_v0 = vmax.f32 %v227_v60, 0.0  ;;  %v345_v60 = vld [vmem:[%s9536_s1 + $0x340] sm:$0xff] }
  0xc0   :  { %1535 = vmatpush.msra.mxu0 %v235_v0  ;;  %5244 = vmatpush.msra.mxu1 %v235_v0 }
  0xc1   :  { %5245 = vmatpush.msra.mxu2 %v235_v0  ;;  %5246 = vmatpush.msra.mxu3 %v235_v0  ;;  %v491_v0 = vld [vmem:[%s9532_s9 + $0x3d0] sm:$0xff] }
  0xc2   :  { %759 = vperm.xlu1 %5265, %v421_v51   ;;  %884 = vperm.xlu0 %5267, %v446_v2   ;;  %v5683_v5 = vpop.permute.xlu0 %999  ;;  %v247_v51 = vld [vmem:[%s9536_s1 + $0x30] sm:$0xff] }
  0xc3   :  { %829 = vperm.xlu2 %5266, %v435_v53   ;;  %1536 = vmatpush.msra.mxu0 %v234_v3  ;;  %v5685_v6 = vpop.permute.xlu2 %1024  ;;  %v289_v53 = vld [vmem:[%s9536_s1 + $0x180] sm:$0xff] }
  0xc4   :  { %5247 = vmatpush.msra.mxu1 %v234_v3  ;;  %5248 = vmatpush.msra.mxu2 %v234_v3 }
  0xc5   :  { %5249 = vmatpush.msra.mxu3 %v234_v3  ;;  %1537 = vmatpush.msra.mxu0 %v233_v4  ;;  %v318_v3 = vld [vmem:[%s9536_s1 + $0x268] sm:$0xff] }
  0xc6   :  { %5250 = vmatpush.msra.mxu1 %v233_v4  ;;  %5251 = vmatpush.msra.mxu2 %v233_v4 }
  0xc7   :  { %5252 = vmatpush.msra.mxu3 %v233_v4  ;;  %5036 = vmatmul.msk.f32.vlgmr.msra.gmra.mxu0 %vm1137_vm0, %v241_v7  ;;  %v346_v4 = vld [vmem:[%s9536_s1 + $0x348] sm:$0xff]  ;;  %v385_v7 = vld [vmem:[%s9532_s9 + $0x80] sm:$0xff] }
  0xc8   :  { %5078 = vmatmul.msk.f32.vlgmr.msra.gmra.mxu1 %vm1137_vm0, %v283_v8  ;;  %5107 = vmatmul.msk.f32.vlgmr.msra.gmra.mxu2 %vm1137_vm0, %v312_v9  ;;  %v453_v8 = vld [vmem:[%s9532_s9 + $0x2a0] sm:$0xff] }
  0xc9   :  { %5135 = vmatmul.msk.f32.vlgmr.msra.gmra.mxu3 %vm1137_vm0, %v340_v10  ;;  %2080 = vmatpush.msrb.mxu1 %v2053_v11  ;;  %v405_v9 = vld [vmem:[%s9532_s9 + $0x120] sm:$0xff]  ;;  %v248_v11 = vld [vmem:[%s9536_s1 + $0x38] sm:$0xff] }
  0xca   :  { %969 = vperm.xlu1 %5265, %v463_v12   ;;  %1089 = vperm.xlu0 %5267, %v487_v13   ;;  %v5715_v15 = vpop.permute.xlu0 %1019  ;;  %v290_v13 = vld [vmem:[%s9536_s1 + $0x188] sm:$0xff] }
  0xcb   :  { %879 = vperm.xlu2 %5266, %v445_v14   ;;  %v5717_v16 = vpop.permute.xlu2 %1009  ;;  %v319_v14 = vld [vmem:[%s9536_s1 + $0x270] sm:$0xff] }
  0xcf   :  { %5037 = vmatmul.msk.f32.gmra.mxu0 %vm1137_vm0, %v242_v17  ;;  %v347_v17 = vld [vmem:[%s9536_s1 + $0x350] sm:$0xff] }
  0xd0   :  { %5079 = vmatmul.msk.f32.gmra.mxu1 %vm1137_vm0, %v284_v18  ;;  %5108 = vmatmul.msk.f32.gmra.mxu2 %vm1137_vm0, %v313_v19  ;;  %v427_v18 = vld [vmem:[%s9532_s9 + $0x1d0] sm:$0xff] }
  0xd1   :  { %5136 = vmatmul.msk.f32.gmra.mxu3 %vm1137_vm0, %v341_v20  ;;  %v495_v19 = vld [vmem:[%s9532_s9 + $0x3f0] sm:$0xff]  ;;  %v440_v20 = vld [vmem:[%s9532_s9 + $0x238] sm:$0xff] }
  0xd2   :  { %714 = vperm.xlu1 %5265, %v412_v21   ;;  %1124 = vperm.xlu0 %5267, %v494_v22   ;;  %v5744_v24 = vpop.permute.xlu0 %989  ;;  %v249_v22 = vld [vmem:[%s9536_s1 + $0x40] sm:$0xff] }
  0xd3   :  { %1054 = vperm.xlu2 %5266, %v480_v23   ;;  %9538 = vst [vmem:[#allocation5_spill] sm:$0xff] %v5744_v24  ;;  %v5746_v25 = vpop.permute.xlu2 %1044 }
  0xd4   :  { %9539 = vst [vmem:[#allocation6_spill] sm:$0xff] %v5746_v25 }
  0xd7   :  { %5038 = vmatmul.msk.f32.gmra.mxu0 %vm1137_vm0, %v243_v26  ;;  %v291_v26 = vld [vmem:[%s9536_s1 + $0x190] sm:$0xff] }
  0xd8   :  { %5080 = vmatmul.msk.f32.gmra.mxu1 %vm1137_vm0, %v285_v27  ;;  %5109 = vmatmul.msk.f32.gmra.mxu2 %vm1137_vm0, %v314_v28  ;;  %v320_v27 = vld [vmem:[%s9536_s1 + $0x278] sm:$0xff] }
  0xd9   :  { %5137 = vmatmul.msk.f32.gmra.mxu3 %vm1137_vm0, %v342_v29  ;;  %v348_v28 = vld [vmem:[%s9536_s1 + $0x358] sm:$0xff]  ;;  %v383_v29 = vld [vmem:[%s9532_s9 + $0x70] sm:$0xff] }
  0xda   :  { %784 = vperm.xlu1 %5265, %v426_v30   ;;  %899 = vperm.xlu0 %5267, %v449_v31   ;;  %v5773_v34 = vpop.permute.xlu0 %1039  ;;  %v444_v30 = vld [vmem:[%s9532_s9 + $0x258] sm:$0xff]  ;;  %v454_v31 = vld [vmem:[%s9532_s9 + $0x2a8] sm:$0xff] }
  0xdb   :  { %1119 = vperm.xlu2 %5266, %v493_v33   ;;  %v5775_v35 = vpop.permute.xlu2 %1059 }
  0xdc   :  { %9540 = vst [vmem:[#allocation7_spill] sm:$0xff] %v5775_v35 }
  0xdf   :  { %5039 = vmatmul.msk.f32.gmra.mxu0 %vm1137_vm0, %v244_v36  ;;  %v250_v36 = vld [vmem:[%s9536_s1 + $0x48] sm:$0xff] }
  0xe0   :  { %5081 = vmatmul.msk.f32.gmra.mxu1 %vm1137_vm0, %v286_v37  ;;  %5110 = vmatmul.msk.f32.gmra.mxu2 %vm1137_vm0, %v315_v38  ;;  %v292_v38 = vld [vmem:[%s9536_s1 + $0x198] sm:$0xff] }
  0xe1   :  { %5138 = vmatmul.msk.f32.gmra.mxu3 %vm1137_vm0, %v343_v39  ;;  %v321_v39 = vld [vmem:[%s9536_s1 + $0x280] sm:$0xff] }
  0xe2   :  { %529 = vperm.xlu1 %5265, %v375_v40   ;;  %1074 = vperm.xlu0 %5267, %v484_v41   ;;  %v5802_v45 = vpop.permute.xlu0 %1029  ;;  %v349_v40 = vld [vmem:[%s9536_s1 + $0x360] sm:$0xff]  ;;  %v458_v41 = vld [vmem:[%s9532_s9 + $0x2c8] sm:$0xff] }
  0xe3   :  { %869 = vperm.xlu2 %5266, %v443_v42   ;;  %v5804_v44 = vpop.permute.xlu2 %819  ;;  %v409_v42 = vld [vmem:[%s9532_s9 + $0x140] sm:$0xff] }
  0xe4   :  { %9541 = vst [vmem:[#allocation8_spill] sm:$0xff] %v5804_v44 }
  0xe7   :  { %5040 = vmatmul.msk.f32.gmra.mxu0 %vm1137_vm0, %v245_v46 }
  0xe8   :  { %5082 = vmatmul.msk.f32.gmra.mxu1 %vm1137_vm0, %v287_v47  ;;  %5111 = vmatmul.msk.f32.gmra.mxu2 %vm1137_vm0, %v316_v48  ;;  %v251_v47 = vld [vmem:[%s9536_s1 + $0x50] sm:$0xff] }
  0xe9   :  { %5139 = vmatmul.msk.f32.gmra.mxu3 %vm1137_vm0, %v344_v49  ;;  %v293_v49 = vld [vmem:[%s9536_s1 + $0x1a0] sm:$0xff] }
  0xea   :  { %734 = vperm.xlu1 %5265, %v416_v50   ;;  %664 = vperm.xlu0 %5267, %v402_v54   ;;  %v5831_v56 = vpop.permute.xlu0 %1064  ;;  %v322_v50 = vld [vmem:[%s9536_s1 + $0x288] sm:$0xff] }
  0xeb   :  { %904 = vperm.xlu2 %5266, %v450_v55   ;;  %9542 = vst [vmem:[#allocation9_spill] sm:$0xff] %v5831_v56  ;;  %v5833_v57 = vpop.permute.xlu2 %844  ;;  %v350_v54 = vld [vmem:[%s9536_s1 + $0x368] sm:$0xff]  ;;  %v407_v55 = vld [vmem:[%s9532_s9 + $0x130] sm:$0xff] }
  0xec   :  { %9543 = vst [vmem:[#allocation10_spill] sm:$0xff] %v5833_v57 }
  0xef   :  { %5041 = vmatmul.msk.f32.gmra.mxu0 %vm1137_vm0, %v246_v58  ;;  %v451_v58 = vld [vmem:[%s9532_s9 + $0x290] sm:$0xff] }
  0xf0   :  { %5083 = vmatmul.msk.f32.gmra.mxu1 %vm1137_vm0, %v288_v59  ;;  %5112 = vmatmul.msk.f32.gmra.mxu2 %vm1137_vm0, %v317_v52  ;;  %v252_v52 = vld [vmem:[%s9536_s1 + $0x58] sm:$0xff] }
  0xf1   :  { %5140 = vmatmul.msk.f32.gmra.mxu3 %vm1137_vm0, %v345_v60 }
  0xf2   :  { %804 = vperm.xlu1 %5265, %v430_v62   ;;  %834 = vperm.xlu0 %5267, %v436_v63   ;;  %v5860_v1 = vpop.permute.xlu0 %839  ;;  %v294_v62 = vld [vmem:[%s9536_s1 + $0x1a8] sm:$0xff]  ;;  %v323_v63 = vld [vmem:[%s9536_s1 + $0x290] sm:$0xff] }
  0xf3   :  { %1109 = vperm.xlu2 %5266, %v491_v0   ;;  %9544 = vst [vmem:[#allocation11_spill] sm:$0xff] %v5860_v1  ;;  %v351_v0 = vld [vmem:[%s9536_s1 + $0x370] sm:$0xff] }
  0xf5   :  { %v5865_v2 = vpop.permute.xlu2 %1014 }
  0xf7   :  { %5042 = vmatmul.msk.f32.gmra.mxu0 %vm1137_vm0, %v247_v51  ;;  %v448_v51 = vld [vmem:[%s9532_s9 + $0x278] sm:$0xff] }
  0xf8   :  { %5084 = vmatmul.msk.f32.gmra.mxu1 %vm1137_vm0, %v289_v53  ;;  %5113 = vmatmul.msk.f32.gmra.mxu2 %vm1137_vm0, %v318_v3  ;;  %v492_v53 = vld [vmem:[%s9532_s9 + $0x3d8] sm:$0xff] }
  0xf9   :  { %5141 = vmatmul.msk.f32.gmra.mxu3 %vm1137_vm0, %v346_v4  ;;  %v253_v4 = vld [vmem:[%s9536_s1 + $0x60] sm:$0xff] }
  0xfa   :  { %579 = vperm.xlu1 %5265, %v385_v7   ;;  %919 = vperm.xlu0 %5267, %v453_v8   ;;  %v5889_v10 = vpop.permute.xlu0 %994  ;;  %v295_v8 = vld [vmem:[%s9536_s1 + $0x1b0] sm:$0xff] }
  0xfb   :  { %679 = vperm.xlu2 %5266, %v405_v9   ;;  %v324_v9 = vld [vmem:[%s9536_s1 + $0x298] sm:$0xff] }
  0xfd   :  { %v5894_v12 = vpop.permute.xlu2 %1079 }
  0xfe   :  { %9545 = vst [vmem:[#allocation12_spill] sm:$0xff] %v5894_v12 }
  0xff   :  { %5043 = vmatmul.msk.f32.gmra.mxu0 %vm1137_vm0, %v248_v11  ;;  %v352_v11 = vld [vmem:[%s9536_s1 + $0x378] sm:$0xff] }
 0x100   :  { %5085 = vmatmul.msk.f32.gmra.mxu1 %vm1137_vm0, %v290_v13  ;;  %5114 = vmatmul.msk.f32.gmra.mxu2 %vm1137_vm0, %v319_v14  ;;  %v462_v13 = vld [vmem:[%s9532_s9 + $0x2e8] sm:$0xff]  ;;  %v413_v14 = vld [vmem:[%s9532_s9 + $0x160] sm:$0xff] }
 0x101   :  { %5142 = vmatmul.msk.f32.gmra.mxu3 %vm1137_vm0, %v347_v17 }
 0x102   :  { %789 = vperm.xlu1 %5265, %v427_v18   ;;  %1129 = vperm.xlu0 %5267, %v495_v19   ;;  %v5918_v21 = vpop.permute.xlu0 %1049  ;;  %v254_v18 = vld [vmem:[%s9536_s1 + $0x68] sm:$0xff] }
 0x103   :  { %854 = vperm.xlu2 %5266, %v440_v20   ;;  %9546 = vst [vmem:[#allocation13_spill] sm:$0xff] %v5918_v21  ;;  %v296_v20 = vld [vmem:[%s9536_s1 + $0x1b8] sm:$0xff] }
 0x105   :  { %v5923_v23 = vpop.permute.xlu2 %859 }
 0x107   :  { %5044 = vmatmul.msk.f32.gmra.mxu0 %vm1137_vm0, %v249_v22  ;;  %v325_v22 = vld [vmem:[%s9536_s1 + $0x2a0] sm:$0xff] }
 0x108   :  { %5086 = vmatmul.msk.f32.gmra.mxu1 %vm1137_vm0, %v291_v26  ;;  %5115 = vmatmul.msk.f32.gmra.mxu2 %vm1137_vm0, %v320_v27  ;;  %v353_v26 = vld [vmem:[%s9536_s1 + $0x380] sm:$0xff] }
 0x109   :  { %5143 = vmatmul.msk.f32.gmra.mxu3 %vm1137_vm0, %v348_v28  ;;  %v417_v27 = vld [vmem:[%s9532_s9 + $0x180] sm:$0xff]  ;;  %v455_v28 = vld [vmem:[%s9532_s9 + $0x2b0] sm:$0xff] }
 0x10a   :  { %569 = vperm.xlu1 %5265, %v383_v29   ;;  %874 = vperm.xlu0 %5267, %v444_v30   ;;  %v255_v30 = vld [vmem:[%s9536_s1 + $0x70] sm:$0xff] }
 0x10b   :  { %924 = vperm.xlu2 %5266, %v454_v31  }
 0x10c   :  { %v5947_v33 = vpop.permute.xlu0 %1084 }
 0x10d   :  { %9547 = vst [vmem:[#allocation14_spill] sm:$0xff] %v5947_v33  ;;  %v5952_v37 = vpop.permute.xlu2 %1034 }
 0x10f   :  { %5045 = vmatmul.msk.f32.gmra.mxu0 %vm1137_vm0, %v250_v36  ;;  %v297_v36 = vld [vmem:[%s9536_s1 + $0x1c0] sm:$0xff] }
 0x110   :  { %5087 = vmatmul.msk.f32.gmra.mxu1 %vm1137_vm0, %v292_v38  ;;  %5116 = vmatmul.msk.f32.gmra.mxu2 %vm1137_vm0, %v321_v39  ;;  %v326_v38 = vld [vmem:[%s9536_s1 + $0x2a8] sm:$0xff] }
 0x111   :  { %5144 = vmatmul.msk.f32.gmra.mxu3 %vm1137_vm0, %v349_v40  ;;  %v354_v39 = vld [vmem:[%s9536_s1 + $0x388] sm:$0xff]  ;;  %v459_v40 = vld [vmem:[%s9532_s9 + $0x2d0] sm:$0xff] }
 0x112   :  { %944 = vperm.xlu0 %5267, %v458_v41   ;;  %v496_v41 = vld [vmem:[%s9532_s9 + $0x3f8] sm:$0xff] }
 0x113   :  { %699 = vperm.xlu2 %5266, %v409_v42  }
 0x114   :  { %v5973_v46 = vpop.permute.xlu0 %864 }
 0x115   :  { %v5978_v48 = vpop.permute.xlu2 %1099 }
 0x116   :  { %9548 = vst [vmem:[#allocation15_spill] sm:$0xff] %v5978_v48 }
 0x117   :  { %5046 = vmatmul.msk.f32.gmra.mxu0 %vm1137_vm0, %v251_v47  ;;  %v256_v47 = vld [vmem:[%s9536_s1 + $0x78] sm:$0xff] }
 0x118   :  { %5088 = vmatmul.msk.f32.gmra.mxu1 %vm1137_vm0, %v293_v49  ;;  %5117 = vmatmul.msk.f32.gmra.mxu2 %vm1137_vm0, %v322_v50  ;;  %v298_v50 = vld [vmem:[%s9536_s1 + $0x1c8] sm:$0xff] }
 0x119   :  { %5145 = vmatmul.msk.f32.gmra.mxu3 %vm1137_vm0, %v350_v54  ;;  %v327_v54 = vld [vmem:[%s9536_s1 + $0x2b0] sm:$0xff] }
 0x11a   :  { %689 = vperm.xlu0 %5267, %v407_v55   ;;  %v355_v55 = vld [vmem:[%s9536_s1 + $0x390] sm:$0xff] }
 0x11b   :  { %909 = vperm.xlu2 %5266, %v451_v58   ;;  %v373_v58 = vld [vmem:[%s9532_s9 + $0x20] sm:$0xff] }
 0x11c   :  { %v5999_v59 = vpop.permute.xlu0 %1069 }
 0x11d   :  { %9549 = vst [vmem:[#allocation16_spill] sm:$0xff] %v5999_v59  ;;  %v6004_v60 = vpop.permute.xlu2 %829 }
 0x11e   :  { %9550 = vst [vmem:[#allocation17_spill] sm:$0xff] %v6004_v60  ;;  %v429_v60 = vld [vmem:[%s9532_s9 + $0x1e0] sm:$0xff] }
 0x11f   :  { %5047 = vmatmul.msk.f32.gmra.mxu0 %vm1137_vm0, %v252_v52  ;;  %v418_v52 = vld [vmem:[%s9532_s9 + $0x188] sm:$0xff] }
 0x120   :  { %5089 = vmatmul.msk.f32.gmra.mxu1 %vm1137_vm0, %v294_v62  ;;  %5118 = vmatmul.msk.f32.gmra.mxu2 %vm1137_vm0, %v323_v63  ;;  %v257_v62 = vld [vmem:[%s9536_s1 + $0x80] sm:$0xff] }
 0x121   :  { %5146 = vmatmul.msk.f32.gmra.mxu3 %vm1137_vm0, %v351_v0 }
 0x122   :  { %894 = vperm.xlu0 %5267, %v448_v51   ;;  %v299_v51 = vld [vmem:[%s9536_s1 + $0x1d0] sm:$0xff] }
 0x123   :  { %1114 = vperm.xlu2 %5266, %v492_v53   ;;  %v328_v53 = vld [vmem:[%s9536_s1 + $0x2b8] sm:$0xff] }
 0x124   :  { %v6025_v3 = vpop.permute.xlu0 %1104 }
 0x125   :  { %9551 = vst [vmem:[#allocation18_spill] sm:$0xff] %v6025_v3  ;;  %v6030_v7 = vpop.permute.xlu2 %879 }
 0x127   :  { %5048 = vmatmul.msk.f32.gmra.mxu0 %vm1137_vm0, %v253_v4 }
 0x128   :  { %5090 = vmatmul.msk.f32.gmra.mxu1 %vm1137_vm0, %v295_v8  ;;  %5119 = vmatmul.msk.f32.gmra.mxu2 %vm1137_vm0, %v324_v9  ;;  %v356_v8 = vld [vmem:[%s9536_s1 + $0x398] sm:$0xff] }
 0x129   :  { %5147 = vmatmul.msk.f32.gmra.mxu3 %vm1137_vm0, %v352_v11  ;;  %v408_v9 = vld [vmem:[%s9532_s9 + $0x138] sm:$0xff]  ;;  %v369_v11 = vld [vmem:[%s9532_s9] sm:$0xff] }
 0x12a   :  { %964 = vperm.xlu0 %5267, %v462_v13  }
 0x12b   :  { %719 = vperm.xlu2 %5266, %v413_v14   ;;  %v258_v14 = vld [vmem:[%s9536_s1 + $0x88] sm:$0xff] }
 0x12c   :  { %v6051_v17 = vpop.permute.xlu0 %849 }
 0x12d   :  { %9552 = vst [vmem:[#allocation19_spill] sm:$0xff] %v6051_v17  ;;  %v6056_v19 = vpop.permute.xlu2 %1054  ;;  %v371_v17 = vld [vmem:[%s9532_s9 + $0x10] sm:$0xff] }
 0x12e   :  { %9553 = vst [vmem:[#allocation20_spill] sm:$0xff] %v6056_v19 }
 0x12f   :  { %5049 = vmatmul.msk.f32.gmra.mxu0 %vm1137_vm0, %v254_v18 }
 0x130   :  { %5091 = vmatmul.msk.f32.gmra.mxu1 %vm1137_vm0, %v296_v20  ;;  %5120 = vmatmul.msk.f32.gmra.mxu2 %vm1137_vm0, %v325_v22  ;;  %v300_v20 = vld [vmem:[%s9536_s1 + $0x1d8] sm:$0xff]  ;;  %v329_v22 = vld [vmem:[%s9536_s1 + $0x2c0] sm:$0xff] }
 0x131   :  { %5148 = vmatmul.msk.f32.gmra.mxu3 %vm1137_vm0, %v353_v26 }
 0x132   :  { %739 = vperm.xlu0 %5267, %v417_v27  }
 0x133   :  { %929 = vperm.xlu2 %5266, %v455_v28   ;;  %v357_v28 = vld [vmem:[%s9536_s1 + $0x3a0] sm:$0xff] }
 0x134   :  { %v6077_v29 = vpop.permute.xlu0 %884 }
 0x135   :  { %v6082_v31 = vpop.permute.xlu2 %1119 }
 0x136   :  { %9554 = vst [vmem:[#allocation21_spill] sm:$0xff] %v6082_v31 }
 0x137   :  { %5050 = vmatmul.msk.f32.gmra.mxu0 %vm1137_vm0, %v255_v30  ;;  %v422_v30 = vld [vmem:[%s9532_s9 + $0x1a8] sm:$0xff] }
 0x138   :  { %5092 = vmatmul.msk.f32.gmra.mxu1 %vm1137_vm0, %v297_v36  ;;  %5121 = vmatmul.msk.f32.gmra.mxu2 %vm1137_vm0, %v326_v38  ;;  %v374_v36 = vld [vmem:[%s9532_s9 + $0x28] sm:$0xff] }
 0x139   :  { %5149 = vmatmul.msk.f32.gmra.mxu3 %vm1137_vm0, %v354_v39  ;;  %v259_v39 = vld [vmem:[%s9536_s1 + $0x90] sm:$0xff] }
 0x13a   :  { %949 = vperm.xlu0 %5267, %v459_v40  }
 0x13b   :  { %1134 = vperm.xlu2 %5266, %v496_v41   ;;  %v301_v41 = vld [vmem:[%s9536_s1 + $0x1e0] sm:$0xff] }
 0x13c   :  { %v6103_v42 = vpop.permute.xlu0 %1089 }
 0x13d   :  { %9555 = vst [vmem:[#allocation22_spill] sm:$0xff] %v6103_v42  ;;  %v6108_v49 = vpop.permute.xlu2 %869 }
 0x13f   :  { %5051 = vmatmul.msk.f32.gmra.mxu0 %vm1137_vm0, %v256_v47  ;;  %v330_v47 = vld [vmem:[%s9536_s1 + $0x2c8] sm:$0xff] }
 0x140   :  { %5093 = vmatmul.msk.f32.gmra.mxu1 %vm1137_vm0, %v298_v50  ;;  %5122 = vmatmul.msk.f32.gmra.mxu2 %vm1137_vm0, %v327_v54 }
 0x141   :  { %5150 = vmatmul.msk.f32.gmra.mxu3 %vm1137_vm0, %v355_v55  ;;  %v358_v55 = vld [vmem:[%s9536_s1 + $0x3a8] sm:$0xff] }
 0x142   :  { %519 = vperm.xlu0 %5267, %v373_v58   ;;  %v377_v58 = vld [vmem:[%s9532_s9 + $0x40] sm:$0xff] }
 0x143   :  { %744 = vperm.xlu2 %5266, %v418_v52   ;;  %v415_v52 = vld [vmem:[%s9532_s9 + $0x170] sm:$0xff] }
 0x144   :  { %v6134_v0 = vpop.permute.xlu0 %1124 }
 0x145   :  { %v6132_v63 = vpop.f32.mrf.mxu1  ;;  %9556 = vst [vmem:[#allocation23_spill] sm:$0xff] %v6134_v0  ;;  %v6142_v4 = vpop.permute.xlu2 %904 }
 0x147   :  { %5052 = vmatmul.msk.f32.gmra.mxu0 %vm1137_vm0, %v257_v62  ;;  %v6215_v62 = vpop.f32.mrf.mxu0 }
 0x148   :  { %5094 = vmatmul.msk.f32.gmra.mxu1 %vm1137_vm0, %v299_v51  ;;  %5123 = vmatmul.msk.f32.gmra.mxu2 %vm1137_vm0, %v328_v53  ;;  %9560 = vst [vmem:[#allocation27_spill] sm:$0xff] %v6215_v62 }
 0x149   :  { %5151 = vmatmul.msk.f32.gmra.mxu3 %vm1137_vm0, %v356_v8  ;;  %v260_v8 = vld [vmem:[%s9536_s1 + $0x98] sm:$0xff] }
 0x14a   :  { %694 = vperm.xlu0 %5267, %v408_v9  }
 0x14b   :  { %v1752_v13 = vpop.f32.mrf.mxu2  ;;  %499 = vperm.xlu2 %5266, %v369_v11   ;;  %v302_v11 = vld [vmem:[%s9536_s1 + $0x1e8] sm:$0xff] }
 0x14c   :  { %v6168_v26 = vpop.permute.xlu0 %899  ;;  %v6374_v1 = vpop.f32.mrf.mxu3 }
 0x14d   :  { %v6160_v18 = vpop.f32.mrf.mxu1  ;;  %v6170_v27 = vpop.permute.xlu2 %1109 }
 0x14e   :  { %9557 = vst [vmem:[#allocation24_spill] sm:$0xff] %v6170_v27 }
 0x14f   :  { %5053 = vmatmul.msk.f32.gmra.mxu0 %vm1137_vm0, %v258_v14  ;;  %v331_v14 = vld [vmem:[%s9536_s1 + $0x2d0] sm:$0xff] }
 0x150   :  { %5095 = vmatmul.msk.f32.gmra.mxu1 %vm1137_vm0, %v300_v20  ;;  %5124 = vmatmul.msk.f32.gmra.mxu2 %vm1137_vm0, %v329_v22 }
 0x151   :  { %5152 = vmatmul.msk.f32.gmra.mxu3 %vm1137_vm0, %v357_v28 }
 0x152   :  { %764 = vperm.xlu0 %5267, %v422_v30   ;;  %v419_v30 = vld [vmem:[%s9532_s9 + $0x190] sm:$0xff] }
 0x153   :  { %v6185_v38 = vpop.f32.mrf.mxu2  ;;  %524 = vperm.xlu2 %5266, %v374_v36   ;;  %v456_v36 = vld [vmem:[%s9532_s9 + $0x2b8] sm:$0xff] }
 0x154   :  { %v6198_v50 = vpop.permute.xlu0 %1074  ;;  %v6410_v27 = vpop.f32.mrf.mxu3 }
 0x155   :  { %v6190_v40 = vpop.f32.mrf.mxu1  ;;  %9558 = vst [vmem:[#allocation25_spill] sm:$0xff] %v6198_v50  ;;  %v6200_v54 = vpop.permute.xlu2 %679  ;;  %v431_v50 = vld [vmem:[%s9532_s9 + $0x1f0] sm:$0xff] }
 0x156   :  { %9559 = vst [vmem:[#allocation26_spill] sm:$0xff] %v6200_v54 }
 0x157   :  { %5054 = vmatmul.msk.f32.gmra.mxu0 %vm1137_vm0, %v259_v39 }
 0x158   :  { %5096 = vmatmul.msk.f32.gmra.mxu1 %vm1137_vm0, %v301_v41  ;;  %5125 = vmatmul.msk.f32.gmra.mxu2 %vm1137_vm0, %v330_v47  ;;  %v261_v41 = vld [vmem:[%s9536_s1 + $0xa0] sm:$0xff]  ;;  %v6254_v47 = vpop.f32.mrf.mxu0 }
 0x159   :  { %5153 = vmatmul.msk.f32.gmra.mxu3 %vm1137_vm0, %v358_v55 }
 0x15a   :  { %539 = vperm.xlu0 %5267, %v377_v58   ;;  %v303_v58 = vld [vmem:[%s9536_s1 + $0x1f0] sm:$0xff] }
 0x15b   :  { %v1758_v51 = vpop.f32.mrf.mxu2  ;;  %729 = vperm.xlu2 %5266, %v415_v52   ;;  %v332_v52 = vld [vmem:[%s9536_s1 + $0x2d8] sm:$0xff] }
 0x15c   :  { %v6218_v53 = vadd.f32 %v1758_v51, %v5973_v46  ;;  %v6231_v20 = vpop.permute.xlu0 %664  ;;  %v359_v46 = vld [vmem:[%s9536_s1 + $0x3b0] sm:$0xff]  ;;  %v6449_v48 = vpop.f32.mrf.mxu3 }
 0x15d   :  { %v6223_v9 = vpop.f32.mrf.mxu1  ;;  %9561 = vst [vmem:[#allocation28_spill] sm:$0xff] %v6231_v20  ;;  %v855_v22 = vpop.permute.xlu2 %854 }
 0x15e   :  { %v6236_v28 = vadd.f32 %v1752_v13, %v855_v22 }
 0x15f   :  { %5055 = vmatmul.msk.f32.gmra.mxu0 %vm1137_vm0, %v260_v8  ;;  %v360_v8 = vld [vmem:[%s9536_s1 + $0x3b8] sm:$0xff] }
 0x160   :  { %5097 = vmatmul.msk.f32.gmra.mxu1 %vm1137_vm0, %v302_v11  ;;  %5126 = vmatmul.msk.f32.gmra.mxu2 %vm1137_vm0, %v331_v14  ;;  %v460_v11 = vld [vmem:[%s9532_s9 + $0x2d8] sm:$0xff]  ;;  %v378_v14 = vld [vmem:[%s9532_s9 + $0x48] sm:$0xff] }
 0x161   :  { %5154 = vmatmul.msk.f32.gmra.mxu3 %vm1137_vm0, %v359_v46  ;;  %v262_v46 = vld [vmem:[%s9536_s1 + $0xa8] sm:$0xff] }
 0x162   :  { %749 = vperm.xlu0 %5267, %v419_v30  }
 0x163   :  { %v1761_v39 = vpop.f32.mrf.mxu2  ;;  %934 = vperm.xlu2 %5266, %v456_v36   ;;  %v304_v36 = vld [vmem:[%s9536_s1 + $0x1f8] sm:$0xff] }
 0x164   :  { %v6249_v13 = vadd.f32 %v1761_v39, %v6108_v49  ;;  %v6264_v51 = vpop.permute.xlu0 %834  ;;  %v333_v39 = vld [vmem:[%s9536_s1 + $0x2e0] sm:$0xff] }
 0x165   :  { %v6256_v55 = vpop.f32.mrf.mxu1  ;;  %9563 = vst [vmem:[#allocation30_spill] sm:$0xff] %v6264_v51  ;;  %v6266_v49 = vpop.permute.xlu2 %924 }
 0x166   :  { %9562 = vst [vmem:[#allocation29_spill] sm:$0xff] %v6256_v55 }
 0x167   :  { %9564 = vst [vmem:[#allocation31_spill] sm:$0xff] %v6266_v49  ;;  %5056 = vmatmul.msk.f32.gmra.mxu0 %vm1137_vm0, %v261_v41 }
 0x168   :  { %5098 = vmatmul.msk.f32.gmra.mxu1 %vm1137_vm0, %v303_v58  ;;  %5127 = vmatmul.msk.f32.gmra.mxu2 %vm1137_vm0, %v332_v52  ;;  %v361_v52 = vld [vmem:[%s9536_s1 + $0x3c0] sm:$0xff] }
 0x169   :  { %5155 = vmatmul.msk.f32.gmra.mxu3 %vm1137_vm0, %v360_v8  ;;  %v6301_v8 = vpop.f32.mrf.mxu0 }
 0x16a   :  { %954 = vperm.xlu0 %5267, %v460_v11   ;;  %9567 = vst [vmem:[#allocation34_spill] sm:$0xff] %v6301_v8  ;;  %v381_v11 = vld [vmem:[%s9532_s9 + $0x60] sm:$0xff] }
 0x16b   :  { %v6281_v22 = vpop.f32.mrf.mxu2  ;;  %544 = vperm.xlu2 %5266, %v378_v14   ;;  %v425_v14 = vld [vmem:[%s9532_s9 + $0x1c0] sm:$0xff] }
 0x16c   :  { %v6294_v41 = vpop.permute.xlu0 %919 }
 0x16d   :  { %v6286_v30 = vpop.f32.mrf.mxu1  ;;  %9565 = vst [vmem:[#allocation32_spill] sm:$0xff] %v6294_v41  ;;  %v6296_v58 = vpop.permute.xlu2 %699 }
 0x16e   :  { %9566 = vst [vmem:[#allocation33_spill] sm:$0xff] %v6296_v58 }
 0x16f   :  { %5057 = vmatmul.msk.f32.gmra.mxu0 %vm1137_vm0, %v262_v46  ;;  %v263_v46 = vld [vmem:[%s9536_s1 + $0xb0] sm:$0xff] }
 0x170   :  { %5099 = vmatmul.msk.f32.gmra.mxu1 %vm1137_vm0, %v304_v36  ;;  %5128 = vmatmul.msk.f32.gmra.mxu2 %vm1137_vm0, %v333_v39  ;;  %v305_v36 = vld [vmem:[%s9536_s1 + $0x200] sm:$0xff]  ;;  %v334_v39 = vld [vmem:[%s9536_s1 + $0x2e8] sm:$0xff] }
 0x171   :  { %5156 = vmatmul.msk.f32.gmra.mxu3 %vm1137_vm0, %v361_v52 }
 0x172   :  { %559 = vperm.xlu0 %5267, %v381_v11   ;;  %v362_v11 = vld [vmem:[%s9536_s1 + $0x3c8] sm:$0xff] }
 0x173   :  { %v6313_v58 = vpop.f32.mrf.mxu2  ;;  %779 = vperm.xlu2 %5266, %v425_v14   ;;  %v423_v14 = vld [vmem:[%s9532_s9 + $0x1b0] sm:$0xff] }
 0x174   :  { %v6326_v20 = vpop.permute.xlu0 %1129 }
 0x175   :  { %v6318_v54 = vpop.f32.mrf.mxu1  ;;  %9568 = vst [vmem:[#allocation35_spill] sm:$0xff] %v6326_v20  ;;  %v6328_v52 = vpop.permute.xlu2 %909 }
 0x176   :  { %9569 = vst [vmem:[#allocation36_spill] sm:$0xff] %v6328_v52  ;;  %v6342_v20 = vpop.f32.mrf.mxu0 }
 0x177   :  { %5058 = vmatmul.msk.f32.gmra.mxu0 %vm1137_vm0, %v263_v46  ;;  %9570 = vst [vmem:[#allocation37_spill] sm:$0xff] %v6342_v20  ;;  %v264_v46 = vld [vmem:[%s9536_s1 + $0xb8] sm:$0xff]  ;;  %v386_v20 = vld [vmem:[%s9532_s9 + $0x88] sm:$0xff] }
 0x178   :  { %5100 = vmatmul.msk.f32.gmra.mxu1 %vm1137_vm0, %v305_v36  ;;  %5129 = vmatmul.msk.f32.gmra.mxu2 %vm1137_vm0, %v334_v39  ;;  %v306_v36 = vld [vmem:[%s9536_s1 + $0x208] sm:$0xff]  ;;  %v335_v39 = vld [vmem:[%s9536_s1 + $0x2f0] sm:$0xff] }
 0x179   :  { %5157 = vmatmul.msk.f32.gmra.mxu3 %vm1137_vm0, %v362_v11 }
 0x17a   :  { %769 = vperm.xlu0 %5267, %v423_v14   ;;  %v464_v14 = vld [vmem:[%s9532_s9 + $0x2f8] sm:$0xff] }
 0x17b   :  { %v6345_v24 = vpop.f32.mrf.mxu2  ;;  %509 = vperm.xlu2 %5266, %v371_v17   ;;  %v363_v17 = vld [vmem:[%s9536_s1 + $0x3d0] sm:$0xff] }
 0x17c   :  { %v6358_v0 = vpop.permute.xlu0 %874 }
 0x17d   :  { %v6350_v57 = vpop.f32.mrf.mxu1  ;;  %v6360_v11 = vpop.permute.xlu2 %1114 }
 0x17e   :  { %9571 = vst [vmem:[#allocation38_spill] sm:$0xff] %v6350_v57  ;;  %v6377_v31 = vpop.f32.mrf.mxu0 }
 0x17f   :  { %9572 = vst [vmem:[#allocation39_spill] sm:$0xff] %v6360_v11  ;;  %5059 = vmatmul.msk.f32.gmra.mxu0 %vm1137_vm0, %v264_v46 }
 0x180   :  { %5101 = vmatmul.msk.f32.gmra.mxu1 %vm1137_vm0, %v306_v36  ;;  %5130 = vmatmul.msk.f32.gmra.mxu2 %vm1137_vm0, %v335_v39  ;;  %9573 = vst [vmem:[#allocation40_spill] sm:$0xff] %v6377_v31  ;;  %v265_v36 = vld [vmem:[%s9536_s1 + $0xc0] sm:$0xff]  ;;  %v307_v39 = vld [vmem:[%s9536_s1 + $0x210] sm:$0xff] }
 0x181   :  { %5158 = vmatmul.msk.f32.gmra.mxu3 %vm1137_vm0, %v363_v17  ;;  %v336_v17 = vld [vmem:[%s9536_s1 + $0x2f8] sm:$0xff] }
 0x182   :  { %974 = vperm.xlu0 %5267, %v464_v14  }
 0x183   :  { %v6379_v46 = vpop.f32.mrf.mxu2  ;;  %564 = vperm.xlu2 %5266, %v382_v43   ;;  %v364_v43 = vld [vmem:[%s9536_s1 + $0x3d8] sm:$0xff] }
 0x184   :  { %v6392_v14 = vpop.permute.xlu0 %944 }
 0x185   :  { %v6384_v32 = vpop.f32.mrf.mxu1  ;;  %9575 = vst [vmem:[#allocation42_spill] sm:$0xff] %v6392_v14  ;;  %v720_v51 = vpop.permute.xlu2 %719  ;;  %v389_v14 = vld [vmem:[%s9532_s9 + $0xa0] sm:$0xff] }
 0x186   :  { %9574 = vst [vmem:[#allocation41_spill] sm:$0xff] %v6384_v32  ;;  %v6398_v11 = vadd.f32 %v6190_v40, %v720_v51  ;;  %v266_v51 = vld [vmem:[%s9536_s1 + $0xc8] sm:$0xff] }
 0x187   :  { %5060 = vmatmul.msk.f32.gmra.mxu0 %vm1137_vm0, %v265_v36  ;;  %v6417_v36 = vpop.f32.mrf.mxu0 }
 0x188   :  { %9576 = vst [vmem:[#allocation43_spill] sm:$0xff] %v6398_v11  ;;  %5102 = vmatmul.msk.f32.gmra.mxu1 %vm1137_vm0, %v307_v39  ;;  %5131 = vmatmul.msk.f32.gmra.mxu2 %vm1137_vm0, %v336_v17  ;;  %v308_v17 = vld [vmem:[%s9536_s1 + $0x218] sm:$0xff] }
 0x189   :  { %5159 = vmatmul.msk.f32.gmra.mxu3 %vm1137_vm0, %v364_v43 }
 0x18a   :  { %584 = vperm.xlu0 %5267, %v386_v20   ;;  %v337_v20 = vld [vmem:[%s9536_s1 + $0x300] sm:$0xff] }
 0x18b   :  { %v6412_v40 = vpop.f32.mrf.mxu2  ;;  %799 = vperm.xlu2 %5266, %v429_v60   ;;  %v365_v60 = vld [vmem:[%s9536_s1 + $0x3e0] sm:$0xff] }
 0x18c   :  { %v6427_v43 = vpop.permute.xlu0 %689 }
 0x18d   :  { %v6419_v39 = vpop.f32.mrf.mxu1  ;;  %9578 = vst [vmem:[#allocation45_spill] sm:$0xff] %v6427_v43  ;;  %v6429_v3 = vpop.permute.xlu2 %929  ;;  %v379_v43 = vld [vmem:[%s9532_s9 + $0x50] sm:$0xff] }
 0x18e   :  { %9577 = vst [vmem:[#allocation44_spill] sm:$0xff] %v6419_v39  ;;  %v372_v39 = vld [vmem:[%s9532_s9 + $0x18] sm:$0xff] }
 0x18f   :  { %9579 = vst [vmem:[#allocation46_spill] sm:$0xff] %v6429_v3  ;;  %5061 = vmatmul.msk.f32.gmra.mxu0 %vm1137_vm0, %v266_v51  ;;  %v267_v51 = vld [vmem:[%s9536_s1 + $0xd0] sm:$0xff]  ;;  %v6466_v33 = vpop.f32.mrf.mxu0 }
 0x190   :  { %5103 = vmatmul.msk.f32.gmra.mxu1 %vm1137_vm0, %v308_v17  ;;  %5132 = vmatmul.msk.f32.gmra.mxu2 %vm1137_vm0, %v337_v20  ;;  %v309_v17 = vld [vmem:[%s9536_s1 + $0x220] sm:$0xff]  ;;  %v338_v20 = vld [vmem:[%s9536_s1 + $0x308] sm:$0xff] }
 0x191   :  { %5160 = vmatmul.msk.f32.gmra.mxu3 %vm1137_vm0, %v365_v60 }
 0x192   :  { %514 = vperm.xlu0 %5267, %v372_v39  }
 0x193   :  { %v6444_v44 = vpop.f32.mrf.mxu2  ;;  %549 = vperm.xlu2 %5266, %v379_v43   ;;  %v366_v43 = vld [vmem:[%s9536_s1 + $0x3e8] sm:$0xff] }
 0x194   :  { %v6459_v39 = vpop.permute.xlu0 %894 }
 0x195   :  { %v6451_v42 = vpop.f32.mrf.mxu1  ;;  %v6461_v60 = vpop.permute.xlu2 %1134 }
 0x196   :  { %9580 = vst [vmem:[#allocation47_spill] sm:$0xff] %v6461_v60  ;;  %v420_v60 = vld [vmem:[%s9532_s9 + $0x198] sm:$0xff] }
 0x197   :  { %5062 = vmatmul.msk.f32.gmra.mxu0 %vm1137_vm0, %v267_v51  ;;  %v268_v51 = vld [vmem:[%s9536_s1 + $0xd8] sm:$0xff] }
 0x198   :  { %5104 = vmatmul.msk.f32.gmra.mxu1 %vm1137_vm0, %v309_v17  ;;  %5133 = vmatmul.msk.f32.gmra.mxu2 %vm1137_vm0, %v338_v20  ;;  %v310_v17 = vld [vmem:[%s9536_s1 + $0x228] sm:$0xff]  ;;  %v339_v20 = vld [vmem:[%s9536_s1 + $0x310] sm:$0xff] }
 0x199   :  { %5161 = vmatmul.msk.f32.gmra.mxu3 %vm1137_vm0, %v366_v43  ;;  %v6498_v43 = vpop.f32.mrf.mxu3 }
 0x19a   :  { %599 = vperm.xlu0 %5267, %v389_v14  }
 0x19b   :  { %v6478_v8 = vpop.f32.mrf.mxu2  ;;  %754 = vperm.xlu2 %5266, %v420_v60   ;;  %v367_v60 = vld [vmem:[%s9536_s1 + $0x3f0] sm:$0xff] }
 0x19c   :  { %v6491_v12 = vpop.permute.xlu0 %964 }
 0x19d   :  { %v6483_v32 = vpop.f32.mrf.mxu1  ;;  %9582 = vst [vmem:[#allocation49_spill] sm:$0xff] %v6491_v12  ;;  %v6493_v14 = vpop.permute.xlu2 %744  ;;  %v376_v12 = vld [vmem:[%s9532_s9 + $0x38] sm:$0xff] }
 0x19e   :  { %9581 = vst [vmem:[#allocation48_spill] sm:$0xff] %v6483_v32  ;;  %v6509_v32 = vpop.f32.mrf.mxu0 }
 0x19f   :  { %9583 = vst [vmem:[#allocation50_spill] sm:$0xff] %v6493_v14  ;;  %5063 = vmatmul.msk.f32.gmra.mxu0 %vm1137_vm0, %v268_v51  ;;  %v269_v51 = vld [vmem:[%s9536_s1 + $0xe0] sm:$0xff] }
 0x1a0   :  { %5105 = vmatmul.msk.f32.gmra.mxu1 %vm1137_vm0, %v310_v17  ;;  %5134 = vmatmul.msk.f32.gmra.mxu2 %vm1137_vm0, %v339_v20  ;;  %9584 = vst [vmem:[#allocation51_spill] sm:$0xff] %v6509_v32  ;;  %v311_v17 = vld [vmem:[%s9536_s1 + $0x230] sm:$0xff]  ;;  %v390_v32 = vld [vmem:[%s9532_s9 + $0xa8] sm:$0xff] }
 0x1a1   :  { %5162 = vmatmul.msk.f32.gmra.mxu3 %vm1137_vm0, %v367_v60 }
 0x1a2   :  { %809 = vperm.xlu0 %5267, %v431_v50   ;;  %v368_v50 = vld [vmem:[%s9536_s1 + $0x3f8] sm:$0xff] }
 0x1a3   :  { %v6512_v59 = vpop.f32.mrf.mxu2  ;;  %534 = vperm.xlu2 %5266, %v376_v12   ;;  %v393_v12 = vld [vmem:[%s9532_s9 + $0xc0] sm:$0xff] }
 0x1a4   :  { %9585 = vst [vmem:[#allocation52_spill] sm:$0xff] %v6512_v59  ;;  %v740_v20 = vpop.permute.xlu0 %739 }
 0x1a5   :  { %v6517_v3 = vpop.f32.mrf.mxu1  ;;  %v6522_v56 = vpop.permute.xlu2 %499  ;;  %v6528_v60 = vadd.f32 %v6318_v54, %v740_v20 }
 0x1a6   :  { %9586 = vst [vmem:[#allocation53_spill] sm:$0xff] %v6517_v3  ;;  %v6538_v3 = vpop.f32.mrf.mxu3  ;;  %v6541_v49 = vpop.f32.mrf.mxu0 }
 0x1a7   :  { %9587 = vst [vmem:[#allocation54_spill] sm:$0xff] %v6522_v56  ;;  %5064 = vmatmul.msk.f32.gmra.mxu0 %vm1137_vm0, %v269_v51  ;;  %v270_v51 = vld [vmem:[%s9536_s1 + $0xe8] sm:$0xff] }
 0x1a8   :  { %9588 = vst [vmem:[#allocation55_spill] sm:$0xff] %v6528_v60  ;;  %5106 = vmatmul.msk.f32.gmra.mxu1 %vm1137_vm0, %v311_v17  ;;  %v2051_v17 = vld [vmem:[%s9324_s0] sm:$0xff] }
 0x1a9   :  { %5163 = vmatmul.msk.f32.gmra.mxu3 %vm1137_vm0, %v368_v50  ;;  %9589 = vst [vmem:[#allocation56_spill] sm:$0xff] %v6541_v49 }
 0x1aa   :  { %619 = vperm.xlu0 %5267, %v393_v12  }
 0x1ab   :  { %v6543_v54 = vpop.f32.mrf.mxu2  ;;  %604 = vperm.xlu2 %5266, %v390_v32   ;;  %v384_v32 = vld [vmem:[%s9532_s9 + $0x78] sm:$0xff] }
 0x1ac   :  { %9590 = vst [vmem:[#allocation57_spill] sm:$0xff] %v6543_v54  ;;  %v6553_v55 = vpop.permute.xlu0 %949 }
 0x1ad   :  { %v6548_v20 = vpop.f32.mrf.mxu1  ;;  %v525_v50 = vpop.permute.xlu2 %524 }
 0x1ae   :  { %9591 = vst [vmem:[#allocation58_spill] sm:$0xff] %v6548_v20  ;;  %v6556_v12 = vadd.f32 %v6417_v36, %v525_v50  ;;  %v380_v20 = vld [vmem:[%s9532_s9 + $0x58] sm:$0xff]  ;;  %v271_v36 = vld [vmem:[%s9536_s1 + $0xf0] sm:$0xff]  ;;  %v1566_v50 = vpop.f32.mrf.mxu0 }
 0x1af   :  { %5065 = vmatmul.msk.f32.gmra.mxu0 %vm1137_vm0, %v270_v51 }
 0x1b0   :  { %9592 = vst [vmem:[#allocation59_spill] sm:$0xff] %v6556_v12  ;;  %5164 = vmatmul.msk.f32.vlgmr.msrb.gmra.mxu1 %vm2058_vm1, %v2051_v17  ;;  %v2052_v12 = vld [vmem:[%s9324_s0 + $0x8] sm:$0xf] }
 0x1b2   :  { %574 = vperm.xlu0 %5267, %v384_v32   ;;  %v394_v32 = vld [vmem:[%s9532_s9 + $0xc8] sm:$0xff] }
 0x1b3   :  { %v6566_v49 = vpop.f32.mrf.mxu2  ;;  %554 = vperm.xlu2 %5266, %v380_v20   ;;  %v398_v20 = vld [vmem:[%s9532_s9 + $0xe8] sm:$0xff] }
 0x1b4   :  { %9593 = vst [vmem:[#allocation60_spill] sm:$0xff] %v6566_v49  ;;  %v6576_v17 = vpop.permute.xlu0 %519 }
 0x1b5   :  { %v6571_v51 = vpop.f32.mrf.mxu1  ;;  %9595 = vst [vmem:[#allocation62_spill] sm:$0xff] %v6576_v17  ;;  %v6578_v31 = vpop.permute.xlu2 %729 }
 0x1b6   :  { %9594 = vst [vmem:[#allocation61_spill] sm:$0xff] %v6571_v51  ;;  %v6599_v49 = vpop.f32.mrf.mxu0 }
 0x1b7   :  { %9596 = vst [vmem:[#allocation63_spill] sm:$0xff] %v6578_v31  ;;  %5066 = vmatmul.msk.f32.gmra.mxu0 %vm1137_vm0, %v271_v36  ;;  %v272_v31 = vld [vmem:[%s9536_s1 + $0xf8] sm:$0xff] }
 0x1b8   :  { %5165 = vmatmul.msk.f32.gmra.mxu1 %vm2058_vm1, %v2052_v12  ;;  %9601 = vst [vmem:[#allocation68_spill] sm:$0xff] %v6599_v49  ;;  %v395_v12 = vld [vmem:[%s9532_s9 + $0xd0] sm:$0xff] }
 0x1ba   :  { %644 = vperm.xlu0 %5267, %v398_v20   ;;  %v391_v20 = vld [vmem:[%s9532_s9 + $0xb0] sm:$0xff] }
 0x1bb   :  { %v6588_v51 = vpop.f32.mrf.mxu2  ;;  %624 = vperm.xlu2 %5266, %v394_v32  }
 0x1bc   :  { %9597 = vst [vmem:[#allocation64_spill] sm:$0xff] %v6588_v51  ;;  %v6595_v36 = vpop.permute.xlu0 %694 }
 0x1bd   :  { %v6593_v17 = vpop.f32.mrf.mxu1  ;;  %9599 = vst [vmem:[#allocation66_spill] sm:$0xff] %v6595_v36  ;;  %v6597_v35 = vpop.permute.xlu2 %934  ;;  %v273_v36 = vld [vmem:[%s9536_s1 + $0x100] sm:$0xff] }
 0x1be   :  { %9598 = vst [vmem:[#allocation65_spill] sm:$0xff] %v6593_v17 }
 0x1bf   :  { %9600 = vst [vmem:[#allocation67_spill] sm:$0xff] %v6597_v35  ;;  %5067 = vmatmul.msk.f32.gmra.mxu0 %vm1137_vm0, %v272_v31 }
 0x1c2   :  { %629 = vperm.xlu0 %5267, %v395_v12   ;;  %v396_v12 = vld [vmem:[%s9532_s9 + $0xd8] sm:$0xff] }
 0x1c3   :  { %v6608_v32 = vpop.f32.mrf.mxu2  ;;  %609 = vperm.xlu2 %5266, %v391_v20   ;;  %v432_v20 = vld [vmem:[%s9532_s9 + $0x1f8] sm:$0xff] }
 0x1c4   :  { %9602 = vst [vmem:[#allocation69_spill] sm:$0xff] %v6608_v32  ;;  %v6615_v49 = vpop.permute.xlu0 %764  ;;  %v6626_v32 = vpop.f32.mrf.mxu0 }
 0x1c5   :  { %v6613_v35 = vpop.f32.mrf.mxu1  ;;  %9604 = vst [vmem:[#allocation71_spill] sm:$0xff] %v6615_v49  ;;  %v545_v31 = vpop.permute.xlu2 %544 }
 0x1c6   :  { %9603 = vst [vmem:[#allocation70_spill] sm:$0xff] %v6613_v35  ;;  %v6617_v17 = vadd.f32 %v1566_v50, %v545_v31  ;;  %v274_v50 = vld [vmem:[%s9536_s1 + $0x108] sm:$0xff] }
 0x1c7   :  { %5068 = vmatmul.msk.f32.gmra.mxu0 %vm1137_vm0, %v273_v36  ;;  %9606 = vst [vmem:[#allocation73_spill] sm:$0xff] %v6626_v32  ;;  %v392_v32 = vld [vmem:[%s9532_s9 + $0xb8] sm:$0xff] }
 0x1c8   :  { %9605 = vst [vmem:[#allocation72_spill] sm:$0xff] %v6617_v17 }
 0x1ca   :  { %634 = vperm.xlu0 %5267, %v396_v12  }
 0x1cb   :  { %v6628_v51 = vpop.f32.mrf.mxu2  ;;  %814 = vperm.xlu2 %5266, %v432_v20   ;;  %v275_v20 = vld [vmem:[%s9536_s1 + $0x110] sm:$0xff] }
 0x1cc   :  { %9607 = vst [vmem:[#allocation74_spill] sm:$0xff] %v6628_v51  ;;  %v6635_v36 = vpop.permute.xlu0 %539  ;;  %v1575_v12 = vpop.f32.mrf.mxu0 }
 0x1cd   :  { %v6633_v31 = vpop.f32.mrf.mxu1  ;;  %9609 = vst [vmem:[#allocation76_spill] sm:$0xff] %v6635_v36  ;;  %v6637_v17 = vpop.permute.xlu2 %779 }
 0x1ce   :  { %9608 = vst [vmem:[#allocation75_spill] sm:$0xff] %v6633_v31 }
 0x1cf   :  { %9610 = vst [vmem:[#allocation77_spill] sm:$0xff] %v6637_v17  ;;  %5069 = vmatmul.msk.f32.gmra.mxu0 %vm1137_vm0, %v274_v50  ;;  %v400_v50 = vld [vmem:[%s9532_s9 + $0xf8] sm:$0xff] }
 0x1d3   :  { %v6643_v49 = vpop.f32.mrf.mxu2  ;;  %614 = vperm.xlu2 %5266, %v392_v32   ;;  %v276_v32 = vld [vmem:[%s9536_s1 + $0x118] sm:$0xff] }
 0x1d4   :  { %9611 = vst [vmem:[#allocation78_spill] sm:$0xff] %v6643_v49  ;;  %v6650_v31 = vpop.permute.xlu0 %749  ;;  %v1578_v49 = vpop.f32.mrf.mxu0 }
 0x1d5   :  { %v6648_v51 = vpop.f32.mrf.mxu1  ;;  %9613 = vst [vmem:[#allocation80_spill] sm:$0xff] %v6650_v31  ;;  %v6652_v36 = vpop.permute.xlu2 %509 }
 0x1d6   :  { %9612 = vst [vmem:[#allocation79_spill] sm:$0xff] %v6648_v51 }
 0x1d7   :  { %9614 = vst [vmem:[#allocation81_spill] sm:$0xff] %v6652_v36  ;;  %5070 = vmatmul.msk.f32.gmra.mxu0 %vm1137_vm0, %v275_v20 }
 0x1db   :  { %v6658_v17 = vpop.f32.mrf.mxu2  ;;  %654 = vperm.xlu2 %5266, %v400_v50   ;;  %v277_v50 = vld [vmem:[%s9536_s1 + $0x120] sm:$0xff] }
 0x1dc   :  { %9615 = vst [vmem:[#allocation82_spill] sm:$0xff] %v6658_v17  ;;  %v6665_v51 = vpop.permute.xlu0 %954 }
 0x1dd   :  { %v6663_v35 = vpop.f32.mrf.mxu1  ;;  %9617 = vst [vmem:[#allocation84_spill] sm:$0xff] %v6665_v51  ;;  %v565_v31 = vpop.permute.xlu2 %564 }
 0x1de   :  { %9616 = vst [vmem:[#allocation83_spill] sm:$0xff] %v6663_v35  ;;  %v6667_v36 = vadd.f32 %v1578_v49, %v565_v31  ;;  %v6681_v51 = vpop.permute.xlu1 %824  ;;  %v6686_v49 = vld [vmem:[%s9326_s2 + $0x8] sm:$0xf] }
 0x1df   :  { %5071 = vmatmul.msk.f32.gmra.mxu0 %vm1137_vm0, %v276_v32  ;;  %9622 = vst [vmem:[#allocation89_spill] sm:$0xff] %v6681_v51  ;;  %5166 = vmatpush.msk.msrb.mxu2 %vm9498_vm2, %v6686_v49  ;;  %v279_v32 = vld [vmem:[%s9536_s1 + $0x130] sm:$0xff]  ;;  %v2104_v35 = vld [vmem:[%s9328_s14 + $0x8] sm:$0xff] }
 0x1e0   :  { %9618 = vst [vmem:[#allocation85_spill] sm:$0xff] %v6667_v36 }
 0x1e3   :  { %v1809_v20 = vpop.f32.mrf.mxu2 }
 0x1e4   :  { %v6671_v41 = vadd.f32 %v1809_v20, %v6553_v55  ;;  %v560_v60 = vpop.permute.xlu0 %559  ;;  %v278_v55 = vld [vmem:[%s9536_s1 + $0x128] sm:$0xff] }
 0x1e5   :  { %v6676_v17 = vpop.f32.mrf.mxu1  ;;  %v6678_v19 = vadd.f32 %v1575_v12, %v560_v60  ;;  %v6696_v60 = vpop.f32.mrf.mxu0 }
 0x1e6   :  { %9619 = vst [vmem:[#allocation86_spill] sm:$0xff] %v6671_v41  ;;  %v6698_v12 = vpop.permute.xlu1 %659 }
 0x1e7   :  { %9620 = vst [vmem:[#allocation87_spill] sm:$0xff] %v6676_v17  ;;  %5072 = vmatmul.msk.f32.gmra.mxu0 %vm1137_vm0, %v277_v50 }
 0x1e8   :  { %9621 = vst [vmem:[#allocation88_spill] sm:$0xff] %v6678_v19 }
 0x1e9   :  { %9624 = vst [vmem:[#allocation91_spill] sm:$0xff] %v6696_v60  ;;  %v6773_v60 = vpop.f32.mrf.mxu3 }
 0x1ea   :  { %9625 = vst [vmem:[#allocation92_spill] sm:$0xff] %v6698_v12  ;;  %v281_v12 = vld [vmem:[%s9536_s1 + $0x140] sm:$0xff] }
 0x1ed   :  { %v6693_v31 = vpop.f32.mrf.mxu1  ;;  %v6706_v50 = vpop.f32.mrf.mxu0 }
 0x1ee   :  { %9623 = vst [vmem:[#allocation90_spill] sm:$0xff] %v6693_v31  ;;  %v6708_v17 = vpop.permute.xlu1 %684 }
 0x1ef   :  { %5073 = vmatmul.msk.f32.gmra.mxu0 %vm1137_vm0, %v278_v55  ;;  %9627 = vst [vmem:[#allocation94_spill] sm:$0xff] %v6706_v50  ;;  %v280_v55 = vld [vmem:[%s9536_s1 + $0x138] sm:$0xff] }
 0x1f0   :  { %9628 = vst [vmem:[#allocation95_spill] sm:$0xff] %v6708_v17  ;;  %v2097_v17 = vld [vmem:[%s9327_s11 + $0x18] sm:$0xff] }
 0x1f1   :  { %2878 = vmatpush.msrb.mxu3 %v2097_v17 }
 0x1f5   :  { %v6703_v20 = vpop.f32.mrf.mxu1  ;;  %v6719_v51 = vpop.f32.mrf.mxu0 }
 0x1f6   :  { %9626 = vst [vmem:[#allocation93_spill] sm:$0xff] %v6703_v20 }
 0x1f7   :  { %5074 = vmatmul.msk.f32.gmra.mxu0 %vm1137_vm0, %v279_v32  ;;  %9630 = vst [vmem:[#allocation97_spill] sm:$0xff] %v6719_v51  ;;  %v6723_v32 = vpop.permute.xlu1 %889 }
 0x1fd   :  { %v6713_v31 = vpop.f32.mrf.mxu1 }
 0x1fe   :  { %9629 = vst [vmem:[#allocation96_spill] sm:$0xff] %v6713_v31  ;;  %v2096_v31 = vld [vmem:[%s9327_s11 + $0x10] sm:$0xff] }
 0x1ff   :  { %5075 = vmatmul.msk.f32.gmra.mxu0 %vm1137_vm0, %v280_v55  ;;  %v282_v55 = vld [vmem:[%s9536_s1 + $0x148] sm:$0xff]  ;;  %2879 = vmatpush.msrb.mxu3 %v2096_v31  ;;  %v6743_v19 = vpop.permute.xlu1 %1094 }
 0x200   :  { %9634 = vst [vmem:[#allocation101_spill] sm:$0xff] %v6743_v19  ;;  %v2105_v19 = vld [vmem:[%s9328_s14 + $0x10] sm:$0xff] }
 0x205   :  { %v6721_v20 = vpop.f32.mrf.mxu1 }
 0x206   :  { %9631 = vst [vmem:[#allocation98_spill] sm:$0xff] %v6721_v20  ;;  %v6737_v20 = vpop.f32.mrf.mxu0 }
 0x207   :  { %5076 = vmatmul.msk.f32.gmra.mxu0 %vm1137_vm0, %v281_v12  ;;  %9633 = vst [vmem:[#allocation100_spill] sm:$0xff] %v6737_v20  ;;  %v2095_v12 = vld [vmem:[%s9327_s11 + $0x8] sm:$0xff]  ;;  %v6750_v36 = vpop.permute.xlu1 %704 }
 0x208   :  { %2880 = vmatpush.msrb.mxu3 %v2095_v12  ;;  %9636 = vst [vmem:[#allocation103_spill] sm:$0xff] %v6750_v36  ;;  %v2103_v36 = vld [vmem:[%s9328_s14] sm:$0xff] }
 0x20d   :  { %v6732_v50 = vpop.f32.mrf.mxu1 }
 0x20e   :  { %9632 = vst [vmem:[#allocation99_spill] sm:$0xff] %v6732_v50  ;;  %v2094_v50 = vld [vmem:[%s9327_s11] sm:$0xff] }
 0x20f   :  { %5077 = vmatmul.msk.f32.gmra.mxu0 %vm1137_vm0, %v282_v55  ;;  %2881 = vmatpush.msrb.mxu3 %v2094_v50  ;;  %v2106_v55 = vld [vmem:[%s9328_s14 + $0x18] sm:$0xff] }
 0x211   :  { %3012 = vmatpush.msra.mxu3 %v2106_v55 }
 0x213   :  { %3013 = vmatpush.msra.mxu3 %v2105_v19 }
 0x215   :  { %v6748_v41 = vpop.f32.mrf.mxu1  ;;  %3014 = vmatpush.msra.mxu3 %v2104_v35 }
 0x216   :  { %9635 = vst [vmem:[#allocation102_spill] sm:$0xff] %v6748_v41  ;;  %v6766_v41 = vpop.permute.xlu1 %939 }
 0x217   :  { %3015 = vmatpush.msra.mxu3 %v2103_v36  ;;  %9638 = vst [vmem:[#allocation105_spill] sm:$0xff] %v6766_v41  ;;  %v6782_v41 = vpop.f32.mrf.mxu3 }
 0x21d   :  { %v6755_v20 = vpop.f32.mrf.mxu1 }
 0x21e   :  { %9637 = vst [vmem:[#allocation104_spill] sm:$0xff] %v6755_v20  ;;  %v5268_v20 = vld [vmem:[%s9325_s6] ss:$0 sm:$0xff]  ;;  %v6775_v62 = vpop.permute.xlu1 %669 }
 0x21f   :  { %9640 = vst [vmem:[#allocation107_spill] sm:$0xff] %v6775_v62 }
 0x225   :  { %v6768_v51 = vpop.f32.mrf.mxu1 }
 0x226   :  { %9639 = vst [vmem:[#allocation106_spill] sm:$0xff] %v6768_v51  ;;  %v6784_v52 = vpop.permute.xlu1 %724 }
 0x22d   :  { %v2082_v54 = vpop.f32.mrf.mxu1 }
 0x22e   :  { %v2083_v56 = vadd.f32 %v5268_v20, %v2082_v54  ;;  %v6793_v54 = vpop.permute.xlu1 %959 }
 0x22f   :  { %9643 = vst [vmem:[#allocation110_spill] sm:$0xff] %v6793_v54 }
 0x230   :  { %v6777_v21 = vmax.f32 %v2083_v56, 0.0  ;;  %v6791_v56 = vpop.f32.mrf.mxu3 }
 0x232   :  { %9641 = vst [vmem:[#allocation108_spill] sm:$0xff] %v6777_v21  ;;  %2108 = vxpose.xlu1.b32.start [1/2] (short) (narrow) %v6777_v21, 32  ;;  %5171 = vmatmul.msk.f32.vlgmr.msrb.gmra.mxu3 %vm2859_vm3, %v6777_v21 }
 0x233   :  { %3780 = vmatpush.msrb.mxu3 %v2097_v17  ;;  %v2090_v17 = vld [vmem:[%s9326_s2] sm:$0xff] }
 0x234   :  { %2172 = vmatpush.msrb.mxu2 %v2090_v17 }
 0x235   :  { %v2085_v51 = vpop.f32.mrf.mxu1  ;;  %3781 = vmatpush.msrb.mxu3 %v2096_v31 }
 0x236   :  { %v2086_v59 = vadd.f32 %v5268_v20, %v2085_v51  ;;  %5185 = vmatpush.msk.msra.mxu2 %vm9498_vm2, %v6686_v49 }
 0x237   :  { %3782 = vmatpush.msrb.mxu3 %v2095_v12 }
 0x238   :  { %v6786_v11 = vmax.f32 %v2086_v59, 0.0  ;;  %v6797_v51 = vpop.f32.mrf.mxu3  ;;  %v6801_v59 = vpop.permute.xlu1 %709  ;;  %3206 = vmatpush.msra.mxu2 %v2090_v17 }
 0x239   :  { %3783 = vmatpush.msrb.mxu3 %v2094_v50 }
 0x23a   :  { %9642 = vst [vmem:[#allocation109_spill] sm:$0xff] %v6786_v11  ;;  %2109 = vxpose.xlu1.b32.end [2/2] (short) (narrow) %v6786_v11, 32  ;;  %5172 = vmatmul.msk.f32.gmra.mxu3 %vm2859_vm3, %v6786_v11 }
 0x240   :  { %v6808_v31 = vpop.permute.xlu1 %914 }
 0x241   :  { %9644 = vst [vmem:[#allocation111_spill] sm:$0xff] %v6808_v31 }
 0x242   :  { %5179 = vmatmul.msk.f32.vlgmr.msra.gmra.mxu3 %vm2859_vm3, %v6777_v21  ;;  %v6826_v21 = vpop.f32.mrf.mxu3 }
 0x243   :  { %3898 = vmatpush.msra.mxu3 %v2106_v55 }
 0x245   :  { %3899 = vmatpush.msra.mxu3 %v2105_v19 }
 0x247   :  { %3900 = vmatpush.msra.mxu3 %v2104_v35 }
 0x248   :  { %v6810_v35 = vpop.permute.xlu1 %504 }
 0x249   :  { %3901 = vmatpush.msra.mxu3 %v2103_v36  ;;  %v6814_v36 = vpop.f32.mrf.mxu0 }
 0x24a   :  { %5180 = vmatmul.msk.f32.gmra.mxu3 %vm2859_vm3, %v6786_v11  ;;  %9646 = vst [vmem:[#allocation113_spill] sm:$0xff] %v6814_v36  ;;  %v6832_v31 = vpop.f32.mrf.mxu3 }
 0x24b   :  { %9652 = vst [vmem:[#allocation119_spill] sm:$0xff] %v6832_v31 }
 0x250   :  { %v6812_v19 = vpop.permute.xlu1 %674 }
 0x251   :  { %9645 = vst [vmem:[#allocation112_spill] sm:$0xff] %v6812_v19  ;;  %v6818_v50 = vpop.f32.mrf.mxu0 }
 0x252   :  { %9647 = vst [vmem:[#allocation114_spill] sm:$0xff] %v6818_v50  ;;  %v6838_v57 = vpop.f32.mrf.mxu3 }
 0x253   :  { %9654 = vst [vmem:[#allocation121_spill] sm:$0xff] %v6838_v57 }
 0x258   :  { %v6816_v20 = vpop.permute.xlu1 %759 }
 0x259   :  { %v6822_v55 = vpop.f32.mrf.mxu0 }
 0x25a   :  { %9649 = vst [vmem:[#allocation116_spill] sm:$0xff] %v6822_v55  ;;  %v424_v55 = vld [vmem:[%s9532_s9 + $0x1b8] sm:$0xff] }
 0x260   :  { %v6820_v12 = vpop.permute.xlu1 %969 }
 0x261   :  { %9648 = vst [vmem:[#allocation115_spill] sm:$0xff] %v6820_v12  ;;  %v6828_v62 = vpop.f32.mrf.mxu0 }
 0x262   :  { %9650 = vst [vmem:[#allocation117_spill] sm:$0xff] %v6828_v62  ;;  %v6847_v62 = vpop.f32.mrf.mxu3 }
 0x263   :  { %9656 = vst [vmem:[#allocation123_spill] sm:$0xff] %v6847_v62 }
 0x268   :  { %v6824_v11 = vpop.permute.xlu1 %714 }
 0x269   :  { %v6834_v19 = vpop.f32.mrf.mxu0 }
 0x26a   :  { %9653 = vst [vmem:[#allocation120_spill] sm:$0xff] %v6834_v19  ;;  %v387_v19 = vld [vmem:[%s9532_s9 + $0x90] sm:$0xff]  ;;  %v6859_v57 = vpop.f32.mrf.mxu3 }
 0x26b   :  { %9659 = vst [vmem:[#allocation126_spill] sm:$0xff] %v6859_v57 }
 0x270   :  { %v6830_v54 = vpop.permute.xlu1 %784 }
 0x271   :  { %9651 = vst [vmem:[#allocation118_spill] sm:$0xff] %v6830_v54  ;;  %v6840_v50 = vpop.f32.mrf.mxu0 }
 0x272   :  { %9655 = vst [vmem:[#allocation122_spill] sm:$0xff] %v6840_v50  ;;  %v428_v50 = vld [vmem:[%s9532_s9 + $0x1d8] sm:$0xff]  ;;  %v6868_v31 = vpop.f32.mrf.mxu3 }
 0x273   :  { %9662 = vst [vmem:[#allocation129_spill] sm:$0xff] %v6868_v31 }
 0x278   :  { %v6836_v36 = vpop.permute.xlu1 %529 }
 0x279   :  { %v6849_v54 = vpop.f32.mrf.mxu0 }
 0x27a   :  { %9657 = vst [vmem:[#allocation124_spill] sm:$0xff] %v6849_v54  ;;  %v397_v54 = vld [vmem:[%s9532_s9 + $0xe0] sm:$0xff] }
 0x280   :  { %v6845_v12 = vpop.permute.xlu1 %734 }
 0x288   :  { %v6854_v14 = vpop.permute.xlu1 %804 }
 0x289   :  { %9658 = vst [vmem:[#allocation125_spill] sm:$0xff] %v6854_v14  ;;  %v388_v14 = vld [vmem:[%s9532_s9 + $0x98] sm:$0xff] }
 0x290   :  { %v6866_v62 = vpop.permute.xlu1 %579 }
 0x291   :  { %9661 = vst [vmem:[#allocation128_spill] sm:$0xff] %v6866_v62  ;;  %v399_v62 = vld [vmem:[%s9532_s9 + $0xf0] sm:$0xff]  ;;  %s5342_s9 = smov 96  }
 0x298   :  { %v6875_v25 = vpop.permute.xlu1 %789 }
 0x299   :  { %9664 = vst [vmem:[#allocation131_spill] sm:$0xff] %v6875_v25 }
 0x2a0   :  { %v6884_v31 = vpop.permute.xlu1 %569 }
 0x2a1   :  { %9667 = vst [vmem:[#allocation134_spill] sm:$0xff] %v6884_v31  ;;  %v6904_v31 = vpop.permute.xlu2 %799 }
 0x2a2   :  { %9674 = vst [vmem:[#allocation141_spill] sm:$0xff] %v6904_v31 }
 0x2a4   :  { %774 = vperm.xlu1 %5265, %v424_v55   ;;  %v6861_v55 = vpop.f32.mrf.mxu0 }
 0x2a5   :  { %9660 = vst [vmem:[#allocation127_spill] sm:$0xff] %v6861_v55  ;;  %v6877_v55 = vpop.f32.mrf.mxu3 }
 0x2a6   :  { %9665 = vst [vmem:[#allocation132_spill] sm:$0xff] %v6877_v55 }
 0x2ac   :  { %589 = vperm.xlu1 %5265, %v387_v19   ;;  %v6870_v19 = vpop.f32.mrf.mxu0 }
 0x2ad   :  { %9663 = vst [vmem:[#allocation130_spill] sm:$0xff] %v6870_v19 }
 0x2b4   :  { %794 = vperm.xlu1 %5265, %v428_v50   ;;  %v6879_v50 = vpop.f32.mrf.mxu0 }
 0x2b5   :  { %9666 = vst [vmem:[#allocation133_spill] sm:$0xff] %v6879_v50 }
 0x2bc   :  { %639 = vperm.xlu1 %5265, %v397_v54   ;;  %v6886_v54 = vpop.f32.mrf.mxu3  ;;  %v6888_v19 = vpop.f32.mrf.mxu0 }
 0x2bd   :  { %9668 = vst [vmem:[#allocation135_spill] sm:$0xff] %v6886_v54  ;;  %v6900_v54 = vpop.permute.xlu0 %769 }
 0x2be   :  { %9669 = vst [vmem:[#allocation136_spill] sm:$0xff] %v6888_v19 }
 0x2bf   :  { %9672 = vst [vmem:[#allocation139_spill] sm:$0xff] %v6900_v54 }
 0x2c4   :  { %594 = vperm.xlu1 %5265, %v388_v14   ;;  %v6893_v14 = vpop.f32.mrf.mxu3  ;;  %v6895_v50 = vpop.f32.mrf.mxu0 }
 0x2c5   :  { %9670 = vst [vmem:[#allocation137_spill] sm:$0xff] %v6895_v50 }
 0x2cc   :  { %649 = vperm.xlu1 %5265, %v399_v62   ;;  %v6898_v62 = vpop.f32.mrf.mxu3  ;;  %v6902_v19 = vpop.f32.mrf.mxu0 }
 0x2cd   :  { %9671 = vst [vmem:[#allocation138_spill] sm:$0xff] %v6898_v62 }
 0x2ce   :  { %9673 = vst [vmem:[#allocation140_spill] sm:$0xff] %v6902_v19 }
 0x2d4   :  { %v6911_v50 = vpop.f32.mrf.mxu0 }
 0x2d5   :  { %9677 = vst [vmem:[#allocation144_spill] sm:$0xff] %v6911_v50  ;;  %v1837_v50 = vadd.f32 %v6374_v1, %v5889_v10  ;;  %v1675_v10 = vadd.f32 %v6223_v9, %v6784_v52  ;;  %v1768_v9 = vadd.f32 %v6313_v58, %v6030_v7 }
 0x2d6   :  { %v2124_v57 = vpop.trf.xlu1 }
 0x2d7   :  { %5167 = vmatmul.msk.f32.vlgmr.msrb.gmra.mxu2 %vm2140_vm4, %v2124_v57  ;;  %v6907_v57 = vpop.f32.mrf.mxu3 }
 0x2d8   :  { %5204 = vmatpush.msk.msrb.mxu2 %vm9498_vm2, %v6686_v49  ;;  %9675 = vst [vmem:[#allocation142_spill] sm:$0xff] %v6907_v57  ;;  %v6926_v57 = vpop.f32.mrf.mxu2 }
 0x2da   :  { %4083 = vmatpush.msrb.mxu2 %v2090_v17  ;;  %v6909_v17 = vpop.permute.xlu0 %974 }
 0x2db   :  { %9676 = vst [vmem:[#allocation143_spill] sm:$0xff] %v6909_v17  ;;  %v1669_v17 = vadd.f32 %v6160_v18, %v6824_v11  ;;  %v1846_v18 = vadd.f32 %v6498_v43, %v5717_v16 }
 0x2dc   :  { %v6920_v19 = vpop.f32.mrf.mxu0 }
 0x2dd   :  { %9681 = vst [vmem:[#allocation148_spill] sm:$0xff] %v6920_v19  ;;  %v1756_v19 = vadd.f32 %v6185_v38, %v5923_v23  ;;  %v2025_v7 = vpack.c.bf16 %v1846_v18, %v1846_v18 }
 0x2de   :  { %v2125_v25 = vpop.trf.xlu1 }
 0x2df   :  { %5168 = vmatmul.msk.f32.gmra.mxu2 %vm2140_vm4, %v2125_v25  ;;  %v6914_v25 = vpop.permute.xlu2 %549  ;;  %v6916_v62 = vpop.f32.mrf.mxu3 }
 0x2e0   :  { %9678 = vst [vmem:[#allocation145_spill] sm:$0xff] %v6914_v25 }
 0x2e1   :  { %9679 = vst [vmem:[#allocation146_spill] sm:$0xff] %v6916_v62  ;;  %v1843_v62 = vadd.f32 %v6449_v48, %v5672_v61  ;;  %v1681_v61 = vadd.f32 %v6286_v30, %v6845_v12  ;;  %v1968_v30 = vpack.c.bf16 %v1675_v10, %v1675_v10  ;;  %v1994_v12 = vpack.c.bf16 %v6236_v28, %v6236_v28 }
 0x2e2   :  { %v6918_v54 = vpop.permute.xlu0 %584  ;;  %v1771_v28 = vadd.f32 %v6345_v24, %v6077_v29 }
 0x2e3   :  { %9680 = vst [vmem:[#allocation147_spill] sm:$0xff] %v6918_v54  ;;  %v2022_v54 = vpack.c.bf16 %v1837_v50, %v1837_v50  ;;  %v1852_v50 = vadd.f32 %v6773_v60, %v5715_v15  ;;  %v1765_v15 = vadd.f32 %v6281_v22, %v6358_v0  ;;  %v6992_v60 = vunpack.c.l.bf16 %v1968_v30  ;;  %v9702_v30 = vld [vmem:[#allocation50_spill] sm:$0xff] }
 0x2e4   :  { %v6948_v11 = vpop.f32.mrf.mxu0  ;;  %v1774_v0 = vadd.f32 %v6379_v46, %v6723_v32  ;;  %v1858_v22 = vadd.f32 %v6791_v56, %v5802_v45  ;;  %v1696_v46 = vadd.f32 %v6451_v42, %v6816_v20  ;;  %v1777_v45 = vadd.f32 %v6412_v40, %v6459_v39  ;;  %v9705_v20 = vld [vmem:[#allocation43_spill] sm:$0xff] }
 0x2e5   :  { %v6956_v48 = vunpack.c.l.bf16 %v2022_v54  ;;  %v1558_v54 = vadd.f32 %v6466_v33, %v6836_v36  ;;  %9691 = vst [vmem:[#allocation158_spill] sm:$0xff] %v6992_v60  ;;  %v6994_v33 = vunpack.c.l.bf16 %v1994_v12  ;;  %v2027_v29 = vpack.c.bf16 %v1852_v50, %v1852_v50 }
 0x2e6   :  { %v2126_v55 = vpop.trf.xlu1  ;;  %v1783_v32 = vadd.f32 %v6478_v8, %v6142_v4  ;;  %v2001_v40 = vpack.c.bf16 %v1774_v0, %v1774_v0  ;;  %v2029_v39 = vpack.c.bf16 %v1858_v22, %v1858_v22  ;;  %v1967_v4 = vpack.c.bf16 %v9705_v20, %v9705_v20  ;;  %v9711_v0 = vld [vmem:[#allocation121_spill] sm:$0xff] }
 0x2e7   :  { %5169 = vmatmul.msk.f32.gmra.mxu2 %vm2140_vm4, %v2126_v55  ;;  %v6922_v31 = vpop.permute.xlu2 %754  ;;  %v1666_v55 = vadd.f32 %v6132_v63, %v6801_v59  ;;  %v1966_v59 = vpack.c.bf16 %v1669_v17, %v1669_v17  ;;  %v6940_v1 = vpop.f32.mrf.mxu3  ;;  %9684 = vst [vmem:[#allocation151_spill] sm:$0xff] %v6956_v48  ;;  %v1999_v17 = vpack.c.bf16 %v1768_v9, %v1768_v9 }
 0x2e8   :  { %9682 = vst [vmem:[#allocation149_spill] sm:$0xff] %v6922_v31  ;;  %v1840_v31 = vadd.f32 %v6410_v27, %v5683_v5  ;;  %v1849_v5 = vadd.f32 %v6538_v3, %v5865_v2  ;;  %v1995_v27 = vpack.c.bf16 %v1756_v19, %v1756_v19  ;;  %v2024_v2 = vpack.c.bf16 %v1843_v62, %v1843_v62  ;;  %v6968_v3 = vpop.f32.mrf.mxu2 }
 0x2e9   :  { %v1965_v25 = vpack.c.bf16 %v1666_v55, %v1666_v55  ;;  %v6964_v43 = vunpack.c.l.bf16 %v1966_v59  ;;  %v1970_v19 = vpack.c.bf16 %v1681_v61, %v1681_v61  ;;  %v1855_v55 = vadd.f32 %v6782_v41, %v5685_v6  ;;  %9692 = vst [vmem:[#allocation159_spill] sm:$0xff] %v6994_v33  ;;  %v9750_v33 = vld [vmem:[#allocation69_spill] sm:$0xff] }
 0x2ea   :  { %v2023_v38 = vpack.c.bf16 %v1840_v31, %v1840_v31  ;;  %v1997_v31 = vpack.c.bf16 %v6249_v13, %v6249_v13  ;;  %v2026_v58 = vpack.c.bf16 %v1849_v5, %v1849_v5  ;;  %v6986_v13 = vunpack.c.l.bf16 %v2024_v2 }
 0x2eb   :  { %v6950_v23 = vunpack.c.l.bf16 %v1965_v25  ;;  %9686 = vst [vmem:[#allocation153_spill] sm:$0xff] %v6964_v43  ;;  %v7002_v24 = vunpack.c.l.bf16 %v1970_v19  ;;  %v1929_v59 = vpack.c.bf16 %v1558_v54, %v1558_v54  ;;  %v7006_v6 = vunpack.c.l.bf16 %v1999_v17  ;;  %v9740_v43 = vld [vmem:[#allocation31_spill] sm:$0xff] }
 0x2ec   :  { %v6980_v62 = vunpack.c.l.bf16 %v2023_v38  ;;  %9690 = vst [vmem:[#allocation157_spill] sm:$0xff] %v6986_v13  ;;  %v6996_v36 = vunpack.c.l.bf16 %v1997_v31  ;;  %v2000_v41 = vpack.c.bf16 %v1771_v28, %v1771_v28  ;;  %v7014_v5 = vpop.f32.mrf.mxu0  ;;  %v2028_v61 = vpack.c.bf16 %v1855_v55, %v1855_v55 }
 0x2ed   :  { %9683 = vst [vmem:[#allocation150_spill] sm:$0xff] %v6950_v23  ;;  %v1861_v38 = vadd.f32 %v6797_v51, %v5952_v37  ;;  %v1780_v9 = vadd.f32 %v6444_v44, %v6168_v26  ;;  %v7030_v2 = vunpack.c.l.bf16 %v2027_v29  ;;  %v7032_v37 = vunpack.c.l.bf16 %v1929_v59  ;;  %v9700_v51 = vld [vmem:[#allocation6_spill] sm:$0xff]  ;;  %v9701_v44 = vld [vmem:[#allocation119_spill] sm:$0xff]  ;;  %v9709_v29 = vld [vmem:[#allocation52_spill] sm:$0xff] }
 0x2ee   :  { %v2127_v49 = vpop.trf.xlu1  ;;  %9688 = vst [vmem:[#allocation155_spill] sm:$0xff] %v6980_v62  ;;  %v1867_v26 = vadd.f32 %v9701_v44, %v9700_v51  ;;  %v7040_v42 = vunpack.c.l.bf16 %v2000_v41  ;;  %v7044_v8 = vunpack.c.l.bf16 %v2028_v61  ;;  %v1975_v50 = vpack.c.bf16 %v1696_v46, %v1696_v46  ;;  %v9710_v41 = vld [vmem:[#allocation13_spill] sm:$0xff] }
 0x2ef   :  { %5170 = vmatmul.msk.f32.gmra.mxu2 %vm2140_vm4, %v2127_v49  ;;  %v1543_v49 = vadd.f32 %v6254_v47, %v6810_v35  ;;  %v6946_v47 = vpop.permute.xlu0 %514  ;;  %v6960_v16 = vpop.permute.xlu2 %534  ;;  %v1996_v35 = vpack.c.bf16 %v6218_v53, %v6218_v53  ;;  %v6978_v53 = vunpack.c.l.bf16 %v1995_v27  ;;  %9693 = vst [vmem:[#allocation160_spill] sm:$0xff] %v6996_v36  ;;  %v1998_v27 = vpack.c.bf16 %v1765_v15, %v1765_v15  ;;  %v9708_v15 = vld [vmem:[#allocation36_spill] sm:$0xff]  ;;  %v9720_v44 = vld [vmem:[#allocation57_spill] sm:$0xff] }
 0x2f0   :  { %9696 = vst [vmem:[#allocation163_spill] sm:$0xff] %v7002_v24  ;;  %v7004_v10 = vpop.f32.mrf.mxu3  ;;  %v7038_v12 = vpop.f32.mrf.mxu2  ;;  %v2002_v54 = vpack.c.bf16 %v1777_v45, %v1777_v45  ;;  %v2004_v17 = vpack.c.bf16 %v1783_v32, %v1783_v32  ;;  %v2032_v28 = vpack.c.bf16 %v1867_v26, %v1867_v26  ;;  %v1786_v59 = vadd.f32 %v9709_v29, %v9708_v15  ;;  %v9719_v32 = vld [vmem:[#allocation111_spill] sm:$0xff]  ;;  %v9742_v23 = vld [vmem:[#allocation9_spill] sm:$0xff] }
 0x2f1   :  { %v1924_v63 = vpack.c.bf16 %v1543_v49, %v1543_v49  ;;  %9687 = vst [vmem:[#allocation154_spill] sm:$0xff] %v6978_v53  ;;  %v6984_v25 = vunpack.c.l.bf16 %v1996_v35  ;;  %v6998_v49 = vunpack.c.l.bf16 %v2025_v7  ;;  %v1864_v35 = vadd.f32 %v6826_v21, %v5773_v34  ;;  %v9703_v34 = vld [vmem:[#allocation38_spill] sm:$0xff]  ;;  %v9735_v24 = vld [vmem:[#allocation91_spill] sm:$0xff]  ;;  %v9787_v36 = vld [vmem:[#allocation81_spill] sm:$0xff] }
 0x2f2   :  { %9697 = vst [vmem:[#allocation164_spill] sm:$0xff] %v7006_v6  ;;  %v1687_v21 = vadd.f32 %v9703_v34, %v9702_v30  ;;  %v7046_v31 = vunpack.c.l.bf16 %v1998_v27  ;;  %v2030_v7 = vpack.c.bf16 %v1861_v38, %v1861_v38  ;;  %v1870_v22 = vadd.f32 %v9711_v0, %v9710_v41  ;;  %v9715_v38 = vld [vmem:[#allocation54_spill] sm:$0xff]  ;;  %v9721_v30 = vld [vmem:[#allocation20_spill] sm:$0xff]  ;;  %v9722_v34 = vld [vmem:[#allocation123_spill] sm:$0xff] }
 0x2f3   :  { %v6962_v52 = vunpack.c.l.bf16 %v1924_v63  ;;  %9689 = vst [vmem:[#allocation156_spill] sm:$0xff] %v6984_v25  ;;  %v7000_v63 = vunpack.c.l.bf16 %v2026_v58  ;;  %v2003_v58 = vpack.c.bf16 %v1780_v9, %v1780_v9  ;;  %v2031_v19 = vpack.c.bf16 %v1864_v35, %v1864_v35  ;;  %v9716_v9 = vld [vmem:[#allocation27_spill] sm:$0xff]  ;;  %v9789_v25 = vld [vmem:[#allocation42_spill] sm:$0xff] }
 0x2f4   :  { %9694 = vst [vmem:[#allocation161_spill] sm:$0xff] %v6998_v49  ;;  %v1972_v55 = vpack.c.bf16 %v1687_v21, %v1687_v21  ;;  %v7052_v51 = vunpack.c.l.bf16 %v2001_v40  ;;  %v7054_v61 = vunpack.c.l.bf16 %v2029_v39  ;;  %v7056_v27 = vunpack.c.l.bf16 %v1967_v4  ;;  %v9792_v49 = vld [vmem:[#allocation138_spill] sm:$0xff] }
 0x2f5   :  { %9685 = vst [vmem:[#allocation152_spill] sm:$0xff] %v6962_v52  ;;  %v1540_v35 = vadd.f32 %v9716_v9, %v9715_v38  ;;  %v7060_v46 = vunpack.c.l.bf16 %v2030_v7  ;;  %v7062_v45 = vunpack.c.l.bf16 %v2003_v58  ;;  %v1789_v26 = vadd.f32 %v9720_v44, %v9719_v32  ;;  %v7080_v58 = vpop.f32.mrf.mxu0  ;;  %v9729_v9 = vld [vmem:[#allocation55_spill] sm:$0xff]  ;;  %v9731_v44 = vld [vmem:[#allocation60_spill] sm:$0xff] }
 0x2f6   :  { %9695 = vst [vmem:[#allocation162_spill] sm:$0xff] %v7000_v63  ;;  %v1873_v21 = vadd.f32 %v9722_v34, %v9721_v30  ;;  %v7070_v40 = vunpack.c.l.bf16 %v2031_v19  ;;  %v7072_v39 = vunpack.c.l.bf16 %v1975_v50  ;;  %v7074_v4 = vunpack.c.l.bf16 %v2002_v54  ;;  %v9730_v50 = vld [vmem:[#allocation32_spill] sm:$0xff]  ;;  %v9732_v30 = vld [vmem:[#allocation7_spill] sm:$0xff] }
 0x2f7   :  { %v7012_v18 = vpop.permute.xlu0 %599  ;;  %v7028_v56 = vpop.permute.xlu2 %604  ;;  %9698 = vst [vmem:[#allocation165_spill] sm:$0xff] %v7030_v2  ;;  %v7076_v15 = vunpack.c.l.bf16 %v2004_v17  ;;  %v7082_v29 = vunpack.c.l.bf16 %v2032_v28  ;;  %v7084_v41 = vunpack.c.l.bf16 %v1972_v55  ;;  %v2005_v0 = vpack.c.bf16 %v1786_v59, %v1786_v59  ;;  %v9733_v17 = vld [vmem:[#allocation126_spill] sm:$0xff]  ;;  %v9737_v59 = vld [vmem:[#allocation40_spill] sm:$0xff] }
 0x2f8   :  { %9699 = vst [vmem:[#allocation166_spill] sm:$0xff] %v7032_v37  ;;  %v7068_v20 = vpop.f32.mrf.mxu3  ;;  %v2033_v38 = vpack.c.bf16 %v1870_v22, %v1870_v22  ;;  %v1971_v19 = vpack.c.bf16 %v9729_v9, %v9729_v9  ;;  %v1923_v32 = vpack.c.bf16 %v1540_v35, %v1540_v35  ;;  %v1792_v54 = vadd.f32 %v9731_v44, %v9730_v50  ;;  %v9734_v28 = vld [vmem:[#allocation134_spill] sm:$0xff]  ;;  %v7098_v60 = vpop.f32.mrf.mxu2  ;;  %v9738_v9 = vld [vmem:[#allocation63_spill] sm:$0xff]  ;;  %v9739_v35 = vld [vmem:[#allocation29_spill] sm:$0xff] }
 0x2f9   :  { %9704 = vst [vmem:[#allocation6_spill] sm:$0xff] %v7040_v42  ;;  %v1876_v34 = vadd.f32 %v9733_v17, %v9732_v30  ;;  %v2006_v52 = vpack.c.bf16 %v1789_v26, %v1789_v26  ;;  %v1582_v55 = vadd.f32 %v9735_v24, %v9734_v28  ;;  %v9741_v50 = vld [vmem:[#allocation64_spill] sm:$0xff]  ;;  %v9743_v30 = vld [vmem:[#allocation129_spill] sm:$0xff]  ;;  %v9748_v28 = vld [vmem:[#allocation59_spill] sm:$0xff] }
 0x2fa   :  { %9706 = vst [vmem:[#allocation119_spill] sm:$0xff] %v7044_v8  ;;  %v1795_v44 = vadd.f32 %v9741_v50, %v9740_v43  ;;  %v1879_v17 = vadd.f32 %v9743_v30, %v9742_v23  ;;  %v9745_v26 = vld [vmem:[#allocation65_spill] sm:$0xff]  ;;  %v7110_v24 = vunpack.c.l.bf16 %v2033_v38  ;;  %v2007_v43 = vpack.c.bf16 %v1792_v54, %v1792_v54  ;;  %v9785_v42 = vld [vmem:[#allocation80_spill] sm:$0xff] }
 0x2fb   :  { %9707 = vst [vmem:[#allocation50_spill] sm:$0xff] %v7046_v31  ;;  %v7108_v31 = vunpack.c.l.bf16 %v2005_v0  ;;  %v2035_v50 = vpack.c.bf16 %v1876_v34, %v1876_v34  ;;  %v7120_v23 = vunpack.c.l.bf16 %v2006_v52 }
 0x2fc   :  { %9712 = vst [vmem:[#allocation38_spill] sm:$0xff] %v7052_v51  ;;  %v7132_v52 = vunpack.c.l.bf16 %v2007_v43  ;;  %v9782_v51 = vld [vmem:[#allocation105_spill] sm:$0xff] }
 0x2fd   :  { %9713 = vst [vmem:[#allocation43_spill] sm:$0xff] %v7054_v61  ;;  %v9791_v61 = vld [vmem:[#allocation14_spill] sm:$0xff] }
 0x2fe   :  { %9714 = vst [vmem:[#allocation36_spill] sm:$0xff] %v7056_v27  ;;  %v1678_v27 = vadd.f32 %v9739_v35, %v9738_v9  ;;  %v7116_v9 = vunpack.c.l.bf16 %v1971_v19  ;;  %v7118_v35 = vunpack.c.l.bf16 %v1923_v32  ;;  %v9757_v19 = vld [vmem:[#allocation132_spill] sm:$0xff] }
 0x2ff   :  { %9717 = vst [vmem:[#allocation52_spill] sm:$0xff] %v7060_v46  ;;  %v7078_v7 = vpop.permute.xlu0 %809  ;;  %v7092_v37 = vpop.permute.xlu2 %554  ;;  %v9758_v32 = vld [vmem:[#allocation128_spill] sm:$0xff] }
 0x300   :  { %9718 = vst [vmem:[#allocation13_spill] sm:$0xff] %v7062_v45  ;;  %v1969_v38 = vpack.c.bf16 %v1678_v27, %v1678_v27  ;;  %v7130_v34 = vpop.f32.mrf.mxu3  ;;  %v9763_v27 = vld [vmem:[#allocation70_spill] sm:$0xff]  ;;  %v9832_v45 = vld [vmem:[#allocation49_spill] sm:$0xff] }
 0x301   :  { %9723 = vst [vmem:[#allocation121_spill] sm:$0xff] %v7070_v40 }
 0x302   :  { %9724 = vst [vmem:[#allocation54_spill] sm:$0xff] %v7072_v39  ;;  %v2034_v39 = vpack.c.bf16 %v1873_v21, %v1873_v21 }
 0x303   :  { %9725 = vst [vmem:[#allocation27_spill] sm:$0xff] %v7074_v4  ;;  %v9744_v4 = vld [vmem:[#allocation118_spill] sm:$0xff] }
 0x304   :  { %9726 = vst [vmem:[#allocation111_spill] sm:$0xff] %v7076_v15  ;;  %v1711_v21 = vadd.f32 %v9745_v26, %v9744_v4  ;;  %v7122_v30 = vunpack.c.l.bf16 %v2034_v39  ;;  %v1937_v4 = vpack.c.bf16 %v1582_v55, %v1582_v55  ;;  %v2008_v26 = vpack.c.bf16 %v1795_v44, %v1795_v44  ;;  %v9762_v55 = vld [vmem:[#allocation131_spill] sm:$0xff] }
 0x305   :  { %9727 = vst [vmem:[#allocation57_spill] sm:$0xff] %v7082_v29  ;;  %v7134_v39 = vunpack.c.l.bf16 %v2035_v50  ;;  %v9764_v44 = vld [vmem:[#allocation71_spill] sm:$0xff] }
 0x306   :  { %9728 = vst [vmem:[#allocation20_spill] sm:$0xff] %v7084_v41  ;;  %v9736_v41 = vld [vmem:[#allocation62_spill] sm:$0xff]  ;;  %v1980_v63 = vpack.c.bf16 %v1711_v21, %v1711_v21  ;;  %v9771_v50 = vld [vmem:[#allocation135_spill] sm:$0xff] }
 0x307   :  { %v1552_v22 = vadd.f32 %v9737_v59, %v9736_v41  ;;  %9746 = vst [vmem:[#allocation123_spill] sm:$0xff] %v7108_v31  ;;  %v1928_v41 = vpack.c.bf16 %v9748_v28, %v9748_v28  ;;  %v9749_v59 = vld [vmem:[#allocation46_spill] sm:$0xff]  ;;  %v2036_v31 = vpack.c.bf16 %v1879_v17, %v1879_v17  ;;  %v9765_v17 = vld [vmem:[#allocation48_spill] sm:$0xff] }
 0x308   :  { %9747 = vst [vmem:[#allocation55_spill] sm:$0xff] %v7110_v24  ;;  %v1798_v46 = vadd.f32 %v9750_v33, %v9749_v59  ;;  %v9756_v33 = vld [vmem:[#allocation16_spill] sm:$0xff]  ;;  %v1699_v21 = vadd.f32 %v9765_v17, %v9764_v44  ;;  %v7158_v44 = vunpack.c.l.bf16 %v1980_v63  ;;  %v7160_v17 = vpop.permute.xlu2 %624  ;;  %v9780_v63 = vld [vmem:[#allocation77_spill] sm:$0xff]  ;;  %v9790_v24 = vld [vmem:[#allocation82_spill] sm:$0xff] }
 0x309   :  { %9751 = vst [vmem:[#allocation32_spill] sm:$0xff] %v7116_v9  ;;  %v1927_v0 = vpack.c.bf16 %v1552_v22, %v1552_v22  ;;  %v7124_v28 = vunpack.c.l.bf16 %v1928_v41  ;;  %v1882_v59 = vadd.f32 %v9757_v19, %v9756_v33  ;;  %v1714_v22 = vadd.f32 %v9763_v27, %v9762_v55  ;;  %v7140_v41 = vpop.permute.xlu0 %619 }
 0x30a   :  { %9752 = vst [vmem:[#allocation60_spill] sm:$0xff] %v7118_v35  ;;  %v2009_v48 = vpack.c.bf16 %v1798_v46, %v1798_v46  ;;  %v9759_v35 = vld [vmem:[#allocation97_spill] sm:$0xff]  ;;  %v7142_v46 = vpop.f32.mrf.mxu0  ;;  %v7144_v33 = vunpack.c.l.bf16 %v1937_v4  ;;  %v7154_v55 = vunpack.c.l.bf16 %v2008_v26  ;;  %v7156_v27 = vunpack.c.l.bf16 %v2036_v31 }
 0x30b   :  { %9753 = vst [vmem:[#allocation7_spill] sm:$0xff] %v7120_v23  ;;  %v1588_v54 = vadd.f32 %v9759_v35, %v9758_v32  ;;  %v7146_v19 = vunpack.c.l.bf16 %v1927_v0  ;;  %v9768_v35 = vld [vmem:[#allocation67_spill] sm:$0xff]  ;;  %v9769_v32 = vld [vmem:[#allocation74_spill] sm:$0xff]  ;;  %v7152_v23 = vunpack.c.l.bf16 %v1969_v38  ;;  %v1981_v38 = vpack.c.bf16 %v1714_v22, %v1714_v22 }
 0x30c   :  { %9754 = vst [vmem:[#allocation126_spill] sm:$0xff] %v7122_v30  ;;  %v1801_v43 = vadd.f32 %v9769_v32, %v9768_v35  ;;  %v7164_v0 = vunpack.c.l.bf16 %v2009_v48  ;;  %v9777_v35 = vld [vmem:[#allocation76_spill] sm:$0xff]  ;;  %v1976_v26 = vpack.c.bf16 %v1699_v21, %v1699_v21  ;;  %v9783_v48 = vld [vmem:[#allocation78_spill] sm:$0xff] }
 0x30d   :  { %9755 = vst [vmem:[#allocation134_spill] sm:$0xff] %v7124_v28  ;;  %v9770_v28 = vld [vmem:[#allocation25_spill] sm:$0xff]  ;;  %v9778_v32 = vld [vmem:[#allocation56_spill] sm:$0xff]  ;;  %v9788_v22 = vld [vmem:[#allocation34_spill] sm:$0xff] }
 0x30e   :  { %9760 = vst [vmem:[#allocation91_spill] sm:$0xff] %v7132_v52  ;;  %v1885_v9 = vadd.f32 %v9771_v50, %v9770_v28  ;;  %v1564_v30 = vadd.f32 %v9778_v32, %v9777_v35  ;;  %v7168_v28 = vpop.f32.mrf.mxu2  ;;  %v9779_v50 = vld [vmem:[#allocation72_spill] sm:$0xff]  ;;  %v9786_v35 = vld [vmem:[#allocation41_spill] sm:$0xff]  ;;  %v1546_v21 = vadd.f32 %v9788_v22, %v9787_v36 }
 0x30f   :  { %9761 = vst [vmem:[#allocation62_spill] sm:$0xff] %v7134_v39  ;;  %v1932_v31 = vpack.c.bf16 %v9779_v50, %v9779_v50  ;;  %v1690_v32 = vadd.f32 %v9786_v35, %v9785_v42  ;;  %v1807_v50 = vadd.f32 %v9790_v24, %v9789_v25  ;;  %v7194_v42 = vunpack.c.l.bf16 %v1976_v26  ;;  %v7202_v24 = vpop.f32.mrf.mxu3  ;;  %v9830_v52 = vld [vmem:[#allocation149_spill] sm:$0xff] }
 0x310   :  { %9766 = vst [vmem:[#allocation40_spill] sm:$0xff] %v7144_v33  ;;  %v2037_v33 = vpack.c.bf16 %v1882_v59, %v1882_v59  ;;  %v2038_v15 = vpack.c.bf16 %v1885_v9, %v1885_v9  ;;  %v9784_v59 = vld [vmem:[#allocation12_spill] sm:$0xff] }
 0x311   :  { %9767 = vst [vmem:[#allocation63_spill] sm:$0xff] %v7146_v19  ;;  %v1939_v19 = vpack.c.bf16 %v1588_v54, %v1588_v54  ;;  %v1888_v54 = vadd.f32 %v6893_v14, %v9784_v59  ;;  %v7192_v59 = vunpack.c.l.bf16 %v1981_v38  ;;  %v7196_v35 = vunpack.c.l.bf16 %v1932_v31 }
 0x312   :  { %9772 = vst [vmem:[#allocation29_spill] sm:$0xff] %v7152_v23  ;;  %v7200_v25 = vunpack.c.l.bf16 %v2038_v15  ;;  %v7206_v38 = vpop.f32.mrf.mxu0  ;;  %v9804_v15 = vld [vmem:[#allocation22_spill] sm:$0xff] }
 0x313   :  { %9773 = vst [vmem:[#allocation31_spill] sm:$0xff] %v7154_v55  ;;  %v2010_v55 = vpack.c.bf16 %v1801_v43, %v1801_v43  ;;  %v7186_v43 = vunpack.c.l.bf16 %v2037_v33  ;;  %v7188_v9 = vunpack.c.l.bf16 %v1939_v19  ;;  %v1973_v33 = vpack.c.bf16 %v1690_v32, %v1690_v32  ;;  %v9808_v32 = vld [vmem:[#allocation79_spill] sm:$0xff] }
 0x314   :  { %9774 = vst [vmem:[#allocation64_spill] sm:$0xff] %v7156_v27  ;;  %v2012_v19 = vpack.c.bf16 %v1807_v50, %v1807_v50  ;;  %v9809_v50 = vld [vmem:[#allocation84_spill] sm:$0xff] }
 0x315   :  { %9775 = vst [vmem:[#allocation9_spill] sm:$0xff] %v7158_v44  ;;  %v9781_v44 = vld [vmem:[#allocation61_spill] sm:$0xff]  ;;  %v7198_v22 = vunpack.c.l.bf16 %v2010_v55 }
 0x316   :  { %v7162_v4 = vpop.permute.xlu1 %774  ;;  %9776 = vst [vmem:[#allocation129_spill] sm:$0xff] %v7164_v0  ;;  %v1708_v23 = vadd.f32 %v9781_v44, %v9780_v63  ;;  %v1804_v0 = vadd.f32 %v9783_v48, %v9782_v51  ;;  %v1891_v44 = vadd.f32 %v9792_v49, %v9791_v61  ;;  %v1931_v51 = vpack.c.bf16 %v1564_v30, %v1564_v30  ;;  %v9795_v63 = vld [vmem:[#allocation125_spill] sm:$0xff]  ;;  %v9796_v48 = vld [vmem:[#allocation83_spill] sm:$0xff] }
 0x317   :  { %9793 = vst [vmem:[#allocation118_spill] sm:$0xff] %v7186_v43  ;;  %v1723_v14 = vadd.f32 %v9796_v48, %v9795_v63  ;;  %v2039_v61 = vpack.c.bf16 %v1888_v54, %v1888_v54  ;;  %v1925_v30 = vpack.c.bf16 %v1546_v21, %v1546_v21  ;;  %v7204_v63 = vpop.permute.xlu0 %574  ;;  %v9805_v48 = vld [vmem:[#allocation142_spill] sm:$0xff] }
 0x318   :  { %9794 = vst [vmem:[#allocation65_spill] sm:$0xff] %v7188_v9  ;;  %v1979_v36 = vpack.c.bf16 %v1708_v23, %v1708_v23  ;;  %v2011_v49 = vpack.c.bf16 %v1804_v0, %v1804_v0  ;;  %v2040_v9 = vpack.c.bf16 %v1891_v44, %v1891_v44  ;;  %v7208_v26 = vunpack.c.l.bf16 %v1931_v51  ;;  %v9803_v23 = vld [vmem:[#allocation85_spill] sm:$0xff]  ;;  %v7222_v51 = vpop.permute.xlu2 %609  ;;  %v9824_v43 = vld [vmem:[#allocation86_spill] sm:$0xff] }
 0x319   :  { %9797 = vst [vmem:[#allocation59_spill] sm:$0xff] %v7192_v59  ;;  %v1984_v31 = vpack.c.bf16 %v1723_v14, %v1723_v14  ;;  %v1936_v55 = vpack.c.bf16 %v9803_v23, %v9803_v23  ;;  %v1894_v0 = vadd.f32 %v9805_v48, %v9804_v15  ;;  %v1813_v44 = vadd.f32 %v6926_v57, %v9809_v50  ;;  %v9810_v59 = vld [vmem:[#allocation101_spill] sm:$0xff]  ;;  %v9814_v15 = vld [vmem:[#allocation139_spill] sm:$0xff] }
 0x31a   :  { %9798 = vst [vmem:[#allocation46_spill] sm:$0xff] %v7194_v42  ;;  %v7214_v54 = vunpack.c.l.bf16 %v1979_v36  ;;  %v9811_v42 = vld [vmem:[#allocation146_spill] sm:$0xff]  ;;  %v7228_v23 = vunpack.c.l.bf16 %v2039_v61  ;;  %v9815_v36 = vld [vmem:[#allocation53_spill] sm:$0xff]  ;;  %v7236_v57 = vunpack.c.l.bf16 %v1973_v33  ;;  %v7238_v50 = vunpack.c.l.bf16 %v1925_v30 }
 0x31b   :  { %9799 = vst [vmem:[#allocation69_spill] sm:$0xff] %v7196_v35  ;;  %v9807_v35 = vld [vmem:[#allocation141_spill] sm:$0xff]  ;;  %v1702_v48 = vadd.f32 %v9815_v36, %v9814_v15  ;;  %v7246_v61 = vunpack.c.l.bf16 %v1936_v55  ;;  %v2013_v15 = vpack.c.bf16 %v9824_v43, %v9824_v43  ;;  %v2041_v36 = vpack.c.bf16 %v1894_v0, %v1894_v0  ;;  %v9828_v55 = vld [vmem:[#allocation8_spill] sm:$0xff] }
 0x31c   :  { %9800 = vst [vmem:[#allocation16_spill] sm:$0xff] %v7198_v22  ;;  %v1720_v21 = vadd.f32 %v9808_v32, %v9807_v35  ;;  %v1897_v22 = vadd.f32 %v9811_v42, %v9810_v59  ;;  %v7234_v32 = vpop.f32.mrf.mxu2  ;;  %v7240_v59 = vunpack.c.l.bf16 %v2012_v19  ;;  %v7242_v42 = vunpack.c.l.bf16 %v2040_v9  ;;  %v9826_v19 = vld [vmem:[#allocation110_spill] sm:$0xff]  ;;  %v9831_v43 = vld [vmem:[#allocation44_spill] sm:$0xff] }
 0x31d   :  { %9801 = vst [vmem:[#allocation132_spill] sm:$0xff] %v7200_v25  ;;  %v9817_v25 = vld [vmem:[#allocation68_spill] sm:$0xff]  ;;  %v2014_v33 = vpack.c.bf16 %v1813_v44, %v1813_v44  ;;  %v1977_v30 = vpack.c.bf16 %v1702_v48, %v1702_v48  ;;  %v1816_v9 = vadd.f32 %v6968_v3, %v9826_v19  ;;  %v1693_v0 = vadd.f32 %v9831_v43, %v9830_v52  ;;  %v9836_v3 = vld [vmem:[#allocation89_spill] sm:$0xff] }
 0x31e   :  { %9802 = vst [vmem:[#allocation128_spill] sm:$0xff] %v7208_v26  ;;  %v7224_v14 = vpop.permute.xlu1 %589  ;;  %v7226_v26 = vunpack.c.l.bf16 %v2011_v49  ;;  %v7244_v49 = vunpack.c.l.bf16 %v1984_v31  ;;  %v7264_v44 = vunpack.c.l.bf16 %v2013_v15  ;;  %v7266_v48 = vunpack.c.l.bf16 %v2041_v36  ;;  %v7284_v15 = vpop.f32.mrf.mxu0 }
 0x31f   :  { %9806 = vst [vmem:[#allocation97_spill] sm:$0xff] %v7214_v54  ;;  %v9816_v54 = vld [vmem:[#allocation145_spill] sm:$0xff]  ;;  %v7286_v36 = vunpack.c.l.bf16 %v1977_v30 }
 0x320   :  { %9812 = vst [vmem:[#allocation131_spill] sm:$0xff] %v7226_v26  ;;  %v1570_v35 = vadd.f32 %v9817_v25, %v9816_v54  ;;  %v9825_v26 = vld [vmem:[#allocation88_spill] sm:$0xff]  ;;  %v1983_v54 = vpack.c.bf16 %v1720_v21, %v1720_v21  ;;  %v9833_v21 = vld [vmem:[#allocation18_spill] sm:$0xff] }
 0x321   :  { %9813 = vst [vmem:[#allocation70_spill] sm:$0xff] %v7228_v23  ;;  %v1935_v25 = vpack.c.bf16 %v9825_v26, %v9825_v26  ;;  %v1819_v26 = vadd.f32 %v7038_v12, %v9832_v45  ;;  %v7278_v12 = vunpack.c.l.bf16 %v2014_v33 }
 0x322   :  { %9818 = vst [vmem:[#allocation71_spill] sm:$0xff] %v7236_v57  ;;  %v2042_v57 = vpack.c.bf16 %v1897_v22, %v1897_v22  ;;  %v1903_v22 = vadd.f32 %v7004_v10, %v9833_v21  ;;  %v7276_v52 = vunpack.c.l.bf16 %v1983_v54  ;;  %v7282_v10 = vpop.permute.xlu0 %644  ;;  %v2015_v21 = vpack.c.bf16 %v1816_v9, %v1816_v9  ;;  %v7290_v54 = vpop.permute.xlu2 %814 }
 0x323   :  { %9819 = vst [vmem:[#allocation48_spill] sm:$0xff] %v7238_v50  ;;  %v1933_v50 = vpack.c.bf16 %v1570_v35, %v1570_v35  ;;  %v9837_v35 = vld [vmem:[#allocation96_spill] sm:$0xff] }
 0x324   :  { %9820 = vst [vmem:[#allocation67_spill] sm:$0xff] %v7240_v59  ;;  %v9827_v59 = vld [vmem:[#allocation15_spill] sm:$0xff]  ;;  %v1735_v19 = vadd.f32 %v9837_v35, %v9836_v3  ;;  %v7280_v45 = vunpack.c.l.bf16 %v2042_v57 }
 0x325   :  { %9821 = vst [vmem:[#allocation74_spill] sm:$0xff] %v7242_v42  ;;  %v1900_v31 = vadd.f32 %v6940_v1, %v9827_v59  ;;  %v9838_v1 = vld [vmem:[#allocation147_spill] sm:$0xff]  ;;  %v9839_v59 = vld [vmem:[#allocation100_spill] sm:$0xff]  ;;  %v7288_v43 = vunpack.c.l.bf16 %v1933_v50  ;;  %v1830_v50 = vpop.f32.mrf.mxu2 }
 0x326   :  { %9822 = vst [vmem:[#allocation25_spill] sm:$0xff] %v7244_v49  ;;  %v1591_v6 = vadd.f32 %v9839_v59, %v9838_v1  ;;  %v1974_v1 = vpack.c.bf16 %v1693_v0, %v1693_v0  ;;  %v2044_v59 = vpack.c.bf16 %v1903_v22, %v1903_v22  ;;  %v7292_v33 = vpop.permute.xlu1 %794  ;;  %v1988_v57 = vpack.c.bf16 %v1735_v19, %v1735_v19 }
 0x327   :  { %9823 = vst [vmem:[#allocation135_spill] sm:$0xff] %v7246_v61  ;;  %v9829_v61 = vld [vmem:[#allocation93_spill] sm:$0xff]  ;;  %v2043_v3 = vpack.c.bf16 %v1900_v31, %v1900_v31  ;;  %v9850_v31 = vld [vmem:[#allocation98_spill] sm:$0xff] }
 0x328   :  { %v1732_v49 = vadd.f32 %v9829_v61, %v9828_v55  ;;  %9834 = vst [vmem:[#allocation76_spill] sm:$0xff] %v7264_v44  ;;  %v7272_v61 = vpop.f32.mrf.mxu3  ;;  %v7274_v55 = vunpack.c.l.bf16 %v1935_v25  ;;  %v2016_v25 = vpack.c.bf16 %v1819_v26, %v1819_v26  ;;  %v9847_v44 = vld [vmem:[#allocation115_spill] sm:$0xff]  ;;  %v9851_v26 = vld [vmem:[#allocation37_spill] sm:$0xff] }
 0x329   :  { %9835 = vst [vmem:[#allocation56_spill] sm:$0xff] %v7266_v48  ;;  %v1822_v30 = vadd.f32 %v7098_v60, %v9847_v44  ;;  %v1549_v22 = vadd.f32 %v9851_v26, %v6946_v47  ;;  %v9856_v44 = vld [vmem:[#allocation39_spill] sm:$0xff]  ;;  %v7320_v47 = vunpack.c.l.bf16 %v2044_v59 }
 0x32a   :  { %9840 = vst [vmem:[#allocation72_spill] sm:$0xff] %v7274_v55  ;;  %v1987_v35 = vpack.c.bf16 %v1732_v49, %v1732_v49  ;;  %v1940_v55 = vpack.c.bf16 %v1591_v6, %v1591_v6  ;;  %v9849_v49 = vld [vmem:[#allocation17_spill] sm:$0xff]  ;;  %v7306_v6 = vunpack.c.l.bf16 %v2015_v21 }
 0x32b   :  { %9841 = vst [vmem:[#allocation77_spill] sm:$0xff] %v7276_v52  ;;  %v9846_v52 = vld [vmem:[#allocation51_spill] sm:$0xff]  ;;  %v1738_v0 = vadd.f32 %v9850_v31, %v9849_v49  ;;  %v7318_v49 = vunpack.c.l.bf16 %v2016_v25  ;;  %v7322_v31 = vunpack.c.l.bf16 %v1988_v57  ;;  %v2017_v21 = vpack.c.bf16 %v1822_v30, %v1822_v30  ;;  %v9865_v25 = vld [vmem:[#allocation116_spill] sm:$0xff]  ;;  %v9866_v57 = vld [vmem:[#allocation73_spill] sm:$0xff] }
 0x32c   :  { %9842 = vst [vmem:[#allocation61_spill] sm:$0xff] %v7278_v12  ;;  %v1561_v12 = vadd.f32 %v9846_v52, %v6960_v16  ;;  %v9855_v16 = vld [vmem:[#allocation143_spill] sm:$0xff]  ;;  %v1909_v52 = vadd.f32 %v7130_v34, %v9856_v44  ;;  %v9868_v30 = vld [vmem:[#allocation21_spill] sm:$0xff] }
 0x32d   :  { %9843 = vst [vmem:[#allocation105_spill] sm:$0xff] %v7280_v45  ;;  %v7308_v45 = vunpack.c.l.bf16 %v2043_v3  ;;  %v1825_v60 = vadd.f32 %v7168_v28, %v9855_v16  ;;  %v1989_v26 = vpack.c.bf16 %v1738_v0, %v1738_v0  ;;  %v1926_v28 = vpack.c.bf16 %v1549_v22, %v1549_v22  ;;  %v9864_v44 = vld [vmem:[#allocation99_spill] sm:$0xff]  ;;  %v9870_v22 = vld [vmem:[#allocation102_spill] sm:$0xff] }
 0x32e   :  { %9844 = vst [vmem:[#allocation78_spill] sm:$0xff] %v7286_v36  ;;  %v9852_v36 = vld [vmem:[#allocation117_spill] sm:$0xff]  ;;  %v2046_v34 = vpack.c.bf16 %v1909_v52, %v1909_v52  ;;  %v9869_v0 = vld [vmem:[#allocation11_spill] sm:$0xff]  ;;  %v7338_v52 = vpop.f32.mrf.mxu0 }
 0x32f   :  { %9845 = vst [vmem:[#allocation12_spill] sm:$0xff] %v7288_v43  ;;  %v9848_v43 = vld [vmem:[#allocation24_spill] sm:$0xff]  ;;  %v1603_v19 = vadd.f32 %v9852_v36, %v7028_v56  ;;  %v7324_v56 = vunpack.c.l.bf16 %v1940_v55  ;;  %v1930_v36 = vpack.c.bf16 %v1561_v12, %v1561_v12  ;;  %v2018_v48 = vpack.c.bf16 %v1825_v60, %v1825_v60  ;;  %v9867_v55 = vld [vmem:[#allocation3_spill] sm:$0xff]  ;;  %v630_v60 = vpop.permute.xlu0 %629 }
 0x330   :  { %v1906_v9 = vadd.f32 %v7068_v20, %v9848_v43  ;;  %9853 = vst [vmem:[#allocation80_spill] sm:$0xff] %v7306_v6  ;;  %v7314_v20 = vunpack.c.l.bf16 %v1987_v35  ;;  %v7316_v43 = vunpack.c.l.bf16 %v1974_v1  ;;  %v9863_v35 = vld [vmem:[#allocation30_spill] sm:$0xff]  ;;  %v1917_v59 = vpop.f32.mrf.mxu3  ;;  %v1828_v12 = vadd.f32 %v7234_v32, %v9867_v55 }
 0x331   :  { %9854 = vst [vmem:[#allocation41_spill] sm:$0xff] %v7308_v45  ;;  %v1944_v16 = vpack.c.bf16 %v1603_v19, %v1603_v19  ;;  %v1741_v1 = vadd.f32 %v9864_v44, %v9863_v35  ;;  %v1744_v19 = vadd.f32 %v9870_v22, %v9869_v0  ;;  %v7340_v35 = vunpack.c.l.bf16 %v1930_v36  ;;  %v615_v0 = vpop.permute.xlu2 %614  ;;  %v7356_v22 = vpop.permute.xlu1 %639 }
 0x332   :  { %9857 = vst [vmem:[#allocation81_spill] sm:$0xff] %v7314_v20  ;;  %v2045_v3 = vpack.c.bf16 %v1906_v9, %v1906_v9  ;;  %v1912_v9 = vadd.f32 %v7202_v24, %v9868_v30  ;;  %v7342_v44 = vunpack.c.l.bf16 %v2017_v21  ;;  %v7350_v55 = vunpack.c.l.bf16 %v1989_v26 }
 0x333   :  { %9858 = vst [vmem:[#allocation34_spill] sm:$0xff] %v7316_v43  ;;  %v1600_v43 = vadd.f32 %v9865_v25, %v7012_v18  ;;  %v9873_v18 = vld [vmem:[#allocation87_spill] sm:$0xff]  ;;  %v7352_v24 = vunpack.c.l.bf16 %v1926_v28  ;;  %v7354_v30 = vunpack.c.l.bf16 %v1944_v16  ;;  %v7358_v36 = vunpack.c.l.bf16 %v2018_v48  ;;  %v9881_v28 = vld [vmem:[#allocation4_spill] sm:$0xff] }
 0x334   :  { %9859 = vst [vmem:[#allocation42_spill] sm:$0xff] %v7318_v49  ;;  %v1573_v49 = vadd.f32 %v9866_v57, %v7092_v37  ;;  %v1726_v25 = vadd.f32 %v9873_v18, %v7078_v7  ;;  %v9874_v37 = vld [vmem:[#allocation127_spill] sm:$0xff]  ;;  %v7348_v32 = vunpack.c.l.bf16 %v2045_v3  ;;  %v7360_v21 = vunpack.c.l.bf16 %v2046_v34  ;;  %v1833_v18 = vpop.f32.mrf.mxu2  ;;  %v9885_v34 = vld [vmem:[#allocation124_spill] sm:$0xff] }
 0x335   :  { %9860 = vst [vmem:[#allocation82_spill] sm:$0xff] %v7320_v47  ;;  %v1615_v57 = vadd.f32 %v9874_v37, %v7160_v17  ;;  %v1943_v7 = vpack.c.bf16 %v1600_v43, %v1600_v43  ;;  %v2019_v17 = vpack.c.bf16 %v1828_v12, %v1828_v12  ;;  %v2047_v3 = vpack.c.bf16 %v1912_v9, %v1912_v9  ;;  %v9882_v16 = vld [vmem:[#allocation23_spill] sm:$0xff]  ;;  %v9886_v43 = vld [vmem:[#allocation120_spill] sm:$0xff] }
 0x336   :  { %9861 = vst [vmem:[#allocation14_spill] sm:$0xff] %v7322_v31  ;;  %v1991_v37 = vpack.c.bf16 %v1744_v19, %v1744_v19  ;;  %v1985_v26 = vpack.c.bf16 %v1726_v25, %v1726_v25  ;;  %v9890_v25 = vld [vmem:[#allocation35_spill] sm:$0xff] }
 0x337   :  { %9862 = vst [vmem:[#allocation138_spill] sm:$0xff] %v7324_v56  ;;  %v1990_v56 = vpack.c.bf16 %v1741_v1, %v1741_v1  ;;  %v1606_v1 = vadd.f32 %v9886_v43, %v7222_v51  ;;  %v7374_v19 = vunpack.c.l.bf16 %v1943_v7 }
 0x338   :  { %9871 = vst [vmem:[#allocation125_spill] sm:$0xff] %v7340_v35  ;;  %v1934_v35 = vpack.c.bf16 %v1573_v49, %v1573_v49  ;;  %v9887_v49 = vld [vmem:[#allocation5_spill] sm:$0xff]  ;;  %v7387_v51 = vunpack.c.l.bf16 %v1985_v26 }
 0x339   :  { %9872 = vst [vmem:[#allocation83_spill] sm:$0xff] %v7342_v44  ;;  %v1948_v44 = vpack.c.bf16 %v1615_v57, %v1615_v57  ;;  %v1834_v12 = vadd.f32 %v1833_v18, %v9887_v49  ;;  %v7372_v9 = vunpack.c.l.bf16 %v1990_v56  ;;  %v9891_v57 = vld [vmem:[#allocation19_spill] sm:$0xff]  ;;  %v1945_v49 = vpack.c.bf16 %v1606_v1, %v1606_v1 }
 0x33a   :  { %9875 = vst [vmem:[#allocation85_spill] sm:$0xff] %v7348_v32  ;;  %v9884_v32 = vld [vmem:[#allocation104_spill] sm:$0xff] }
 0x33b   :  { %9876 = vst [vmem:[#allocation22_spill] sm:$0xff] %v7350_v55  ;;  %v9883_v55 = vld [vmem:[#allocation10_spill] sm:$0xff]  ;;  %v7389_v18 = vunpack.c.l.bf16 %v1948_v44 }
 0x33c   :  { %9877 = vst [vmem:[#allocation142_spill] sm:$0xff] %v7352_v24  ;;  %v1831_v24 = vadd.f32 %v1830_v50, %v9881_v28  ;;  %v1747_v48 = vadd.f32 %v9884_v32, %v9883_v55  ;;  %v1918_v50 = vadd.f32 %v1917_v59, %v9890_v25  ;;  %v9892_v28 = vld [vmem:[#allocation106_spill] sm:$0xff]  ;;  %v7381_v32 = vunpack.c.l.bf16 %v2019_v17 }
 0x33d   :  { %9878 = vst [vmem:[#allocation141_spill] sm:$0xff] %v7354_v30  ;;  %v1915_v30 = vadd.f32 %v7272_v61, %v9882_v16  ;;  %v1750_v61 = vadd.f32 %v9892_v28, %v9891_v57  ;;  %v7379_v16 = vunpack.c.l.bf16 %v1934_v35  ;;  %v7383_v55 = vunpack.c.l.bf16 %v2047_v3  ;;  %v635_v57 = vpop.permute.xlu0 %634  ;;  %v1659_v35 = vpop.f32.mrf.mxu0  ;;  %v9899_v3 = vld [vmem:[#allocation94_spill] sm:$0xff] }
 0x33e   :  { %9879 = vst [vmem:[#allocation79_spill] sm:$0xff] %v7358_v36  ;;  %v1612_v36 = vadd.f32 %v9885_v34, %v7140_v41  ;;  %v7385_v41 = vunpack.c.l.bf16 %v1991_v37  ;;  %v2020_v56 = vpack.c.bf16 %v1831_v24, %v1831_v24  ;;  %v1920_v34 = vpop.f32.mrf.mxu3  ;;  %v1992_v43 = vpack.c.bf16 %v1747_v48, %v1747_v48  ;;  %v9900_v37 = vld [vmem:[#allocation90_spill] sm:$0xff]  ;;  %v9902_v24 = vld [vmem:[#allocation137_spill] sm:$0xff] }
 0x33f   :  { %9880 = vst [vmem:[#allocation84_spill] sm:$0xff] %v7360_v21  ;;  %v2048_v7 = vpack.c.bf16 %v1915_v30, %v1915_v30  ;;  %v2021_v25 = vpack.c.bf16 %v1834_v12, %v1834_v12  ;;  %v2049_v28 = vpack.c.bf16 %v1918_v50, %v1918_v50  ;;  %v1993_v17 = vpack.c.bf16 %v1750_v61, %v1750_v61  ;;  %v655_v12 = vpop.permute.xlu2 %654  ;;  %v9907_v61 = vld [vmem:[#allocation144_spill] sm:$0xff] }
 0x340   :  { %9888 = vst [vmem:[#allocation101_spill] sm:$0xff] %v7372_v9  ;;  %v1947_v59 = vpack.c.bf16 %v1612_v36, %v1612_v36  ;;  %v1729_v26 = vadd.f32 %v9900_v37, %v7290_v54  ;;  %v1627_v30 = vadd.f32 %v9902_v24, %v7282_v10  ;;  %v9904_v36 = vld [vmem:[#allocation130_spill] sm:$0xff]  ;;  %v7400_v9 = vunpack.c.l.bf16 %v2020_v56 }
 0x341   :  { %9889 = vst [vmem:[#allocation146_spill] sm:$0xff] %v7374_v19  ;;  %v1585_v19 = vadd.f32 %v9899_v3, %v7204_v63  ;;  %v1618_v1 = vadd.f32 %v9904_v36, %v630_v60  ;;  %v7402_v50 = vunpack.c.l.bf16 %v2048_v7  ;;  %v1633_v63 = vadd.f32 %v9907_v61, %v655_v12  ;;  %v9908_v3 = vld [vmem:[#allocation133_spill] sm:$0xff]  ;;  %v9916_v61 = vld [vmem:[#allocation148_spill] sm:$0xff] }
 0x342   :  { %9893 = vst [vmem:[#allocation139_spill] sm:$0xff] %v7379_v16  ;;  %v9901_v16 = vld [vmem:[#allocation47_spill] sm:$0xff]  ;;  %v1621_v21 = vadd.f32 %v9908_v3, %v635_v57  ;;  %v7406_v54 = vunpack.c.l.bf16 %v1992_v43  ;;  %v7412_v10 = vunpack.c.l.bf16 %v2021_v25  ;;  %v7416_v60 = vunpack.c.l.bf16 %v1993_v17  ;;  %v9915_v43 = vld [vmem:[#allocation92_spill] sm:$0xff] }
 0x343   :  { %9894 = vst [vmem:[#allocation53_spill] sm:$0xff] %v7381_v32  ;;  %v1921_v44 = vadd.f32 %v1920_v34, %v9901_v16  ;;  %v7408_v16 = vunpack.c.l.bf16 %v1947_v59  ;;  %v7410_v34 = vunpack.c.l.bf16 %v1945_v49  ;;  %v1986_v56 = vpack.c.bf16 %v1729_v26, %v1729_v26  ;;  %v9917_v3 = vld [vmem:[#allocation28_spill] sm:$0xff]  ;;  %v9918_v25 = vld [vmem:[#allocation107_spill] sm:$0xff] }
 0x344   :  { %9895 = vst [vmem:[#allocation145_spill] sm:$0xff] %v7383_v55  ;;  %v1952_v37 = vpack.c.bf16 %v1627_v30, %v1627_v30  ;;  %v1949_v36 = vpack.c.bf16 %v1618_v1, %v1618_v1  ;;  %v1954_v12 = vpack.c.bf16 %v1633_v63, %v1633_v63  ;;  %v1950_v57 = vpack.c.bf16 %v1621_v21, %v1621_v21  ;;  %v9924_v1 = vld [vmem:[#allocation45_spill] sm:$0xff] }
 0x345   :  { %9896 = vst [vmem:[#allocation68_spill] sm:$0xff] %v7385_v41  ;;  %v2050_v7 = vpack.c.bf16 %v1921_v44, %v1921_v44  ;;  %v1636_v59 = vadd.f32 %v9916_v61, %v9915_v43  ;;  %v1639_v49 = vadd.f32 %v6948_v11, %v9917_v3  ;;  %v9921_v44 = vld [vmem:[#allocation95_spill] sm:$0xff]  ;;  %v7432_v21 = vunpack.c.l.bf16 %v1986_v56  ;;  %v9925_v11 = vld [vmem:[#allocation66_spill] sm:$0xff] }
 0x346   :  { %9897 = vst [vmem:[#allocation86_spill] sm:$0xff] %v7387_v51  ;;  %v595_v51 = vpop.permute.xlu1 %594  ;;  %v1651_v30 = vadd.f32 %v7206_v38, %v9921_v44  ;;  %v1654_v63 = vadd.f32 %v7284_v15, %v9924_v1  ;;  %v1657_v43 = vadd.f32 %v7338_v52, %v9925_v11  ;;  %v7440_v61 = vunpack.c.l.bf16 %v1952_v37  ;;  %v9932_v37 = vld [vmem:[#allocation33_spill] sm:$0xff] }
 0x347   :  { %9898 = vst [vmem:[#allocation88_spill] sm:$0xff] %v7389_v18  ;;  %v9903_v18 = vld [vmem:[#allocation122_spill] sm:$0xff]  ;;  %v7446_v38 = vunpack.c.l.bf16 %v1954_v12  ;;  %v1955_v56 = vpack.c.bf16 %v1636_v59, %v1636_v59  ;;  %v1956_v3 = vpack.c.bf16 %v1639_v49, %v1639_v49  ;;  %v1660_v11 = vadd.f32 %v1659_v35, %v9932_v37  ;;  %v9935_v12 = vld [vmem:[#allocation113_spill] sm:$0xff]  ;;  %v9936_v59 = vld [vmem:[#allocation75_spill] sm:$0xff] }
 0x348   :  { %v1609_v48 = vadd.f32 %v9903_v18, %v615_v0  ;;  %9905 = vst [vmem:[#allocation110_spill] sm:$0xff] %v7400_v9  ;;  %v7414_v0 = vunpack.c.l.bf16 %v2049_v28  ;;  %v1938_v18 = vpack.c.bf16 %v1585_v19, %v1585_v19  ;;  %v1642_v28 = vadd.f32 %v7014_v5, %v9918_v25  ;;  %v9920_v19 = vld [vmem:[#allocation26_spill] sm:$0xff] }
 0x349   :  { %9906 = vst [vmem:[#allocation15_spill] sm:$0xff] %v7402_v50  ;;  %v1648_v26 = vadd.f32 %v7142_v46, %v9920_v19  ;;  %v7438_v5 = vunpack.c.l.bf16 %v2050_v7  ;;  %v7444_v46 = vunpack.c.l.bf16 %v1949_v36  ;;  %v1960_v44 = vpack.c.bf16 %v1651_v30, %v1651_v30  ;;  %v9934_v36 = vld [vmem:[#allocation58_spill] sm:$0xff] }
 0x34a   :  { %9909 = vst [vmem:[#allocation8_spill] sm:$0xff] %v7406_v54  ;;  %v1946_v24 = vpack.c.bf16 %v1609_v48, %v1609_v48  ;;  %v7430_v48 = vunpack.c.l.bf16 %v1938_v18  ;;  %v7448_v18 = vunpack.c.l.bf16 %v1950_v57  ;;  %v1957_v25 = vpack.c.bf16 %v1642_v28, %v1642_v28  ;;  %v9937_v28 = vld [vmem:[#allocation136_spill] sm:$0xff] }
 0x34b   :  { %9910 = vst [vmem:[#allocation93_spill] sm:$0xff] %v7408_v16  ;;  %v9919_v16 = vld [vmem:[#allocation112_spill] sm:$0xff]  ;;  %v1959_v19 = vpack.c.bf16 %v1648_v26, %v1648_v26  ;;  %v1961_v7 = vpack.c.bf16 %v1654_v63, %v1654_v63  ;;  %v1962_v1 = vpack.c.bf16 %v1657_v43, %v1657_v43  ;;  %v1594_v57 = vadd.f32 %v9935_v12, %v7224_v14  ;;  %v9940_v63 = vld [vmem:[#allocation114_spill] sm:$0xff] }
 0x34c   :  { %9911 = vst [vmem:[#allocation149_spill] sm:$0xff] %v7410_v34  ;;  %v1645_v17 = vadd.f32 %v7080_v58, %v9919_v16  ;;  %v7442_v58 = vunpack.c.l.bf16 %v1946_v24  ;;  %v1662_v16 = vpop.f32.mrf.mxu0  ;;  %v9933_v24 = vld [vmem:[#allocation103_spill] sm:$0xff]  ;;  %v1717_v49 = vadd.f32 %v9936_v59, %v7292_v33  ;;  %v7460_v26 = vunpack.c.l.bf16 %v1955_v56  ;;  %v9941_v43 = vld [vmem:[#allocation140_spill] sm:$0xff] }
 0x34d   :  { %9912 = vst [vmem:[#allocation44_spill] sm:$0xff] %v7412_v10  ;;  %v7462_v30 = vunpack.c.l.bf16 %v1956_v3  ;;  %v1597_v35 = vadd.f32 %v9940_v63, %v595_v51  ;;  %v7466_v37 = vunpack.c.l.bf16 %v1957_v25  ;;  %v7472_v14 = vunpack.c.l.bf16 %v1960_v44 }
 0x34e   :  { %9913 = vst [vmem:[#allocation49_spill] sm:$0xff] %v7414_v0  ;;  %v1958_v15 = vpack.c.bf16 %v1645_v17, %v1645_v17  ;;  %v650_v52 = vpop.permute.xlu1 %649  ;;  %v1624_v17 = vadd.f32 %v9937_v28, %v7356_v22  ;;  %v7474_v33 = vunpack.c.l.bf16 %v1961_v7  ;;  %v1963_v22 = vpack.c.bf16 %v1660_v11, %v1660_v11 }
 0x34f   :  { %9914 = vst [vmem:[#allocation18_spill] sm:$0xff] %v7416_v60  ;;  %v1941_v51 = vpack.c.bf16 %v1594_v57, %v1594_v57  ;;  %v1982_v59 = vpack.c.bf16 %v1717_v49, %v1717_v49  ;;  %v1942_v25 = vpack.c.bf16 %v1597_v35, %v1597_v35 }
 0x350   :  { %9922 = vst [vmem:[#allocation89_spill] sm:$0xff] %v7430_v48  ;;  %v7490_v7 = vunpack.c.l.bf16 %v1963_v22 }
 0x351   :  { %9923 = vst [vmem:[#allocation96_spill] sm:$0xff] %v7432_v21  ;;  %v7502_v63 = vunpack.c.l.bf16 %v1941_v51  ;;  %v7504_v35 = vunpack.c.l.bf16 %v1982_v59 }
 0x352   :  { %9926 = vst [vmem:[#allocation147_spill] sm:$0xff] %v7438_v5 }
 0x353   :  { %9927 = vst [vmem:[#allocation100_spill] sm:$0xff] %v7440_v61  ;;  %v1663_v61 = vadd.f32 %v1662_v16, %v9933_v24  ;;  %v1630_v16 = vadd.f32 %v9941_v43, %v650_v52  ;;  %v7470_v24 = vunpack.c.l.bf16 %v1959_v19  ;;  %v1951_v52 = vpack.c.bf16 %v1624_v17, %v1624_v17 }
 0x354   :  { %9928 = vst [vmem:[#allocation51_spill] sm:$0xff] %v7442_v58 }
 0x355   :  { %9929 = vst [vmem:[#allocation115_spill] sm:$0xff] %v7444_v46  ;;  %v1705_v46 = vadd.f32 %v9934_v36, %v7162_v4  ;;  %v7468_v4 = vunpack.c.l.bf16 %v1958_v15  ;;  %v7476_v36 = vunpack.c.l.bf16 %v1962_v1  ;;  %v1964_v56 = vpack.c.bf16 %v1663_v61, %v1663_v61 }
 0x356   :  { %9930 = vst [vmem:[#allocation24_spill] sm:$0xff] %v7446_v38  ;;  %v1953_v28 = vpack.c.bf16 %v1630_v16, %v1630_v16  ;;  %v7506_v43 = vunpack.c.l.bf16 %v1951_v52  ;;  %v7508_v16 = vunpack.c.l.bf16 %v1942_v25  ;;  %v9960_v38 = vld [vmem:[#allocation161_spill] sm:$0xff] }
 0x357   :  { %9931 = vst [vmem:[#allocation17_spill] sm:$0xff] %v7448_v18  ;;  %v1978_v12 = vpack.c.bf16 %v1705_v46, %v1705_v46  ;;  %v7498_v49 = vunpack.c.l.bf16 %v1964_v56 }
 0x358   :  { %9938 = vst [vmem:[#allocation98_spill] sm:$0xff] %v7460_v26  ;;  %v7510_v22 = vunpack.c.l.bf16 %v1953_v28 }
 0x359   :  { %9939 = vst [vmem:[#allocation37_spill] sm:$0xff] %v7462_v30  ;;  %v7500_v17 = vunpack.c.l.bf16 %v1978_v12 }
 0x35a   :  { %9942 = vst [vmem:[#allocation117_spill] sm:$0xff] %v7466_v37  ;;  %v7478_v3 = vpop.f32.mrf.mxu2 }
 0x35b   :  { %9943 = vst [vmem:[#allocation143_spill] sm:$0xff] %v7468_v4  ;;  %v2410_v15 = vmul.f32 %v7381_v32, %v7478_v3  ;;  %v2414_v19 = vmul.f32 %v6980_v62, %v7478_v3  ;;  %v2418_v44 = vmul.f32 %v7030_v2, %v7478_v3  ;;  %v2422_v61 = vmul.f32 %v7070_v40, %v7478_v3  ;;  %v9958_v2 = vld [vmem:[#allocation91_spill] sm:$0xff] }
 0x35c   :  { %9944 = vst [vmem:[#allocation39_spill] sm:$0xff] %v7470_v24  ;;  %v2426_v46 = vmul.f32 %v7134_v39, %v7478_v3  ;;  %v2430_v1 = vmul.f32 %v7228_v23, %v7478_v3  ;;  %v2434_v11 = vmul.f32 %v7308_v45, %v7478_v3  ;;  %v2438_v57 = vmul.f32 %v7383_v55, %v7478_v3 }
 0x35d   :  { %9945 = vst [vmem:[#allocation30_spill] sm:$0xff] %v7472_v14  ;;  %v2755_v23 = vsel %vm2442_vm5, %v2410_v15, 0.0  ;;  %v2768_v45 = vsel %vm2442_vm5, %v2414_v19, 0.0  ;;  %v2781_v55 = vsel %vm2442_vm5, %v2418_v44, 0.0  ;;  %v2794_v56 = vsel %vm2442_vm5, %v2422_v61, 0.0 }
 0x35e   :  { %9946 = vst [vmem:[#allocation99_spill] sm:$0xff] %v7474_v33  ;;  %v2807_v12 = vsel %vm2442_vm5, %v2426_v46, 0.0  ;;  %v2820_v59 = vsel %vm2442_vm5, %v2430_v1, 0.0  ;;  %v2833_v52 = vsel %vm2442_vm5, %v2434_v11, 0.0  ;;  %v2846_v25 = vsel %vm2442_vm5, %v2438_v57, 0.0 }
 0x35f   :  { %9947 = vst [vmem:[#allocation116_spill] sm:$0xff] %v7476_v36  ;;  %v7524_v28 = vmul.f32 %v7314_v20, %v7478_v3 }
 0x360   :  { %9948 = vst [vmem:[#allocation73_spill] sm:$0xff] %v7490_v7 }
 0x361   :  { %9949 = vst [vmem:[#allocation3_spill] sm:$0xff] %v7498_v49 }
 0x362   :  { %9950 = vst [vmem:[#allocation21_spill] sm:$0xff] %v7500_v17  ;;  %v7517_v51 = vpop.f32.mrf.mxu2 }
 0x363   :  { %9951 = vst [vmem:[#allocation11_spill] sm:$0xff] %v7502_v63  ;;  %v2411_v15 = vmul.f32 %v7400_v9, %v7517_v51  ;;  %v2415_v19 = vmul.f32 %v6986_v13, %v7517_v51  ;;  %v2419_v44 = vmul.f32 %v7044_v8, %v7517_v51  ;;  %v2423_v61 = vmul.f32 %v7082_v29, %v7517_v51 }
 0x364   :  { %9952 = vst [vmem:[#allocation102_spill] sm:$0xff] %v7504_v35  ;;  %v2427_v46 = vmul.f32 %v7156_v27, %v7517_v51  ;;  %v2431_v1 = vmul.f32 %v7242_v42, %v7517_v51  ;;  %v2435_v11 = vmul.f32 %v7320_v47, %v7517_v51  ;;  %v2439_v57 = vmul.f32 %v7402_v50, %v7517_v51  ;;  %v9956_v27 = vld [vmem:[#allocation164_spill] sm:$0xff] }
 0x365   :  { %9953 = vst [vmem:[#allocation87_spill] sm:$0xff] %v7506_v43  ;;  %v2756_v13 = vsel %vm2442_vm5, %v2411_v15, 0.0  ;;  %v7545_v8 = vmul.f32 %v7385_v41, %v7478_v3  ;;  %v7549_v29 = vmul.f32 %v6978_v53, %v7478_v3  ;;  %v7553_v9 = vmul.f32 %v9956_v27, %v7478_v3  ;;  %v9957_v15 = vld [vmem:[#allocation13_spill] sm:$0xff] }
 0x366   :  { %9954 = vst [vmem:[#allocation127_spill] sm:$0xff] %v7508_v16  ;;  %v2769_v42 = vsel %vm2442_vm5, %v2415_v19, 0.0  ;;  %v2782_v47 = vsel %vm2442_vm5, %v2419_v44, 0.0  ;;  %v2795_v50 = vsel %vm2442_vm5, %v2423_v61, 0.0  ;;  %v7560_v20 = vmul.f32 %v9957_v15, %v7478_v3  ;;  %v9959_v44 = vld [vmem:[#allocation131_spill] sm:$0xff] }
 0x367   :  { %9955 = vst [vmem:[#allocation4_spill] sm:$0xff] %v7510_v22  ;;  %v2808_v41 = vsel %vm2442_vm5, %v2427_v46, 0.0  ;;  %v2821_v39 = vsel %vm2442_vm5, %v2431_v1, 0.0  ;;  %v2834_v53 = vsel %vm2442_vm5, %v2435_v11, 0.0  ;;  %v2847_v40 = vsel %vm2442_vm5, %v2439_v57, 0.0 }
 0x368   :  { %v2757_v27 = vadd.f32 %v2756_v13, %v2755_v23  ;;  %v7568_v19 = vmul.f32 %v9958_v2, %v7478_v3  ;;  %v7572_v61 = vmul.f32 %v9959_v44, %v7478_v3  ;;  %v7576_v15 = vmul.f32 %v7306_v6, %v7478_v3 }
 0x369   :  { %v2770_v46 = vadd.f32 %v2769_v42, %v2768_v45  ;;  %v2783_v62 = vadd.f32 %v2782_v47, %v2781_v55  ;;  %v2796_v1 = vadd.f32 %v2795_v50, %v2794_v56  ;;  %v2809_v32 = vadd.f32 %v2808_v41, %v2807_v12  ;;  %v9961_v42 = vld [vmem:[#allocation43_spill] sm:$0xff]  ;;  %v9965_v50 = vld [vmem:[#allocation85_spill] sm:$0xff] }
 0x36a   :  { %v7578_v11 = vpop.f32.mrf.mxu2  ;;  %v2822_v57 = vadd.f32 %v2821_v39, %v2820_v59  ;;  %v2835_v13 = vadd.f32 %v2834_v53, %v2833_v52  ;;  %v2848_v23 = vadd.f32 %v2847_v40, %v2846_v25  ;;  %v7582_v2 = vmul.f32 %v7322_v31, %v7517_v51  ;;  %v9962_v47 = vld [vmem:[#allocation55_spill] sm:$0xff]  ;;  %v9963_v39 = vld [vmem:[#allocation118_spill] sm:$0xff]  ;;  %v9964_v40 = vld [vmem:[#allocation56_spill] sm:$0xff] }
 0x36b   :  { %v2412_v44 = vmul.f32 %v7412_v10, %v7578_v11  ;;  %v2416_v6 = vmul.f32 %v9960_v38, %v7578_v11  ;;  %v2420_v45 = vmul.f32 %v9961_v42, %v7578_v11  ;;  %v2424_v55 = vmul.f32 %v9962_v47, %v7578_v11 }
 0x36c   :  { %v2428_v53 = vmul.f32 %v9963_v39, %v7578_v11  ;;  %v2432_v41 = vmul.f32 %v9964_v40, %v7578_v11  ;;  %v2436_v56 = vmul.f32 %v9965_v50, %v7578_v11  ;;  %v2440_v12 = vmul.f32 %v7414_v0, %v7578_v11 }
 0x36d   :  { %v2758_v59 = vsel %vm2442_vm5, %v2412_v44, 0.0  ;;  %v2771_v52 = vsel %vm2442_vm5, %v2416_v6, 0.0  ;;  %v2784_v25 = vsel %vm2442_vm5, %v2420_v45, 0.0  ;;  %v2797_v47 = vsel %vm2442_vm5, %v2424_v55, 0.0  ;;  %v9966_v45 = vld [vmem:[#allocation22_spill] sm:$0xff]  ;;  %v9971_v55 = vld [vmem:[#allocation111_spill] sm:$0xff] }
 0x36e   :  { %v2759_v42 = vadd.f32 %v2758_v59, %v2757_v27  ;;  %v2772_v38 = vadd.f32 %v2771_v52, %v2770_v46  ;;  %v2785_v39 = vadd.f32 %v2784_v25, %v2783_v62  ;;  %v2798_v10 = vadd.f32 %v2797_v47, %v2796_v1  ;;  %v9967_v46 = vld [vmem:[#allocation156_spill] sm:$0xff]  ;;  %v9975_v52 = vld [vmem:[#allocation126_spill] sm:$0xff] }
 0x36f   :  { %v2810_v40 = vsel %vm2442_vm5, %v2428_v53, 0.0  ;;  %v2823_v31 = vsel %vm2442_vm5, %v2432_v41, 0.0  ;;  %v2836_v50 = vsel %vm2442_vm5, %v2436_v56, 0.0  ;;  %v2849_v0 = vsel %vm2442_vm5, %v2440_v12, 0.0  ;;  %v9974_v12 = vld [vmem:[#allocation52_spill] sm:$0xff] }
 0x370   :  { %v2811_v22 = vadd.f32 %v2810_v40, %v2809_v32  ;;  %v2824_v44 = vadd.f32 %v2823_v31, %v2822_v57  ;;  %v2837_v43 = vadd.f32 %v2836_v50, %v2835_v13  ;;  %v2850_v6 = vadd.f32 %v2849_v0, %v2848_v23  ;;  %v9968_v31 = vld [vmem:[#allocation160_spill] sm:$0xff]  ;;  %v9969_v57 = vld [vmem:[#allocation6_spill] sm:$0xff]  ;;  %v9972_v40 = vld [vmem:[#allocation151_spill] sm:$0xff] }
 0x371   :  { %v7610_v18 = vmul.f32 %v9966_v45, %v7578_v11  ;;  %v7614_v62 = vmul.f32 %v7406_v54, %v7517_v51  ;;  %v7618_v27 = vmul.f32 %v7416_v60, %v7578_v11  ;;  %v7622_v1 = vmul.f32 %v9967_v46, %v7517_v51  ;;  %v9970_v23 = vld [vmem:[#allocation38_spill] sm:$0xff]  ;;  %v9977_v60 = vld [vmem:[#allocation105_spill] sm:$0xff] }
 0x372   :  { %v7624_v32 = vpop.f32.mrf.mxu2  ;;  %v7628_v0 = vmul.f32 %v9968_v31, %v7578_v11  ;;  %v7632_v13 = vmul.f32 %v9969_v57, %v7517_v51  ;;  %v7636_v47 = vmul.f32 %v9970_v23, %v7578_v11  ;;  %v7640_v53 = vmul.f32 %v9971_v55, %v7517_v51  ;;  %v9973_v50 = vld [vmem:[#allocation162_spill] sm:$0xff]  ;;  %v9976_v31 = vld [vmem:[#allocation132_spill] sm:$0xff] }
 0x373   :  { %v2413_v41 = vmul.f32 %v9972_v40, %v7624_v32  ;;  %v2417_v56 = vmul.f32 %v9973_v50, %v7624_v32  ;;  %v2421_v59 = vmul.f32 %v9974_v12, %v7624_v32  ;;  %v2425_v25 = vmul.f32 %v9975_v52, %v7624_v32  ;;  %v9978_v55 = vld [vmem:[#allocation84_spill] sm:$0xff] }
 0x374   :  { %v2429_v23 = vmul.f32 %v9976_v31, %v7624_v32  ;;  %v2433_v45 = vmul.f32 %v9977_v60, %v7624_v32  ;;  %v2437_v57 = vmul.f32 %v9978_v55, %v7624_v32  ;;  %v2441_v40 = vmul.f32 %v7438_v5, %v7624_v32 }
 0x375   :  { %v2760_v50 = vsel %vm2442_vm5, %v2413_v41, 0.0  ;;  %v2773_v46 = vsel %vm2442_vm5, %v2417_v56, 0.0  ;;  %v2786_v12 = vsel %vm2442_vm5, %v2421_v59, 0.0  ;;  %v2799_v52 = vsel %vm2442_vm5, %v2425_v25, 0.0 }
 0x376   :  { %v2761_v54 = vadd.f32 %v2760_v50, %v2759_v42  ;;  %v2774_v58 = vadd.f32 %v2773_v46, %v2772_v38  ;;  %v2787_v31 = vadd.f32 %v2786_v12, %v2785_v39  ;;  %v2800_v34 = vadd.f32 %v2799_v52, %v2798_v10 }
 0x377   :  { %v2812_v60 = vsel %vm2442_vm5, %v2429_v23, 0.0  ;;  %v2825_v16 = vsel %vm2442_vm5, %v2433_v45, 0.0  ;;  %v2838_v55 = vsel %vm2442_vm5, %v2437_v57, 0.0  ;;  %v2851_v5 = vsel %vm2442_vm5, %v2441_v40, 0.0 }
 0x378   :  { %v2762_v63 = vrot.slane %v2761_v54, 4  ;;  %v2775_v41 = vrot.slane %v2774_v58, 4  ;;  %v2788_v48 = vrot.slane %v2787_v31, 4  ;;  %v2801_v56 = vrot.slane %v2800_v34, 4 }
 0x379   :  { %v2813_v21 = vadd.f32 %v2812_v60, %v2811_v22  ;;  %v2826_v59 = vadd.f32 %v2825_v16, %v2824_v44  ;;  %v2839_v35 = vadd.f32 %v2838_v55, %v2837_v43  ;;  %v2852_v25 = vadd.f32 %v2851_v5, %v2850_v6 }
 0x37a   :  { %v2763_v38 = vadd.f32 %v2762_v63, %v2761_v54  ;;  %v2776_v42 = vadd.f32 %v2775_v41, %v2774_v58  ;;  %v2789_v10 = vadd.f32 %v2788_v48, %v2787_v31  ;;  %v2802_v39 = vadd.f32 %v2801_v56, %v2800_v34 }
 0x37b   :  { %v2814_v46 = vrot.slane %v2813_v21, 4  ;;  %v2827_v23 = vrot.slane %v2826_v59, 4  ;;  %v2840_v45 = vrot.slane %v2839_v35, 4  ;;  %v2853_v50 = vrot.slane %v2852_v25, 4 }
 0x37c   :  { %v2764_v57 = vrot.slane %v2763_v38, 2  ;;  %v2777_v40 = vrot.slane %v2776_v42, 2  ;;  %v2790_v12 = vrot.slane %v2789_v10, 2  ;;  %v2803_v52 = vrot.slane %v2802_v39, 2 }
 0x37d   :  { %v2815_v17 = vadd.f32 %v2814_v46, %v2813_v21  ;;  %v2828_v60 = vadd.f32 %v2827_v23, %v2826_v59  ;;  %v2841_v16 = vadd.f32 %v2840_v45, %v2839_v35  ;;  %v2854_v43 = vadd.f32 %v2853_v50, %v2852_v25 }
 0x37e   :  { %v2765_v5 = vadd.f32 %v2764_v57, %v2763_v38  ;;  %v2778_v54 = vadd.f32 %v2777_v40, %v2776_v42  ;;  %v2791_v58 = vadd.f32 %v2790_v12, %v2789_v10  ;;  %v2804_v48 = vadd.f32 %v2803_v52, %v2802_v39  ;;  %v9979_v57 = vld [vmem:[#allocation101_spill] sm:$0xff]  ;;  %v9980_v12 = vld [vmem:[#allocation159_spill] sm:$0xff] }
 0x37f   :  { %v2816_v34 = vrot.slane %v2815_v17, 2  ;;  %v2829_v63 = vrot.slane %v2828_v60, 2  ;;  %v2842_v22 = vrot.slane %v2841_v16, 2  ;;  %v2855_v44 = vrot.slane %v2854_v43, 2 }
 0x380   :  { %v2766_v6 = vrot.slane %v2765_v5, 1  ;;  %v2779_v31 = vrot.slane %v2778_v54, 1  ;;  %v2792_v55 = vrot.slane %v2791_v58, 1  ;;  %v2805_v41 = vrot.slane %v2804_v48, 1 }
 0x381   :  { %v2817_v21 = vadd.f32 %v2816_v34, %v2815_v17  ;;  %v2830_v56 = vadd.f32 %v2829_v63, %v2828_v60  ;;  %v2843_v35 = vadd.f32 %v2842_v22, %v2841_v16  ;;  %v2856_v59 = vadd.f32 %v2855_v44, %v2854_v43  ;;  %v9981_v17 = vld [vmem:[#allocation50_spill] sm:$0xff]  ;;  %v9983_v63 = vld [vmem:[#allocation123_spill] sm:$0xff] }
 0x382   :  { %v2767_v25 = vadd.f32 %v2766_v6, %v2765_v5  ;;  %v2780_v38 = vadd.f32 %v2779_v31, %v2778_v54  ;;  %v2793_v42 = vadd.f32 %v2792_v55, %v2791_v58  ;;  %v2806_v10 = vadd.f32 %v2805_v41, %v2804_v48  ;;  %v9982_v48 = vld [vmem:[#allocation27_spill] sm:$0xff] }
 0x383   :  { %v2818_v39 = vrot.slane %v2817_v21, 1  ;;  %v2831_v46 = vrot.slane %v2830_v56, 1  ;;  %v2844_v23 = vrot.slane %v2843_v35, 1  ;;  %v2857_v45 = vrot.slane %v2856_v59, 1  ;;  %v9984_v44 = vld [vmem:[#allocation7_spill] sm:$0xff] }
 0x384   :  { %v2949_v50 = vsel %vm2921_vm6, %v2780_v38, %v2767_v25  ;;  %v2381_v40 = vmul.f32 %v9979_v57, %v7624_v32  ;;  %v2385_v52 = vmul.f32 %v9980_v12, %v7624_v32  ;;  %v2389_v60 = vmul.f32 %v9981_v17, %v7624_v32  ;;  %v9985_v55 = vld [vmem:[#allocation31_spill] sm:$0xff] }
 0x385   :  { %v2819_v16 = vadd.f32 %v2818_v39, %v2817_v21  ;;  %v2832_v43 = vadd.f32 %v2831_v46, %v2830_v56  ;;  %v2845_v5 = vadd.f32 %v2844_v23, %v2843_v35  ;;  %v2858_v54 = vadd.f32 %v2857_v45, %v2856_v59  ;;  %v9986_v21 = vld [vmem:[#allocation129_spill] sm:$0xff]  ;;  %v9987_v35 = vld [vmem:[#allocation16_spill] sm:$0xff]  ;;  %v9988_v38 = vld [vmem:[#allocation67_spill] sm:$0xff] }
 0x386   :  { %v2950_v58 = vsel %vm2923_vm7, %v2793_v42, %v2949_v50  ;;  %v2393_v34 = vmul.f32 %v9982_v48, %v7624_v32  ;;  %v2396_v22 = vmul.f32 %v9983_v63, %v7578_v11  ;;  %v2397_v6 = vmul.f32 %v9984_v44, %v7624_v32  ;;  %v9989_v39 = vld [vmem:[#allocation76_spill] sm:$0xff]  ;;  %v9991_v50 = vld [vmem:[#allocation42_spill] sm:$0xff] }
 0x387   :  { %v2951_v31 = vsel %vm2925_vm8, %v2806_v10, %v2950_v58  ;;  %v2399_v41 = vmul.f32 %v9985_v55, %v7517_v51  ;;  %v2400_v56 = vmul.f32 %v9986_v21, %v7578_v11  ;;  %v2401_v59 = vmul.f32 %v9987_v35, %v7624_v32  ;;  %v9990_v10 = vld [vmem:[#allocation61_spill] sm:$0xff]  ;;  %v9992_v35 = vld [vmem:[#allocation83_spill] sm:$0xff] }
 0x388   :  { %v2952_v25 = vsel %vm2927_vm9, %v2819_v16, %v2951_v31  ;;  %v2403_v42 = vmul.f32 %v9988_v38, %v7517_v51  ;;  %v7692_v46 = vmul.f32 %v9989_v39, %v7578_v11  ;;  %v7696_v23 = vmul.f32 %v9990_v10, %v7624_v32  ;;  %v9993_v31 = vld [vmem:[#allocation79_spill] sm:$0xff] }
 0x389   :  { %v2953_v45 = vsel %vm2929_vm10, %v2832_v43, %v2952_v25  ;;  %v7701_v58 = vmul.f32 %v9991_v50, %v7517_v51  ;;  %v7705_v16 = vmul.f32 %v9992_v35, %v7578_v11  ;;  %v7709_v44 = vmul.f32 %v9993_v31, %v7624_v32 }
 0x38a   :  { %v2954_v39 = vsel %vm9500_vm11, %v2845_v5, %v2953_v45  ;;  %v2651_v10 = vsel %vm2442_vm5, %v7524_v28, 0.0  ;;  %v2652_v43 = vsel %vm2442_vm5, %v7582_v2, 0.0  ;;  %v2654_v25 = vsel %vm2442_vm5, %v7610_v18, 0.0 }
 0x38b   :  { %v2955_v50 = vsel %vm9499_vm12, %v2858_v54, %v2954_v39  ;;  %v2653_v48 = vadd.f32 %v2652_v43, %v2651_v10  ;;  %v2656_v35 = vsel %vm2442_vm5, %v2381_v40, 0.0  ;;  %v2664_v31 = vsel %vm2442_vm5, %v7545_v8, 0.0 }
 0x38c   :  { %5173 = vmatpush.xpose.msk.msra.mxu1 %vm2442_vm5, %v2955_v50  ;;  %v2665_v5 = vsel %vm2442_vm5, %v7614_v62, 0.0  ;;  %v2667_v28 = vsel %vm2442_vm5, %v7618_v27, 0.0  ;;  %v2669_v2 = vsel %vm2442_vm5, %v2385_v52, 0.0  ;;  %v2677_v18 = vsel %vm2442_vm5, %v7549_v29, 0.0 }
 0x38d   :  { %v2655_v54 = vadd.f32 %v2654_v25, %v2653_v48  ;;  %v2666_v39 = vadd.f32 %v2665_v5, %v2664_v31  ;;  %v2678_v40 = vsel %vm2442_vm5, %v7622_v1, 0.0  ;;  %v2680_v8 = vsel %vm2442_vm5, %v7628_v0, 0.0 }
 0x38e   :  { %v2679_v10 = vadd.f32 %v2678_v40, %v2677_v18  ;;  %v2682_v45 = vsel %vm2442_vm5, %v2389_v60, 0.0  ;;  %v2690_v62 = vsel %vm2442_vm5, %v7553_v9, 0.0  ;;  %v2691_v27 = vsel %vm2442_vm5, %v7632_v13, 0.0 }
 0x38f   :  { %v2657_v52 = vadd.f32 %v2656_v35, %v2655_v54  ;;  %v2668_v50 = vadd.f32 %v2667_v28, %v2666_v39  ;;  %v2692_v29 = vadd.f32 %v2691_v27, %v2690_v62  ;;  %v2693_v48 = vsel %vm2442_vm5, %v7636_v47, 0.0 }
 0x390   :  { %v2681_v31 = vadd.f32 %v2680_v8, %v2679_v10  ;;  %v2695_v1 = vsel %vm2442_vm5, %v2393_v34, 0.0  ;;  %v2703_v0 = vsel %vm2442_vm5, %v7560_v20, 0.0  ;;  %v2704_v60 = vsel %vm2442_vm5, %v7640_v53, 0.0 }
 0x391   :  { %v2658_v43 = vrot.slane %v2657_v52, 4  ;;  %v2670_v9 = vadd.f32 %v2669_v2, %v2668_v50  ;;  %v2694_v25 = vadd.f32 %v2693_v48, %v2692_v29  ;;  %v2705_v5 = vadd.f32 %v2704_v60, %v2703_v0 }
 0x392   :  { %v2683_v13 = vadd.f32 %v2682_v45, %v2681_v31  ;;  %v2706_v35 = vsel %vm2442_vm5, %v2396_v22, 0.0  ;;  %v2708_v28 = vsel %vm2442_vm5, %v2397_v6, 0.0  ;;  %v2716_v47 = vsel %vm2442_vm5, %v7568_v19, 0.0 }
 0x393   :  { %v2659_v18 = vadd.f32 %v2658_v43, %v2657_v52  ;;  %v2671_v34 = vrot.slane %v2670_v9, 4  ;;  %v2696_v54 = vadd.f32 %v2695_v1, %v2694_v25  ;;  %v2707_v39 = vadd.f32 %v2706_v35, %v2705_v5 }
 0x394   :  { %v2684_v20 = vrot.slane %v2683_v13, 4  ;;  %v2717_v40 = vsel %vm2442_vm5, %v2399_v41, 0.0  ;;  %v2719_v53 = vsel %vm2442_vm5, %v2400_v56, 0.0  ;;  %v2721_v2 = vsel %vm2442_vm5, %v2401_v59, 0.0 }
 0x395   :  { %v2660_v8 = vrot.slane %v2659_v18, 2  ;;  %v2672_v10 = vadd.f32 %v2671_v34, %v2670_v9  ;;  %v2697_v45 = vrot.slane %v2696_v54, 4  ;;  %v2709_v22 = vadd.f32 %v2708_v28, %v2707_v39 }
 0x396   :  { %v2685_v62 = vadd.f32 %v2684_v20, %v2683_v13  ;;  %v2718_v6 = vadd.f32 %v2717_v40, %v2716_v47  ;;  %v2729_v19 = vsel %vm2442_vm5, %v7572_v61, 0.0  ;;  %v2730_v27 = vsel %vm2442_vm5, %v2403_v42, 0.0 }
 0x397   :  { %v2661_v52 = vadd.f32 %v2660_v8, %v2659_v18  ;;  %v2673_v50 = vrot.slane %v2672_v10, 2  ;;  %v2698_v29 = vadd.f32 %v2697_v45, %v2696_v54  ;;  %v2710_v48 = vrot.slane %v2709_v22, 4 }
 0x398   :  { %v2686_v41 = vrot.slane %v2685_v62, 2  ;;  %v2720_v31 = vadd.f32 %v2719_v53, %v2718_v6  ;;  %v2731_v56 = vadd.f32 %v2730_v27, %v2729_v19  ;;  %v2732_v59 = vsel %vm2442_vm5, %v7692_v46, 0.0 }
 0x399   :  { %v2662_v1 = vrot.slane %v2661_v52, 1  ;;  %v2674_v0 = vadd.f32 %v2673_v50, %v2672_v10  ;;  %v2699_v60 = vrot.slane %v2698_v29, 2  ;;  %v2711_v43 = vadd.f32 %v2710_v48, %v2709_v22 }
 0x39a   :  { %v2687_v9 = vadd.f32 %v2686_v41, %v2685_v62  ;;  %v2722_v25 = vadd.f32 %v2721_v2, %v2720_v31  ;;  %v2733_v5 = vadd.f32 %v2732_v59, %v2731_v56  ;;  %v2734_v61 = vsel %vm2442_vm5, %v7696_v23, 0.0 }
 0x39b   :  { %v2663_v42 = vadd.f32 %v2662_v1, %v2661_v52  ;;  %v2675_v13 = vrot.slane %v2674_v0, 1  ;;  %v2700_v35 = vadd.f32 %v2699_v60, %v2698_v29  ;;  %v2712_v28 = vrot.slane %v2711_v43, 2 }
 0x39c   :  { %v2688_v47 = vrot.slane %v2687_v9, 1  ;;  %v2723_v18 = vrot.slane %v2722_v25, 4  ;;  %v2735_v34 = vadd.f32 %v2734_v61, %v2733_v5  ;;  %v2742_v46 = vsel %vm2442_vm5, %v7576_v15, 0.0 }
 0x39d   :  { %v2676_v54 = vadd.f32 %v2675_v13, %v2674_v0  ;;  %v2701_v39 = vrot.slane %v2700_v35, 1  ;;  %v2713_v20 = vadd.f32 %v2712_v28, %v2711_v43  ;;  %v2743_v40 = vsel %vm2442_vm5, %v7701_v58, 0.0 }
 0x39e   :  { %v2689_v53 = vadd.f32 %v2688_v47, %v2687_v9  ;;  %v2724_v2 = vadd.f32 %v2723_v18, %v2722_v25  ;;  %v2736_v8 = vrot.slane %v2735_v34, 4  ;;  %v2744_v23 = vadd.f32 %v2743_v40, %v2742_v46  ;;  %v9994_v47 = vld [vmem:[#allocation150_spill] sm:$0xff] }
 0x39f   :  { %v2702_v10 = vadd.f32 %v2701_v39, %v2700_v35  ;;  %v2714_v45 = vrot.slane %v2713_v20, 1  ;;  %v2745_v22 = vsel %vm2442_vm5, %v7705_v16, 0.0  ;;  %v2747_v62 = vsel %vm2442_vm5, %v7709_v44, 0.0 }
 0x3a0   :  { %v2725_v6 = vrot.slane %v2724_v2, 2  ;;  %v2737_v15 = vadd.f32 %v2736_v8, %v2735_v34  ;;  %v2746_v19 = vadd.f32 %v2745_v22, %v2744_v23  ;;  %v2942_v27 = vsel %vm2921_vm6, %v2676_v54, %v2663_v42  ;;  %v9995_v34 = vld [vmem:[#allocation153_spill] sm:$0xff]  ;;  %v9996_v54 = vld [vmem:[#allocation36_spill] sm:$0xff] }
 0x3a1   :  { %v2715_v52 = vadd.f32 %v2714_v45, %v2713_v20  ;;  %v2943_v58 = vsel %vm2923_vm7, %v2689_v53, %v2942_v27  ;;  %v2346_v50 = vmul.f32 %v7460_v26, %v7478_v3  ;;  %v2347_v29 = vmul.f32 %v7462_v30, %v7517_v51  ;;  %v9997_v20 = vld [vmem:[#allocation158_spill] sm:$0xff]  ;;  %v9998_v53 = vld [vmem:[#allocation29_spill] sm:$0xff]  ;;  %v9999_v45 = vld [vmem:[#allocation163_spill] sm:$0xff] }
 0x3a2   :  { %v2726_v48 = vadd.f32 %v2725_v6, %v2724_v2  ;;  %v2738_v41 = vrot.slane %v2737_v15, 2  ;;  %v2748_v16 = vadd.f32 %v2747_v62, %v2746_v19  ;;  %v2944_v31 = vsel %vm2925_vm8, %v2702_v10, %v2943_v58  ;;  %v10000_v62 = vld [vmem:[#allocation32_spill] sm:$0xff]  ;;  %v10002_v27 = vld [vmem:[#allocation71_spill] sm:$0xff]  ;;  %v10003_v58 = vld [vmem:[#allocation34_spill] sm:$0xff] }
 0x3a3   :  { %v2945_v44 = vsel %vm2927_vm9, %v2715_v52, %v2944_v31  ;;  %v2348_v56 = vmul.f32 %v7466_v37, %v7578_v11  ;;  %v2349_v59 = vmul.f32 %v7468_v4, %v7624_v32  ;;  %v2350_v1 = vmul.f32 %v7470_v24, %v7478_v3  ;;  %v10004_v31 = vld [vmem:[#allocation54_spill] sm:$0xff] }
 0x3a4   :  { %v2727_v0 = vrot.slane %v2726_v48, 1  ;;  %v2739_v60 = vadd.f32 %v2738_v41, %v2737_v15  ;;  %v2749_v43 = vrot.slane %v2748_v16, 4  ;;  %v2351_v9 = vmul.f32 %v7472_v14, %v7517_v51  ;;  %v10001_v15 = vld [vmem:[#allocation20_spill] sm:$0xff] }
 0x3a5   :  { %v2352_v25 = vmul.f32 %v7474_v33, %v7578_v11  ;;  %v2353_v5 = vmul.f32 %v7476_v36, %v7624_v32  ;;  %v2354_v61 = vmul.f32 %v7490_v7, %v7478_v3  ;;  %v2355_v42 = vmul.f32 %v7498_v49, %v7517_v51 }
 0x3a6   :  { %v2728_v13 = vadd.f32 %v2727_v0, %v2726_v48  ;;  %v2740_v35 = vrot.slane %v2739_v60, 1  ;;  %v2750_v28 = vadd.f32 %v2749_v43, %v2748_v16  ;;  %v2356_v18 = vmul.f32 %v9994_v47, %v7578_v11  ;;  %v10005_v0 = vld [vmem:[#allocation46_spill] sm:$0xff] }
 0x3a7   :  { %v2357_v46 = vmul.f32 %v9995_v34, %v7624_v32  ;;  %v2358_v39 = vmul.f32 %v9996_v54, %v7478_v3  ;;  %v2359_v40 = vmul.f32 %v9997_v20, %v7517_v51  ;;  %v2360_v2 = vmul.f32 %v9998_v53, %v7578_v11  ;;  %v10006_v43 = vld [vmem:[#allocation78_spill] sm:$0xff]  ;;  %v10015_v20 = vld [vmem:[#allocation96_spill] sm:$0xff] }
 0x3a8   :  { %v2741_v8 = vadd.f32 %v2740_v35, %v2739_v60  ;;  %v2751_v23 = vrot.slane %v2750_v28, 2  ;;  %v2946_v10 = vsel %vm2929_vm10, %v2728_v13, %v2945_v44  ;;  %v2361_v22 = vmul.f32 %v9999_v45, %v7624_v32  ;;  %v10007_v35 = vld [vmem:[#allocation21_spill] sm:$0xff] }
 0x3a9   :  { %v2362_v6 = vmul.f32 %v10000_v62, %v7478_v3  ;;  %v2363_v19 = vmul.f32 %v10001_v15, %v7517_v51  ;;  %v2364_v52 = vmul.f32 %v10002_v27, %v7578_v11  ;;  %v2365_v48 = vmul.f32 %v10003_v58, %v7624_v32  ;;  %v10008_v27 = vld [vmem:[#allocation97_spill] sm:$0xff] }
 0x3aa   :  { %v2752_v41 = vadd.f32 %v2751_v23, %v2750_v28  ;;  %v2947_v16 = vsel %vm9500_vm11, %v2741_v8, %v2946_v10  ;;  %v2366_v44 = vmul.f32 %v10004_v31, %v7478_v3  ;;  %v2367_v60 = vmul.f32 %v10005_v0, %v7517_v51  ;;  %v10009_v58 = vld [vmem:[#allocation9_spill] sm:$0xff]  ;;  %v10010_v23 = vld [vmem:[#allocation59_spill] sm:$0xff]  ;;  %v10011_v0 = vld [vmem:[#allocation102_spill] sm:$0xff] }
 0x3ab   :  { %v2368_v13 = vmul.f32 %v10006_v43, %v7578_v11  ;;  %v2369_v15 = vmul.f32 %v10007_v35, %v7624_v32  ;;  %v2370_v62 = vmul.f32 %v10008_v27, %v7478_v3  ;;  %v7826_v28 = vmul.f32 %v10009_v58, %v7517_v51  ;;  %v10012_v43 = vld [vmem:[#allocation77_spill] sm:$0xff]  ;;  %v10014_v58 = vld [vmem:[#allocation86_spill] sm:$0xff] }
 0x3ac   :  { %v2753_v8 = vrot.slane %v2752_v41, 1  ;;  %v7830_v10 = vmul.f32 %v10010_v23, %v7578_v11  ;;  %v7834_v31 = vmul.f32 %v10011_v0, %v7624_v32  ;;  %v7838_v45 = vmul.f32 %v10012_v43, %v7478_v3  ;;  %v10013_v35 = vld [vmem:[#allocation25_spill] sm:$0xff] }
 0x3ad   :  { %v7842_v27 = vmul.f32 %v10013_v35, %v7517_v51  ;;  %v7846_v53 = vmul.f32 %v10014_v58, %v7578_v11  ;;  %v7850_v23 = vmul.f32 %v10015_v20, %v7624_v32  ;;  %v2547_v54 = vsel %vm2442_vm5, %v2346_v50, 0.0 }
 0x3ae   :  { %v2754_v0 = vadd.f32 %v2753_v8, %v2752_v41  ;;  %v2548_v34 = vsel %vm2442_vm5, %v2347_v29, 0.0  ;;  %v2550_v43 = vsel %vm2442_vm5, %v2348_v56, 0.0  ;;  %v2552_v47 = vsel %vm2442_vm5, %v2349_v59, 0.0 }
 0x3af   :  { %v2549_v49 = vadd.f32 %v2548_v34, %v2547_v54  ;;  %v2560_v35 = vsel %vm2442_vm5, %v2350_v1, 0.0  ;;  %v2561_v7 = vsel %vm2442_vm5, %v2351_v9, 0.0  ;;  %v2563_v58 = vsel %vm2442_vm5, %v2352_v25, 0.0 }
 0x3b0   :  { %v2948_v36 = vsel %vm9499_vm12, %v2754_v0, %v2947_v16  ;;  %v2562_v20 = vadd.f32 %v2561_v7, %v2560_v35  ;;  %v2565_v33 = vsel %vm2442_vm5, %v2353_v5, 0.0  ;;  %v2573_v50 = vsel %vm2442_vm5, %v2354_v61, 0.0 }
 0x3b1   :  { %5174 = vmatpush.xpose.msk.msra.mxu1 %vm2442_vm5, %v2948_v36  ;;  %v2551_v29 = vadd.f32 %v2550_v43, %v2549_v49  ;;  %v2574_v56 = vsel %vm2442_vm5, %v2355_v42, 0.0  ;;  %v2576_v59 = vsel %vm2442_vm5, %v2356_v18, 0.0  ;;  %v2578_v1 = vsel %vm2442_vm5, %v2357_v46, 0.0 }
 0x3b2   :  { %v2564_v34 = vadd.f32 %v2563_v58, %v2562_v20  ;;  %v2575_v9 = vadd.f32 %v2574_v56, %v2573_v50  ;;  %v2586_v25 = vsel %vm2442_vm5, %v2358_v39, 0.0  ;;  %v2587_v54 = vsel %vm2442_vm5, %v2359_v40, 0.0 }
 0x3b3   :  { %v2553_v7 = vadd.f32 %v2552_v47, %v2551_v29  ;;  %v2588_v41 = vadd.f32 %v2587_v54, %v2586_v25  ;;  %v2589_v5 = vsel %vm2442_vm5, %v2360_v2, 0.0  ;;  %v2591_v61 = vsel %vm2442_vm5, %v2361_v22, 0.0 }
 0x3b4   :  { %v2566_v36 = vadd.f32 %v2565_v33, %v2564_v34  ;;  %v2577_v49 = vadd.f32 %v2576_v59, %v2575_v9  ;;  %v2599_v42 = vsel %vm2442_vm5, %v2362_v6, 0.0  ;;  %v2600_v18 = vsel %vm2442_vm5, %v2363_v19, 0.0 }
 0x3b5   :  { %v2554_v16 = vrot.slane %v2553_v7, 4  ;;  %v2590_v46 = vadd.f32 %v2589_v5, %v2588_v41  ;;  %v2601_v20 = vadd.f32 %v2600_v18, %v2599_v42  ;;  %v2602_v58 = vsel %vm2442_vm5, %v2364_v52, 0.0 }
 0x3b6   :  { %v2567_v39 = vrot.slane %v2566_v36, 4  ;;  %v2579_v0 = vadd.f32 %v2578_v1, %v2577_v49  ;;  %v2604_v47 = vsel %vm2442_vm5, %v2365_v48, 0.0  ;;  %v2612_v40 = vsel %vm2442_vm5, %v2366_v44, 0.0 }
 0x3b7   :  { %v2555_v2 = vadd.f32 %v2554_v16, %v2553_v7  ;;  %v2592_v43 = vadd.f32 %v2591_v61, %v2590_v46  ;;  %v2603_v22 = vadd.f32 %v2602_v58, %v2601_v20  ;;  %v2613_v33 = vsel %vm2442_vm5, %v2367_v60, 0.0 }
 0x3b8   :  { %v2568_v35 = vadd.f32 %v2567_v39, %v2566_v36  ;;  %v2580_v6 = vrot.slane %v2579_v0, 4  ;;  %v2614_v8 = vadd.f32 %v2613_v33, %v2612_v40  ;;  %v2615_v19 = vsel %vm2442_vm5, %v2368_v13, 0.0 }
 0x3b9   :  { %v2556_v50 = vrot.slane %v2555_v2, 2  ;;  %v2593_v29 = vrot.slane %v2592_v43, 4  ;;  %v2605_v56 = vadd.f32 %v2604_v47, %v2603_v22  ;;  %v2617_v52 = vsel %vm2442_vm5, %v2369_v15, 0.0 }
 0x3ba   :  { %v2569_v59 = vrot.slane %v2568_v35, 2  ;;  %v2581_v1 = vadd.f32 %v2580_v6, %v2579_v0  ;;  %v2616_v48 = vadd.f32 %v2615_v19, %v2614_v8  ;;  %v2625_v44 = vsel %vm2442_vm5, %v2370_v62, 0.0 }
 0x3bb   :  { %v2557_v34 = vadd.f32 %v2556_v50, %v2555_v2  ;;  %v2594_v9 = vadd.f32 %v2593_v29, %v2592_v43  ;;  %v2606_v25 = vrot.slane %v2605_v56, 4  ;;  %v2626_v60 = vsel %vm2442_vm5, %v7826_v28, 0.0 }
 0x3bc   :  { %v2570_v54 = vadd.f32 %v2569_v59, %v2568_v35  ;;  %v2582_v7 = vrot.slane %v2581_v1, 2  ;;  %v2618_v41 = vadd.f32 %v2617_v52, %v2616_v48  ;;  %v2627_v13 = vadd.f32 %v2626_v60, %v2625_v44  ;;  %v10017_v44 = vld [vmem:[#allocation152_spill] sm:$0xff] }
 0x3bd   :  { %v2558_v5 = vrot.slane %v2557_v34, 1  ;;  %v2595_v61 = vrot.slane %v2594_v9, 2  ;;  %v2607_v36 = vadd.f32 %v2606_v25, %v2605_v56  ;;  %v2628_v15 = vsel %vm2442_vm5, %v7830_v10, 0.0 }
 0x3be   :  { %v2571_v49 = vrot.slane %v2570_v54, 1  ;;  %v2583_v42 = vadd.f32 %v2582_v7, %v2581_v1  ;;  %v2619_v18 = vrot.slane %v2618_v41, 4  ;;  %v2629_v62 = vadd.f32 %v2628_v15, %v2627_v13  ;;  %v10016_v1 = vld [vmem:[#allocation60_spill] sm:$0xff] }
 0x3bf   :  { %v2559_v16 = vadd.f32 %v2558_v5, %v2557_v34  ;;  %v2596_v46 = vadd.f32 %v2595_v61, %v2594_v9  ;;  %v2608_v20 = vrot.slane %v2607_v36, 2  ;;  %v2630_v28 = vsel %vm2442_vm5, %v7834_v31, 0.0  ;;  %v10020_v5 = vld [vmem:[#allocation63_spill] sm:$0xff] }
 0x3c0   :  { %v2572_v58 = vadd.f32 %v2571_v49, %v2570_v54  ;;  %v2584_v39 = vrot.slane %v2583_v42, 1  ;;  %v2620_v0 = vadd.f32 %v2619_v18, %v2618_v41  ;;  %v2631_v47 = vadd.f32 %v2630_v28, %v2629_v62  ;;  %v10018_v54 = vld [vmem:[#allocation48_spill] sm:$0xff]  ;;  %v10019_v41 = vld [vmem:[#allocation142_spill] sm:$0xff] }
 0x3c1   :  { %v2597_v40 = vrot.slane %v2596_v46, 1  ;;  %v2609_v2 = vadd.f32 %v2608_v20, %v2607_v36  ;;  %v2638_v43 = vsel %vm2442_vm5, %v7838_v45, 0.0  ;;  %v2639_v10 = vsel %vm2442_vm5, %v7842_v27, 0.0  ;;  %v10022_v62 = vld [vmem:[#allocation166_spill] sm:$0xff]  ;;  %v10024_v28 = vld [vmem:[#allocation128_spill] sm:$0xff] }
 0x3c2   :  { %v2585_v22 = vadd.f32 %v2584_v39, %v2583_v42  ;;  %v2621_v33 = vrot.slane %v2620_v0, 2  ;;  %v2632_v35 = vrot.slane %v2631_v47, 4  ;;  %v2640_v6 = vadd.f32 %v2639_v10, %v2638_v43  ;;  %v10021_v42 = vld [vmem:[#allocation134_spill] sm:$0xff]  ;;  %v10025_v39 = vld [vmem:[#allocation69_spill] sm:$0xff]  ;;  %v10026_v43 = vld [vmem:[#allocation12_spill] sm:$0xff] }
 0x3c3   :  { %v2598_v8 = vadd.f32 %v2597_v40, %v2596_v46  ;;  %v2610_v19 = vrot.slane %v2609_v2, 1  ;;  %v2641_v31 = vsel %vm2442_vm5, %v7846_v53, 0.0  ;;  %v2643_v50 = vsel %vm2442_vm5, %v7850_v23, 0.0  ;;  %v10023_v46 = vld [vmem:[#allocation125_spill] sm:$0xff] }
 0x3c4   :  { %v2622_v29 = vadd.f32 %v2621_v33, %v2620_v0  ;;  %v2633_v56 = vadd.f32 %v2632_v35, %v2631_v47  ;;  %v2642_v52 = vadd.f32 %v2641_v31, %v2640_v6  ;;  %v2935_v45 = vsel %vm2921_vm6, %v2572_v58, %v2559_v16  ;;  %v10028_v35 = vld [vmem:[#allocation72_spill] sm:$0xff] }
 0x3c5   :  { %v2611_v59 = vadd.f32 %v2610_v19, %v2609_v2  ;;  %v2936_v27 = vsel %vm2923_vm7, %v2585_v22, %v2935_v45  ;;  %v2314_v48 = vmul.f32 %v10016_v1, %v7478_v3  ;;  %v2315_v34 = vmul.f32 %v10017_v44, %v7517_v51  ;;  %v10027_v22 = vld [vmem:[#allocation139_spill] sm:$0xff]  ;;  %v10030_v31 = vld [vmem:[#allocation40_spill] sm:$0xff] }
 0x3c6   :  { %v2623_v9 = vrot.slane %v2622_v29, 1  ;;  %v2634_v25 = vrot.slane %v2633_v56, 2  ;;  %v2644_v53 = vadd.f32 %v2643_v50, %v2642_v52  ;;  %v2937_v60 = vsel %vm2925_vm8, %v2598_v8, %v2936_v27  ;;  %v10029_v8 = vld [vmem:[#allocation135_spill] sm:$0xff]  ;;  %v10031_v52 = vld [vmem:[#allocation89_spill] sm:$0xff] }
 0x3c7   :  { %v2938_v23 = vsel %vm2927_vm9, %v2611_v59, %v2937_v60  ;;  %v2316_v7 = vmul.f32 %v10018_v54, %v7578_v11  ;;  %v2317_v13 = vmul.f32 %v10019_v41, %v7624_v32  ;;  %v2318_v61 = vmul.f32 %v10020_v5, %v7478_v3  ;;  %v10032_v59 = vld [vmem:[#allocation65_spill] sm:$0xff] }
 0x3c8   :  { %v2624_v36 = vadd.f32 %v2623_v9, %v2622_v29  ;;  %v2635_v15 = vadd.f32 %v2634_v25, %v2633_v56  ;;  %v2645_v49 = vrot.slane %v2644_v53, 4  ;;  %v2319_v18 = vmul.f32 %v10021_v42, %v7517_v51  ;;  %v10033_v9 = vld [vmem:[#allocation138_spill] sm:$0xff] }
 0x3c9   :  { %v2320_v16 = vmul.f32 %v10022_v62, %v7578_v11  ;;  %v2321_v20 = vmul.f32 %v10023_v46, %v7624_v32  ;;  %v2322_v58 = vmul.f32 %v10024_v28, %v7478_v3  ;;  %v2323_v0 = vmul.f32 %v10025_v39, %v7517_v51 }
 0x3ca   :  { %v2636_v47 = vrot.slane %v2635_v15, 1  ;;  %v2646_v40 = vadd.f32 %v2645_v49, %v2644_v53  ;;  %v2939_v2 = vsel %vm2929_vm10, %v2624_v36, %v2938_v23  ;;  %v2324_v10 = vmul.f32 %v10026_v43, %v7578_v11  ;;  %v10034_v53 = vld [vmem:[#allocation11_spill] sm:$0xff]  ;;  %v10036_v49 = vld [vmem:[#allocation146_spill] sm:$0xff] }
 0x3cb   :  { %v2325_v33 = vmul.f32 %v10027_v22, %v7624_v32  ;;  %v2326_v6 = vmul.f32 %v10028_v35, %v7478_v3  ;;  %v2327_v19 = vmul.f32 %v10029_v8, %v7517_v51  ;;  %v2328_v50 = vmul.f32 %v10030_v31, %v7578_v11  ;;  %v10035_v23 = vld [vmem:[#allocation127_spill] sm:$0xff] }
 0x3cc   :  { %v2637_v29 = vadd.f32 %v2636_v47, %v2635_v15  ;;  %v2647_v56 = vrot.slane %v2646_v40, 2  ;;  %v2329_v45 = vmul.f32 %v10031_v52, %v7624_v32  ;;  %v2330_v27 = vmul.f32 %v10032_v59, %v7478_v3  ;;  %v10037_v52 = vld [vmem:[#allocation141_spill] sm:$0xff] }
 0x3cd   :  { %v2331_v25 = vmul.f32 %v10033_v9, %v7517_v51  ;;  %v2332_v60 = vmul.f32 %v10034_v53, %v7578_v11  ;;  %v2333_v36 = vmul.f32 %v10035_v23, %v7624_v32  ;;  %v2334_v31 = vmul.f32 %v10036_v49, %v7478_v3  ;;  %v10038_v59 = vld [vmem:[#allocation149_spill] sm:$0xff]  ;;  %v10039_v9 = vld [vmem:[#allocation51_spill] sm:$0xff]  ;;  %v10041_v23 = vld [vmem:[#allocation88_spill] sm:$0xff] }
 0x3ce   :  { %v2648_v15 = vadd.f32 %v2647_v56, %v2646_v40  ;;  %v2940_v47 = vsel %vm9500_vm11, %v2637_v29, %v2939_v2  ;;  %v2335_v8 = vmul.f32 %v10037_v52, %v7517_v51  ;;  %v2336_v35 = vmul.f32 %v10038_v59, %v7578_v11  ;;  %v10040_v53 = vld [vmem:[#allocation93_spill] sm:$0xff]  ;;  %v10042_v40 = vld [vmem:[#allocation115_spill] sm:$0xff] }
 0x3cf   :  { %v2337_v22 = vmul.f32 %v10039_v9, %v7624_v32  ;;  %v2338_v43 = vmul.f32 %v10040_v53, %v7478_v3  ;;  %v7951_v39 = vmul.f32 %v10041_v23, %v7517_v51  ;;  %v7955_v56 = vmul.f32 %v10042_v40, %v7578_v11  ;;  %v10043_v29 = vld [vmem:[#allocation17_spill] sm:$0xff]  ;;  %v10044_v59 = vld [vmem:[#allocation87_spill] sm:$0xff]  ;;  %v10045_v9 = vld [vmem:[#allocation100_spill] sm:$0xff] }
 0x3d0   :  { %v2649_v2 = vrot.slane %v2648_v15, 1  ;;  %v7959_v52 = vmul.f32 %v10043_v29, %v7624_v32  ;;  %v7963_v49 = vmul.f32 %v10044_v59, %v7478_v3  ;;  %v7967_v53 = vmul.f32 %v10045_v9, %v7517_v51  ;;  %v10046_v23 = vld [vmem:[#allocation4_spill] sm:$0xff] }
 0x3d1   :  { %v7971_v28 = vmul.f32 %v10046_v23, %v7578_v11  ;;  %v10047_v40 = vld [vmem:[#allocation24_spill] sm:$0xff]  ;;  %v2443_v62 = vsel %vm2442_vm5, %v2314_v48, 0.0  ;;  %v2444_v29 = vsel %vm2442_vm5, %v2315_v34, 0.0  ;;  %v2446_v3 = vsel %vm2442_vm5, %v2316_v7, 0.0 }
 0x3d2   :  { %v7975_v46 = vmul.f32 %v10047_v40, %v7624_v32  ;;  %v2650_v42 = vadd.f32 %v2649_v2, %v2648_v15  ;;  %v2445_v5 = vadd.f32 %v2444_v29, %v2443_v62  ;;  %v2448_v59 = vsel %vm2442_vm5, %v2317_v13, 0.0 }
 0x3d3   :  { %v2456_v51 = vsel %vm2442_vm5, %v2318_v61, 0.0  ;;  %v2457_v9 = vsel %vm2442_vm5, %v2319_v18, 0.0  ;;  %v2459_v11 = vsel %vm2442_vm5, %v2320_v16, 0.0  ;;  %v2461_v23 = vsel %vm2442_vm5, %v2321_v20, 0.0 }
 0x3d4   :  { %v2941_v32 = vsel %vm9499_vm12, %v2650_v42, %v2940_v47  ;;  %v2447_v40 = vadd.f32 %v2446_v3, %v2445_v5  ;;  %v2458_v48 = vadd.f32 %v2457_v9, %v2456_v51  ;;  %v2469_v34 = vsel %vm2442_vm5, %v2322_v58, 0.0 }
 0x3d5   :  { %5175 = vmatpush.xpose.msk.msra.mxu1 %vm2442_vm5, %v2941_v32  ;;  %v2470_v7 = vsel %vm2442_vm5, %v2323_v0, 0.0  ;;  %v2472_v13 = vsel %vm2442_vm5, %v2324_v10, 0.0  ;;  %v2474_v61 = vsel %vm2442_vm5, %v2325_v33, 0.0  ;;  %v2482_v18 = vsel %vm2442_vm5, %v2326_v6, 0.0 }
 0x3d6   :  { %v2449_v62 = vadd.f32 %v2448_v59, %v2447_v40  ;;  %v2460_v16 = vadd.f32 %v2459_v11, %v2458_v48  ;;  %v2471_v15 = vadd.f32 %v2470_v7, %v2469_v34  ;;  %v2483_v20 = vsel %vm2442_vm5, %v2327_v19, 0.0 }
 0x3d7   :  { %v2484_v42 = vadd.f32 %v2483_v20, %v2482_v18  ;;  %v2485_v5 = vsel %vm2442_vm5, %v2328_v50, 0.0  ;;  %v2487_v58 = vsel %vm2442_vm5, %v2329_v45, 0.0  ;;  %v2495_v9 = vsel %vm2442_vm5, %v2330_v27, 0.0 }
 0x3d8   :  { %v2450_v47 = vrot.slane %v2449_v62, 4  ;;  %v2462_v0 = vadd.f32 %v2461_v23, %v2460_v16  ;;  %v2473_v2 = vadd.f32 %v2472_v13, %v2471_v15  ;;  %v2496_v10 = vsel %vm2442_vm5, %v2331_v25, 0.0 }
 0x3d9   :  { %v2486_v33 = vadd.f32 %v2485_v5, %v2484_v42  ;;  %v2497_v29 = vadd.f32 %v2496_v10, %v2495_v9  ;;  %v2498_v6 = vsel %vm2442_vm5, %v2332_v60, 0.0  ;;  %v2500_v59 = vsel %vm2442_vm5, %v2333_v36, 0.0 }
 0x3da   :  { %v2451_v40 = vadd.f32 %v2450_v47, %v2449_v62  ;;  %v2463_v19 = vrot.slane %v2462_v0, 4  ;;  %v2475_v3 = vadd.f32 %v2474_v61, %v2473_v2  ;;  %v2508_v50 = vsel %vm2442_vm5, %v2334_v31, 0.0 }
 0x3db   :  { %v2488_v51 = vadd.f32 %v2487_v58, %v2486_v33  ;;  %v2499_v45 = vadd.f32 %v2498_v6, %v2497_v29  ;;  %v2509_v27 = vsel %vm2442_vm5, %v2335_v8, 0.0  ;;  %v2511_v23 = vsel %vm2442_vm5, %v2336_v35, 0.0 }
 0x3dc   :  { %v2452_v11 = vrot.slane %v2451_v40, 2  ;;  %v2464_v32 = vadd.f32 %v2463_v19, %v2462_v0  ;;  %v2476_v25 = vrot.slane %v2475_v3, 4  ;;  %v2510_v48 = vadd.f32 %v2509_v27, %v2508_v50 }
 0x3dd   :  { %v2489_v34 = vrot.slane %v2488_v51, 4  ;;  %v2501_v7 = vadd.f32 %v2500_v59, %v2499_v45  ;;  %v2513_v60 = vsel %vm2442_vm5, %v2337_v22, 0.0  ;;  %v2521_v36 = vsel %vm2442_vm5, %v2338_v43, 0.0 }
 0x3de   :  { %v2453_v13 = vadd.f32 %v2452_v11, %v2451_v40  ;;  %v2465_v61 = vrot.slane %v2464_v32, 2  ;;  %v2477_v18 = vadd.f32 %v2476_v25, %v2475_v3  ;;  %v2512_v31 = vadd.f32 %v2511_v23, %v2510_v48 }
 0x3df   :  { %v2490_v62 = vadd.f32 %v2489_v34, %v2488_v51  ;;  %v2502_v16 = vrot.slane %v2501_v7, 4  ;;  %v2522_v8 = vsel %vm2442_vm5, %v7951_v39, 0.0  ;;  %v2524_v35 = vsel %vm2442_vm5, %v7955_v56, 0.0 }
 0x3e0   :  { %v2454_v15 = vrot.slane %v2453_v13, 1  ;;  %v2466_v20 = vadd.f32 %v2465_v61, %v2464_v32  ;;  %v2478_v42 = vrot.slane %v2477_v18, 2  ;;  %v2514_v5 = vadd.f32 %v2513_v60, %v2512_v31 }
 0x3e1   :  { %v2491_v58 = vrot.slane %v2490_v62, 2  ;;  %v2503_v22 = vadd.f32 %v2502_v16, %v2501_v7  ;;  %v2523_v9 = vadd.f32 %v2522_v8, %v2521_v36  ;;  %v2526_v43 = vsel %vm2442_vm5, %v7959_v52, 0.0 }
 0x3e2   :  { %v2455_v47 = vadd.f32 %v2454_v15, %v2453_v13  ;;  %v2467_v0 = vrot.slane %v2466_v20, 1  ;;  %v2479_v2 = vadd.f32 %v2478_v42, %v2477_v18  ;;  %v2515_v10 = vrot.slane %v2514_v5, 4 }
 0x3e3   :  { %v2492_v33 = vadd.f32 %v2491_v58, %v2490_v62  ;;  %v2504_v29 = vrot.slane %v2503_v22, 2  ;;  %v2525_v39 = vadd.f32 %v2524_v35, %v2523_v9  ;;  %v2534_v56 = vsel %vm2442_vm5, %v7963_v49, 0.0 }
 0x3e4   :  { %v2468_v6 = vadd.f32 %v2467_v0, %v2466_v20  ;;  %v2480_v59 = vrot.slane %v2479_v2, 1  ;;  %v2516_v40 = vadd.f32 %v2515_v10, %v2514_v5  ;;  %v2535_v19 = vsel %vm2442_vm5, %v7967_v53, 0.0  ;;  %v2093_v0 = vld [vmem:[%s9330_s3 + $0x8] sm:$0xf]  ;;  %v2101_v10 = vld [vmem:[%s9332_s13 + $0x10] sm:$0xff] }
 0x3e5   :  { %v2493_v3 = vrot.slane %v2492_v33, 1  ;;  %v2505_v50 = vadd.f32 %v2504_v29, %v2503_v22  ;;  %v2527_v51 = vadd.f32 %v2526_v43, %v2525_v39  ;;  %v2536_v52 = vadd.f32 %v2535_v19, %v2534_v56  ;;  %v2099_v29 = vld [vmem:[%s9332_s13] sm:$0xff]  ;;  %v2883_v39 = vpop.f32.mrf.mxu3 }
 0x3e6   :  { %v2481_v45 = vadd.f32 %v2480_v59, %v2479_v2  ;;  %v2517_v27 = vrot.slane %v2516_v40, 2  ;;  %v2537_v23 = vsel %vm2442_vm5, %v7971_v28, 0.0  ;;  %v2539_v11 = vsel %vm2442_vm5, %v7975_v46, 0.0  ;;  %v2102_v2 = vld [vmem:[%s9332_s13 + $0x18] sm:$0xff]  ;;  %v5269_v56 = vld [vmem:[%s9329_s12] ss:$0 sm:$0xff] }
 0x3e7   :  { %v2528_v32 = vrot.slane %v2527_v51, 4  ;;  %v2538_v49 = vadd.f32 %v2537_v23, %v2536_v52  ;;  %v2506_v25 = vrot.slane %v2505_v50, 1  ;;  %v2922_v34 = vsel %vm2921_vm6, %v2468_v6, %v2455_v47  ;;  %v2092_v47 = vld [vmem:[%s9330_s3] sm:$0xff] }
 0x3e8   :  { %v2518_v48 = vadd.f32 %v2517_v27, %v2516_v40  ;;  %v2494_v7 = vadd.f32 %v2493_v3, %v2492_v33  ;;  %v2924_v36 = vsel %vm2923_vm7, %v2481_v45, %v2922_v34  ;;  %v2100_v33 = vld [vmem:[%s9332_s13 + $0x8] sm:$0xff]  ;;  %v5270_v23 = vld [vmem:[%s9331_s15] ss:$0 sm:$0xff] }
 0x3e9   :  { %v2529_v53 = vadd.f32 %v2528_v32, %v2527_v51  ;;  %v2540_v60 = vadd.f32 %v2539_v11, %v2538_v49  ;;  %v2507_v28 = vadd.f32 %v2506_v25, %v2505_v50 }
 0x3ea   :  { %v2519_v13 = vrot.slane %v2518_v48, 1  ;;  %v2926_v31 = vsel %vm2925_vm8, %v2494_v7, %v2924_v36 }
 0x3eb   :  { %v2530_v61 = vrot.slane %v2529_v53, 2  ;;  %v2541_v18 = vrot.slane %v2540_v60, 4  ;;  %v2928_v46 = vsel %vm2927_vm9, %v2507_v28, %v2926_v31 }
 0x3ec   :  { %v2520_v8 = vadd.f32 %v2519_v13, %v2518_v48 }
 0x3ed   :  { %v2531_v62 = vadd.f32 %v2530_v61, %v2529_v53  ;;  %v2542_v16 = vadd.f32 %v2541_v18, %v2540_v60  ;;  %v2886_v3 = vpop.f32.mrf.mxu3 }
 0x3ee   :  { %v2930_v42 = vsel %vm2929_vm10, %v2520_v8, %v2928_v46 }
 0x3ef   :  { %v2532_v35 = vrot.slane %v2531_v62, 1  ;;  %v2543_v15 = vrot.slane %v2542_v16, 2 }
 0x3f1   :  { %v2544_v20 = vadd.f32 %v2543_v15, %v2542_v16  ;;  %v2533_v5 = vadd.f32 %v2532_v35, %v2531_v62 }
 0x3f3   :  { %v2545_v58 = vrot.slane %v2544_v20, 1  ;;  %v2932_v22 = vsel %vm9500_vm11, %v2533_v5, %v2930_v42 }
 0x3f5   :  { %v2546_v9 = vadd.f32 %v2545_v58, %v2544_v20  ;;  %v3017_v27 = vpop.f32.mrf.mxu3 }
 0x3f7   :  { %v2934_v43 = vsel %vm9499_vm12, %v2546_v9, %v2932_v22 }
 0x3f8   :  { %5176 = vmatpush.xpose.msk.msra.mxu1 %vm2442_vm5, %v2934_v43 }
 0x3fb   :  { %5177 = vmatmul.msk.f32.vlgmr.msra.gmra.mxu1 %vm2442_vm5, %v2092_v47 }
 0x3fc   :  { %3041 = vmatpush.msrb.mxu1 %v2102_v2 }
 0x3fd   :  { %v3020_v25 = vpop.f32.mrf.mxu3 }
 0x3fe   :  { %3042 = vmatpush.msrb.mxu1 %v2101_v10 }
 0x400   :  { %3043 = vmatpush.msrb.mxu1 %v2100_v33 }
 0x402   :  { %3044 = vmatpush.msrb.mxu1 %v2099_v29 }
 0x403   :  { %5178 = vmatmul.msk.f32.gmra.mxu1 %vm2442_vm5, %v2093_v0 }
 0x478   :  { %v2987_v6 = vpop.f32.mrf.mxu1 }
 0x479   :  { %v2988_v59 = vadd.f32 %v2987_v6, %v2883_v39 }
 0x47b   :  { %v2996_v40 = vadd.f32 %v5269_v56, %v2988_v59  ;;  %v10048_v59 = vld [vmem:[#allocation108_spill] sm:$0xff] }
 0x47d   :  { %v2998_v19 = vmax.f32 %v2996_v40, 0.0 }
 0x47f   :  { %5181 = vmatmul.msk.f32.vlgmr.msrb.gmra.mxu1 %vm2859_vm3, %v2998_v19 }
 0x480   :  { %v2990_v50 = vpop.f32.mrf.mxu1 }
 0x481   :  { %v2991_v51 = vadd.f32 %v2990_v50, %v2886_v3  ;;  %v10049_v50 = vld [vmem:[#allocation109_spill] sm:$0xff] }
 0x483   :  { %v2997_v52 = vadd.f32 %v5269_v56, %v2991_v51 }
 0x485   :  { %v2999_v45 = vmax.f32 %v2997_v52, 0.0 }
 0x487   :  { %5182 = vmatmul.msk.f32.gmra.mxu1 %vm2859_vm3, %v2999_v45 }
 0x4fc   :  { %v3046_v11 = vpop.f32.mrf.mxu1 }
 0x4fd   :  { %v3047_v32 = vadd.f32 %v3046_v11, %v3017_v27 }
 0x4ff   :  { %v3055_v49 = vadd.f32 %v5270_v23, %v3047_v32 }
 0x501   :  { %3097 = vrot.lane.b32.xlu1 %v3055_v49, %s5340_s24  ;;  %v5183_v53 = vmul.f32 -1.442695, %v3055_v49 }
 0x503   :  { %5274 = vpow2.f32 %v5183_v53 }
 0x504   :  { %v3049_v48 = vpop.f32.mrf.mxu1 }
 0x505   :  { %v3050_v34 = vadd.f32 %v3049_v48, %v3020_v25 }
 0x507   :  { %v3056_v7 = vadd.f32 %v5270_v23, %v3050_v34 }
 0x509   :  { %3099 = vrot.lane.b32.xlu0 %v3056_v7, %s5340_s24  ;;  %v5184_v60 = vmul.f32 -1.442695, %v3056_v7  ;;  %v5275_v36 = vpop.eup %5274 }
 0x50a   :  { %v3063_v13 = vadd.f32 1.0, %v5275_v36 }
 0x50b   :  { %5276 = vpow2.f32 %v5184_v60 }
 0x50c   :  { %5278 = vrcp.f32 %v3063_v13  ;;  %v3076_v20 = vand.u32 2147483648, %v3063_v13  ;;  %vm3070_vm14 = vweird.f32 %v3063_v13  ;;  %v3074_v42 = vand.u32 2147483647, %v3063_v13 }
 0x50e   :  { %v3077_v22 = vor.u32 1.1754944e-38, %v3076_v20  ;;  %vm3075_vm0 = vcmp.eq.f32.partialorder %v3074_v42, 8.507059e+37 }
 0x511   :  { %v5277_v61 = vpop.eup %5276 }
 0x512   :  { %v3064_v18 = vadd.f32 1.0, %v5277_v61  ;;  %v5279_v31 = vpop.eup %5278  ;;  %v5314_v61 = vld [vmem:[%s9327_s11 + $0x18] sm:$0xff] }
 0x513   :  { %v3066_v28 = vmul.f32 %v5279_v31, %v3063_v13  ;;  %vm3071_vm13 = vweird.f32 %v5279_v31 }
 0x514   :  { %5280 = vrcp.f32 %v3064_v18  ;;  %vm3072_vm15 = vmor %vm3070_vm14, %vm3071_vm13  ;;  %v3091_v2 = vand.u32 2147483648, %v3064_v18  ;;  %vm3085_vm2 = vweird.f32 %v3064_v18  ;;  %v3089_v10 = vand.u32 2147483647, %v3064_v18 }
 0x515   :  { %v3067_v62 = vsub.f32 1.0, %v3066_v28  ;;  %v5317_v28 = vld [vmem:[%s9327_s11] sm:$0xff] }
 0x516   :  { %v3092_v29 = vor.u32 1.1754944e-38, %v3091_v2  ;;  %vm3090_vm11 = vcmp.eq.f32.partialorder %v3089_v10, 8.507059e+37  ;;  %v10056_v10 = vld [vmem:[#allocation121_spill] sm:$0xff] }
 0x517   :  { %v3068_v46 = vmul.f32 %v5279_v31, %v3067_v62 }
 0x519   :  { %v3069_v35 = vadd.f32 %v5279_v31, %v3068_v46  ;;  %v5319_v46 = vld [vmem:[%s9328_s14 + $0x10] sm:$0xff] }
 0x51a   :  { %v5281_v16 = vpop.eup %5280 }
 0x51b   :  { %v3081_v8 = vmul.f32 %v5281_v16, %v3064_v18  ;;  %v3073_v5 = vsel %vm3072_vm15, %v5279_v31, %v3069_v35  ;;  %vm3086_vm1 = vweird.f32 %v5281_v16  ;;  %v5315_v18 = vld [vmem:[%s9327_s11 + $0x10] sm:$0xff]  ;;  %v5316_v31 = vld [vmem:[%s9327_s11 + $0x8] sm:$0xff]  ;;  %v5321_v35 = vld [vmem:[%s9328_s14] sm:$0xff] }
 0x51c   :  { %v3078_v43 = vsel %vm3075_vm0, %v3077_v22, %v3073_v5  ;;  %vm3087_vm12 = vmor %vm3085_vm2, %vm3086_vm1  ;;  %v10053_v22 = vld [vmem:[#allocation53_spill] sm:$0xff]  ;;  %vm10110_vm2 = vcmask 1046534  }
 0x51d   :  { %v3082_v15 = vsub.f32 1.0, %v3081_v8  ;;  %v3117_v23 = vsub.f32 1.0, %v3078_v43  ;;  %v5320_v8 = vld [vmem:[%s9328_s14 + $0x8] sm:$0xff]  ;;  %vm10167_vm14 = vmmov %vm10110_vm2 }
 0x51e   :  { %vm10180_vm0 = vmmov %vm10110_vm2 }
 0x51f   :  { %v3083_v58 = vmul.f32 %v5281_v16, %v3082_v15 }
 0x521   :  { %v3084_v0 = vadd.f32 %v5281_v16, %v3083_v58 }
 0x523   :  { %v3088_v33 = vsel %vm3087_vm12, %v5281_v16, %v3084_v0  ;;  %v5318_v16 = vld [vmem:[%s9328_s14 + $0x18] sm:$0xff]  ;;  %vm10135_vm12 = vmmov %vm10110_vm2 }
 0x524   :  { %v3093_v56 = vsel %vm3090_vm11, %v3092_v29, %v3088_v33  ;;  %v10055_v0 = vld [vmem:[#allocation165_spill] sm:$0xff]  ;;  %v10057_v29 = vld [vmem:[#allocation62_spill] sm:$0xff]  ;;  %vm10111_vm11 = vcmask 1047559  }
 0x525   :  { %v3118_v34 = vsub.f32 1.0, %v3093_v56  ;;  %vm10145_vm13 = vmmov %vm10111_vm11 }
 0x526   :  { %vm10179_vm15 = vmmov %vm10111_vm11 }
 0x527   :  { %vm10181_vm1 = vmmov %vm10111_vm11 }
 0x573   :  { %v3098_v9 = vpop.permute.xlu1 %3097 }
 0x574   :  { %v3103_v47 = vmul.f32 %v3098_v9, %v3078_v43 }
 0x576   :  { %3107 = vrot.lane.b32.xlu2 %v3103_v47, %s5341_s10 }
 0x57b   :  { %v3100_v39 = vpop.permute.xlu0 %3099 }
 0x57c   :  { %v3104_v6 = vmul.f32 %v3100_v39, %v3093_v56 }
 0x57e   :  { %3129 = vrot.lane.b32.xlu2 %v10048_v59, %s5340_s24  ;;  %3109 = vrot.lane.b32.xlu1 %v3104_v6, %s5341_s10  ;;  %v10059_v59 = vld [vmem:[#allocation41_spill] sm:$0xff] }
 0x5d0   :  { %v3108_v40 = vpop.permute.xlu2 %3107 }
 0x5d1   :  { %v3113_v19 = vadd.f32 %v3108_v40, %v3055_v49 }
 0x5d3   :  { %5282 = vtanh.f32 %v3113_v19  ;;  %v10060_v19 = vld [vmem:[#allocation145_spill] sm:$0xff] }
 0x5d8   :  { %v3130_v27 = vpop.permute.xlu2 %3129 }
 0x5d9   :  { %v5283_v3 = vpop.eup %5282  ;;  %v3135_v32 = vmul.f32 %v3130_v27, %v3078_v43  ;;  %v10054_v43 = vld [vmem:[#allocation155_spill] sm:$0xff] }
 0x5da   :  { %3121 = vrot.lane.b32.xlu0 %v5283_v3, %s5342_s9 }
 0x5e2   :  { %3131 = vrot.lane.b32.xlu0 %v10049_v50, %s5340_s24 }
 0x5f0   :  { %v3110_v51 = vpop.permute.xlu1 %3109 }
 0x5f1   :  { %v3114_v52 = vadd.f32 %v3110_v51, %v3056_v7  ;;  %v10061_v51 = vld [vmem:[#allocation81_spill] sm:$0xff] }
 0x5f3   :  { %5284 = vtanh.f32 %v3114_v52 }
 0x5f9   :  { %v5285_v45 = vpop.eup %5284 }
 0x5fa   :  { %3123 = vrot.lane.b32.xlu1 %v5285_v45, %s5342_s9  ;;  %v10062_v45 = vld [vmem:[#allocation68_spill] sm:$0xff] }
 0x64c   :  { %v3122_v11 = vpop.permute.xlu0 %3121 }
 0x64d   :  { %v3127_v25 = vmul.f32 %v3122_v11, %v3117_v23  ;;  %v10063_v23 = vld [vmem:[#allocation154_spill] sm:$0xff] }
 0x64f   :  { %v8064_v49 = vadd.f32 %v3135_v32, %v3127_v25  ;;  %v10064_v32 = vld [vmem:[#allocation164_spill] sm:$0xff] }
 0x651   :  { %10050 = vst [vmem:[#allocation23_spill] sm:$0xff] %v8064_v49  ;;  %3141 = vrot.lane.b32.xlu2 %v8064_v49, %s5342_s9  ;;  %v10090_v49 = vld [vmem:[#allocation22_spill] sm:$0xff] }
 0x654   :  { %v3132_v48 = vpop.permute.xlu0 %3131 }
 0x655   :  { %v3136_v60 = vmul.f32 %v3132_v48, %v3093_v56  ;;  %v10058_v56 = vld [vmem:[#allocation70_spill] sm:$0xff]  ;;  %v10065_v48 = vld [vmem:[#allocation13_spill] sm:$0xff] }
 0x66c   :  { %v3124_v53 = vpop.permute.xlu1 %3123 }
 0x66d   :  { %v3128_v36 = vmul.f32 %v3124_v53, %v3118_v34  ;;  %v10066_v53 = vld [vmem:[#allocation91_spill] sm:$0xff] }
 0x66f   :  { %v8068_v7 = vadd.f32 %v3136_v60, %v3128_v36  ;;  %v10067_v36 = vld [vmem:[#allocation131_spill] sm:$0xff] }
 0x671   :  { %10051 = vst [vmem:[#allocation10_spill] sm:$0xff] %v8068_v7  ;;  %3143 = vrot.lane.b32.xlu1 %v8068_v7, %s5342_s9 }
 0x6ab   :  { %v3142_v13 = vpop.permute.xlu2 %3141 }
 0x6ac   :  { %5190 = vmatmul.msk.f32.vlgmr.msrb.gmra.mxu3 %vm2859_vm3, %v3142_v13  ;;  %3147 = vxpose.xlu0.b32.start [1/2] (short) (narrow) %v3142_v13, 32 }
 0x6ad   :  { %4657 = vmatpush.msrb.mxu3 %v5314_v61  ;;  %v10068_v61 = vld [vmem:[#allocation80_spill] sm:$0xff] }
 0x6af   :  { %4658 = vmatpush.msrb.mxu3 %v5315_v18 }
 0x6b1   :  { %4659 = vmatpush.msrb.mxu3 %v5316_v31 }
 0x6b3   :  { %4660 = vmatpush.msrb.mxu3 %v5317_v28 }
 0x6e3   :  { %v3144_v62 = vpop.permute.xlu1 %3143 }
 0x6e4   :  { %5191 = vmatmul.msk.f32.gmra.mxu3 %vm2859_vm3, %v3144_v62  ;;  %3148 = vxpose.xlu0.b32.end [2/2] (short) (narrow) %v3144_v62, 32 }
 0x6ec   :  { %5198 = vmatmul.msk.f32.vlgmr.msra.gmra.mxu3 %vm2859_vm3, %v3142_v13 }
 0x6ed   :  { %4775 = vmatpush.msra.mxu3 %v5318_v16 }
 0x6ef   :  { %4776 = vmatpush.msra.mxu3 %v5319_v46 }
 0x6f1   :  { %4777 = vmatpush.msra.mxu3 %v5320_v8  ;;  %v10069_v8 = vld [vmem:[#allocation110_spill] sm:$0xff] }
 0x6f3   :  { %4778 = vmatpush.msra.mxu3 %v5321_v35 }
 0x6f4   :  { %5199 = vmatmul.msk.f32.gmra.mxu3 %vm2859_vm3, %v3144_v62 }
 0x780   :  { %v3163_v15 = vpop.trf.xlu0 }
 0x781   :  { %5186 = vmatmul.msk.f32.vlgmr.msra.gmra.mxu2 %vm2140_vm4, %v3163_v15  ;;  %v10070_v15 = vld [vmem:[#allocation157_spill] sm:$0xff] }
 0x788   :  { %v3164_v20 = vpop.trf.xlu0 }
 0x789   :  { %5187 = vmatmul.msk.f32.gmra.mxu2 %vm2140_vm4, %v3164_v20 }
 0x790   :  { %v3165_v42 = vpop.trf.xlu0 }
 0x791   :  { %5188 = vmatmul.msk.f32.gmra.mxu2 %vm2140_vm4, %v3165_v42  ;;  %v10071_v42 = vld [vmem:[#allocation119_spill] sm:$0xff] }
 0x798   :  { %v3166_v5 = vpop.trf.xlu0 }
 0x799   :  { %5189 = vmatmul.msk.f32.gmra.mxu2 %vm2140_vm4, %v3166_v5 }
 0x804   :  { %v8104_v58 = vpop.f32.mrf.mxu2 }
 0x805   :  { %10052 = vst [vmem:[#allocation104_spill] sm:$0xff] %v8104_v58  ;;  %v3316_v9 = vmul.f32 %v8104_v58, %v10053_v22  ;;  %v3320_v47 = vmul.f32 %v8104_v58, %v10054_v43  ;;  %v3324_v2 = vmul.f32 %v8104_v58, %v10055_v0  ;;  %v3328_v33 = vmul.f32 %v8104_v58, %v10056_v10 }
 0x806   :  { %v3332_v39 = vmul.f32 %v8104_v58, %v10057_v29  ;;  %v3336_v6 = vmul.f32 %v8104_v58, %v10058_v56  ;;  %v3340_v40 = vmul.f32 %v8104_v58, %v10059_v59  ;;  %v3344_v3 = vmul.f32 %v8104_v58, %v10060_v19 }
 0x807   :  { %v3660_v50 = vsel %vm2442_vm5, %v3316_v9, 0.0  ;;  %v8125_v52 = vmul.f32 %v8104_v58, %v10061_v51  ;;  %v8129_v27 = vmul.f32 %v8104_v58, %v10062_v45  ;;  %v8133_v11 = vmul.f32 %v8104_v58, %v10063_v23  ;;  %v10072_v9 = vld [vmem:[#allocation57_spill] sm:$0xff] }
 0x808   :  { %v8137_v25 = vmul.f32 %v8104_v58, %v10064_v32  ;;  %v8141_v34 = vmul.f32 %v8104_v58, %v10065_v48  ;;  %v8145_v60 = vmul.f32 %v8104_v58, %v10066_v53  ;;  %v8149_v13 = vmul.f32 %v8104_v58, %v10067_v36  ;;  %v10073_v36 = vld [vmem:[#allocation64_spill] sm:$0xff]  ;;  %v10075_v53 = vld [vmem:[#allocation82_spill] sm:$0xff]  ;;  %v10076_v48 = vld [vmem:[#allocation15_spill] sm:$0xff] }
 0x809   :  { %v8153_v18 = vmul.f32 %v8104_v58, %v10068_v61  ;;  %v3673_v28 = vsel %vm2442_vm5, %v3320_v47, 0.0  ;;  %v3686_v62 = vsel %vm2442_vm5, %v3324_v2, 0.0  ;;  %v3699_v16 = vsel %vm2442_vm5, %v3328_v33, 0.0  ;;  %v10074_v2 = vld [vmem:[#allocation74_spill] sm:$0xff] }
 0x80a   :  { %v3712_v46 = vsel %vm2442_vm5, %v3332_v39, 0.0  ;;  %v3725_v19 = vsel %vm2442_vm5, %v3336_v6, 0.0 }
 0x80c   :  { %v8155_v31 = vpop.f32.mrf.mxu2 }
 0x80d   :  { %v3317_v35 = vmul.f32 %v8155_v31, %v10069_v8  ;;  %v3321_v20 = vmul.f32 %v8155_v31, %v10070_v15  ;;  %v3325_v5 = vmul.f32 %v8155_v31, %v10071_v42  ;;  %v3329_v61 = vmul.f32 %v8155_v31, %v10072_v9 }
 0x80e   :  { %v3333_v47 = vmul.f32 %v8155_v31, %v10073_v36  ;;  %v3337_v33 = vmul.f32 %v8155_v31, %v10074_v2  ;;  %v3341_v39 = vmul.f32 %v8155_v31, %v10075_v53  ;;  %v3345_v8 = vmul.f32 %v8155_v31, %v10076_v48 }
 0x80f   :  { %v3661_v15 = vsel %vm2442_vm5, %v3317_v35, 0.0  ;;  %v3674_v32 = vsel %vm2442_vm5, %v3321_v20, 0.0  ;;  %v3687_v42 = vsel %vm2442_vm5, %v3325_v5, 0.0  ;;  %v3700_v9 = vsel %vm2442_vm5, %v3329_v61, 0.0 }
 0x810   :  { %v3662_v23 = vadd.f32 %v3661_v15, %v3660_v50  ;;  %v3675_v45 = vadd.f32 %v3674_v32, %v3673_v28  ;;  %v3688_v36 = vadd.f32 %v3687_v42, %v3686_v62  ;;  %v3701_v51 = vadd.f32 %v3700_v9, %v3699_v16  ;;  %v10077_v32 = vld [vmem:[#allocation14_spill] sm:$0xff]  ;;  %v10078_v28 = vld [vmem:[#allocation8_spill] sm:$0xff]  ;;  %v10083_v42 = vld [vmem:[#allocation161_spill] sm:$0xff] }
 0x811   :  { %v3713_v2 = vsel %vm2442_vm5, %v3333_v47, 0.0  ;;  %v3726_v53 = vsel %vm2442_vm5, %v3337_v33, 0.0  ;;  %v3738_v48 = vsel %vm2442_vm5, %v3340_v40, 0.0  ;;  %v3739_v20 = vsel %vm2442_vm5, %v3341_v39, 0.0  ;;  %v10079_v16 = vld [vmem:[#allocation156_spill] sm:$0xff]  ;;  %v10084_v47 = vld [vmem:[#allocation43_spill] sm:$0xff] }
 0x812   :  { %v3714_v59 = vadd.f32 %v3713_v2, %v3712_v46  ;;  %v3727_v35 = vadd.f32 %v3726_v53, %v3725_v19  ;;  %v3751_v5 = vsel %vm2442_vm5, %v3344_v3, 0.0  ;;  %v3740_v56 = vadd.f32 %v3739_v20, %v3738_v48  ;;  %v10080_v53 = vld [vmem:[#allocation6_spill] sm:$0xff]  ;;  %v10081_v48 = vld [vmem:[#allocation111_spill] sm:$0xff] }
 0x813   :  { %v3752_v50 = vsel %vm2442_vm5, %v3345_v8, 0.0  ;;  %v8190_v61 = vmul.f32 %v8155_v31, %v10077_v32  ;;  %v8194_v6 = vmul.f32 %v8155_v31, %v10078_v28  ;;  %v8200_v19 = vmul.f32 %v8155_v31, %v10079_v16  ;;  %v10082_v8 = vld [vmem:[#allocation44_spill] sm:$0xff]  ;;  %v10085_v33 = vld [vmem:[#allocation55_spill] sm:$0xff]  ;;  %v10086_v20 = vld [vmem:[#allocation118_spill] sm:$0xff] }
 0x814   :  { %v8196_v62 = vpop.f32.mrf.mxu2  ;;  %v3753_v40 = vadd.f32 %v3752_v50, %v3751_v5  ;;  %v8204_v3 = vmul.f32 %v8155_v31, %v10080_v53  ;;  %v8208_v46 = vmul.f32 %v8155_v31, %v10081_v48  ;;  %v10087_v50 = vld [vmem:[#allocation56_spill] sm:$0xff]  ;;  %v10088_v48 = vld [vmem:[#allocation85_spill] sm:$0xff] }
 0x815   :  { %v3318_v15 = vmul.f32 %v8196_v62, %v10082_v8  ;;  %v3322_v9 = vmul.f32 %v8196_v62, %v10083_v42  ;;  %v3326_v2 = vmul.f32 %v8196_v62, %v10084_v47  ;;  %v3330_v39 = vmul.f32 %v8196_v62, %v10085_v33  ;;  %v10089_v28 = vld [vmem:[#allocation49_spill] sm:$0xff] }
 0x816   :  { %v3334_v5 = vmul.f32 %v8196_v62, %v10086_v20  ;;  %v3338_v53 = vmul.f32 %v8196_v62, %v10087_v50  ;;  %v3342_v16 = vmul.f32 %v8196_v62, %v10088_v48  ;;  %v3346_v8 = vmul.f32 %v8196_v62, %v10089_v28 }
 0x817   :  { %v3663_v42 = vsel %vm2442_vm5, %v3318_v15, 0.0  ;;  %v3676_v32 = vsel %vm2442_vm5, %v3322_v9, 0.0  ;;  %v3689_v47 = vsel %vm2442_vm5, %v3326_v2, 0.0  ;;  %v3702_v33 = vsel %vm2442_vm5, %v3330_v39, 0.0 }
 0x818   :  { %v3664_v29 = vadd.f32 %v3663_v42, %v3662_v23  ;;  %v3677_v10 = vadd.f32 %v3676_v32, %v3675_v45  ;;  %v3690_v20 = vadd.f32 %v3689_v47, %v3688_v36  ;;  %v3703_v0 = vadd.f32 %v3702_v33, %v3701_v51  ;;  %v10091_v23 = vld [vmem:[#allocation18_spill] sm:$0xff]  ;;  %v10092_v51 = vld [vmem:[#allocation160_spill] sm:$0xff] }
 0x819   :  { %v3715_v50 = vsel %vm2442_vm5, %v3334_v5, 0.0  ;;  %v3728_v43 = vsel %vm2442_vm5, %v3338_v53, 0.0  ;;  %v3741_v48 = vsel %vm2442_vm5, %v3342_v16, 0.0  ;;  %v3754_v28 = vsel %vm2442_vm5, %v3346_v8, 0.0  ;;  %v10093_v32 = vld [vmem:[#allocation38_spill] sm:$0xff]  ;;  %v10096_v42 = vld [vmem:[#allocation52_spill] sm:$0xff] }
 0x81a   :  { %v3716_v22 = vadd.f32 %v3715_v50, %v3714_v59  ;;  %v3729_v15 = vadd.f32 %v3728_v43, %v3727_v35  ;;  %v3742_v7 = vadd.f32 %v3741_v48, %v3740_v56  ;;  %v3755_v9 = vadd.f32 %v3754_v28, %v3753_v40  ;;  %v10094_v40 = vld [vmem:[#allocation151_spill] sm:$0xff]  ;;  %v10095_v48 = vld [vmem:[#allocation162_spill] sm:$0xff]  ;;  %v10098_v5 = vld [vmem:[#allocation132_spill] sm:$0xff] }
 0x81b   :  { %v8236_v2 = vmul.f32 %v8196_v62, %v10090_v49  ;;  %v8240_v45 = vmul.f32 %v8196_v62, %v10091_v23  ;;  %v8244_v36 = vmul.f32 %v8196_v62, %v10092_v51  ;;  %v8248_v16 = vmul.f32 %v8196_v62, %v10093_v32  ;;  %v10097_v33 = vld [vmem:[#allocation126_spill] sm:$0xff]  ;;  %v10101_v32 = vld [vmem:[#allocation147_spill] sm:$0xff] }
 0x81c   :  { %v8250_v59 = vpop.f32.mrf.mxu2  ;;  %v8254_v43 = vmul.f32 %v8196_v62, %v9983_v63  ;;  %v8258_v56 = vmul.f32 %v8155_v31, %v9985_v55  ;;  %v8262_v35 = vmul.f32 %v8196_v62, %v9986_v21  ;;  %v8266_v28 = vmul.f32 %v8155_v31, %v9988_v38  ;;  %v10099_v21 = vld [vmem:[#allocation105_spill] sm:$0xff]  ;;  %v10100_v38 = vld [vmem:[#allocation84_spill] sm:$0xff] }
 0x81d   :  { %v3319_v53 = vmul.f32 %v8250_v59, %v10094_v40  ;;  %v3323_v8 = vmul.f32 %v8250_v59, %v10095_v48  ;;  %v3327_v47 = vmul.f32 %v8250_v59, %v10096_v42  ;;  %v3331_v39 = vmul.f32 %v8250_v59, %v10097_v33 }
 0x81e   :  { %v3335_v50 = vmul.f32 %v8250_v59, %v10098_v5  ;;  %v3339_v55 = vmul.f32 %v8250_v59, %v10099_v21  ;;  %v3343_v63 = vmul.f32 %v8250_v59, %v10100_v38  ;;  %v3347_v40 = vmul.f32 %v8250_v59, %v10101_v32 }
 0x81f   :  { %v3665_v48 = vsel %vm2442_vm5, %v3319_v53, 0.0  ;;  %v3678_v51 = vsel %vm2442_vm5, %v3323_v8, 0.0  ;;  %v3691_v42 = vsel %vm2442_vm5, %v3327_v47, 0.0  ;;  %v3704_v33 = vsel %vm2442_vm5, %v3331_v39, 0.0 }
 0x820   :  { %v3666_v23 = vadd.f32 %v3665_v48, %v3664_v29  ;;  %v3679_v49 = vadd.f32 %v3678_v51, %v3677_v10  ;;  %v3692_v5 = vadd.f32 %v3691_v42, %v3690_v20  ;;  %v3705_v41 = vadd.f32 %v3704_v33, %v3703_v0 }
 0x821   :  { %v3717_v21 = vsel %vm2442_vm5, %v3335_v50, 0.0  ;;  %v3730_v54 = vsel %vm2442_vm5, %v3339_v55, 0.0  ;;  %v3743_v38 = vsel %vm2442_vm5, %v3343_v63, 0.0  ;;  %v3756_v32 = vsel %vm2442_vm5, %v3347_v40, 0.0 }
 0x822   :  { %v3667_v44 = vrot.slane %v3666_v23, 4  ;;  %v3680_v53 = vrot.slane %v3679_v49, 4  ;;  %v3693_v1 = vrot.slane %v3692_v5, 4  ;;  %v3706_v8 = vrot.slane %v3705_v41, 4 }
 0x823   :  { %v3718_v14 = vadd.f32 %v3717_v21, %v3716_v22  ;;  %v3731_v47 = vadd.f32 %v3730_v54, %v3729_v15  ;;  %v3744_v24 = vadd.f32 %v3743_v38, %v3742_v7  ;;  %v3757_v39 = vadd.f32 %v3756_v32, %v3755_v9 }
 0x824   :  { %v3668_v29 = vadd.f32 %v3667_v44, %v3666_v23  ;;  %v3681_v10 = vadd.f32 %v3680_v53, %v3679_v49  ;;  %v3694_v20 = vadd.f32 %v3693_v1, %v3692_v5  ;;  %v3707_v0 = vadd.f32 %v3706_v8, %v3705_v41 }
 0x825   :  { %v3719_v51 = vrot.slane %v3718_v14, 4  ;;  %v3732_v48 = vrot.slane %v3731_v47, 4  ;;  %v3745_v42 = vrot.slane %v3744_v24, 4  ;;  %v3758_v55 = vrot.slane %v3757_v39, 4 }
 0x826   :  { %v3669_v33 = vrot.slane %v3668_v29, 2  ;;  %v3682_v63 = vrot.slane %v3681_v10, 2  ;;  %v3695_v50 = vrot.slane %v3694_v20, 2  ;;  %v3708_v40 = vrot.slane %v3707_v0, 2 }
 0x827   :  { %v3720_v4 = vadd.f32 %v3719_v51, %v3718_v14  ;;  %v3733_v37 = vadd.f32 %v3732_v48, %v3731_v47  ;;  %v3746_v30 = vadd.f32 %v3745_v42, %v3744_v24  ;;  %v3759_v58 = vadd.f32 %v3758_v55, %v3757_v39 }
 0x828   :  { %v3670_v21 = vadd.f32 %v3669_v33, %v3668_v29  ;;  %v3683_v54 = vadd.f32 %v3682_v63, %v3681_v10  ;;  %v3696_v38 = vadd.f32 %v3695_v50, %v3694_v20  ;;  %v3709_v7 = vadd.f32 %v3708_v40, %v3707_v0  ;;  %v10102_v63 = vld [vmem:[#allocation27_spill] sm:$0xff] }
 0x829   :  { %v3721_v44 = vrot.slane %v3720_v4, 2  ;;  %v3734_v49 = vrot.slane %v3733_v37, 2  ;;  %v3747_v1 = vrot.slane %v3746_v30, 2  ;;  %v3760_v41 = vrot.slane %v3759_v58, 2  ;;  %v10103_v40 = vld [vmem:[#allocation7_spill] sm:$0xff] }
 0x82a   :  { %v3671_v22 = vrot.slane %v3670_v21, 1  ;;  %v3684_v15 = vrot.slane %v3683_v54, 1  ;;  %v3697_v9 = vrot.slane %v3696_v38, 1  ;;  %v3710_v23 = vrot.slane %v3709_v7, 1 }
 0x82b   :  { %v3722_v32 = vadd.f32 %v3721_v44, %v3720_v4  ;;  %v3735_v5 = vadd.f32 %v3734_v49, %v3733_v37  ;;  %v3748_v53 = vadd.f32 %v3747_v1, %v3746_v30  ;;  %v3761_v8 = vadd.f32 %v3760_v41, %v3759_v58  ;;  %v10105_v44 = vld [vmem:[#allocation76_spill] sm:$0xff]  ;;  %v10106_v1 = vld [vmem:[#allocation61_spill] sm:$0xff] }
 0x82c   :  { %v3672_v14 = vadd.f32 %v3671_v22, %v3670_v21  ;;  %v3685_v47 = vadd.f32 %v3684_v15, %v3683_v54  ;;  %v3698_v24 = vadd.f32 %v3697_v9, %v3696_v38  ;;  %v3711_v39 = vadd.f32 %v3710_v23, %v3709_v7  ;;  %v10104_v54 = vld [vmem:[#allocation16_spill] sm:$0xff]  ;;  %v10107_v22 = vld [vmem:[#allocation42_spill] sm:$0xff]  ;;  %v10108_v23 = vld [vmem:[#allocation83_spill] sm:$0xff] }
 0x82d   :  { %v3723_v29 = vrot.slane %v3722_v32, 1  ;;  %v3736_v10 = vrot.slane %v3735_v5, 1  ;;  %v3749_v20 = vrot.slane %v3748_v53, 1  ;;  %v3762_v0 = vrot.slane %v3761_v8, 1 }
 0x82e   :  { %v3844_v51 = vsel %vm2921_vm6, %v3685_v47, %v3672_v14  ;;  %v3287_v48 = vmul.f32 %v8250_v59, %v9979_v57  ;;  %v3291_v42 = vmul.f32 %v8250_v59, %v9980_v12  ;;  %v3295_v30 = vmul.f32 %v8250_v59, %v9981_v17 }
 0x82f   :  { %v3724_v37 = vadd.f32 %v3723_v29, %v3722_v32  ;;  %v3737_v4 = vadd.f32 %v3736_v10, %v3735_v5  ;;  %v3750_v58 = vadd.f32 %v3749_v20, %v3748_v53  ;;  %v3763_v55 = vadd.f32 %v3762_v0, %v3761_v8  ;;  %v10109_v5 = vld [vmem:[#allocation79_spill] sm:$0xff] }
 0x830   :  { %v3845_v33 = vsel %vm2923_vm7, %v3698_v24, %v3844_v51  ;;  %v3299_v50 = vmul.f32 %v8250_v59, %v10102_v63  ;;  %v3303_v21 = vmul.f32 %v8250_v59, %v10103_v40  ;;  %v3307_v38 = vmul.f32 %v8250_v59, %v10104_v54 }
 0x831   :  { %v3846_v7 = vsel %vm2925_vm8, %v3711_v39, %v3845_v33  ;;  %v8309_v49 = vmul.f32 %v8196_v62, %v10105_v44  ;;  %v8313_v41 = vmul.f32 %v8250_v59, %v10106_v1  ;;  %v8317_v15 = vmul.f32 %v8155_v31, %v10107_v22 }
 0x832   :  { %v3847_v9 = vsel %vm2927_vm9, %v3724_v37, %v3846_v7  ;;  %v8322_v32 = vmul.f32 %v8196_v62, %v10108_v23  ;;  %v8326_v53 = vmul.f32 %v8250_v59, %v10109_v5  ;;  %v3556_v8 = vsel %vm2442_vm5, %v8125_v52, 0.0 }
 0x833   :  { %v3848_v14 = vsel %vm2929_vm10, %v3737_v4, %v3847_v9  ;;  %v3557_v47 = vsel %vm2442_vm5, %v8190_v61, 0.0  ;;  %v3559_v24 = vsel %vm2442_vm5, %v8236_v2, 0.0  ;;  %v3561_v39 = vsel %vm2442_vm5, %v3287_v48, 0.0 }
 0x834   :  { %v3849_v29 = vsel %vm10110_vm2, %v3750_v58, %v3848_v14  ;;  %v3558_v10 = vadd.f32 %v3557_v47, %v3556_v8  ;;  %v3569_v20 = vsel %vm2442_vm5, %v8129_v27, 0.0  ;;  %v3570_v0 = vsel %vm2442_vm5, %v8194_v6, 0.0 }
 0x835   :  { %v3850_v52 = vsel %vm10111_vm11, %v3763_v55, %v3849_v29  ;;  %v3571_v51 = vadd.f32 %v3570_v0, %v3569_v20  ;;  %v3572_v61 = vsel %vm2442_vm5, %v8240_v45, 0.0  ;;  %v3574_v37 = vsel %vm2442_vm5, %v3291_v42, 0.0 }
 0x836   :  { %5192 = vmatpush.xpose.msk.msra.mxu1 %vm2442_vm5, %v3850_v52  ;;  %v3560_v2 = vadd.f32 %v3559_v24, %v3558_v10  ;;  %v3582_v48 = vsel %vm2442_vm5, %v8133_v11, 0.0  ;;  %v3583_v27 = vsel %vm2442_vm5, %v8200_v19, 0.0  ;;  %v3585_v6 = vsel %vm2442_vm5, %v8244_v36, 0.0 }
 0x837   :  { %v3573_v4 = vadd.f32 %v3572_v61, %v3571_v51  ;;  %v3584_v58 = vadd.f32 %v3583_v27, %v3582_v48  ;;  %v3587_v55 = vsel %vm2442_vm5, %v3295_v30, 0.0  ;;  %v3595_v45 = vsel %vm2442_vm5, %v8137_v25, 0.0 }
 0x838   :  { %v3562_v42 = vadd.f32 %v3561_v39, %v3560_v2  ;;  %v3596_v33 = vsel %vm2442_vm5, %v8204_v3, 0.0  ;;  %v3598_v11 = vsel %vm2442_vm5, %v8248_v16, 0.0  ;;  %v3600_v7 = vsel %vm2442_vm5, %v3299_v50, 0.0 }
 0x839   :  { %v3575_v19 = vadd.f32 %v3574_v37, %v3573_v4  ;;  %v3586_v9 = vadd.f32 %v3585_v6, %v3584_v58  ;;  %v3597_v8 = vadd.f32 %v3596_v33, %v3595_v45  ;;  %v3608_v36 = vsel %vm2442_vm5, %v8141_v34, 0.0 }
 0x83a   :  { %v3563_v14 = vrot.slane %v3562_v42, 4  ;;  %v3609_v30 = vsel %vm2442_vm5, %v8208_v46, 0.0  ;;  %v3611_v25 = vsel %vm2442_vm5, %v8254_v43, 0.0  ;;  %v3613_v3 = vsel %vm2442_vm5, %v3303_v21, 0.0 }
 0x83b   :  { %v3576_v47 = vrot.slane %v3575_v19, 4  ;;  %v3588_v24 = vadd.f32 %v3587_v55, %v3586_v9  ;;  %v3599_v16 = vadd.f32 %v3598_v11, %v3597_v8  ;;  %v3610_v39 = vadd.f32 %v3609_v30, %v3608_v36 }
 0x83c   :  { %v3564_v50 = vadd.f32 %v3563_v14, %v3562_v42  ;;  %v3621_v29 = vsel %vm2442_vm5, %v8145_v60, 0.0  ;;  %v3622_v34 = vsel %vm2442_vm5, %v8258_v56, 0.0  ;;  %v3624_v10 = vsel %vm2442_vm5, %v8262_v35, 0.0 }
 0x83d   :  { %v3577_v46 = vadd.f32 %v3576_v47, %v3575_v19  ;;  %v3589_v20 = vrot.slane %v3588_v24, 4  ;;  %v3601_v0 = vadd.f32 %v3600_v7, %v3599_v16  ;;  %v3612_v43 = vadd.f32 %v3611_v25, %v3610_v39 }
 0x83e   :  { %v3565_v52 = vrot.slane %v3564_v50, 2  ;;  %v3623_v21 = vadd.f32 %v3622_v34, %v3621_v29  ;;  %v3626_v51 = vsel %vm2442_vm5, %v3307_v38, 0.0  ;;  %v3634_v61 = vsel %vm2442_vm5, %v8149_v13, 0.0 }
 0x83f   :  { %v3578_v37 = vrot.slane %v3577_v46, 2  ;;  %v3590_v2 = vadd.f32 %v3589_v20, %v3588_v24  ;;  %v3602_v60 = vrot.slane %v3601_v0, 4  ;;  %v3614_v48 = vadd.f32 %v3613_v3, %v3612_v43 }
 0x840   :  { %v3566_v27 = vadd.f32 %v3565_v52, %v3564_v50  ;;  %v3625_v56 = vadd.f32 %v3624_v10, %v3623_v21  ;;  %v3635_v35 = vsel %vm2442_vm5, %v8266_v28, 0.0  ;;  %v3637_v6 = vsel %vm2442_vm5, %v8309_v49, 0.0 }
 0x841   :  { %v3579_v4 = vadd.f32 %v3578_v37, %v3577_v46  ;;  %v3591_v58 = vrot.slane %v3590_v2, 2  ;;  %v3603_v55 = vadd.f32 %v3602_v60, %v3601_v0  ;;  %v3615_v45 = vrot.slane %v3614_v48, 4  ;;  %v10113_v37 = vld [vmem:[#allocation37_spill] sm:$0xff] }
 0x842   :  { %v3567_v38 = vrot.slane %v3566_v27, 1  ;;  %v3627_v42 = vadd.f32 %v3626_v51, %v3625_v56  ;;  %v3636_v33 = vadd.f32 %v3635_v35, %v3634_v61  ;;  %v3639_v13 = vsel %vm2442_vm5, %v8313_v41, 0.0 }
 0x843   :  { %v3580_v11 = vrot.slane %v3579_v4, 1  ;;  %v3592_v7 = vadd.f32 %v3591_v58, %v3590_v2  ;;  %v3604_v19 = vrot.slane %v3603_v55, 2  ;;  %v3616_v9 = vadd.f32 %v3615_v45, %v3614_v48 }
 0x844   :  { %v3568_v8 = vadd.f32 %v3567_v38, %v3566_v27  ;;  %v3628_v36 = vrot.slane %v3627_v42, 4  ;;  %v3638_v28 = vadd.f32 %v3637_v6, %v3636_v33  ;;  %v3647_v49 = vsel %vm2442_vm5, %v8153_v18, 0.0  ;;  %v10117_v33 = vld [vmem:[#allocation30_spill] sm:$0xff] }
 0x845   :  { %v3581_v14 = vadd.f32 %v3580_v11, %v3579_v4  ;;  %v3593_v30 = vrot.slane %v3592_v7, 1  ;;  %v3605_v25 = vadd.f32 %v3604_v19, %v3603_v55  ;;  %v3617_v3 = vrot.slane %v3616_v9, 2  ;;  %v10115_v4 = vld [vmem:[#allocation143_spill] sm:$0xff] }
 0x846   :  { %v3629_v47 = vadd.f32 %v3628_v36, %v3627_v42  ;;  %v3640_v24 = vadd.f32 %v3639_v13, %v3638_v28  ;;  %v3648_v16 = vsel %vm2442_vm5, %v8317_v15, 0.0  ;;  %v3650_v41 = vsel %vm2442_vm5, %v8322_v32, 0.0  ;;  %v10112_v32 = vld [vmem:[#allocation104_spill] sm:$0xff]  ;;  %v10116_v55 = vld [vmem:[#allocation39_spill] sm:$0xff]  ;;  %v10120_v28 = vld [vmem:[#allocation73_spill] sm:$0xff] }
 0x847   :  { %v3594_v39 = vadd.f32 %v3593_v30, %v3592_v7  ;;  %v3606_v50 = vrot.slane %v3605_v25, 1  ;;  %v3618_v29 = vadd.f32 %v3617_v3, %v3616_v9  ;;  %v3649_v34 = vadd.f32 %v3648_v16, %v3647_v49  ;;  %v10118_v11 = vld [vmem:[#allocation99_spill] sm:$0xff]  ;;  %v10122_v3 = vld [vmem:[#allocation150_spill] sm:$0xff] }
 0x848   :  { %v3630_v10 = vrot.slane %v3629_v47, 2  ;;  %v3641_v46 = vrot.slane %v3640_v24, 4  ;;  %v3652_v18 = vsel %vm2442_vm5, %v8326_v53, 0.0  ;;  %v3837_v20 = vsel %vm2921_vm6, %v3581_v14, %v3568_v8  ;;  %v10114_v53 = vld [vmem:[#allocation117_spill] sm:$0xff]  ;;  %v10119_v8 = vld [vmem:[#allocation116_spill] sm:$0xff]  ;;  %v10121_v30 = vld [vmem:[#allocation3_spill] sm:$0xff] }
 0x849   :  { %v3607_v0 = vadd.f32 %v3606_v50, %v3605_v25  ;;  %v3619_v43 = vrot.slane %v3618_v29, 1  ;;  %v3651_v52 = vadd.f32 %v3650_v41, %v3649_v34  ;;  %v3838_v21 = vsel %vm2923_vm7, %v3594_v39, %v3837_v20  ;;  %v10124_v50 = vld [vmem:[#allocation36_spill] sm:$0xff]  ;;  %v10125_v34 = vld [vmem:[#allocation158_spill] sm:$0xff] }
 0x84a   :  { %v3631_v15 = vadd.f32 %v3630_v10, %v3629_v47  ;;  %v3642_v51 = vadd.f32 %v3641_v46, %v3640_v24  ;;  %v3252_v61 = vmul.f32 %v10112_v32, %v7460_v26  ;;  %v3253_v2 = vmul.f32 %v8155_v31, %v10113_v37  ;;  %v10123_v24 = vld [vmem:[#allocation153_spill] sm:$0xff] }
 0x84b   :  { %v3620_v60 = vadd.f32 %v3619_v43, %v3618_v29  ;;  %v3653_v48 = vadd.f32 %v3652_v18, %v3651_v52  ;;  %v3839_v27 = vsel %vm2925_vm8, %v3607_v0, %v3838_v21  ;;  %v3254_v56 = vmul.f32 %v8196_v62, %v10114_v53  ;;  %v10126_v18 = vld [vmem:[#allocation29_spill] sm:$0xff]  ;;  %v10127_v0 = vld [vmem:[#allocation163_spill] sm:$0xff]  ;;  %v10128_v52 = vld [vmem:[#allocation32_spill] sm:$0xff] }
 0x84c   :  { %v3632_v35 = vrot.slane %v3631_v15, 1  ;;  %v3643_v6 = vrot.slane %v3642_v51, 2  ;;  %v3255_v58 = vmul.f32 %v8250_v59, %v10115_v4  ;;  %v3256_v45 = vmul.f32 %v10112_v32, %v10116_v55 }
 0x84d   :  { %v3654_v38 = vrot.slane %v3653_v48, 4  ;;  %v3840_v42 = vsel %vm2927_vm9, %v3620_v60, %v3839_v27  ;;  %v3257_v13 = vmul.f32 %v8155_v31, %v10117_v33  ;;  %v3258_v7 = vmul.f32 %v8196_v62, %v10118_v11 }
 0x84e   :  { %v3633_v19 = vadd.f32 %v3632_v35, %v3631_v15  ;;  %v3644_v9 = vadd.f32 %v3643_v6, %v3642_v51  ;;  %v3259_v36 = vmul.f32 %v8250_v59, %v10119_v8  ;;  %v3260_v49 = vmul.f32 %v10112_v32, %v10120_v28  ;;  %v10129_v51 = vld [vmem:[#allocation20_spill] sm:$0xff]  ;;  %v10131_v35 = vld [vmem:[#allocation34_spill] sm:$0xff] }
 0x84f   :  { %v3655_v14 = vadd.f32 %v3654_v38, %v3653_v48  ;;  %v3261_v25 = vmul.f32 %v8155_v31, %v10121_v30  ;;  %v3262_v47 = vmul.f32 %v8196_v62, %v10122_v3  ;;  %v3263_v16 = vmul.f32 %v8250_v59, %v10123_v24  ;;  %v10130_v48 = vld [vmem:[#allocation71_spill] sm:$0xff]  ;;  %v10138_v24 = vld [vmem:[#allocation9_spill] sm:$0xff]  ;;  %v10143_v3 = vld [vmem:[#allocation86_spill] sm:$0xff] }
 0x850   :  { %v3645_v41 = vrot.slane %v3644_v9, 1  ;;  %v3841_v39 = vsel %vm2929_vm10, %v3633_v19, %v3840_v42  ;;  %v3264_v29 = vmul.f32 %v10112_v32, %v10124_v50  ;;  %v3265_v10 = vmul.f32 %v8155_v31, %v10125_v34  ;;  %v10132_v42 = vld [vmem:[#allocation54_spill] sm:$0xff]  ;;  %v10137_v50 = vld [vmem:[#allocation97_spill] sm:$0xff]  ;;  %v10144_v30 = vld [vmem:[#allocation96_spill] sm:$0xff] }
 0x851   :  { %v3656_v46 = vrot.slane %v3655_v14, 2  ;;  %v3266_v20 = vmul.f32 %v8196_v62, %v10126_v18  ;;  %v3267_v43 = vmul.f32 %v8250_v59, %v10127_v0  ;;  %v3268_v21 = vmul.f32 %v10112_v32, %v10128_v52  ;;  %v10133_v18 = vld [vmem:[#allocation46_spill] sm:$0xff] }
 0x852   :  { %v3646_v15 = vadd.f32 %v3645_v41, %v3644_v9  ;;  %v3269_v60 = vmul.f32 %v8155_v31, %v10129_v51  ;;  %v3270_v27 = vmul.f32 %v8196_v62, %v10130_v48  ;;  %v3271_v6 = vmul.f32 %v8250_v59, %v10131_v35  ;;  %v10134_v34 = vld [vmem:[#allocation78_spill] sm:$0xff]  ;;  %v10136_v41 = vld [vmem:[#allocation21_spill] sm:$0xff] }
 0x853   :  { %v3657_v38 = vadd.f32 %v3656_v46, %v3655_v14  ;;  %v3272_v19 = vmul.f32 %v10112_v32, %v10132_v42  ;;  %v3273_v0 = vmul.f32 %v8155_v31, %v10133_v18  ;;  %v3274_v52 = vmul.f32 %v8196_v62, %v10134_v34  ;;  %v10139_v42 = vld [vmem:[#allocation59_spill] sm:$0xff]  ;;  %v10140_v18 = vld [vmem:[#allocation102_spill] sm:$0xff] }
 0x854   :  { %v3842_v9 = vsel %vm10135_vm12, %v3646_v15, %v3841_v39  ;;  %v3275_v51 = vmul.f32 %v8250_v59, %v10136_v41  ;;  %v3276_v48 = vmul.f32 %v10112_v32, %v10137_v50  ;;  %v8448_v14 = vmul.f32 %v8155_v31, %v10138_v24  ;;  %v10141_v39 = vld [vmem:[#allocation77_spill] sm:$0xff] }
 0x855   :  { %v3658_v46 = vrot.slane %v3657_v38, 1  ;;  %v8452_v35 = vmul.f32 %v8196_v62, %v10139_v42  ;;  %v8456_v34 = vmul.f32 %v8250_v59, %v10140_v18  ;;  %v8460_v15 = vmul.f32 %v10112_v32, %v10141_v39  ;;  %v10142_v41 = vld [vmem:[#allocation25_spill] sm:$0xff] }
 0x856   :  { %v8464_v50 = vmul.f32 %v8155_v31, %v10142_v41  ;;  %v8468_v24 = vmul.f32 %v8196_v62, %v10143_v3  ;;  %v8472_v42 = vmul.f32 %v8250_v59, %v10144_v30  ;;  %v3452_v28 = vsel %vm2442_vm5, %v3252_v61, 0.0 }
 0x857   :  { %v3659_v18 = vadd.f32 %v3658_v46, %v3657_v38  ;;  %v3453_v8 = vsel %vm2442_vm5, %v3253_v2, 0.0  ;;  %v3455_v39 = vsel %vm2442_vm5, %v3254_v56, 0.0  ;;  %v3457_v11 = vsel %vm2442_vm5, %v3255_v58, 0.0 }
 0x858   :  { %v3454_v33 = vadd.f32 %v3453_v8, %v3452_v28  ;;  %v3465_v41 = vsel %vm2442_vm5, %v3256_v45, 0.0  ;;  %v3466_v55 = vsel %vm2442_vm5, %v3257_v13, 0.0  ;;  %v3468_v3 = vsel %vm2442_vm5, %v3258_v7, 0.0 }
 0x859   :  { %v3843_v4 = vsel %vm10145_vm13, %v3659_v18, %v3842_v9  ;;  %v3467_v30 = vadd.f32 %v3466_v55, %v3465_v41  ;;  %v3470_v53 = vsel %vm2442_vm5, %v3259_v36, 0.0  ;;  %v3478_v61 = vsel %vm2442_vm5, %v3260_v49, 0.0 }
 0x85a   :  { %5193 = vmatpush.xpose.msk.msra.mxu1 %vm2442_vm5, %v3843_v4  ;;  %v3456_v2 = vadd.f32 %v3455_v39, %v3454_v33  ;;  %v3479_v56 = vsel %vm2442_vm5, %v3261_v25, 0.0  ;;  %v3481_v58 = vsel %vm2442_vm5, %v3262_v47, 0.0  ;;  %v3483_v45 = vsel %vm2442_vm5, %v3263_v16, 0.0 }
 0x85b   :  { %v3469_v8 = vadd.f32 %v3468_v3, %v3467_v30  ;;  %v3480_v13 = vadd.f32 %v3479_v56, %v3478_v61  ;;  %v3491_v7 = vsel %vm2442_vm5, %v3264_v29, 0.0  ;;  %v3492_v28 = vsel %vm2442_vm5, %v3265_v10, 0.0 }
 0x85c   :  { %v3458_v55 = vadd.f32 %v3457_v11, %v3456_v2  ;;  %v3493_v18 = vadd.f32 %v3492_v28, %v3491_v7  ;;  %v3494_v36 = vsel %vm2442_vm5, %v3266_v20, 0.0  ;;  %v3496_v49 = vsel %vm2442_vm5, %v3267_v43, 0.0 }
 0x85d   :  { %v3471_v4 = vadd.f32 %v3470_v53, %v3469_v8  ;;  %v3482_v33 = vadd.f32 %v3481_v58, %v3480_v13  ;;  %v3504_v25 = vsel %vm2442_vm5, %v3268_v21, 0.0  ;;  %v3505_v47 = vsel %vm2442_vm5, %v3269_v60, 0.0 }
 0x85e   :  { %v3459_v38 = vrot.slane %v3458_v55, 4  ;;  %v3495_v16 = vadd.f32 %v3494_v36, %v3493_v18  ;;  %v3506_v30 = vadd.f32 %v3505_v47, %v3504_v25  ;;  %v3507_v3 = vsel %vm2442_vm5, %v3270_v27, 0.0 }
 0x85f   :  { %v3472_v29 = vrot.slane %v3471_v4, 4  ;;  %v3484_v9 = vadd.f32 %v3483_v45, %v3482_v33  ;;  %v3509_v11 = vsel %vm2442_vm5, %v3271_v6, 0.0  ;;  %v3517_v10 = vsel %vm2442_vm5, %v3272_v19, 0.0 }
 0x860   :  { %v3460_v20 = vadd.f32 %v3459_v38, %v3458_v55  ;;  %v3497_v41 = vadd.f32 %v3496_v49, %v3495_v16  ;;  %v3508_v43 = vadd.f32 %v3507_v3, %v3506_v30  ;;  %v3518_v53 = vsel %vm2442_vm5, %v3273_v0, 0.0 }
 0x861   :  { %v3473_v46 = vadd.f32 %v3472_v29, %v3471_v4  ;;  %v3485_v21 = vrot.slane %v3484_v9, 4  ;;  %v3519_v39 = vadd.f32 %v3518_v53, %v3517_v10  ;;  %v3520_v60 = vsel %vm2442_vm5, %v3274_v52, 0.0 }
 0x862   :  { %v3461_v61 = vrot.slane %v3460_v20, 2  ;;  %v3498_v2 = vrot.slane %v3497_v41, 4  ;;  %v3510_v56 = vadd.f32 %v3509_v11, %v3508_v43  ;;  %v3522_v27 = vsel %vm2442_vm5, %v3275_v51, 0.0 }
 0x863   :  { %v3474_v58 = vrot.slane %v3473_v46, 2  ;;  %v3486_v45 = vadd.f32 %v3485_v21, %v3484_v9  ;;  %v3521_v6 = vadd.f32 %v3520_v60, %v3519_v39  ;;  %v3530_v19 = vsel %vm2442_vm5, %v3276_v48, 0.0 }
 0x864   :  { %v3462_v8 = vadd.f32 %v3461_v61, %v3460_v20  ;;  %v3499_v13 = vadd.f32 %v3498_v2, %v3497_v41  ;;  %v3511_v7 = vrot.slane %v3510_v56, 4  ;;  %v3531_v0 = vsel %vm2442_vm5, %v8448_v14, 0.0 }
 0x865   :  { %v3475_v28 = vadd.f32 %v3474_v58, %v3473_v46  ;;  %v3487_v55 = vrot.slane %v3486_v45, 2  ;;  %v3523_v18 = vadd.f32 %v3522_v27, %v3521_v6  ;;  %v3532_v52 = vadd.f32 %v3531_v0, %v3530_v19  ;;  %v10147_v19 = vld [vmem:[#allocation152_spill] sm:$0xff] }
 0x866   :  { %v3463_v36 = vrot.slane %v3462_v8, 1  ;;  %v3500_v49 = vrot.slane %v3499_v13, 2  ;;  %v3512_v4 = vadd.f32 %v3511_v7, %v3510_v56  ;;  %v3533_v51 = vsel %vm2442_vm5, %v8452_v35, 0.0 }
 0x867   :  { %v3476_v33 = vrot.slane %v3475_v28, 1  ;;  %v3488_v25 = vadd.f32 %v3487_v55, %v3486_v45  ;;  %v3524_v47 = vrot.slane %v3523_v18, 4  ;;  %v3534_v48 = vadd.f32 %v3533_v51, %v3532_v52  ;;  %v10146_v45 = vld [vmem:[#allocation60_spill] sm:$0xff] }
 0x868   :  { %v3464_v38 = vadd.f32 %v3463_v36, %v3462_v8  ;;  %v3501_v16 = vadd.f32 %v3500_v49, %v3499_v13  ;;  %v3513_v30 = vrot.slane %v3512_v4, 2  ;;  %v3535_v14 = vsel %vm2442_vm5, %v8456_v34, 0.0  ;;  %v10150_v36 = vld [vmem:[#allocation63_spill] sm:$0xff] }
 0x869   :  { %v3477_v3 = vadd.f32 %v3476_v33, %v3475_v28  ;;  %v3489_v29 = vrot.slane %v3488_v25, 1  ;;  %v3525_v9 = vadd.f32 %v3524_v47, %v3523_v18  ;;  %v3536_v11 = vadd.f32 %v3535_v14, %v3534_v48  ;;  %v10148_v28 = vld [vmem:[#allocation48_spill] sm:$0xff]  ;;  %v10149_v18 = vld [vmem:[#allocation142_spill] sm:$0xff] }
 0x86a   :  { %v3502_v10 = vrot.slane %v3501_v16, 1  ;;  %v3514_v20 = vadd.f32 %v3513_v30, %v3512_v4  ;;  %v3543_v41 = vsel %vm2442_vm5, %v8460_v15, 0.0  ;;  %v3544_v35 = vsel %vm2442_vm5, %v8464_v50, 0.0  ;;  %v10152_v48 = vld [vmem:[#allocation166_spill] sm:$0xff]  ;;  %v10154_v14 = vld [vmem:[#allocation128_spill] sm:$0xff] }
 0x86b   :  { %v3490_v43 = vadd.f32 %v3489_v29, %v3488_v25  ;;  %v3526_v53 = vrot.slane %v3525_v9, 2  ;;  %v3537_v46 = vrot.slane %v3536_v11, 4  ;;  %v3545_v21 = vadd.f32 %v3544_v35, %v3543_v41  ;;  %v10151_v25 = vld [vmem:[#allocation134_spill] sm:$0xff]  ;;  %v10155_v29 = vld [vmem:[#allocation69_spill] sm:$0xff]  ;;  %v10156_v41 = vld [vmem:[#allocation12_spill] sm:$0xff] }
 0x86c   :  { %v3503_v39 = vadd.f32 %v3502_v10, %v3501_v16  ;;  %v3515_v60 = vrot.slane %v3514_v20, 1  ;;  %v3546_v34 = vsel %vm2442_vm5, %v8468_v24, 0.0  ;;  %v3548_v61 = vsel %vm2442_vm5, %v8472_v42, 0.0  ;;  %v10153_v16 = vld [vmem:[#allocation125_spill] sm:$0xff] }
 0x86d   :  { %v3527_v2 = vadd.f32 %v3526_v53, %v3525_v9  ;;  %v3538_v56 = vadd.f32 %v3537_v46, %v3536_v11  ;;  %v3547_v27 = vadd.f32 %v3546_v34, %v3545_v21  ;;  %v3830_v15 = vsel %vm2921_vm6, %v3477_v3, %v3464_v38  ;;  %v10158_v46 = vld [vmem:[#allocation72_spill] sm:$0xff] }
 0x86e   :  { %v3516_v58 = vadd.f32 %v3515_v60, %v3514_v20  ;;  %v3831_v50 = vsel %vm2923_vm7, %v3490_v43, %v3830_v15  ;;  %v3220_v6 = vmul.f32 %v10112_v32, %v10146_v45  ;;  %v3221_v8 = vmul.f32 %v8155_v31, %v10147_v19  ;;  %v10157_v43 = vld [vmem:[#allocation139_spill] sm:$0xff]  ;;  %v10160_v34 = vld [vmem:[#allocation40_spill] sm:$0xff] }
 0x86f   :  { %v3528_v13 = vrot.slane %v3527_v2, 1  ;;  %v3539_v7 = vrot.slane %v3538_v56, 2  ;;  %v3549_v24 = vadd.f32 %v3548_v61, %v3547_v27  ;;  %v3832_v0 = vsel %vm2925_vm8, %v3503_v39, %v3831_v50  ;;  %v10159_v39 = vld [vmem:[#allocation135_spill] sm:$0xff]  ;;  %v10161_v27 = vld [vmem:[#allocation89_spill] sm:$0xff] }
 0x870   :  { %v3833_v42 = vsel %vm2927_vm9, %v3516_v58, %v3832_v0  ;;  %v3222_v55 = vmul.f32 %v8196_v62, %v10148_v28  ;;  %v3223_v52 = vmul.f32 %v8250_v59, %v10149_v18  ;;  %v3224_v49 = vmul.f32 %v10112_v32, %v10150_v36  ;;  %v10162_v58 = vld [vmem:[#allocation65_spill] sm:$0xff]  ;;  %v10246_v18 = vld [vmem:[#allocation147_spill] sm:$0xff] }
 0x871   :  { %v3529_v4 = vadd.f32 %v3528_v13, %v3527_v2  ;;  %v3540_v51 = vadd.f32 %v3539_v7, %v3538_v56  ;;  %v3550_v33 = vrot.slane %v3549_v24, 4  ;;  %v3225_v47 = vmul.f32 %v8155_v31, %v10151_v25  ;;  %v10163_v13 = vld [vmem:[#allocation138_spill] sm:$0xff] }
 0x872   :  { %v3226_v38 = vmul.f32 %v8196_v62, %v10152_v48  ;;  %v3227_v30 = vmul.f32 %v8250_v59, %v10153_v16  ;;  %v3228_v3 = vmul.f32 %v10112_v32, %v10154_v14  ;;  %v3229_v9 = vmul.f32 %v8155_v31, %v10155_v29  ;;  %v10172_v29 = vld [vmem:[#allocation88_spill] sm:$0xff] }
 0x873   :  { %v3541_v11 = vrot.slane %v3540_v51, 1  ;;  %v3551_v10 = vadd.f32 %v3550_v33, %v3549_v24  ;;  %v3834_v20 = vsel %vm2929_vm10, %v3529_v4, %v3833_v42  ;;  %v3230_v35 = vmul.f32 %v8196_v62, %v10156_v41  ;;  %v10164_v24 = vld [vmem:[#allocation11_spill] sm:$0xff]  ;;  %v10166_v33 = vld [vmem:[#allocation146_spill] sm:$0xff]  ;;  %v10171_v41 = vld [vmem:[#allocation93_spill] sm:$0xff] }
 0x874   :  { %v3231_v53 = vmul.f32 %v8250_v59, %v10157_v43  ;;  %v3232_v21 = vmul.f32 %v10112_v32, %v10158_v46  ;;  %v3233_v60 = vmul.f32 %v8155_v31, %v10159_v39  ;;  %v3234_v61 = vmul.f32 %v8196_v62, %v10160_v34  ;;  %v10165_v42 = vld [vmem:[#allocation127_spill] sm:$0xff]  ;;  %v10168_v39 = vld [vmem:[#allocation141_spill] sm:$0xff]  ;;  %v10177_v14 = vld [vmem:[#allocation4_spill] sm:$0xff] }
 0x875   :  { %v3542_v2 = vadd.f32 %v3541_v11, %v3540_v51  ;;  %v3552_v56 = vrot.slane %v3551_v10, 2  ;;  %v3235_v15 = vmul.f32 %v8250_v59, %v10161_v27  ;;  %v3236_v50 = vmul.f32 %v10112_v32, %v10162_v58  ;;  %v10169_v46 = vld [vmem:[#allocation149_spill] sm:$0xff]  ;;  %v10170_v43 = vld [vmem:[#allocation51_spill] sm:$0xff]  ;;  %v10178_v16 = vld [vmem:[#allocation24_spill] sm:$0xff] }
 0x876   :  { %v3237_v7 = vmul.f32 %v8155_v31, %v10163_v13  ;;  %v3238_v0 = vmul.f32 %v8196_v62, %v10164_v24  ;;  %v3239_v4 = vmul.f32 %v8250_v59, %v10165_v42  ;;  %v3240_v34 = vmul.f32 %v10112_v32, %v10166_v33  ;;  %v10173_v33 = vld [vmem:[#allocation115_spill] sm:$0xff] }
 0x877   :  { %v3553_v51 = vadd.f32 %v3552_v56, %v3551_v10  ;;  %v3835_v11 = vsel %vm10167_vm14, %v3542_v2, %v3834_v20  ;;  %v3241_v27 = vmul.f32 %v8155_v31, %v10168_v39  ;;  %v3242_v58 = vmul.f32 %v8196_v62, %v10169_v46  ;;  %v10174_v2 = vld [vmem:[#allocation17_spill] sm:$0xff]  ;;  %v10175_v46 = vld [vmem:[#allocation87_spill] sm:$0xff] }
 0x878   :  { %v3243_v13 = vmul.f32 %v8250_v59, %v10170_v43  ;;  %v3244_v24 = vmul.f32 %v10112_v32, %v10171_v41  ;;  %v8573_v42 = vmul.f32 %v8155_v31, %v10172_v29  ;;  %v8577_v10 = vmul.f32 %v8196_v62, %v10173_v33  ;;  %v10176_v43 = vld [vmem:[#allocation100_spill] sm:$0xff] }
 0x879   :  { %v3554_v20 = vrot.slane %v3553_v51, 1  ;;  %v8581_v56 = vmul.f32 %v8250_v59, %v10174_v2  ;;  %v8585_v39 = vmul.f32 %v10112_v32, %v10175_v46  ;;  %v8589_v41 = vmul.f32 %v8155_v31, %v10176_v43 }
 0x87a   :  { %v8593_v29 = vmul.f32 %v8196_v62, %v10177_v14  ;;  %v8597_v33 = vmul.f32 %v8250_v59, %v10178_v16  ;;  %v3348_v48 = vsel %vm2442_vm5, %v3220_v6, 0.0  ;;  %v3349_v2 = vsel %vm2442_vm5, %v3221_v8, 0.0 }
 0x87b   :  { %v3555_v25 = vadd.f32 %v3554_v20, %v3553_v51  ;;  %v3350_v36 = vadd.f32 %v3349_v2, %v3348_v48  ;;  %v3351_v32 = vsel %vm2442_vm5, %v3222_v55, 0.0  ;;  %v3353_v46 = vsel %vm2442_vm5, %v3223_v52, 0.0 }
 0x87c   :  { %v3361_v31 = vsel %vm2442_vm5, %v3224_v49, 0.0  ;;  %v3362_v43 = vsel %vm2442_vm5, %v3225_v47, 0.0  ;;  %v3364_v62 = vsel %vm2442_vm5, %v3226_v38, 0.0  ;;  %v3366_v14 = vsel %vm2442_vm5, %v3227_v30, 0.0 }
 0x87d   :  { %v3836_v59 = vsel %vm10179_vm15, %v3555_v25, %v3835_v11  ;;  %v3352_v16 = vadd.f32 %v3351_v32, %v3350_v36  ;;  %v3363_v6 = vadd.f32 %v3362_v43, %v3361_v31  ;;  %v3374_v8 = vsel %vm2442_vm5, %v3228_v3, 0.0 }
 0x87e   :  { %5194 = vmatpush.xpose.msk.msra.mxu1 %vm2442_vm5, %v3836_v59  ;;  %v3375_v55 = vsel %vm2442_vm5, %v3229_v9, 0.0  ;;  %v3377_v52 = vsel %vm2442_vm5, %v3230_v35, 0.0  ;;  %v3379_v49 = vsel %vm2442_vm5, %v3231_v53, 0.0  ;;  %v3387_v47 = vsel %vm2442_vm5, %v3232_v21, 0.0 }
 0x87f   :  { %v3354_v48 = vadd.f32 %v3353_v46, %v3352_v16  ;;  %v3365_v38 = vadd.f32 %v3364_v62, %v3363_v6  ;;  %v3376_v51 = vadd.f32 %v3375_v55, %v3374_v8  ;;  %v3388_v30 = vsel %vm2442_vm5, %v3233_v60, 0.0 }
 0x880   :  { %v3389_v25 = vadd.f32 %v3388_v30, %v3387_v47  ;;  %v3390_v36 = vsel %vm2442_vm5, %v3234_v61, 0.0  ;;  %v3392_v3 = vsel %vm2442_vm5, %v3235_v15, 0.0  ;;  %v3400_v43 = vsel %vm2442_vm5, %v3236_v50, 0.0 }
 0x881   :  { %v3355_v11 = vrot.slane %v3354_v48, 4  ;;  %v3367_v9 = vadd.f32 %v3366_v14, %v3365_v38  ;;  %v3378_v20 = vadd.f32 %v3377_v52, %v3376_v51  ;;  %v3401_v35 = vsel %vm2442_vm5, %v3237_v7, 0.0 }
 0x882   :  { %v3391_v53 = vadd.f32 %v3390_v36, %v3389_v25  ;;  %v3402_v2 = vadd.f32 %v3401_v35, %v3400_v43  ;;  %v3403_v16 = vsel %vm2442_vm5, %v3238_v0, 0.0  ;;  %v3405_v46 = vsel %vm2442_vm5, %v3239_v4, 0.0 }
 0x883   :  { %v3356_v21 = vadd.f32 %v3355_v11, %v3354_v48  ;;  %v3368_v60 = vrot.slane %v3367_v9, 4  ;;  %v3380_v32 = vadd.f32 %v3379_v49, %v3378_v20  ;;  %v3413_v61 = vsel %vm2442_vm5, %v3240_v34, 0.0 }
 0x884   :  { %v3393_v31 = vadd.f32 %v3392_v3, %v3391_v53  ;;  %v3404_v15 = vadd.f32 %v3403_v16, %v3402_v2  ;;  %v3414_v50 = vsel %vm2442_vm5, %v3241_v27, 0.0  ;;  %v3416_v14 = vsel %vm2442_vm5, %v3242_v58, 0.0 }
 0x885   :  { %v3357_v62 = vrot.slane %v3356_v21, 2  ;;  %v3369_v59 = vadd.f32 %v3368_v60, %v3367_v9  ;;  %v3381_v7 = vrot.slane %v3380_v32, 4  ;;  %v3415_v6 = vadd.f32 %v3414_v50, %v3413_v61 }
 0x886   :  { %v3394_v8 = vrot.slane %v3393_v31, 4  ;;  %v3406_v55 = vadd.f32 %v3405_v46, %v3404_v15  ;;  %v3418_v0 = vsel %vm2442_vm5, %v3243_v13, 0.0  ;;  %v3426_v4 = vsel %vm2442_vm5, %v3244_v24, 0.0 }
 0x887   :  { %v3358_v52 = vadd.f32 %v3357_v62, %v3356_v21  ;;  %v3370_v49 = vrot.slane %v3369_v59, 2  ;;  %v3382_v47 = vadd.f32 %v3381_v7, %v3380_v32  ;;  %v3417_v34 = vadd.f32 %v3416_v14, %v3415_v6 }
 0x888   :  { %v3395_v48 = vadd.f32 %v3394_v8, %v3393_v31  ;;  %v3407_v38 = vrot.slane %v3406_v55, 4  ;;  %v3427_v27 = vsel %vm2442_vm5, %v8573_v42, 0.0  ;;  %v3429_v58 = vsel %vm2442_vm5, %v8577_v10, 0.0 }
 0x889   :  { %v3359_v51 = vrot.slane %v3358_v52, 1  ;;  %v3371_v30 = vadd.f32 %v3370_v49, %v3369_v59  ;;  %v3383_v25 = vrot.slane %v3382_v47, 2  ;;  %v3419_v36 = vadd.f32 %v3418_v0, %v3417_v34 }
 0x88a   :  { %v3396_v3 = vrot.slane %v3395_v48, 2  ;;  %v3408_v13 = vadd.f32 %v3407_v38, %v3406_v55  ;;  %v3428_v43 = vadd.f32 %v3427_v27, %v3426_v4  ;;  %v3431_v24 = vsel %vm2442_vm5, %v8581_v56, 0.0 }
 0x88b   :  { %v3360_v11 = vadd.f32 %v3359_v51, %v3358_v52  ;;  %v3372_v9 = vrot.slane %v3371_v30, 1  ;;  %v3384_v20 = vadd.f32 %v3383_v25, %v3382_v47  ;;  %v3420_v35 = vrot.slane %v3419_v36, 4 }
 0x88c   :  { %v3397_v53 = vadd.f32 %v3396_v3, %v3395_v48  ;;  %v3409_v2 = vrot.slane %v3408_v13, 2  ;;  %v3430_v42 = vadd.f32 %v3429_v58, %v3428_v43  ;;  %v3439_v10 = vsel %vm2442_vm5, %v8585_v39, 0.0 }
 0x88d   :  { %v3373_v16 = vadd.f32 %v3372_v9, %v3371_v30  ;;  %v3385_v46 = vrot.slane %v3384_v20, 1  ;;  %v3421_v21 = vadd.f32 %v3420_v35, %v3419_v36  ;;  %v3440_v60 = vsel %vm2442_vm5, %v8589_v41, 0.0  ;;  %v5323_v9 = vld [vmem:[%s9330_s3] sm:$0xff]  ;;  %v5325_v35 = vld [vmem:[%s9332_s13 + $0x8] sm:$0xff] }
 0x88e   :  { %v3398_v32 = vrot.slane %v3397_v53, 1  ;;  %v3410_v61 = vadd.f32 %v3409_v2, %v3408_v13  ;;  %v3432_v31 = vadd.f32 %v3431_v24, %v3430_v42  ;;  %v3441_v56 = vadd.f32 %v3440_v60, %v3439_v10  ;;  %v5327_v2 = vld [vmem:[%s9330_s3 + $0x8] sm:$0xf]  ;;  %v3785_v42 = vpop.f32.mrf.mxu3 }
 0x88f   :  { %v3386_v15 = vadd.f32 %v3385_v46, %v3384_v20  ;;  %v3422_v50 = vrot.slane %v3421_v21, 2  ;;  %v3442_v14 = vsel %vm2442_vm5, %v8593_v29, 0.0  ;;  %v3444_v62 = vsel %vm2442_vm5, %v8597_v33, 0.0  ;;  %v5324_v20 = vld [vmem:[%s9332_s13 + $0x10] sm:$0xff]  ;;  %v5328_v46 = vld [vmem:[%s9329_s12] ss:$0 sm:$0xff] }
 0x890   :  { %v3433_v59 = vrot.slane %v3432_v31, 4  ;;  %v3443_v39 = vadd.f32 %v3442_v14, %v3441_v56  ;;  %v3411_v7 = vrot.slane %v3410_v61, 1  ;;  %v3823_v8 = vsel %vm2921_vm6, %v3373_v16, %v3360_v11  ;;  %v5322_v11 = vld [vmem:[%s9332_s13 + $0x18] sm:$0xff] }
 0x891   :  { %v3423_v6 = vadd.f32 %v3422_v50, %v3421_v21  ;;  %v3399_v55 = vadd.f32 %v3398_v32, %v3397_v53  ;;  %v3824_v4 = vsel %vm2923_vm7, %v3386_v15, %v3823_v8  ;;  %v5326_v53 = vld [vmem:[%s9332_s13] sm:$0xff] }
 0x892   :  { %v3434_v41 = vadd.f32 %v3433_v59, %v3432_v31  ;;  %v3445_v0 = vadd.f32 %v3444_v62, %v3443_v39  ;;  %v3412_v29 = vadd.f32 %v3411_v7, %v3410_v61  ;;  %v5329_v59 = vld [vmem:[%s9331_s15] ss:$0 sm:$0xff] }
 0x893   :  { %v3424_v52 = vrot.slane %v3423_v6, 1  ;;  %v3825_v34 = vsel %vm2925_vm8, %v3399_v55, %v3824_v4 }
 0x894   :  { %v3435_v49 = vrot.slane %v3434_v41, 2  ;;  %v3446_v47 = vrot.slane %v3445_v0, 4  ;;  %v3826_v33 = vsel %vm2927_vm9, %v3412_v29, %v3825_v34 }
 0x895   :  { %v3425_v27 = vadd.f32 %v3424_v52, %v3423_v6 }
 0x896   :  { %v3436_v48 = vadd.f32 %v3435_v49, %v3434_v41  ;;  %v3447_v38 = vadd.f32 %v3446_v47, %v3445_v0  ;;  %v3788_v32 = vpop.f32.mrf.mxu3 }
 0x897   :  { %v3827_v25 = vsel %vm2929_vm10, %v3425_v27, %v3826_v33 }
 0x898   :  { %v3437_v58 = vrot.slane %v3436_v48, 1  ;;  %v3448_v51 = vrot.slane %v3447_v38, 2 }
 0x89a   :  { %v3449_v30 = vadd.f32 %v3448_v51, %v3447_v38  ;;  %v3438_v36 = vadd.f32 %v3437_v58, %v3436_v48 }
 0x89c   :  { %v3450_v3 = vrot.slane %v3449_v30, 1  ;;  %v3828_v13 = vsel %vm10180_vm0, %v3438_v36, %v3827_v25 }
 0x89e   :  { %v3451_v43 = vadd.f32 %v3450_v3, %v3449_v30  ;;  %v3903_v50 = vpop.f32.mrf.mxu3 }
 0x8a0   :  { %v3829_v24 = vsel %vm10181_vm1, %v3451_v43, %v3828_v13 }
 0x8a1   :  { %5195 = vmatpush.xpose.msk.msra.mxu1 %vm2442_vm5, %v3829_v24 }
 0x8a4   :  { %5196 = vmatmul.msk.f32.vlgmr.msra.gmra.mxu1 %vm2442_vm5, %v5323_v9 }
 0x8a5   :  { %3927 = vmatpush.msrb.mxu1 %v5322_v11 }
 0x8a6   :  { %v3906_v7 = vpop.f32.mrf.mxu3 }
 0x8a7   :  { %3928 = vmatpush.msrb.mxu1 %v5324_v20 }
 0x8a9   :  { %3929 = vmatpush.msrb.mxu1 %v5325_v35 }
 0x8ab   :  { %3930 = vmatpush.msrb.mxu1 %v5326_v53 }
 0x8ac   :  { %5197 = vmatmul.msk.f32.gmra.mxu1 %vm2442_vm5, %v5327_v2 }
 0x921   :  { %v3876_v10 = vpop.f32.mrf.mxu1 }
 0x922   :  { %v3877_v16 = vadd.f32 %v3876_v10, %v3785_v42 }
 0x924   :  { %v3882_v21 = vadd.f32 %v5328_v46, %v3877_v16 }
 0x926   :  { %v3884_v60 = vmax.f32 %v3882_v21, 0.0 }
 0x928   :  { %5200 = vmatmul.msk.f32.vlgmr.msrb.gmra.mxu1 %vm2859_vm3, %v3884_v60 }
 0x929   :  { %v3879_v61 = vpop.f32.mrf.mxu1 }
 0x92a   :  { %v3880_v31 = vadd.f32 %v3879_v61, %v3788_v32 }
 0x92c   :  { %v3883_v56 = vadd.f32 %v5328_v46, %v3880_v31 }
 0x92e   :  { %v3885_v15 = vmax.f32 %v3883_v56, 0.0 }
 0x930   :  { %5201 = vmatmul.msk.f32.gmra.mxu1 %vm2859_vm3, %v3885_v15 }
 0x9a5   :  { %v3932_v14 = vpop.f32.mrf.mxu1 }
 0x9a6   :  { %v3933_v62 = vadd.f32 %v3932_v14, %v3903_v50  ;;  %v10182_v50 = vld [vmem:[#allocation23_spill] sm:$0xff] }
 0x9a8   :  { %v3938_v39 = vadd.f32 %v5329_v59, %v3933_v62 }
 0x9aa   :  { %3980 = vrot.lane.b32.xlu2 %v3938_v39, %s5340_s24  ;;  %v5202_v41 = vmul.f32 -1.442695, %v3938_v39 }
 0x9ac   :  { %5286 = vpow2.f32 %v5202_v41 }
 0x9ad   :  { %v3935_v6 = vpop.f32.mrf.mxu1 }
 0x9ae   :  { %v3936_v8 = vadd.f32 %v3935_v6, %v3906_v7  ;;  %v10184_v6 = vld [vmem:[#allocation10_spill] sm:$0xff] }
 0x9b0   :  { %v3939_v55 = vadd.f32 %v5329_v59, %v3936_v8 }
 0x9b2   :  { %3982 = vrot.lane.b32.xlu1 %v3939_v55, %s5340_s24  ;;  %v5287_v0 = vpop.eup %5286  ;;  %v5203_v34 = vmul.f32 -1.442695, %v3939_v55 }
 0x9b3   :  { %v3946_v4 = vadd.f32 1.0, %v5287_v0 }
 0x9b5   :  { %5288 = vrcp.f32 %v3946_v4  ;;  %v3959_v38 = vand.u32 2147483648, %v3946_v4  ;;  %vm3953_vm11 = vweird.f32 %v3946_v4  ;;  %v3957_v33 = vand.u32 2147483647, %v3946_v4 }
 0x9b6   :  { %5290 = vpow2.f32 %v5203_v34 }
 0x9b7   :  { %v3960_v51 = vor.u32 1.1754944e-38, %v3959_v38  ;;  %vm3958_vm13 = vcmp.eq.f32.partialorder %v3957_v33, 8.507059e+37  ;;  %v10188_v33 = vld [vmem:[#allocation155_spill] sm:$0xff] }
 0x9bb   :  { %v5289_v52 = vpop.eup %5288 }
 0x9bc   :  { %v3949_v49 = vmul.f32 %v5289_v52, %v3946_v4  ;;  %vm3954_vm2 = vweird.f32 %v5289_v52  ;;  %v5291_v27 = vpop.eup %5290 }
 0x9bd   :  { %vm3955_vm12 = vmor %vm3953_vm11, %vm3954_vm2  ;;  %v3947_v30 = vadd.f32 1.0, %v5291_v27  ;;  %vm10247_vm2 = vcmask 1046534   ;;  %vm10248_vm11 = vcmask 1047559  }
 0x9be   :  { %v3950_v47 = vsub.f32 1.0, %v3949_v49 }
 0x9bf   :  { %5292 = vrcp.f32 %v3947_v30  ;;  %v3974_v20 = vand.u32 2147483648, %v3947_v30  ;;  %vm3968_vm15 = vweird.f32 %v3947_v30  ;;  %v3972_v35 = vand.u32 2147483647, %v3947_v30 }
 0x9c0   :  { %v3951_v29 = vmul.f32 %v5289_v52, %v3950_v47 }
 0x9c1   :  { %v3975_v2 = vor.u32 1.1754944e-38, %v3974_v20  ;;  %vm3973_vm1 = vcmp.eq.f32.partialorder %v3972_v35, 8.507059e+37 }
 0x9c2   :  { %v3952_v48 = vadd.f32 %v5289_v52, %v3951_v29 }
 0x9c4   :  { %v3956_v58 = vsel %vm3955_vm12, %v5289_v52, %v3952_v48  ;;  %v10187_v48 = vld [vmem:[#allocation53_spill] sm:$0xff]  ;;  %vm10280_vm12 = vmmov %vm10247_vm2 }
 0x9c5   :  { %v3961_v36 = vsel %vm3958_vm13, %v3960_v51, %v3956_v58  ;;  %v5293_v13 = vpop.eup %5292  ;;  %v10189_v58 = vld [vmem:[#allocation165_spill] sm:$0xff]  ;;  %vm10290_vm13 = vmmov %vm10248_vm11 }
 0x9c6   :  { %v3964_v43 = vmul.f32 %v5293_v13, %v3947_v30  ;;  %vm3969_vm14 = vweird.f32 %v5293_v13  ;;  %v4000_v56 = vsub.f32 1.0, %v3961_v36  ;;  %v4012_v14 = vmul.f32 %v3961_v36, %v10182_v50  ;;  %v10190_v30 = vld [vmem:[#allocation121_spill] sm:$0xff] }
 0x9c7   :  { %vm3970_vm0 = vmor %vm3968_vm15, %vm3969_vm14 }
 0x9c8   :  { %v3965_v24 = vsub.f32 1.0, %v3964_v43  ;;  %vm10312_vm14 = vmmov %vm10247_vm2 }
 0x9c9   :  { %vm10324_vm15 = vmmov %vm10248_vm11 }
 0x9ca   :  { %v3966_v11 = vmul.f32 %v5293_v13, %v3965_v24  ;;  %v10193_v24 = vld [vmem:[#allocation41_spill] sm:$0xff] }
 0x9cc   :  { %v3967_v9 = vadd.f32 %v5293_v13, %v3966_v11 }
 0x9ce   :  { %v3971_v53 = vsel %vm3970_vm0, %v5293_v13, %v3967_v9  ;;  %v10192_v13 = vld [vmem:[#allocation70_spill] sm:$0xff]  ;;  %v10194_v9 = vld [vmem:[#allocation145_spill] sm:$0xff] }
 0x9cf   :  { %v3976_v10 = vsel %vm3973_vm1, %v3975_v2, %v3971_v53  ;;  %v10195_v53 = vld [vmem:[#allocation81_spill] sm:$0xff] }
 0x9d0   :  { %v4013_v8 = vmul.f32 %v3976_v10, %v10184_v6 }
 0xa04   :  { %v3981_v25 = vpop.permute.xlu2 %3980 }
 0xa05   :  { %v3986_v3 = vmul.f32 %v3981_v25, %v3961_v36  ;;  %v10191_v36 = vld [vmem:[#allocation62_spill] sm:$0xff] }
 0xa07   :  { %3990 = vrot.lane.b32.xlu2 %v3986_v3, %s5341_s10 }
 0xa24   :  { %v3983_v42 = vpop.permute.xlu1 %3982 }
 0xa25   :  { %v3987_v16 = vmul.f32 %v3983_v42, %v3976_v10  ;;  %v10196_v42 = vld [vmem:[#allocation68_spill] sm:$0xff] }
 0xa27   :  { %3992 = vrot.lane.b32.xlu1 %v3987_v16, %s5341_s10  ;;  %v10197_v16 = vld [vmem:[#allocation154_spill] sm:$0xff] }
 0xa61   :  { %v3991_v46 = vpop.permute.xlu2 %3990 }
 0xa62   :  { %v3996_v21 = vadd.f32 %v3991_v46, %v3938_v39  ;;  %v4001_v39 = vsub.f32 1.0, %v3976_v10 }
 0xa64   :  { %5294 = vtanh.f32 %v3996_v21  ;;  %v10198_v21 = vld [vmem:[#allocation164_spill] sm:$0xff] }
 0xa6a   :  { %v5295_v60 = vpop.eup %5294 }
 0xa6b   :  { %4004 = vrot.lane.b32.xlu2 %v5295_v60, %s5342_s9 }
 0xa99   :  { %v3993_v32 = vpop.permute.xlu1 %3992 }
 0xa9a   :  { %v3997_v61 = vadd.f32 %v3993_v32, %v3939_v55  ;;  %v10199_v32 = vld [vmem:[#allocation13_spill] sm:$0xff] }
 0xa9c   :  { %5296 = vtanh.f32 %v3997_v61 }
 0xaa2   :  { %v5297_v31 = vpop.eup %5296 }
 0xaa3   :  { %4006 = vrot.lane.b32.xlu1 %v5297_v31, %s5342_s9  ;;  %v10200_v31 = vld [vmem:[#allocation91_spill] sm:$0xff] }
 0xac5   :  { %v4005_v15 = vpop.permute.xlu2 %4004 }
 0xac6   :  { %v4010_v62 = vmul.f32 %v4005_v15, %v4000_v56  ;;  %v10202_v15 = vld [vmem:[#allocation131_spill] sm:$0xff] }
 0xac8   :  { %v8683_v59 = vadd.f32 %v4012_v14, %v4010_v62  ;;  %v10204_v14 = vld [vmem:[#allocation80_spill] sm:$0xff] }
 0xaca   :  { %10183 = vst [vmem:[#allocation124_spill] sm:$0xff] %v8683_v59  ;;  %4018 = vrot.lane.b32.xlu2 %v8683_v59, %s5342_s9 }
 0xb15   :  { %v4007_v7 = vpop.permute.xlu1 %4006 }
 0xb16   :  { %v4011_v41 = vmul.f32 %v4007_v7, %v4001_v39 }
 0xb18   :  { %v8688_v55 = vadd.f32 %v4013_v8, %v4011_v41 }
 0xb1a   :  { %10185 = vst [vmem:[#allocation120_spill] sm:$0xff] %v8688_v55  ;;  %4020 = vrot.lane.b32.xlu1 %v8688_v55, %s5342_s9  ;;  %v10227_v55 = vld [vmem:[#allocation22_spill] sm:$0xff] }
 0xb24   :  { %v4019_v0 = vpop.permute.xlu2 %4018 }
 0xb25   :  { %5209 = vmatmul.msk.f32.vlgmr.msrb.gmra.mxu3 %vm2859_vm3, %v4019_v0  ;;  %4024 = vxpose.xlu2.b32.start [1/2] (short) (narrow) %v4019_v0, 32 }
 0xb8c   :  { %v4021_v4 = vpop.permute.xlu1 %4020 }
 0xb8d   :  { %5210 = vmatmul.msk.f32.gmra.mxu3 %vm2859_vm3, %v4021_v4  ;;  %4025 = vxpose.xlu2.b32.end [2/2] (short) (narrow) %v4021_v4, 32 }
 0xb95   :  { %5217 = vmatmul.msk.f32.vlgmr.msra.gmra.mxu3 %vm2859_vm3, %v4019_v0  ;;  %v10206_v0 = vld [vmem:[#allocation110_spill] sm:$0xff] }
 0xb9d   :  { %5218 = vmatmul.msk.f32.gmra.mxu3 %vm2859_vm3, %v4021_v4 }
 0xc1e   :  { %v4040_v52 = vpop.trf.xlu2 }
 0xc1f   :  { %5205 = vmatmul.msk.f32.vlgmr.msrb.gmra.mxu2 %vm2140_vm4, %v4040_v52  ;;  %v10207_v52 = vld [vmem:[#allocation157_spill] sm:$0xff] }
 0xc26   :  { %v4041_v49 = vpop.trf.xlu2 }
 0xc27   :  { %5206 = vmatmul.msk.f32.gmra.mxu2 %vm2140_vm4, %v4041_v49 }
 0xc2e   :  { %v4042_v47 = vpop.trf.xlu2 }
 0xc2f   :  { %5207 = vmatmul.msk.f32.gmra.mxu2 %vm2140_vm4, %v4042_v47  ;;  %v10208_v47 = vld [vmem:[#allocation119_spill] sm:$0xff] }
 0xc36   :  { %v4043_v34 = vpop.trf.xlu2 }
 0xc37   :  { %5208 = vmatmul.msk.f32.gmra.mxu2 %vm2140_vm4, %v4043_v34 }
 0xca2   :  { %v8700_v29 = vpop.f32.mrf.mxu2 }
 0xca3   :  { %10186 = vst [vmem:[#allocation5_spill] sm:$0xff] %v8700_v29  ;;  %v4193_v38 = vmul.f32 %v8700_v29, %v10187_v48  ;;  %v4197_v27 = vmul.f32 %v8700_v29, %v10188_v33  ;;  %v4201_v51 = vmul.f32 %v8700_v29, %v10189_v58  ;;  %v4205_v25 = vmul.f32 %v8700_v29, %v10190_v30  ;;  %v10209_v48 = vld [vmem:[#allocation57_spill] sm:$0xff]  ;;  %v10210_v33 = vld [vmem:[#allocation64_spill] sm:$0xff]  ;;  %v10211_v58 = vld [vmem:[#allocation74_spill] sm:$0xff] }
 0xca4   :  { %v4209_v3 = vmul.f32 %v8700_v29, %v10191_v36  ;;  %v4213_v43 = vmul.f32 %v8700_v29, %v10192_v13  ;;  %v4217_v11 = vmul.f32 %v8700_v29, %v10193_v24  ;;  %v4221_v20 = vmul.f32 %v8700_v29, %v10194_v9  ;;  %v10212_v30 = vld [vmem:[#allocation82_spill] sm:$0xff]  ;;  %v10213_v36 = vld [vmem:[#allocation15_spill] sm:$0xff] }
 0xca5   :  { %v4537_v35 = vsel %vm2442_vm5, %v4193_v38, 0.0  ;;  %v8721_v2 = vmul.f32 %v8700_v29, %v10195_v53  ;;  %v8725_v10 = vmul.f32 %v8700_v29, %v10196_v42  ;;  %v8729_v46 = vmul.f32 %v8700_v29, %v10197_v16 }
 0xca6   :  { %v8733_v60 = vmul.f32 %v8700_v29, %v10198_v21  ;;  %v8737_v61 = vmul.f32 %v8700_v29, %v10199_v32  ;;  %v8741_v56 = vmul.f32 %v8700_v29, %v10200_v31  ;;  %v8745_v50 = vmul.f32 %v8700_v29, %v10202_v15 }
 0xca7   :  { %v8749_v62 = vmul.f32 %v8700_v29, %v10204_v14  ;;  %v4550_v7 = vsel %vm2442_vm5, %v4197_v27, 0.0  ;;  %v4563_v6 = vsel %vm2442_vm5, %v4201_v51, 0.0  ;;  %v4576_v8 = vsel %vm2442_vm5, %v4205_v25, 0.0 }
 0xca8   :  { %10201 = vst [vmem:[#allocation35_spill] sm:$0xff] %v8741_v56  ;;  %v4589_v41 = vsel %vm2442_vm5, %v4209_v3, 0.0  ;;  %v4602_v15 = vsel %vm2442_vm5, %v4213_v43, 0.0 }
 0xca9   :  { %10203 = vst [vmem:[#allocation19_spill] sm:$0xff] %v8745_v50 }
 0xcaa   :  { %10205 = vst [vmem:[#allocation106_spill] sm:$0xff] %v8749_v62  ;;  %v8751_v39 = vpop.f32.mrf.mxu2 }
 0xcab   :  { %v4194_v4 = vmul.f32 %v8751_v39, %v10206_v0  ;;  %v4198_v49 = vmul.f32 %v8751_v39, %v10207_v52  ;;  %v4202_v34 = vmul.f32 %v8751_v39, %v10208_v47  ;;  %v4206_v38 = vmul.f32 %v8751_v39, %v10209_v48 }
 0xcac   :  { %v4210_v27 = vmul.f32 %v8751_v39, %v10210_v33  ;;  %v4214_v51 = vmul.f32 %v8751_v39, %v10211_v58  ;;  %v4218_v25 = vmul.f32 %v8751_v39, %v10212_v30  ;;  %v4222_v3 = vmul.f32 %v8751_v39, %v10213_v36  ;;  %v10217_v33 = vld [vmem:[#allocation6_spill] sm:$0xff] }
 0xcad   :  { %v4538_v13 = vsel %vm2442_vm5, %v4194_v4, 0.0  ;;  %v4551_v24 = vsel %vm2442_vm5, %v4198_v49, 0.0  ;;  %v4564_v9 = vsel %vm2442_vm5, %v4202_v34, 0.0  ;;  %v4577_v53 = vsel %vm2442_vm5, %v4206_v38, 0.0 }
 0xcae   :  { %v4539_v42 = vadd.f32 %v4538_v13, %v4537_v35  ;;  %v4552_v16 = vadd.f32 %v4551_v24, %v4550_v7  ;;  %v4565_v21 = vadd.f32 %v4564_v9, %v4563_v6  ;;  %v4578_v32 = vadd.f32 %v4577_v53, %v4576_v8  ;;  %v10214_v7 = vld [vmem:[#allocation14_spill] sm:$0xff]  ;;  %v10215_v8 = vld [vmem:[#allocation8_spill] sm:$0xff]  ;;  %v10222_v24 = vld [vmem:[#allocation55_spill] sm:$0xff] }
 0xcaf   :  { %v4590_v31 = vsel %vm2442_vm5, %v4210_v27, 0.0  ;;  %v4603_v14 = vsel %vm2442_vm5, %v4214_v51, 0.0  ;;  %v4615_v0 = vsel %vm2442_vm5, %v4217_v11, 0.0  ;;  %v4616_v49 = vsel %vm2442_vm5, %v4218_v25, 0.0  ;;  %v10218_v27 = vld [vmem:[#allocation111_spill] sm:$0xff]  ;;  %v10219_v51 = vld [vmem:[#allocation44_spill] sm:$0xff] }
 0xcb0   :  { %v4591_v52 = vadd.f32 %v4590_v31, %v4589_v41  ;;  %v4604_v4 = vadd.f32 %v4603_v14, %v4602_v15  ;;  %v4628_v47 = vsel %vm2442_vm5, %v4221_v20, 0.0  ;;  %v4617_v34 = vadd.f32 %v4616_v49, %v4615_v0  ;;  %v10216_v41 = vld [vmem:[#allocation156_spill] sm:$0xff]  ;;  %v10220_v25 = vld [vmem:[#allocation161_spill] sm:$0xff]  ;;  %v10223_v53 = vld [vmem:[#allocation118_spill] sm:$0xff] }
 0xcb1   :  { %v4629_v35 = vsel %vm2442_vm5, %v4222_v3, 0.0  ;;  %v8786_v6 = vmul.f32 %v8751_v39, %v10214_v7  ;;  %v8790_v43 = vmul.f32 %v8751_v39, %v10215_v8  ;;  %v8796_v38 = vmul.f32 %v8751_v39, %v10216_v41  ;;  %v10221_v3 = vld [vmem:[#allocation43_spill] sm:$0xff]  ;;  %v10224_v15 = vld [vmem:[#allocation56_spill] sm:$0xff]  ;;  %v10225_v0 = vld [vmem:[#allocation85_spill] sm:$0xff] }
 0xcb2   :  { %v8792_v48 = vpop.f32.mrf.mxu2  ;;  %v4630_v11 = vadd.f32 %v4629_v35, %v4628_v47  ;;  %v8800_v20 = vmul.f32 %v8751_v39, %v10217_v33  ;;  %v8804_v58 = vmul.f32 %v8751_v39, %v10218_v27  ;;  %v10226_v47 = vld [vmem:[#allocation49_spill] sm:$0xff] }
 0xcb3   :  { %v4195_v30 = vmul.f32 %v8792_v48, %v10219_v51  ;;  %v4199_v36 = vmul.f32 %v8792_v48, %v10220_v25  ;;  %v4203_v13 = vmul.f32 %v8792_v48, %v10221_v3  ;;  %v4207_v9 = vmul.f32 %v8792_v48, %v10222_v24 }
 0xcb4   :  { %v4211_v31 = vmul.f32 %v8792_v48, %v10223_v53  ;;  %v4215_v14 = vmul.f32 %v8792_v48, %v10224_v15  ;;  %v4219_v49 = vmul.f32 %v8792_v48, %v10225_v0  ;;  %v4223_v35 = vmul.f32 %v8792_v48, %v10226_v47 }
 0xcb5   :  { %v4540_v7 = vsel %vm2442_vm5, %v4195_v30, 0.0  ;;  %v4553_v8 = vsel %vm2442_vm5, %v4199_v36, 0.0  ;;  %v4566_v41 = vsel %vm2442_vm5, %v4203_v13, 0.0  ;;  %v4579_v33 = vsel %vm2442_vm5, %v4207_v9, 0.0  ;;  %v10230_v9 = vld [vmem:[#allocation38_spill] sm:$0xff] }
 0xcb6   :  { %v4541_v27 = vadd.f32 %v4540_v7, %v4539_v42  ;;  %v4554_v51 = vadd.f32 %v4553_v8, %v4552_v16  ;;  %v4567_v25 = vadd.f32 %v4566_v41, %v4565_v21  ;;  %v4580_v3 = vadd.f32 %v4579_v33, %v4578_v32  ;;  %v10228_v42 = vld [vmem:[#allocation18_spill] sm:$0xff]  ;;  %v10229_v21 = vld [vmem:[#allocation160_spill] sm:$0xff]  ;;  %v10239_v8 = vld [vmem:[#allocation151_spill] sm:$0xff] }
 0xcb7   :  { %v4592_v24 = vsel %vm2442_vm5, %v4211_v31, 0.0  ;;  %v4605_v53 = vsel %vm2442_vm5, %v4215_v14, 0.0  ;;  %v4618_v15 = vsel %vm2442_vm5, %v4219_v49, 0.0  ;;  %v4631_v0 = vsel %vm2442_vm5, %v4223_v35, 0.0  ;;  %v10235_v14 = vld [vmem:[#allocation129_spill] sm:$0xff]  ;;  %v10237_v35 = vld [vmem:[#allocation67_spill] sm:$0xff] }
 0xcb8   :  { %v4593_v47 = vadd.f32 %v4592_v24, %v4591_v52  ;;  %v4606_v30 = vadd.f32 %v4605_v53, %v4604_v4  ;;  %v4619_v59 = vadd.f32 %v4618_v15, %v4617_v34  ;;  %v4632_v36 = vadd.f32 %v4631_v0, %v4630_v11  ;;  %v10231_v4 = vld [vmem:[#allocation123_spill] sm:$0xff]  ;;  %v10240_v33 = vld [vmem:[#allocation162_spill] sm:$0xff]  ;;  %v10241_v53 = vld [vmem:[#allocation52_spill] sm:$0xff] }
 0xcb9   :  { %v8832_v13 = vmul.f32 %v8792_v48, %v10227_v55  ;;  %v8836_v16 = vmul.f32 %v8792_v48, %v10228_v42  ;;  %v8840_v32 = vmul.f32 %v8792_v48, %v10229_v21  ;;  %v8844_v31 = vmul.f32 %v8792_v48, %v10230_v9  ;;  %v10233_v55 = vld [vmem:[#allocation31_spill] sm:$0xff]  ;;  %v10242_v0 = vld [vmem:[#allocation126_spill] sm:$0xff]  ;;  %v10243_v21 = vld [vmem:[#allocation132_spill] sm:$0xff] }
 0xcba   :  { %v8846_v52 = vpop.f32.mrf.mxu2  ;;  %v8850_v34 = vmul.f32 %v8792_v48, %v10231_v4  ;;  %v8854_v11 = vmul.f32 %v8751_v39, %v10233_v55  ;;  %v8858_v49 = vmul.f32 %v8792_v48, %v10235_v14  ;;  %v8862_v7 = vmul.f32 %v8751_v39, %v10237_v35  ;;  %v10244_v4 = vld [vmem:[#allocation105_spill] sm:$0xff]  ;;  %v10245_v14 = vld [vmem:[#allocation84_spill] sm:$0xff] }
 0xcbb   :  { %v4196_v41 = vmul.f32 %v8846_v52, %v10239_v8  ;;  %v4200_v24 = vmul.f32 %v8846_v52, %v10240_v33  ;;  %v4204_v15 = vmul.f32 %v8846_v52, %v10241_v53  ;;  %v4208_v42 = vmul.f32 %v8846_v52, %v10242_v0 }
 0xcbc   :  { %10232 = vst [vmem:[#allocation94_spill] sm:$0xff] %v8850_v34  ;;  %v4212_v9 = vmul.f32 %v8846_v52, %v10243_v21  ;;  %v4216_v55 = vmul.f32 %v8846_v52, %v10244_v4  ;;  %v4220_v35 = vmul.f32 %v8846_v52, %v10245_v14  ;;  %v4224_v8 = vmul.f32 %v8846_v52, %v10246_v18 }
 0xcbd   :  { %10234 = vst [vmem:[#allocation90_spill] sm:$0xff] %v8854_v11  ;;  %v4542_v33 = vsel %vm2442_vm5, %v4196_v41, 0.0  ;;  %v4555_v28 = vsel %vm2442_vm5, %v4200_v24, 0.0  ;;  %v4568_v53 = vsel %vm2442_vm5, %v4204_v15, 0.0  ;;  %v4581_v0 = vsel %vm2442_vm5, %v4208_v42, 0.0 }
 0xcbe   :  { %10236 = vst [vmem:[#allocation47_spill] sm:$0xff] %v8858_v49  ;;  %v4543_v19 = vadd.f32 %v4542_v33, %v4541_v27  ;;  %v4556_v45 = vadd.f32 %v4555_v28, %v4554_v51  ;;  %v4569_v21 = vadd.f32 %v4568_v53, %v4567_v25  ;;  %v4582_v37 = vadd.f32 %v4581_v0, %v4580_v3 }
 0xcbf   :  { %10238 = vst [vmem:[#allocation137_spill] sm:$0xff] %v8862_v7  ;;  %v4594_v4 = vsel %vm2442_vm5, %v4212_v9, 0.0  ;;  %v4607_v29 = vsel %vm2442_vm5, %v4216_v55, 0.0  ;;  %v4620_v14 = vsel %vm2442_vm5, %v4220_v35, 0.0  ;;  %v4633_v18 = vsel %vm2442_vm5, %v4224_v8, 0.0 }
 0xcc0   :  { %v4544_v26 = vrot.slane %v4543_v19, 4  ;;  %v4557_v41 = vrot.slane %v4556_v45, 4  ;;  %v4570_v62 = vrot.slane %v4569_v21, 4  ;;  %v4583_v24 = vrot.slane %v4582_v37, 4 }
 0xcc1   :  { %v4595_v7 = vadd.f32 %v4594_v4, %v4593_v47  ;;  %v4608_v15 = vadd.f32 %v4607_v29, %v4606_v30  ;;  %v4621_v50 = vadd.f32 %v4620_v14, %v4619_v59  ;;  %v4634_v42 = vadd.f32 %v4633_v18, %v4632_v36 }
 0xcc2   :  { %v4545_v27 = vadd.f32 %v4544_v26, %v4543_v19  ;;  %v4558_v28 = vadd.f32 %v4557_v41, %v4556_v45  ;;  %v4571_v51 = vadd.f32 %v4570_v62, %v4569_v21  ;;  %v4584_v25 = vadd.f32 %v4583_v24, %v4582_v37 }
 0xcc3   :  { %v4596_v3 = vrot.slane %v4595_v7, 4  ;;  %v4609_v9 = vrot.slane %v4608_v15, 4  ;;  %v4622_v33 = vrot.slane %v4621_v50, 4  ;;  %v4635_v55 = vrot.slane %v4634_v42, 4 }
 0xcc4   :  { %v4546_v53 = vrot.slane %v4545_v27, 2  ;;  %v4559_v35 = vrot.slane %v4558_v28, 2  ;;  %v4572_v0 = vrot.slane %v4571_v51, 2  ;;  %v4585_v8 = vrot.slane %v4584_v25, 2 }
 0xcc5   :  { %v4597_v49 = vadd.f32 %v4596_v3, %v4595_v7  ;;  %v4610_v11 = vadd.f32 %v4609_v9, %v4608_v15  ;;  %v4623_v56 = vadd.f32 %v4622_v33, %v4621_v50  ;;  %v4636_v34 = vadd.f32 %v4635_v55, %v4634_v42 }
 0xcc6   :  { %v4547_v47 = vadd.f32 %v4546_v53, %v4545_v27  ;;  %v4560_v29 = vadd.f32 %v4559_v35, %v4558_v28  ;;  %v4573_v59 = vadd.f32 %v4572_v0, %v4571_v51  ;;  %v4586_v30 = vadd.f32 %v4585_v8, %v4584_v25 }
 0xcc7   :  { %v4598_v26 = vrot.slane %v4597_v49, 2  ;;  %v4611_v45 = vrot.slane %v4610_v11, 2  ;;  %v4624_v19 = vrot.slane %v4623_v56, 2  ;;  %v4637_v37 = vrot.slane %v4636_v34, 2 }
 0xcc8   :  { %v4548_v62 = vrot.slane %v4547_v47, 1  ;;  %v4561_v36 = vrot.slane %v4560_v29, 1  ;;  %v4574_v21 = vrot.slane %v4573_v59, 1  ;;  %v4587_v4 = vrot.slane %v4586_v30, 1 }
 0xcc9   :  { %v4599_v14 = vadd.f32 %v4598_v26, %v4597_v49  ;;  %v4612_v18 = vadd.f32 %v4611_v45, %v4610_v11  ;;  %v4625_v41 = vadd.f32 %v4624_v19, %v4623_v56  ;;  %v4638_v24 = vadd.f32 %v4637_v37, %v4636_v34 }
 0xcca   :  { %v4549_v7 = vadd.f32 %v4548_v62, %v4547_v47  ;;  %v4562_v15 = vadd.f32 %v4561_v36, %v4560_v29  ;;  %v4575_v50 = vadd.f32 %v4574_v21, %v4573_v59  ;;  %v4588_v42 = vadd.f32 %v4587_v4, %v4586_v30 }
 0xccb   :  { %v4600_v27 = vrot.slane %v4599_v14, 1  ;;  %v4613_v28 = vrot.slane %v4612_v18, 1  ;;  %v4626_v51 = vrot.slane %v4625_v41, 1  ;;  %v4639_v25 = vrot.slane %v4638_v24, 1 }
 0xccc   :  { %v4721_v3 = vsel %vm2921_vm6, %v4562_v15, %v4549_v7  ;;  %v4164_v9 = vmul.f32 %v8846_v52, %v9979_v57  ;;  %v4168_v33 = vmul.f32 %v8846_v52, %v9980_v12  ;;  %v4172_v56 = vmul.f32 %v8846_v52, %v9981_v17 }
 0xccd   :  { %v4601_v34 = vadd.f32 %v4600_v27, %v4599_v14  ;;  %v4614_v11 = vadd.f32 %v4613_v28, %v4612_v18  ;;  %v4627_v49 = vadd.f32 %v4626_v51, %v4625_v41  ;;  %v4640_v55 = vadd.f32 %v4639_v25, %v4638_v24  ;;  %v10250_v25 = vld [vmem:[#allocation35_spill] sm:$0xff] }
 0xcce   :  { %v4722_v53 = vsel %vm2923_vm7, %v4575_v50, %v4721_v3  ;;  %v4176_v35 = vmul.f32 %v8846_v52, %v10102_v63  ;;  %v4180_v0 = vmul.f32 %v8846_v52, %v10103_v40  ;;  %v4184_v57 = vmul.f32 %v8846_v52, %v10104_v54 }
 0xccf   :  { %v4723_v12 = vsel %vm2925_vm8, %v4588_v42, %v4722_v53  ;;  %v8905_v17 = vmul.f32 %v8792_v48, %v10105_v44  ;;  %v8909_v8 = vmul.f32 %v8846_v52, %v10106_v1  ;;  %v8913_v47 = vmul.f32 %v8751_v39, %v10107_v22 }
 0xcd0   :  { %v4724_v63 = vsel %vm2927_vm9, %v4601_v34, %v4723_v12  ;;  %v8918_v40 = vmul.f32 %v8792_v48, %v10108_v23  ;;  %v8922_v54 = vmul.f32 %v8846_v52, %v10109_v5  ;;  %v4433_v44 = vsel %vm2442_vm5, %v8721_v2, 0.0 }
 0xcd1   :  { %v4725_v1 = vsel %vm2929_vm10, %v4614_v11, %v4724_v63  ;;  %v4434_v29 = vsel %vm2442_vm5, %v8786_v6, 0.0  ;;  %v4436_v22 = vsel %vm2442_vm5, %v8832_v13, 0.0  ;;  %v4438_v59 = vsel %vm2442_vm5, %v4164_v9, 0.0  ;;  %v10251_v9 = vld [vmem:[#allocation90_spill] sm:$0xff] }
 0xcd2   :  { %v4726_v23 = vsel %vm10247_vm2, %v4627_v49, %v4725_v1  ;;  %v4435_v30 = vadd.f32 %v4434_v29, %v4433_v44  ;;  %v4446_v5 = vsel %vm2442_vm5, %v8725_v10, 0.0  ;;  %v4447_v26 = vsel %vm2442_vm5, %v8790_v43, 0.0 }
 0xcd3   :  { %v4727_v2 = vsel %vm10248_vm11, %v4640_v55, %v4726_v23  ;;  %v4448_v45 = vadd.f32 %v4447_v26, %v4446_v5  ;;  %v4449_v6 = vsel %vm2442_vm5, %v8836_v16, 0.0  ;;  %v4451_v19 = vsel %vm2442_vm5, %v4168_v33, 0.0  ;;  %v10252_v33 = vld [vmem:[#allocation47_spill] sm:$0xff]  ;;  %v10254_v23 = vld [vmem:[#allocation137_spill] sm:$0xff] }
 0xcd4   :  { %5211 = vmatpush.xpose.msk.msra.mxu1 %vm2442_vm5, %v4727_v2  ;;  %v4437_v13 = vadd.f32 %v4436_v22, %v4435_v30  ;;  %v4459_v37 = vsel %vm2442_vm5, %v8729_v46, 0.0  ;;  %v4460_v10 = vsel %vm2442_vm5, %v8796_v38, 0.0  ;;  %v4462_v43 = vsel %vm2442_vm5, %v8840_v32, 0.0 }
 0xcd5   :  { %v4450_v62 = vadd.f32 %v4449_v6, %v4448_v45  ;;  %v4461_v36 = vadd.f32 %v4460_v10, %v4459_v37  ;;  %v4464_v21 = vsel %vm2442_vm5, %v4172_v56, 0.0  ;;  %v4472_v16 = vsel %vm2442_vm5, %v8733_v60, 0.0  ;;  %v10249_v60 = vld [vmem:[#allocation94_spill] sm:$0xff] }
 0xcd6   :  { %v4439_v4 = vadd.f32 %v4438_v59, %v4437_v13  ;;  %v4473_v14 = vsel %vm2442_vm5, %v8800_v20, 0.0  ;;  %v4475_v46 = vsel %vm2442_vm5, %v8844_v31, 0.0  ;;  %v4477_v18 = vsel %vm2442_vm5, %v4176_v35, 0.0 }
 0xcd7   :  { %v4452_v38 = vadd.f32 %v4451_v19, %v4450_v62  ;;  %v4463_v41 = vadd.f32 %v4462_v43, %v4461_v36  ;;  %v4474_v24 = vadd.f32 %v4473_v14, %v4472_v16  ;;  %v4485_v32 = vsel %vm2442_vm5, %v8737_v61, 0.0  ;;  %v10255_v14 = vld [vmem:[#allocation106_spill] sm:$0xff] }
 0xcd8   :  { %v4440_v7 = vrot.slane %v4439_v4, 4  ;;  %v4486_v15 = vsel %vm2442_vm5, %v8804_v58, 0.0  ;;  %v4488_v50 = vsel %vm2442_vm5, %v10249_v60, 0.0  ;;  %v4490_v20 = vsel %vm2442_vm5, %v4180_v0, 0.0  ;;  %v10253_v0 = vld [vmem:[#allocation19_spill] sm:$0xff] }
 0xcd9   :  { %v4453_v42 = vrot.slane %v4452_v38, 4  ;;  %v4465_v27 = vadd.f32 %v4464_v21, %v4463_v41  ;;  %v4476_v31 = vadd.f32 %v4475_v46, %v4474_v24  ;;  %v4487_v28 = vadd.f32 %v4486_v15, %v4485_v32 }
 0xcda   :  { %v4441_v51 = vadd.f32 %v4440_v7, %v4439_v4  ;;  %v4498_v3 = vsel %vm2442_vm5, %v10250_v25, 0.0  ;;  %v4499_v61 = vsel %vm2442_vm5, %v10251_v9, 0.0  ;;  %v4501_v56 = vsel %vm2442_vm5, %v10252_v33, 0.0  ;;  %v10256_v33 = vld [vmem:[#allocation98_spill] sm:$0xff] }
 0xcdb   :  { %v4454_v58 = vadd.f32 %v4453_v42, %v4452_v38  ;;  %v4466_v34 = vrot.slane %v4465_v27, 4  ;;  %v4478_v11 = vadd.f32 %v4477_v18, %v4476_v31  ;;  %v4489_v49 = vadd.f32 %v4488_v50, %v4487_v28 }
 0xcdc   :  { %v4442_v55 = vrot.slane %v4441_v51, 2  ;;  %v4500_v53 = vadd.f32 %v4499_v61, %v4498_v3  ;;  %v4503_v35 = vsel %vm2442_vm5, %v4184_v57, 0.0  ;;  %v4511_v12 = vsel %vm2442_vm5, %v10253_v0, 0.0 }
 0xcdd   :  { %v4455_v63 = vrot.slane %v4454_v58, 2  ;;  %v4467_v44 = vadd.f32 %v4466_v34, %v4465_v27  ;;  %v4479_v1 = vrot.slane %v4478_v11, 4  ;;  %v4491_v29 = vadd.f32 %v4490_v20, %v4489_v49 }
 0xcde   :  { %v4443_v22 = vadd.f32 %v4442_v55, %v4441_v51  ;;  %v4502_v59 = vadd.f32 %v4501_v56, %v4500_v53  ;;  %v4512_v30 = vsel %vm2442_vm5, %v10254_v23, 0.0  ;;  %v4514_v5 = vsel %vm2442_vm5, %v8905_v17, 0.0 }
 0xcdf   :  { %v4456_v26 = vadd.f32 %v4455_v63, %v4454_v58  ;;  %v4468_v2 = vrot.slane %v4467_v44, 2  ;;  %v4480_v45 = vadd.f32 %v4479_v1, %v4478_v11  ;;  %v4492_v6 = vrot.slane %v4491_v29, 4  ;;  %v10258_v58 = vld [vmem:[#allocation37_spill] sm:$0xff] }
 0xce0   :  { %v4444_v57 = vrot.slane %v4443_v22, 1  ;;  %v4504_v19 = vadd.f32 %v4503_v35, %v4502_v59  ;;  %v4513_v13 = vadd.f32 %v4512_v30, %v4511_v12  ;;  %v4516_v37 = vsel %vm2442_vm5, %v8909_v8, 0.0  ;;  %v10260_v12 = vld [vmem:[#allocation143_spill] sm:$0xff]  ;;  %v10262_v59 = vld [vmem:[#allocation30_spill] sm:$0xff] }
 0xce1   :  { %v4457_v10 = vrot.slane %v4456_v26, 1  ;;  %v4469_v43 = vadd.f32 %v4468_v2, %v4467_v44  ;;  %v4481_v62 = vrot.slane %v4480_v45, 2  ;;  %v4493_v36 = vadd.f32 %v4492_v6, %v4491_v29  ;;  %v10261_v44 = vld [vmem:[#allocation39_spill] sm:$0xff] }
 0xce2   :  { %v4445_v21 = vadd.f32 %v4444_v57, %v4443_v22  ;;  %v4505_v16 = vrot.slane %v4504_v19, 4  ;;  %v4515_v4 = vadd.f32 %v4514_v5, %v4513_v13  ;;  %v4524_v17 = vsel %vm2442_vm5, %v10255_v14, 0.0  ;;  %v10263_v30 = vld [vmem:[#allocation99_spill] sm:$0xff]  ;;  %v10265_v57 = vld [vmem:[#allocation73_spill] sm:$0xff]  ;;  %v10269_v14 = vld [vmem:[#allocation36_spill] sm:$0xff] }
 0xce3   :  { %v4458_v46 = vadd.f32 %v4457_v10, %v4456_v26  ;;  %v4470_v18 = vrot.slane %v4469_v43, 1  ;;  %v4482_v38 = vadd.f32 %v4481_v62, %v4480_v45  ;;  %v4494_v41 = vrot.slane %v4493_v36, 2  ;;  %v10264_v45 = vld [vmem:[#allocation116_spill] sm:$0xff] }
 0xce4   :  { %v4506_v24 = vadd.f32 %v4505_v16, %v4504_v19  ;;  %v4517_v32 = vadd.f32 %v4516_v37, %v4515_v4  ;;  %v4525_v7 = vsel %vm2442_vm5, %v8913_v47, 0.0  ;;  %v4527_v8 = vsel %vm2442_vm5, %v8918_v40, 0.0  ;;  %v10257_v40 = vld [vmem:[#allocation5_spill] sm:$0xff]  ;;  %v10266_v37 = vld [vmem:[#allocation3_spill] sm:$0xff] }
 0xce5   :  { %v4471_v15 = vadd.f32 %v4470_v18, %v4469_v43  ;;  %v4483_v60 = vrot.slane %v4482_v38, 1  ;;  %v4495_v50 = vadd.f32 %v4494_v41, %v4493_v36  ;;  %v4526_v20 = vadd.f32 %v4525_v7, %v4524_v17  ;;  %v10267_v43 = vld [vmem:[#allocation150_spill] sm:$0xff]  ;;  %v10268_v36 = vld [vmem:[#allocation153_spill] sm:$0xff] }
 0xce6   :  { %v4507_v42 = vrot.slane %v4506_v24, 2  ;;  %v4518_v27 = vrot.slane %v4517_v32, 4  ;;  %v4529_v31 = vsel %vm2442_vm5, %v8922_v54, 0.0  ;;  %v4714_v28 = vsel %vm2921_vm6, %v4458_v46, %v4445_v21  ;;  %v10259_v54 = vld [vmem:[#allocation117_spill] sm:$0xff]  ;;  %v10270_v46 = vld [vmem:[#allocation158_spill] sm:$0xff] }
 0xce7   :  { %v4484_v51 = vadd.f32 %v4483_v60, %v4482_v38  ;;  %v4496_v25 = vrot.slane %v4495_v50, 1  ;;  %v4528_v3 = vadd.f32 %v4527_v8, %v4526_v20  ;;  %v4715_v9 = vsel %vm2923_vm7, %v4471_v15, %v4714_v28  ;;  %v10271_v41 = vld [vmem:[#allocation29_spill] sm:$0xff]  ;;  %v10273_v8 = vld [vmem:[#allocation32_spill] sm:$0xff] }
 0xce8   :  { %v4508_v47 = vadd.f32 %v4507_v42, %v4506_v24  ;;  %v4519_v61 = vadd.f32 %v4518_v27, %v4517_v32  ;;  %v4129_v56 = vmul.f32 %v10257_v40, %v10256_v33  ;;  %v4130_v34 = vmul.f32 %v8751_v39, %v10258_v58  ;;  %v10272_v32 = vld [vmem:[#allocation163_spill] sm:$0xff] }
 0xce9   :  { %v4497_v11 = vadd.f32 %v4496_v25, %v4495_v50  ;;  %v4530_v49 = vadd.f32 %v4529_v31, %v4528_v3  ;;  %v4716_v55 = vsel %vm2925_vm8, %v4484_v51, %v4715_v9  ;;  %v4131_v53 = vmul.f32 %v8792_v48, %v10259_v54  ;;  %v10274_v50 = vld [vmem:[#allocation20_spill] sm:$0xff]  ;;  %v10275_v42 = vld [vmem:[#allocation71_spill] sm:$0xff]  ;;  %v10276_v31 = vld [vmem:[#allocation34_spill] sm:$0xff] }
 0xcea   :  { %v4509_v35 = vrot.slane %v4508_v47, 1  ;;  %v4520_v0 = vrot.slane %v4519_v61, 2  ;;  %v4132_v63 = vmul.f32 %v8846_v52, %v10260_v12  ;;  %v4133_v1 = vmul.f32 %v10257_v40, %v10261_v44  ;;  %v10277_v25 = vld [vmem:[#allocation54_spill] sm:$0xff]  ;;  %v10284_v44 = vld [vmem:[#allocation59_spill] sm:$0xff] }
 0xceb   :  { %v4531_v29 = vrot.slane %v4530_v49, 4  ;;  %v4717_v22 = vsel %vm2927_vm9, %v4497_v11, %v4716_v55  ;;  %v4134_v23 = vmul.f32 %v8751_v39, %v10262_v59  ;;  %v4135_v5 = vmul.f32 %v8792_v48, %v10263_v30  ;;  %v10278_v9 = vld [vmem:[#allocation46_spill] sm:$0xff]  ;;  %v10281_v11 = vld [vmem:[#allocation21_spill] sm:$0xff] }
 0xcec   :  { %v4510_v26 = vadd.f32 %v4509_v35, %v4508_v47  ;;  %v4521_v2 = vadd.f32 %v4520_v0, %v4519_v61  ;;  %v4136_v6 = vmul.f32 %v8846_v52, %v10264_v45  ;;  %v4137_v19 = vmul.f32 %v10257_v40, %v10265_v57  ;;  %v10279_v61 = vld [vmem:[#allocation78_spill] sm:$0xff]  ;;  %v10282_v55 = vld [vmem:[#allocation97_spill] sm:$0xff] }
 0xced   :  { %v4532_v13 = vadd.f32 %v4531_v29, %v4530_v49  ;;  %v4138_v10 = vmul.f32 %v8751_v39, %v10266_v37  ;;  %v4139_v62 = vmul.f32 %v8792_v48, %v10267_v43  ;;  %v4140_v21 = vmul.f32 %v8846_v52, %v10268_v36  ;;  %v10283_v35 = vld [vmem:[#allocation9_spill] sm:$0xff]  ;;  %v10288_v57 = vld [vmem:[#allocation86_spill] sm:$0xff]  ;;  %v10289_v37 = vld [vmem:[#allocation96_spill] sm:$0xff] }
 0xcee   :  { %v4522_v16 = vrot.slane %v4521_v2, 1  ;;  %v4718_v4 = vsel %vm2929_vm10, %v4510_v26, %v4717_v22  ;;  %v4141_v17 = vmul.f32 %v10257_v40, %v10269_v14  ;;  %v4142_v18 = vmul.f32 %v8751_v39, %v10270_v46  ;;  %v10285_v22 = vld [vmem:[#allocation102_spill] sm:$0xff]  ;;  %v10286_v30 = vld [vmem:[#allocation77_spill] sm:$0xff] }
 0xcef   :  { %v4533_v38 = vrot.slane %v4532_v13, 2  ;;  %v4143_v24 = vmul.f32 %v8792_v48, %v10271_v41  ;;  %v4144_v7 = vmul.f32 %v8846_v52, %v10272_v32  ;;  %v4145_v15 = vmul.f32 %v10257_v40, %v10273_v8 }
 0xcf0   :  { %v4523_v60 = vadd.f32 %v4522_v16, %v4521_v2  ;;  %v4146_v20 = vmul.f32 %v8751_v39, %v10274_v50  ;;  %v4147_v27 = vmul.f32 %v8792_v48, %v10275_v42  ;;  %v4148_v28 = vmul.f32 %v8846_v52, %v10276_v31  ;;  %v10287_v2 = vld [vmem:[#allocation25_spill] sm:$0xff] }
 0xcf1   :  { %v4534_v51 = vadd.f32 %v4533_v38, %v4532_v13  ;;  %v4149_v3 = vmul.f32 %v10257_v40, %v10277_v25  ;;  %v4150_v47 = vmul.f32 %v8751_v39, %v10278_v9  ;;  %v4151_v33 = vmul.f32 %v8792_v48, %v10279_v61 }
 0xcf2   :  { %v4719_v58 = vsel %vm10280_vm12, %v4523_v60, %v4718_v4  ;;  %v4152_v49 = vmul.f32 %v8846_v52, %v10281_v11  ;;  %v4153_v54 = vmul.f32 %v10257_v40, %v10282_v55  ;;  %v9044_v0 = vmul.f32 %v8751_v39, %v10283_v35 }
 0xcf3   :  { %v4535_v12 = vrot.slane %v4534_v51, 1  ;;  %v9048_v29 = vmul.f32 %v8792_v48, %v10284_v44  ;;  %v9052_v59 = vmul.f32 %v8846_v52, %v10285_v22  ;;  %v9056_v26 = vmul.f32 %v10257_v40, %v10286_v30 }
 0xcf4   :  { %v9060_v45 = vmul.f32 %v8751_v39, %v10287_v2  ;;  %v9064_v13 = vmul.f32 %v8792_v48, %v10288_v57  ;;  %v9068_v43 = vmul.f32 %v8846_v52, %v10289_v37  ;;  %v4329_v36 = vsel %vm2442_vm5, %v4129_v56, 0.0 }
 0xcf5   :  { %v4536_v16 = vadd.f32 %v4535_v12, %v4534_v51  ;;  %v4330_v4 = vsel %vm2442_vm5, %v4130_v34, 0.0  ;;  %v4332_v14 = vsel %vm2442_vm5, %v4131_v53, 0.0  ;;  %v4334_v46 = vsel %vm2442_vm5, %v4132_v63, 0.0 }
 0xcf6   :  { %v4331_v38 = vadd.f32 %v4330_v4, %v4329_v36  ;;  %v4342_v41 = vsel %vm2442_vm5, %v4133_v1, 0.0  ;;  %v4343_v32 = vsel %vm2442_vm5, %v4134_v23, 0.0  ;;  %v4345_v8 = vsel %vm2442_vm5, %v4135_v5, 0.0 }
 0xcf7   :  { %v4720_v60 = vsel %vm10290_vm13, %v4536_v16, %v4719_v58  ;;  %v4344_v50 = vadd.f32 %v4343_v32, %v4342_v41  ;;  %v4347_v42 = vsel %vm2442_vm5, %v4136_v6, 0.0  ;;  %v4355_v56 = vsel %vm2442_vm5, %v4137_v19, 0.0 }
 0xcf8   :  { %5212 = vmatpush.xpose.msk.msra.mxu1 %vm2442_vm5, %v4720_v60  ;;  %v4333_v34 = vadd.f32 %v4332_v14, %v4331_v38  ;;  %v4356_v53 = vsel %vm2442_vm5, %v4138_v10, 0.0  ;;  %v4358_v63 = vsel %vm2442_vm5, %v4139_v62, 0.0  ;;  %v4360_v1 = vsel %vm2442_vm5, %v4140_v21, 0.0 }
 0xcf9   :  { %v4346_v31 = vadd.f32 %v4345_v8, %v4344_v50  ;;  %v4357_v23 = vadd.f32 %v4356_v53, %v4355_v56  ;;  %v4368_v5 = vsel %vm2442_vm5, %v4141_v17, 0.0  ;;  %v4369_v51 = vsel %vm2442_vm5, %v4142_v18, 0.0 }
 0xcfa   :  { %v4335_v25 = vadd.f32 %v4334_v46, %v4333_v34  ;;  %v4370_v9 = vadd.f32 %v4369_v51, %v4368_v5  ;;  %v4371_v6 = vsel %vm2442_vm5, %v4143_v24, 0.0  ;;  %v4373_v19 = vsel %vm2442_vm5, %v4144_v7, 0.0 }
 0xcfb   :  { %v4348_v61 = vadd.f32 %v4347_v42, %v4346_v31  ;;  %v4359_v58 = vadd.f32 %v4358_v63, %v4357_v23  ;;  %v4381_v10 = vsel %vm2442_vm5, %v4145_v15, 0.0  ;;  %v4382_v62 = vsel %vm2442_vm5, %v4146_v20, 0.0 }
 0xcfc   :  { %v4336_v11 = vrot.slane %v4335_v25, 4  ;;  %v4372_v21 = vadd.f32 %v4371_v6, %v4370_v9  ;;  %v4383_v55 = vadd.f32 %v4382_v62, %v4381_v10  ;;  %v4384_v35 = vsel %vm2442_vm5, %v4147_v27, 0.0 }
 0xcfd   :  { %v4349_v17 = vrot.slane %v4348_v61, 4  ;;  %v4361_v12 = vadd.f32 %v4360_v1, %v4359_v58  ;;  %v4386_v18 = vsel %vm2442_vm5, %v4148_v28, 0.0  ;;  %v4394_v44 = vsel %vm2442_vm5, %v4149_v3, 0.0 }
 0xcfe   :  { %v4337_v24 = vadd.f32 %v4336_v11, %v4335_v25  ;;  %v4374_v22 = vadd.f32 %v4373_v19, %v4372_v21  ;;  %v4385_v7 = vadd.f32 %v4384_v35, %v4383_v55  ;;  %v4395_v30 = vsel %vm2442_vm5, %v4150_v47, 0.0 }
 0xcff   :  { %v4350_v2 = vadd.f32 %v4349_v17, %v4348_v61  ;;  %v4362_v15 = vrot.slane %v4361_v12, 4  ;;  %v4396_v57 = vadd.f32 %v4395_v30, %v4394_v44  ;;  %v4397_v20 = vsel %vm2442_vm5, %v4151_v33, 0.0 }
 0xd00   :  { %v4338_v37 = vrot.slane %v4337_v24, 2  ;;  %v4375_v36 = vrot.slane %v4374_v22, 4  ;;  %v4387_v16 = vadd.f32 %v4386_v18, %v4385_v7  ;;  %v4399_v27 = vsel %vm2442_vm5, %v4152_v49, 0.0  ;;  %v10292_v7 = vld [vmem:[#allocation152_spill] sm:$0xff] }
 0xd01   :  { %v4351_v4 = vrot.slane %v4350_v2, 2  ;;  %v4363_v14 = vadd.f32 %v4362_v15, %v4361_v12  ;;  %v4398_v28 = vadd.f32 %v4397_v20, %v4396_v57  ;;  %v4407_v3 = vsel %vm2442_vm5, %v4153_v54, 0.0  ;;  %v10293_v20 = vld [vmem:[#allocation48_spill] sm:$0xff] }
 0xd02   :  { %v4339_v46 = vadd.f32 %v4338_v37, %v4337_v24  ;;  %v4376_v38 = vadd.f32 %v4375_v36, %v4374_v22  ;;  %v4388_v41 = vrot.slane %v4387_v16, 4  ;;  %v4408_v47 = vsel %vm2442_vm5, %v9044_v0, 0.0  ;;  %v10291_v24 = vld [vmem:[#allocation60_spill] sm:$0xff]  ;;  %v10294_v36 = vld [vmem:[#allocation142_spill] sm:$0xff] }
 0xd03   :  { %v4352_v32 = vadd.f32 %v4351_v4, %v4350_v2  ;;  %v4364_v8 = vrot.slane %v4363_v14, 2  ;;  %v4400_v60 = vadd.f32 %v4399_v27, %v4398_v28  ;;  %v4409_v33 = vadd.f32 %v4408_v47, %v4407_v3  ;;  %v10295_v27 = vld [vmem:[#allocation63_spill] sm:$0xff] }
 0xd04   :  { %v4340_v50 = vrot.slane %v4339_v46, 1  ;;  %v4377_v42 = vrot.slane %v4376_v38, 2  ;;  %v4389_v56 = vadd.f32 %v4388_v41, %v4387_v16  ;;  %v4410_v49 = vsel %vm2442_vm5, %v9048_v29, 0.0  ;;  %v10297_v41 = vld [vmem:[#allocation166_spill] sm:$0xff] }
 0xd05   :  { %v4353_v34 = vrot.slane %v4352_v32, 1  ;;  %v4365_v53 = vadd.f32 %v4364_v8, %v4363_v14  ;;  %v4401_v63 = vrot.slane %v4400_v60, 4  ;;  %v4411_v54 = vadd.f32 %v4410_v49, %v4409_v33 }
 0xd06   :  { %v4341_v1 = vadd.f32 %v4340_v50, %v4339_v46  ;;  %v4378_v31 = vadd.f32 %v4377_v42, %v4376_v38  ;;  %v4390_v23 = vrot.slane %v4389_v56, 2  ;;  %v4412_v0 = vsel %vm2442_vm5, %v9052_v59, 0.0  ;;  %v10296_v46 = vld [vmem:[#allocation134_spill] sm:$0xff]  ;;  %v10300_v50 = vld [vmem:[#allocation69_spill] sm:$0xff] }
 0xd07   :  { %v4354_v5 = vadd.f32 %v4353_v34, %v4352_v32  ;;  %v4366_v51 = vrot.slane %v4365_v53, 1  ;;  %v4402_v25 = vadd.f32 %v4401_v63, %v4400_v60  ;;  %v4413_v9 = vadd.f32 %v4412_v0, %v4411_v54  ;;  %v10298_v32 = vld [vmem:[#allocation125_spill] sm:$0xff]  ;;  %v10299_v60 = vld [vmem:[#allocation128_spill] sm:$0xff]  ;;  %v10302_v54 = vld [vmem:[#allocation139_spill] sm:$0xff] }
 0xd08   :  { %v4379_v6 = vrot.slane %v4378_v31, 1  ;;  %v4391_v19 = vadd.f32 %v4390_v23, %v4389_v56  ;;  %v4420_v61 = vsel %vm2442_vm5, %v9056_v26, 0.0  ;;  %v4421_v29 = vsel %vm2442_vm5, %v9060_v45, 0.0  ;;  %v10304_v0 = vld [vmem:[#allocation135_spill] sm:$0xff] }
 0xd09   :  { %v4367_v58 = vadd.f32 %v4366_v51, %v4365_v53  ;;  %v4403_v10 = vrot.slane %v4402_v25, 2  ;;  %v4414_v62 = vrot.slane %v4413_v9, 4  ;;  %v4422_v11 = vadd.f32 %v4421_v29, %v4420_v61  ;;  %v10301_v53 = vld [vmem:[#allocation12_spill] sm:$0xff]  ;;  %v10307_v29 = vld [vmem:[#allocation65_spill] sm:$0xff] }
 0xd0a   :  { %v4380_v21 = vadd.f32 %v4379_v6, %v4378_v31  ;;  %v4392_v55 = vrot.slane %v4391_v19, 1  ;;  %v4423_v59 = vsel %vm2442_vm5, %v9064_v13, 0.0  ;;  %v4425_v35 = vsel %vm2442_vm5, %v9068_v43, 0.0  ;;  %v10303_v31 = vld [vmem:[#allocation72_spill] sm:$0xff] }
 0xd0b   :  { %v4404_v17 = vadd.f32 %v4403_v10, %v4402_v25  ;;  %v4415_v12 = vadd.f32 %v4414_v62, %v4413_v9  ;;  %v4424_v18 = vadd.f32 %v4423_v59, %v4422_v11  ;;  %v4707_v26 = vsel %vm2921_vm6, %v4354_v5, %v4341_v1  ;;  %v10305_v51 = vld [vmem:[#allocation40_spill] sm:$0xff]  ;;  %v10308_v10 = vld [vmem:[#allocation138_spill] sm:$0xff]  ;;  %v10309_v11 = vld [vmem:[#allocation11_spill] sm:$0xff] }
 0xd0c   :  { %v4393_v44 = vadd.f32 %v4392_v55, %v4391_v19  ;;  %v4708_v45 = vsel %vm2923_vm7, %v4367_v58, %v4707_v26  ;;  %v4097_v22 = vmul.f32 %v10257_v40, %v10291_v24  ;;  %v4098_v30 = vmul.f32 %v8751_v39, %v10292_v7  ;;  %v10306_v19 = vld [vmem:[#allocation89_spill] sm:$0xff]  ;;  %v10310_v55 = vld [vmem:[#allocation127_spill] sm:$0xff] }
 0xd0d   :  { %v4405_v2 = vrot.slane %v4404_v17, 1  ;;  %v4416_v15 = vrot.slane %v4415_v12, 2  ;;  %v4426_v13 = vadd.f32 %v4425_v35, %v4424_v18  ;;  %v4709_v57 = vsel %vm2925_vm8, %v4380_v21, %v4708_v45  ;;  %v10311_v35 = vld [vmem:[#allocation146_spill] sm:$0xff]  ;;  %v10313_v26 = vld [vmem:[#allocation141_spill] sm:$0xff]  ;;  %v10315_v7 = vld [vmem:[#allocation51_spill] sm:$0xff] }
 0xd0e   :  { %v4710_v43 = vsel %vm2927_vm9, %v4393_v44, %v4709_v57  ;;  %v4099_v37 = vmul.f32 %v8792_v48, %v10293_v20  ;;  %v4100_v16 = vmul.f32 %v8846_v52, %v10294_v36  ;;  %v4101_v4 = vmul.f32 %v10257_v40, %v10295_v27  ;;  %v10314_v45 = vld [vmem:[#allocation149_spill] sm:$0xff]  ;;  %v10317_v57 = vld [vmem:[#allocation88_spill] sm:$0xff]  ;;  %v10318_v20 = vld [vmem:[#allocation115_spill] sm:$0xff] }
 0xd0f   :  { %v4406_v14 = vadd.f32 %v4405_v2, %v4404_v17  ;;  %v4417_v28 = vadd.f32 %v4416_v15, %v4415_v12  ;;  %v4427_v3 = vrot.slane %v4426_v13, 4  ;;  %v4102_v38 = vmul.f32 %v8751_v39, %v10296_v46  ;;  %v10316_v15 = vld [vmem:[#allocation93_spill] sm:$0xff] }
 0xd10   :  { %v4103_v47 = vmul.f32 %v8792_v48, %v10297_v41  ;;  %v4104_v8 = vmul.f32 %v8846_v52, %v10298_v32  ;;  %v4105_v33 = vmul.f32 %v10257_v40, %v10299_v60  ;;  %v4106_v42 = vmul.f32 %v8751_v39, %v10300_v50  ;;  %v10321_v41 = vld [vmem:[#allocation100_spill] sm:$0xff] }
 0xd11   :  { %v4418_v56 = vrot.slane %v4417_v28, 1  ;;  %v4428_v49 = vadd.f32 %v4427_v3, %v4426_v13  ;;  %v4711_v34 = vsel %vm2929_vm10, %v4406_v14, %v4710_v43  ;;  %v4107_v63 = vmul.f32 %v8792_v48, %v10301_v53  ;;  %v10319_v14 = vld [vmem:[#allocation17_spill] sm:$0xff]  ;;  %v10320_v3 = vld [vmem:[#allocation87_spill] sm:$0xff]  ;;  %v10322_v60 = vld [vmem:[#allocation4_spill] sm:$0xff] }
 0xd12   :  { %v4108_v1 = vmul.f32 %v8846_v52, %v10302_v54  ;;  %v4109_v23 = vmul.f32 %v10257_v40, %v10303_v31  ;;  %v4110_v5 = vmul.f32 %v8751_v39, %v10304_v0  ;;  %v4111_v25 = vmul.f32 %v8792_v48, %v10305_v51 }
 0xd13   :  { %v4419_v9 = vadd.f32 %v4418_v56, %v4417_v28  ;;  %v4429_v6 = vrot.slane %v4428_v49, 2  ;;  %v4112_v61 = vmul.f32 %v8846_v52, %v10306_v19  ;;  %v4113_v58 = vmul.f32 %v10257_v40, %v10307_v29  ;;  %v10323_v56 = vld [vmem:[#allocation24_spill] sm:$0xff] }
 0xd14   :  { %v4114_v62 = vmul.f32 %v8751_v39, %v10308_v10  ;;  %v4115_v21 = vmul.f32 %v8792_v48, %v10309_v11  ;;  %v4116_v59 = vmul.f32 %v8846_v52, %v10310_v55  ;;  %v4117_v17 = vmul.f32 %v10257_v40, %v10311_v35 }
 0xd15   :  { %v4430_v12 = vadd.f32 %v4429_v6, %v4428_v49  ;;  %v4712_v18 = vsel %vm10312_vm14, %v4419_v9, %v4711_v34  ;;  %v4118_v44 = vmul.f32 %v8751_v39, %v10313_v26  ;;  %v4119_v24 = vmul.f32 %v8792_v48, %v10314_v45 }
 0xd16   :  { %v4120_v2 = vmul.f32 %v8846_v52, %v10315_v7  ;;  %v4121_v13 = vmul.f32 %v10257_v40, %v10316_v15  ;;  %v9169_v43 = vmul.f32 %v8751_v39, %v10317_v57  ;;  %v9173_v36 = vmul.f32 %v8792_v48, %v10318_v20 }
 0xd17   :  { %v4431_v27 = vrot.slane %v4430_v12, 1  ;;  %v9177_v28 = vmul.f32 %v8846_v52, %v10319_v14  ;;  %v9181_v46 = vmul.f32 %v10257_v40, %v10320_v3  ;;  %v9185_v32 = vmul.f32 %v8751_v39, %v10321_v41 }
 0xd18   :  { %v9189_v50 = vmul.f32 %v8792_v48, %v10322_v60  ;;  %v9193_v49 = vmul.f32 %v8846_v52, %v10323_v56  ;;  %v4225_v34 = vsel %vm2442_vm5, %v4097_v22, 0.0  ;;  %v4226_v53 = vsel %vm2442_vm5, %v4098_v30, 0.0 }
 0xd19   :  { %v4432_v54 = vadd.f32 %v4431_v27, %v4430_v12  ;;  %v4227_v31 = vadd.f32 %v4226_v53, %v4225_v34  ;;  %v4228_v40 = vsel %vm2442_vm5, %v4099_v37, 0.0  ;;  %v4230_v0 = vsel %vm2442_vm5, %v4100_v16, 0.0 }
 0xd1a   :  { %v4238_v39 = vsel %vm2442_vm5, %v4101_v4, 0.0  ;;  %v4239_v51 = vsel %vm2442_vm5, %v4102_v38, 0.0  ;;  %v4241_v48 = vsel %vm2442_vm5, %v4103_v47, 0.0  ;;  %v4243_v9 = vsel %vm2442_vm5, %v4104_v8, 0.0 }
 0xd1b   :  { %v4713_v52 = vsel %vm10324_vm15, %v4432_v54, %v4712_v18  ;;  %v4229_v6 = vadd.f32 %v4228_v40, %v4227_v31  ;;  %v4240_v22 = vadd.f32 %v4239_v51, %v4238_v39  ;;  %v4251_v30 = vsel %vm2442_vm5, %v4105_v33, 0.0 }
 0xd1c   :  { %5213 = vmatpush.xpose.msk.msra.mxu1 %vm2442_vm5, %v4713_v52  ;;  %v4252_v37 = vsel %vm2442_vm5, %v4106_v42, 0.0  ;;  %v4254_v16 = vsel %vm2442_vm5, %v4107_v63, 0.0  ;;  %v4256_v4 = vsel %vm2442_vm5, %v4108_v1, 0.0  ;;  %v4264_v38 = vsel %vm2442_vm5, %v4109_v23, 0.0 }
 0xd1d   :  { %v4231_v19 = vadd.f32 %v4230_v0, %v4229_v6  ;;  %v4242_v47 = vadd.f32 %v4241_v48, %v4240_v22  ;;  %v4253_v29 = vadd.f32 %v4252_v37, %v4251_v30  ;;  %v4265_v8 = vsel %vm2442_vm5, %v4110_v5, 0.0 }
 0xd1e   :  { %v4266_v10 = vadd.f32 %v4265_v8, %v4264_v38  ;;  %v4267_v11 = vsel %vm2442_vm5, %v4111_v25, 0.0  ;;  %v4269_v33 = vsel %vm2442_vm5, %v4112_v61, 0.0  ;;  %v4277_v55 = vsel %vm2442_vm5, %v4113_v58, 0.0 }
 0xd1f   :  { %v4232_v35 = vrot.slane %v4231_v19, 4  ;;  %v4244_v42 = vadd.f32 %v4243_v9, %v4242_v47  ;;  %v4255_v12 = vadd.f32 %v4254_v16, %v4253_v29  ;;  %v4278_v63 = vsel %vm2442_vm5, %v4114_v62, 0.0 }
 0xd20   :  { %v4268_v1 = vadd.f32 %v4267_v11, %v4266_v10  ;;  %v4279_v18 = vadd.f32 %v4278_v63, %v4277_v55  ;;  %v4280_v23 = vsel %vm2442_vm5, %v4115_v21, 0.0  ;;  %v4282_v26 = vsel %vm2442_vm5, %v4116_v59, 0.0 }
 0xd21   :  { %v4233_v45 = vadd.f32 %v4232_v35, %v4231_v19  ;;  %v4245_v5 = vrot.slane %v4244_v42, 4  ;;  %v4257_v7 = vadd.f32 %v4256_v4, %v4255_v12  ;;  %v4290_v25 = vsel %vm2442_vm5, %v4117_v17, 0.0 }
 0xd22   :  { %v4270_v15 = vadd.f32 %v4269_v33, %v4268_v1  ;;  %v4281_v61 = vadd.f32 %v4280_v23, %v4279_v18  ;;  %v4291_v58 = vsel %vm2442_vm5, %v4118_v44, 0.0  ;;  %v4293_v57 = vsel %vm2442_vm5, %v4119_v24, 0.0 }
 0xd23   :  { %v4234_v20 = vrot.slane %v4233_v45, 2  ;;  %v4246_v27 = vadd.f32 %v4245_v5, %v4244_v42  ;;  %v4258_v62 = vrot.slane %v4257_v7, 4  ;;  %v4292_v14 = vadd.f32 %v4291_v58, %v4290_v25 }
 0xd24   :  { %v4271_v3 = vrot.slane %v4270_v15, 4  ;;  %v4283_v41 = vadd.f32 %v4282_v26, %v4281_v61  ;;  %v4295_v21 = vsel %vm2442_vm5, %v4120_v2, 0.0  ;;  %v4303_v59 = vsel %vm2442_vm5, %v4121_v13, 0.0 }
 0xd25   :  { %v4235_v60 = vadd.f32 %v4234_v20, %v4233_v45  ;;  %v4247_v56 = vrot.slane %v4246_v27, 2  ;;  %v4259_v34 = vadd.f32 %v4258_v62, %v4257_v7  ;;  %v4294_v17 = vadd.f32 %v4293_v57, %v4292_v14 }
 0xd26   :  { %v4272_v53 = vadd.f32 %v4271_v3, %v4270_v15  ;;  %v4284_v54 = vrot.slane %v4283_v41, 4  ;;  %v4304_v44 = vsel %vm2442_vm5, %v9169_v43, 0.0  ;;  %v4306_v24 = vsel %vm2442_vm5, %v9173_v36, 0.0 }
 0xd27   :  { %v4236_v31 = vrot.slane %v4235_v60, 1  ;;  %v4248_v40 = vadd.f32 %v4247_v56, %v4246_v27  ;;  %v4260_v0 = vrot.slane %v4259_v34, 2  ;;  %v4296_v39 = vadd.f32 %v4295_v21, %v4294_v17  ;;  %v5332_v56 = vld [vmem:[%s9332_s13 + $0x10] sm:$0xff]  ;;  %v5334_v17 = vld [vmem:[%s9332_s13] sm:$0xff] }
 0xd28   :  { %v4273_v51 = vrot.slane %v4272_v53, 2  ;;  %v4285_v2 = vadd.f32 %v4284_v54, %v4283_v41  ;;  %v4305_v48 = vadd.f32 %v4304_v44, %v4303_v59  ;;  %v4308_v13 = vsel %vm2442_vm5, %v9177_v28, 0.0  ;;  %v5330_v59 = vld [vmem:[%s9332_s13 + $0x18] sm:$0xff]  ;;  %v4662_v54 = vpop.f32.mrf.mxu3 }
 0xd29   :  { %v4237_v9 = vadd.f32 %v4236_v31, %v4235_v60  ;;  %v4249_v52 = vrot.slane %v4248_v40, 1  ;;  %v4261_v6 = vadd.f32 %v4260_v0, %v4259_v34  ;;  %v4297_v22 = vrot.slane %v4296_v39, 4  ;;  %v5331_v60 = vld [vmem:[%s9330_s3] sm:$0xff]  ;;  %v5333_v34 = vld [vmem:[%s9332_s13 + $0x8] sm:$0xff] }
 0xd2a   :  { %v4274_v30 = vadd.f32 %v4273_v51, %v4272_v53  ;;  %v4286_v37 = vrot.slane %v4285_v2, 2  ;;  %v4307_v43 = vadd.f32 %v4306_v24, %v4305_v48  ;;  %v4316_v36 = vsel %vm2442_vm5, %v9181_v46, 0.0  ;;  %v5335_v53 = vld [vmem:[%s9330_s3 + $0x8] sm:$0xf]  ;;  %v5336_v31 = vld [vmem:[%s9329_s12] ss:$0 sm:$0xff] }
 0xd2b   :  { %v4250_v16 = vadd.f32 %v4249_v52, %v4248_v40  ;;  %v4262_v4 = vrot.slane %v4261_v6, 1  ;;  %v4298_v38 = vadd.f32 %v4297_v22, %v4296_v39  ;;  %v4317_v19 = vsel %vm2442_vm5, %v9185_v32, 0.0  ;;  %v5337_v22 = vld [vmem:[%s9331_s15] ss:$0 sm:$0xff] }
 0xd2c   :  { %v4275_v47 = vrot.slane %v4274_v30, 1  ;;  %v4287_v29 = vadd.f32 %v4286_v37, %v4285_v2  ;;  %v4309_v8 = vadd.f32 %v4308_v13, %v4307_v43  ;;  %v4318_v28 = vadd.f32 %v4317_v19, %v4316_v36 }
 0xd2d   :  { %v4263_v10 = vadd.f32 %v4262_v4, %v4261_v6  ;;  %v4299_v11 = vrot.slane %v4298_v38, 2  ;;  %v4319_v33 = vsel %vm2442_vm5, %v9189_v50, 0.0  ;;  %v4321_v55 = vsel %vm2442_vm5, %v9193_v49, 0.0 }
 0xd2e   :  { %v4310_v35 = vrot.slane %v4309_v8, 4  ;;  %v4320_v46 = vadd.f32 %v4319_v33, %v4318_v28  ;;  %v4288_v42 = vrot.slane %v4287_v29, 1  ;;  %v4700_v63 = vsel %vm2921_vm6, %v4250_v16, %v4237_v9  ;;  %vm10325_vm6 = vmmov %vm10247_vm2 }
 0xd2f   :  { %v4300_v12 = vadd.f32 %v4299_v11, %v4298_v38  ;;  %v4276_v1 = vadd.f32 %v4275_v47, %v4274_v30  ;;  %v4701_v23 = vsel %vm2923_vm7, %v4263_v10, %v4700_v63  ;;  %vm10326_vm7 = vmmov %vm10248_vm11  ;;  %vm10329_vm12 = vcmask 1043456  }
 0xd30   :  { %v4311_v32 = vadd.f32 %v4310_v35, %v4309_v8  ;;  %v4322_v18 = vadd.f32 %v4321_v55, %v4320_v46  ;;  %v4289_v50 = vadd.f32 %v4288_v42, %v4287_v29  ;;  %v4665_v39 = vpop.f32.mrf.mxu3  ;;  %vm4931_vm14 = vcmask 91136  }
 0xd31   :  { %v4301_v26 = vrot.slane %v4300_v12, 1  ;;  %v4702_v7 = vsel %vm2925_vm8, %v4276_v1, %v4701_v23 }
 0xd32   :  { %v4312_v45 = vrot.slane %v4311_v32, 2  ;;  %v4323_v5 = vrot.slane %v4322_v18, 4  ;;  %v4703_v49 = vsel %vm2927_vm9, %v4289_v50, %v4702_v7 }
 0xd33   :  { %v4302_v61 = vadd.f32 %v4301_v26, %v4300_v12 }
 0xd34   :  { %v4313_v25 = vadd.f32 %v4312_v45, %v4311_v32  ;;  %v4324_v15 = vadd.f32 %v4323_v5, %v4322_v18 }
 0xd35   :  { %v4704_v27 = vsel %vm2929_vm10, %v4302_v61, %v4703_v49 }
 0xd36   :  { %v4314_v58 = vrot.slane %v4313_v25, 1  ;;  %v4325_v57 = vrot.slane %v4324_v15, 2 }
 0xd38   :  { %v4326_v20 = vadd.f32 %v4325_v57, %v4324_v15  ;;  %v4315_v62 = vadd.f32 %v4314_v58, %v4313_v25  ;;  %v4780_v9 = vpop.f32.mrf.mxu3 }
 0xd3a   :  { %v4327_v14 = vrot.slane %v4326_v20, 1  ;;  %v4705_v3 = vsel %vm10325_vm6, %v4315_v62, %v4704_v27 }
 0xd3c   :  { %v4328_v41 = vadd.f32 %v4327_v14, %v4326_v20 }
 0xd3e   :  { %v4706_v21 = vsel %vm10326_vm7, %v4328_v41, %v4705_v3 }
 0xd3f   :  { %5214 = vmatpush.xpose.msk.msra.mxu1 %vm2442_vm5, %v4706_v21 }
 0xd40   :  { %v4783_v37 = vpop.f32.mrf.mxu3 }
 0xd42   :  { %5215 = vmatmul.msk.f32.vlgmr.msra.gmra.mxu1 %vm2442_vm5, %v5331_v60 }
 0xd43   :  { %4804 = vmatpush.msrb.mxu1 %v5330_v59  ;;  %v10327_v59 = vld [vmem:[#allocation120_spill] sm:$0xff] }
 0xd45   :  { %4805 = vmatpush.msrb.mxu1 %v5332_v56 }
 0xd47   :  { %4806 = vmatpush.msrb.mxu1 %v5333_v34 }
 0xd49   :  { %4807 = vmatpush.msrb.mxu1 %v5334_v17 }
 0xd4a   :  { %5216 = vmatmul.msk.f32.gmra.mxu1 %vm2442_vm5, %v5335_v53 }
 0xdbf   :  { %v4753_v44 = vpop.f32.mrf.mxu1 }
 0xdc0   :  { %v4754_v24 = vadd.f32 %v4753_v44, %v4662_v54  ;;  %v10328_v54 = vld [vmem:[#allocation124_spill] sm:$0xff] }
 0xdc2   :  { %v4759_v40 = vadd.f32 %v5336_v31, %v4754_v24 }
 0xdc4   :  { %v4761_v0 = vmax.f32 %v4759_v40, 0.0 }
 0xdc6   :  { %5219 = vmatmul.msk.f32.vlgmr.msrb.gmra.mxu1 %vm2859_vm3, %v4761_v0 }
 0xdc7   :  { %v4756_v51 = vpop.f32.mrf.mxu1 }
 0xdc8   :  { %v4757_v2 = vadd.f32 %v4756_v51, %v4665_v39  ;;  %v4895_v39 = vld [vmem:[%s9333_s16] sm:$0x1] }
 0xdc9   :  { %v4893_v51 = vld [vmem:[%s9334_s4] sm:$0x3] }
 0xdca   :  { %v4760_v48 = vadd.f32 %v5336_v31, %v4757_v2  ;;  %vm4894_vm13 = vcmp.gt.f32.partialorder %v4893_v51, 0.5 }
 0xdcc   :  { %v4762_v13 = vmax.f32 %v4760_v48, 0.0 }
 0xdce   :  { %5220 = vmatmul.msk.f32.gmra.mxu1 %vm2859_vm3, %v4762_v13 }
 0xe43   :  { %v4809_v52 = vpop.f32.mrf.mxu1 }
 0xe44   :  { %v4810_v6 = vadd.f32 %v4809_v52, %v4780_v9 }
 0xe46   :  { %v4815_v30 = vadd.f32 %v5337_v22, %v4810_v6 }
 0xe48   :  { %4857 = vrot.lane.b32.xlu0 %v4815_v30, %s5340_s24  ;;  %v5221_v38 = vmul.f32 -1.442695, %v4815_v30 }
 0xe4b   :  { %v4812_v43 = vpop.f32.mrf.mxu1 }
 0xe4c   :  { %v4813_v36 = vadd.f32 %v4812_v43, %v4783_v37 }
 0xe4e   :  { %v4816_v16 = vadd.f32 %v5337_v22, %v4813_v36  ;;  %v4987_v36 = vld [vmem:[%s9335_s17 + $0x18] sm:$0xff] }
 0xe50   :  { %4859 = vrot.lane.b32.xlu1 %v4816_v16, %s5340_s24  ;;  %v5222_v4 = vmul.f32 -1.442695, %v4816_v16 }
 0xe52   :  { %5298 = vpow2.f32 %v5222_v4  ;;  %v4985_v4 = vld [vmem:[%s9335_s17 + $0x8] sm:$0xff] }
 0xe53   :  { %5300 = vpow2.f32 %v5221_v38 }
 0xe58   :  { %v5299_v19 = vpop.eup %5298 }
 0xe59   :  { %v4824_v47 = vadd.f32 1.0, %v5299_v19  ;;  %v5301_v29 = vpop.eup %5300 }
 0xe5a   :  { %v4823_v8 = vadd.f32 1.0, %v5301_v29 }
 0xe5b   :  { %5302 = vrcp.f32 %v4824_v47  ;;  %v4851_v12 = vand.u32 2147483648, %v4824_v47  ;;  %vm4845_vm8 = vweird.f32 %v4824_v47  ;;  %v4849_v63 = vand.u32 2147483647, %v4824_v47 }
 0xe5c   :  { %5304 = vrcp.f32 %v4823_v8  ;;  %v4836_v7 = vand.u32 2147483648, %v4823_v8  ;;  %vm4830_vm1 = vweird.f32 %v4823_v8  ;;  %v4834_v50 = vand.u32 2147483647, %v4823_v8 }
 0xe5d   :  { %v4852_v18 = vor.u32 1.1754944e-38, %v4851_v12  ;;  %vm4850_vm10 = vcmp.eq.f32.partialorder %v4849_v63, 8.507059e+37  ;;  %v4984_v12 = vld [vmem:[%s9335_s17] sm:$0xff] }
 0xe5e   :  { %v4837_v49 = vor.u32 1.1754944e-38, %v4836_v7  ;;  %vm4835_vm11 = vcmp.eq.f32.partialorder %v4834_v50, 8.507059e+37 }
 0xe61   :  { %v5303_v28 = vpop.eup %5302 }
 0xe62   :  { %v4841_v10 = vmul.f32 %v5303_v28, %v4824_v47  ;;  %v5305_v33 = vpop.eup %5304  ;;  %vm4846_vm5 = vweird.f32 %v5303_v28 }
 0xe63   :  { %v4826_v55 = vmul.f32 %v5305_v33, %v4823_v8  ;;  %vm4847_vm9 = vmor %vm4845_vm8, %vm4846_vm5  ;;  %vm4831_vm0 = vweird.f32 %v5305_v33 }
 0xe64   :  { %v4842_v11 = vsub.f32 1.0, %v4841_v10  ;;  %vm4832_vm2 = vmor %vm4830_vm1, %vm4831_vm0 }
 0xe65   :  { %v4827_v46 = vsub.f32 1.0, %v4826_v55 }
 0xe66   :  { %v4843_v35 = vmul.f32 %v5303_v28, %v4842_v11 }
 0xe67   :  { %v4828_v1 = vmul.f32 %v5305_v33, %v4827_v46 }
 0xe68   :  { %v4844_v42 = vadd.f32 %v5303_v28, %v4843_v35 }
 0xe69   :  { %v4829_v45 = vadd.f32 %v5305_v33, %v4828_v1  ;;  %v26_v1 = vstv %s9338_s20 }
 0xe6a   :  { %v4848_v32 = vsel %vm4847_vm9, %v5303_v28, %v4844_v42  ;;  %27 = vst [vmem:[#allocation2] sm:$0x1] %v26_v1 }
 0xe6b   :  { %v4853_v26 = vsel %vm4850_vm10, %v4852_v18, %v4848_v32  ;;  %v4833_v25 = vsel %vm4832_vm2, %v5305_v33, %v4829_v45  ;;  %v5271_v32 = vld [vmem:[%s9336_s18] ss:$0 sm:$0xff] }
 0xe6c   :  { %v4838_v61 = vsel %vm4835_vm11, %v4837_v49, %v4833_v25  ;;  %v4878_v41 = vsub.f32 1.0, %v4853_v26  ;;  %v4890_v60 = vmul.f32 %v4853_v26, %v10327_v59 }
 0xe6d   :  { %v4877_v17 = vsub.f32 1.0, %v4838_v61  ;;  %v4889_v44 = vmul.f32 %v4838_v61, %v10328_v54 }
 0xe71   :  { %v5273_v50 = vld [vmem:[#allocation2] ss:$0 sm:$0xff] }
 0xeba   :  { %v4858_v15 = vpop.permute.xlu0 %4857 }
 0xebb   :  { %v4863_v58 = vmul.f32 %v4858_v15, %v4838_v61 }
 0xec2   :  { %v4860_v23 = vpop.permute.xlu1 %4859 }
 0xec3   :  { %v4864_v5 = vmul.f32 %v4860_v23, %v4853_v26  ;;  %v5272_v26 = vld [vmem:[%s9337_s19] ss:$0 sm:$0xff] }
 0xec5   :  { %4869 = vrot.lane.b32.xlu1 %v4864_v5, %s5341_s10 }
 0xecd   :  { %4867 = vrot.lane.b32.xlu1 %v4863_v58, %s5341_s10 }
 0xf37   :  { %v4870_v57 = vpop.permute.xlu1 %4869 }
 0xf38   :  { %v4874_v20 = vadd.f32 %v4870_v57, %v4816_v16  ;;  %v4986_v16 = vld [vmem:[%s9335_s17 + $0x10] sm:$0xff] }
 0xf3a   :  { %5306 = vtanh.f32 %v4874_v20 }
 0xf3f   :  { %v4868_v27 = vpop.permute.xlu1 %4867 }
 0xf40   :  { %v5307_v62 = vpop.eup %5306  ;;  %v4873_v14 = vadd.f32 %v4868_v27, %v4815_v30 }
 0xf41   :  { %4883 = vrot.lane.b32.xlu1 %v5307_v62, %s5342_s9 }
 0xf42   :  { %5308 = vtanh.f32 %v4873_v14 }
 0xf48   :  { %v5309_v3 = vpop.eup %5308 }
 0xf49   :  { %4881 = vrot.lane.b32.xlu1 %v5309_v3, %s5342_s9 }
 0xfb3   :  { %v4884_v21 = vpop.permute.xlu1 %4883 }
 0xfb4   :  { %v4888_v56 = vmul.f32 %v4884_v21, %v4878_v41 }
 0xfb6   :  { %v4892_v34 = vadd.f32 %v4890_v60, %v4888_v56 }
 0xfb8   :  { %4900 = vrot.lane.b32.xlu2 %v4892_v34, %s5342_s9 }
 0xfbb   :  { %v4882_v53 = vpop.permute.xlu1 %4881 }
 0xfbc   :  { %v4887_v24 = vmul.f32 %v4882_v53, %v4877_v17 }
 0xfbe   :  { %v4891_v31 = vadd.f32 %v4889_v44, %v4887_v24 }
 0xfc0   :  { %4898 = vrot.lane.b32.xlu1 %v4891_v31, %s5342_s9 }
0x1012   :  { %v4901_v40 = vpop.permute.xlu2 %4900 }
0x1013   :  { %5223 = vmatpush.xpose.msk.msra.mxu2 %vm2859_vm3, %v4901_v40  ;;  %5226 = vmatpush.msk.msrb.mxu3 %vm10329_vm12, %v4901_v40 }
0x1032   :  { %v4899_v0 = vpop.permute.xlu1 %4898 }
0x1033   :  { %5224 = vmatpush.xpose.msk.msra.mxu2 %vm2859_vm3, %v4899_v0  ;;  %4979 = vmatpush.msrb.mxu3 %v4899_v0 }
0x1036   :  { %5225 = vmatmul.msk.f32.vlgmr.msra.gmra.mxu2 %vm2859_vm3, %v4895_v39 }
0x1037   :  { %5007 = vmatpush.msrb.mxu2 %v4987_v36 }
0x1039   :  { %5008 = vmatpush.msrb.mxu2 %v4986_v16 }
0x103b   :  { %5009 = vmatpush.msrb.mxu2 %v4985_v4 }
0x103d   :  { %5010 = vmatpush.msrb.mxu2 %v4984_v12 }
0x10b9   :  { %v4926_v2 = vpop.f32.mrf.mxu2 }
0x10ba   :  { %v4929_v48 = vperm.slane %v4926_v2, 0 }
0x10bc   :  { %v4930_v13 = vsel %vm4894_vm13, %v4929_v48, -1e+30 }
0x10bd   :  { %v4932_v9 = vsel %vm4931_vm14, %v4930_v13, -inf }
0x10be   :  { %4933 = vmax.xlane.f32.xlu1 %v4932_v9 }
0x1131   :  { %v4934_v52 = vpop.xlane.xlu1 %4933 }
0x1132   :  { %v4935_v6 = vsub.f32 %v4930_v13, %v4934_v52 }
0x1134   :  { %v4936_v22 = vmul.f32 1.442695, %v4935_v6 }
0x1136   :  { %5310 = vpow2.f32 %v4936_v22 }
0x113c   :  { %v5311_v30 = vpop.eup %5310 }
0x113d   :  { %v4938_v37 = vsel %vm4894_vm13, %v5311_v30, 0.0 }
0x113e   :  { %v4939_v43 = vsel %vm4931_vm14, %v4938_v37, 0.0 }
0x113f   :  { %4940 = vadd.xlane.f32.xlu1 %v4939_v43 }
0x11b2   :  { %v4941_v38 = vpop.xlane.xlu1 %4940 }
0x11b3   :  { %v4942_v19 = vmax.f32 %v4941_v38, 1e-30 }
0x11b5   :  { %5312 = vrcp.f32 %v4942_v19  ;;  %v4954_v28 = vand.u32 2147483648, %v4942_v19  ;;  %v4952_v11 = vand.u32 2147483647, %v4942_v19  ;;  %vm4948_vm6 = vweird.f32 %v4942_v19 }
0x11b7   :  { %v4955_v55 = vor.u32 1.1754944e-38, %v4954_v28  ;;  %vm4953_vm5 = vcmp.eq.f32.partialorder %v4952_v11, 8.507059e+37 }
0x11bb   :  { %v5313_v47 = vpop.eup %5312 }
0x11bc   :  { %v4944_v29 = vmul.f32 %v5313_v47, %v4942_v19  ;;  %vm4949_vm15 = vweird.f32 %v5313_v47 }
0x11bd   :  { %vm4950_vm7 = vmor %vm4948_vm6, %vm4949_vm15 }
0x11be   :  { %v4945_v8 = vsub.f32 1.0, %v4944_v29 }
0x11c0   :  { %v4946_v10 = vmul.f32 %v5313_v47, %v4945_v8 }
0x11c2   :  { %v4947_v33 = vadd.f32 %v5313_v47, %v4946_v10 }
0x11c4   :  { %v4951_v35 = vsel %vm4950_vm7, %v5313_v47, %v4947_v33 }
0x11c5   :  { %v4956_v46 = vsel %vm4953_vm5, %v4955_v55, %v4951_v35 }
0x11c6   :  { %v4957_v42 = vmul.f32 %v4956_v46, %v4938_v37 }
0x11c8   :  { %5227 = vmatmul.msk.f32.vlgmr.msrb.gmra.mxu3 %vm2140_vm4, %v4957_v42  ;;  %vm5021_vm4 = vcmask 254976  }
0x124b   :  { %v4981_v63 = vpop.f32.mrf.mxu3 }
0x124c   :  { %5228 = vmatmul.msk.f32.vlgmr.msrb.gmra.mxu2 %vm2859_vm3, %v4981_v63  ;;  %vm5030_vm3 = vcmask 1024  }
0x12cf   :  { %v5012_v18 = vpop.f32.mrf.mxu2 }
0x12d0   :  { %v5013_v23 = vadd.f32 %v5271_v32, %v5012_v18 }
0x12d2   :  { %v5015_v45 = vmax.f32 %v5013_v23, 0.0 }
0x12d4   :  { %v5020_v5 = vmul.f32 %v5272_v26, %v5015_v45 }
0x12d6   :  { %v5022_v7 = vsel %vm5021_vm4, %v5020_v5, 0.0 }
0x12d7   :  { %5023 = vadd.xlane.f32.xlu1 %v5022_v7 }
0x134a   :  { %v5024_v25 = vpop.xlane.xlu1 %5023 }
0x134b   :  { %v5029_v15 = vadd.f32 %v5273_v50, %v5024_v25 }
0x134d   :  { %5031 = vst.msk [vmem:[%s9339_s21] sm:$0x3] %vm5030_vm3, %v5029_v15 }

</bundles_post_ra>
